<compile_context>
chip_gen: v7x
topology: tpu7x:2x2x1
jax: 0.10.0
libtpu: 0.0.40
codegen_flags: <defaults>
</compile_context>

<pallas_src>
import numpy as np
import jax
import jax.numpy as jnp
from jax.experimental import pallas as pl
from jax.experimental.pallas import tpu as pltpu

# ----------------------------- network geometry -----------------------------
C0, HIN, WIN = 3, 32, 32            # input (NCHW): (B, 3, 32, 32)
K = 5                               # conv kernel size
C1, HC1, WC1 = 6, 28, 28            # conv1 output
HP1 = 26                            # pool1 output height
SPAN1 = C1 * WC1 - 2                # 166 = pool1 lane width (channel stride WC1)
C2, HC2, WC2 = 16, 22, 22           # conv2 output
HP2, WP2 = 20, 20                   # pool2 output
SPAN2 = C2 * WC2 - 2                # 350 = pool2 lane width (channel stride WC2)
FC1_IN, FC1_OUT = C2 * HP2 * WP2, 120
FC1_PAD = 128                       # fc1 output padded to one full lane group
FC2_OUT = 100
FC2_PAD = 128                       # lane-dense logits / output


def _round_up(v, m):
    return ((v + m - 1) // m) * m


# ------------------------------ fused kernel --------------------------------
def _cifar100_fused_kernel(xr_ref, b1c_ref, m1_ref, m2_ref, b2c_ref,
                           w1r_ref, b1fc_ref, w2fc_ref, b2fc_ref, out_ref):
    """One grid step == TB samples.  Activations are kept in an (H, TB, C*W) layout so
    every row shift is a contiguous, sublane-aligned slab.  Fully unrolled."""
    TB = xr_ref.shape[1]
    x = xr_ref[...]                                               # (32, TB, 96) bf16

    # ---- conv1: K row-shifted MXU matmuls, output rows ordered (h, b) ----
    acc1 = jnp.broadcast_to(b1c_ref[...], (HC1 * TB, C1 * WC1))   # bias-initialized f32
    for kh in range(K):
        lhs = x[kh:kh + HC1].reshape(HC1 * TB, C0 * WIN)          # contiguous slab
        acc1 = acc1 + jnp.dot(lhs, m1_ref[kh],
                              preferred_element_type=jnp.float32)
    a1 = acc1.reshape(HC1, TB, C1 * WC1)

    # ---- maxpool 3x3 / stride 1 + ReLU (separable: lanes, then rows) ----
    mw1 = jnp.maximum(jnp.maximum(a1[:, :, 0:SPAN1], a1[:, :, 1:SPAN1 + 1]),
                      a1[:, :, 2:SPAN1 + 2])                      # (28, TB, 166)
    p1 = jnp.maximum(jnp.maximum(mw1[0:HP1], mw1[1:HP1 + 1]), mw1[2:HP1 + 2])
    p1 = jnp.maximum(p1, 0.0).astype(jnp.bfloat16)                # (26, TB, 166)

    # ---- conv2: weights consume the pool1 lane-dense layout directly ----
    acc2 = jnp.broadcast_to(b2c_ref[...], (HC2 * TB, C2 * WC2))
    for kh in range(K):
        lhs = p1[kh:kh + HC2].reshape(HC2 * TB, SPAN1)
        acc2 = acc2 + jnp.dot(lhs, m2_ref[kh],
                              preferred_element_type=jnp.float32)
    a2 = acc2.reshape(HC2, TB, C2 * WC2)

    # ---- maxpool 3x3 / stride 1 + ReLU ----
    mw2 = jnp.maximum(jnp.maximum(a2[:, :, 0:SPAN2], a2[:, :, 1:SPAN2 + 1]),
                      a2[:, :, 2:SPAN2 + 2])                      # (22, TB, 350)
    p2 = jnp.maximum(jnp.maximum(mw2[0:HP2], mw2[1:HP2 + 1]), mw2[2:HP2 + 2])
    p2 = jnp.maximum(p2, 0.0).astype(jnp.bfloat16)                # (20, TB, 350)

    # ---- fc1: HP2 matmuls of (TB, 350) x (350, 128), f32 accumulation ----
    z1 = jnp.broadcast_to(b1fc_ref[...], (TB, FC1_PAD))
    for h in range(HP2):
        z1 = z1 + jnp.dot(p2[h], w1r_ref[h],
                          preferred_element_type=jnp.float32)
    z1 = jnp.maximum(z1, 0.0)

    # ---- fc2 + exact, numerically-stable softmax over the 100 valid lanes ----
    z2 = jnp.dot(z1, w2fc_ref[...], preferred_element_type=jnp.float32) + b2fc_ref[...]
    lane = jax.lax.broadcasted_iota(jnp.int32, (TB, FC2_PAD), 1)
    z2 = jnp.where(lane < FC2_OUT, z2, -1e30)                     # mask padded lanes
    z2 = z2 - jnp.max(z2, axis=1, keepdims=True)
    e = jnp.exp(z2)
    out_ref[...] = e / jnp.sum(e, axis=1, keepdims=True)


# ------------------------- one-time weight packing ---------------------------
def _band_conv_matrix(w, s_in, w_out, n_in):
    """Banded per-kh matrices so a KxK 'valid' conv == K accumulated row matmuls.

    w: (Cout, Cin, K, K) torch layout.  Returns (K, n_in, Cout*w_out) with
        M[kh, ci*s_in + ow + kw, co*w_out + ow] = w[co, ci, kh, kw].
    Input lanes beyond w_out+K-1 inside each channel block get zero weight rows, so the
    pooled lane-dense activations (channel stride s_in, with 2 'garbage' lanes/channel)
    can be consumed directly without any repacking.
    """
    w = np.asarray(w, np.float32)
    cout, cin, k, _ = w.shape
    assert w_out + k - 1 <= s_in
    m = np.zeros((k, cin * s_in, cout * w_out), np.float32)
    rows = np.arange(cin) * s_in
    cols = np.arange(cout) * w_out
    for kh in range(k):
        for kw in range(k):
            wt = w[:, :, kh, kw].T                    # (Cin, Cout)
            for ow in range(w_out):
                m[kh][np.ix_(rows + ow + kw, cols + ow)] = wt
    return m[:, :n_in, :]


def prepare_params(params):
    """Pack torch-layout params into kernel operands (host side, once)."""
    m1 = _band_conv_matrix(params["conv1_w"], WIN, WC1, C0 * WIN)    # (5,  96, 168)
    m2 = _band_conv_matrix(params["conv2_w"], WC1, WC2, SPAN1)       # (5, 166, 352)
    bias1 = np.repeat(np.asarray(params["conv1_b"], np.float32), WC1)[None, :]
    bias2 = np.repeat(np.asarray(params["conv2_b"], np.float32), WC2)[None, :]

    # fc1: torch .view(-1, 6400) orders features (c, h, w); re-pack to per-h matrices
    # whose rows sit at lane offset c*WC2 + w, so the kernel consumes the pool2
    # lane-dense output directly (the garbage lanes c*WC2+{20,21} get zero weights).
    fw = np.asarray(params["fc1_w"], np.float32).reshape(C2, HP2, WP2, FC1_OUT)
    w1r = np.zeros((HP2, SPAN2, FC1_PAD), np.float32)
    for c in range(C2):
        w1r[:, c * WC2:c * WC2 + WP2, :FC1_OUT] = fw[c]
    b1fc = np.zeros((1, FC1_PAD), np.float32)
    b1fc[0, :FC1_OUT] = np.asarray(params["fc1_b"], np.float32)
    w2fc = np.zeros((FC1_PAD, FC2_PAD), np.float32)
    w2fc[:FC1_OUT, :FC2_OUT] = np.asarray(params["fc2_w"], np.float32)
    b2fc = np.zeros((1, FC2_PAD), np.float32)
    b2fc[0, :FC2_OUT] = np.asarray(params["fc2_b"], np.float32)

    bf16 = jnp.bfloat16
    return {
        "m1": jnp.asarray(m1, bf16), "bias1": jnp.asarray(bias1),
        "m2": jnp.asarray(m2, bf16), "bias2": jnp.asarray(bias2),
        "w1r": jnp.asarray(w1r, bf16), "b1fc": jnp.asarray(b1fc),
        "w2fc": jnp.asarray(w2fc), "b2fc": jnp.asarray(b2fc),
    }


# ------------------------------- forward -------------------------------------
def cifar100net_forward(packed, x, tb=128):
    """x: (B, 3, 32, 32) float32 -> (B, 100) softmax probabilities."""
    B = x.shape[0]
    # batch tile: multiple of 8 sublanes (or the full padded batch if B is small).
    TB = min(_round_up(B, 8), _round_up(tb, 8))
    Bp = _round_up(B, TB)
    if Bp != B:
        x = jnp.pad(x, ((0, Bp - B), (0, 0), (0, 0), (0, 0)))
    # h-major / batch-minor lane-dense layout: xr[h, b, c*WIN + w] = x[b, c, h, w]
    xr = jnp.transpose(x.astype(jnp.bfloat16), (2, 0, 1, 3)).reshape(HIN, Bp, C0 * WIN)

    grid_spec = pltpu.PrefetchScalarGridSpec(
        num_scalar_prefetch=0,
        grid=(Bp // TB,),
        in_specs=[
            pl.BlockSpec((HIN, TB, C0 * WIN), lambda b: (0, b, 0)),      # input tile
            pl.BlockSpec((1, C1 * WC1), lambda b: (0, 0)),               # conv1 bias
            pl.BlockSpec((K, C0 * WIN, C1 * WC1), lambda b: (0, 0, 0)),  # conv1 bands
            pl.BlockSpec((K, SPAN1, C2 * WC2), lambda b: (0, 0, 0)),     # conv2 bands
            pl.BlockSpec((1, C2 * WC2), lambda b: (0, 0)),               # conv2 bias
            pl.BlockSpec((HP2, SPAN2, FC1_PAD), lambda b: (0, 0, 0)),    # fc1 (per-row)
            pl.BlockSpec((1, FC1_PAD), lambda b: (0, 0)),                # fc1 bias
            pl.BlockSpec((FC1_PAD, FC2_PAD), lambda b: (0, 0)),          # fc2 weight
            pl.BlockSpec((1, FC2_PAD), lambda b: (0, 0)),                # fc2 bias
        ],
        out_specs=pl.BlockSpec((TB, FC2_PAD), lambda b: (b, 0)),         # lane-dense out
    )

    out = pl.pallas_call(
        _cifar100_fused_kernel,
        out_shape=jax.ShapeDtypeStruct((Bp, FC2_PAD), jnp.float32),
        grid_spec=grid_spec,
        compiler_params=pltpu.CompilerParams(
            # batch-tile axis is independent per step: v7x's 2 TensorCores split it.
            dimension_semantics=("parallel",),
            # sized for v7x's 64 MiB VMEM; TB=128 peaks at ~20 MiB of live tiles.
            vmem_limit_bytes=48 * 1024 * 1024,
        ),
    )(xr, packed["bias1"], packed["m1"], packed["m2"], packed["bias2"],
      packed["w1r"], packed["b1fc"], packed["w2fc"], packed["b2fc"])
    return out[:B, :FC2_OUT]


# -------------------------- init + pure-JAX reference ------------------------
def init_params(key):
    ks = jax.random.split(key, 8)

    def u(k, shape, fan_in):
        bound = 1.0 / float(fan_in) ** 0.5
        return jax.random.uniform(k, shape, jnp.float32, -bound, bound)

    return {
        "conv1_w": u(ks[0], (C1, C0, K, K), C0 * K * K),   # torch (Cout,Cin,K,K)
        "conv1_b": u(ks[1], (C1,), C0 * K * K),
        "conv2_w": u(ks[2], (C2, C1, K, K), C1 * K * K),
        "conv2_b": u(ks[3], (C2,), C1 * K * K),
        "fc1_w": u(ks[4], (FC1_IN, FC1_OUT), FC1_IN),      # stored (in, out)
        "fc1_b": u(ks[5], (FC1_OUT,), FC1_IN),
        "fc2_w": u(ks[6], (FC1_OUT, FC2_OUT), FC1_OUT),
        "fc2_b": u(ks[7], (FC2_OUT,), FC1_OUT),
    }


def reference_forward(params, x):
    """Pure-JAX f32 reference of the torch forward (sanity check)."""
    def conv(x, w, b):
        y = jax.lax.conv_general_dilated(
            x, w, window_strides=(1, 1), padding="VALID",
            dimension_numbers=("NCHW", "OIHW", "NCHW"))
        return y + b[None, :, None, None]

    def pool3_relu(x):
        oh, ow = x.shape[2] - 2, x.shape[3] - 2
        m = x[:, :, :oh, :ow]
        for dh in range(3):
            for dw in range(3):
                m = jnp.maximum(m, x[:, :, dh:dh + oh, dw:dw + ow])
        return jnp.maximum(m, 0.0)

    x = pool3_relu(conv(x, params["conv1_w"], params["conv1_b"]))
    x = pool3_relu(conv(x, params["conv2_w"], params["conv2_b"]))
    x = x.reshape(x.shape[0], -1)                          # == torch .view(-1, 6400)
    x = jnp.maximum(x @ params["fc1_w"] + params["fc1_b"], 0.0)
    z = x @ params["fc2_w"] + params["fc2_b"]
    return jax.nn.softmax(z, axis=1)


if __name__ == "__main__":
    key = jax.random.PRNGKey(0)
    pkey, xkey = jax.random.split(key)
    params = init_params(pkey)
    packed = prepare_params(params)          # one-time host-side weight packing
    # fc1 expects 16*20*20 features -> input spatial size must be 32x32
    B = 4
    x = jax.random.normal(xkey, (B, C0, HIN, WIN), dtype=jnp.float32)

    fwd = jax.jit(cifar100net_forward)
    out = jax.block_until_ready(fwd(packed, x))

    assert out.shape == (B, FC2_OUT), out.shape
    row_sums = jnp.sum(out, axis=1)
    assert bool(jnp.all(jnp.abs(row_sums - 1.0) < 1e-3)), row_sums

    ref = reference_forward(params, x)
    max_diff = float(jnp.max(jnp.abs(out - ref)))
    assert max_diff < 1e-2, max_diff         # bf16 conv/fc1 MXU operand tolerance
    print("KERNEL_OK")
</pallas_src>

<mosaic_0001>
module attributes {stable_mosaic.version = 11 : i64} {
  func.func @_cifar100_fused_kernel(%arg0: i32, %arg1: memref<32x8x96xbf16, #tpu.memory_space<vmem>>, %arg2: memref<1x168xf32, #tpu.memory_space<vmem>>, %arg3: memref<5x96x168xbf16, #tpu.memory_space<vmem>>, %arg4: memref<5x166x352xbf16, #tpu.memory_space<vmem>>, %arg5: memref<1x352xf32, #tpu.memory_space<vmem>>, %arg6: memref<20x350x128xbf16, #tpu.memory_space<vmem>>, %arg7: memref<1x128xf32, #tpu.memory_space<vmem>>, %arg8: memref<128x128xf32, #tpu.memory_space<vmem>>, %arg9: memref<1x128xf32, #tpu.memory_space<vmem>>, %arg10: memref<8x128xf32, #tpu.memory_space<vmem>>) attributes {dimension_semantics = [#tpu.dimension_semantics<parallel>], iteration_bounds = array<i64: 1>, scalar_prefetch = 0 : i64, scratch_operands = 0 : i64, tpu.core_type = #tpu.core_type<tc>, window_params = [{transform_indices = @transform_0, window_bounds = array<i64: 32, 8, 96>}, {pipeline_mode = #tpu.pipeline_mode<synchronous>, transform_indices = @transform_1, window_bounds = array<i64: 1, 168>}, {pipeline_mode = #tpu.pipeline_mode<synchronous>, transform_indices = @transform_2, window_bounds = array<i64: 5, 96, 168>}, {pipeline_mode = #tpu.pipeline_mode<synchronous>, transform_indices = @transform_3, window_bounds = array<i64: 5, 166, 352>}, {pipeline_mode = #tpu.pipeline_mode<synchronous>, transform_indices = @transform_4, window_bounds = array<i64: 1, 352>}, {pipeline_mode = #tpu.pipeline_mode<synchronous>, transform_indices = @transform_5, window_bounds = array<i64: 20, 350, 128>}, {pipeline_mode = #tpu.pipeline_mode<synchronous>, transform_indices = @transform_6, window_bounds = array<i64: 1, 128>}, {pipeline_mode = #tpu.pipeline_mode<synchronous>, transform_indices = @transform_7, window_bounds = array<i64: 128, 128>}, {pipeline_mode = #tpu.pipeline_mode<synchronous>, transform_indices = @transform_8, window_bounds = array<i64: 1, 128>}, {transform_indices = @transform_9, window_bounds = array<i64: 8, 128>}]} {
    %c0 = arith.constant 0 : index
    %c0_0 = arith.constant 0 : index
    %c0_1 = arith.constant 0 : index
    %0 = vector.load %arg1[%c0, %c0_0, %c0_1] : memref<32x8x96xbf16, #tpu.memory_space<vmem>>, vector<32x8x96xbf16>
    %c0_2 = arith.constant 0 : index
    %c0_3 = arith.constant 0 : index
    %1 = vector.load %arg2[%c0_2, %c0_3] : memref<1x168xf32, #tpu.memory_space<vmem>>, vector<1x168xf32>
    %2 = vector.shape_cast %1 : vector<1x168xf32> to vector<1x168xf32>
    %3 = vector.broadcast %2 : vector<1x168xf32> to vector<224x168xf32>
    %4 = vector.extract_strided_slice %0 {offsets = [0, 0, 0], sizes = [28, 8, 96], strides = [1, 1, 1]} : vector<32x8x96xbf16> to vector<28x8x96xbf16>
    %5 = vector.shape_cast %4 : vector<28x8x96xbf16> to vector<224x96xbf16>
    %c0_4 = arith.constant 0 : index
    %c0_5 = arith.constant 0 : index
    %c0_6 = arith.constant 0 : index
    %6 = vector.load %arg3[%c0_4, %c0_5, %c0_6] : memref<5x96x168xbf16, #tpu.memory_space<vmem>>, vector<1x96x168xbf16>
    %7 = vector.shape_cast %6 : vector<1x96x168xbf16> to vector<96x168xbf16>
    %cst = arith.constant dense<0.000000e+00> : vector<224x168xf32>
    %8 = tpu.matmul %5, %7, %cst {dimension_numbers = #tpu.dot_dimension_numbers<[1], [0], [0], [1], [0, 0, 1, 1], [], []>} : vector<224x96xbf16>, vector<96x168xbf16>, vector<224x168xf32> -> vector<224x168xf32>
    %9 = arith.addf %3, %8 : vector<224x168xf32>
    %10 = vector.extract_strided_slice %0 {offsets = [1, 0, 0], sizes = [28, 8, 96], strides = [1, 1, 1]} : vector<32x8x96xbf16> to vector<28x8x96xbf16>
    %11 = vector.shape_cast %10 : vector<28x8x96xbf16> to vector<224x96xbf16>
    %c1 = arith.constant 1 : index
    %c0_7 = arith.constant 0 : index
    %c0_8 = arith.constant 0 : index
    %12 = vector.load %arg3[%c1, %c0_7, %c0_8] : memref<5x96x168xbf16, #tpu.memory_space<vmem>>, vector<1x96x168xbf16>
    %13 = vector.shape_cast %12 : vector<1x96x168xbf16> to vector<96x168xbf16>
    %cst_9 = arith.constant dense<0.000000e+00> : vector<224x168xf32>
    %14 = tpu.matmul %11, %13, %cst_9 {dimension_numbers = #tpu.dot_dimension_numbers<[1], [0], [0], [1], [0, 0, 1, 1], [], []>} : vector<224x96xbf16>, vector<96x168xbf16>, vector<224x168xf32> -> vector<224x168xf32>
    %15 = arith.addf %9, %14 : vector<224x168xf32>
    %16 = vector.extract_strided_slice %0 {offsets = [2, 0, 0], sizes = [28, 8, 96], strides = [1, 1, 1]} : vector<32x8x96xbf16> to vector<28x8x96xbf16>
    %17 = vector.shape_cast %16 : vector<28x8x96xbf16> to vector<224x96xbf16>
    %c2 = arith.constant 2 : index
    %c0_10 = arith.constant 0 : index
    %c0_11 = arith.constant 0 : index
    %18 = vector.load %arg3[%c2, %c0_10, %c0_11] : memref<5x96x168xbf16, #tpu.memory_space<vmem>>, vector<1x96x168xbf16>
    %19 = vector.shape_cast %18 : vector<1x96x168xbf16> to vector<96x168xbf16>
    %cst_12 = arith.constant dense<0.000000e+00> : vector<224x168xf32>
    %20 = tpu.matmul %17, %19, %cst_12 {dimension_numbers = #tpu.dot_dimension_numbers<[1], [0], [0], [1], [0, 0, 1, 1], [], []>} : vector<224x96xbf16>, vector<96x168xbf16>, vector<224x168xf32> -> vector<224x168xf32>
    %21 = arith.addf %15, %20 : vector<224x168xf32>
    %22 = vector.extract_strided_slice %0 {offsets = [3, 0, 0], sizes = [28, 8, 96], strides = [1, 1, 1]} : vector<32x8x96xbf16> to vector<28x8x96xbf16>
    %23 = vector.shape_cast %22 : vector<28x8x96xbf16> to vector<224x96xbf16>
    %c3 = arith.constant 3 : index
    %c0_13 = arith.constant 0 : index
    %c0_14 = arith.constant 0 : index
    %24 = vector.load %arg3[%c3, %c0_13, %c0_14] : memref<5x96x168xbf16, #tpu.memory_space<vmem>>, vector<1x96x168xbf16>
    %25 = vector.shape_cast %24 : vector<1x96x168xbf16> to vector<96x168xbf16>
    %cst_15 = arith.constant dense<0.000000e+00> : vector<224x168xf32>
    %26 = tpu.matmul %23, %25, %cst_15 {dimension_numbers = #tpu.dot_dimension_numbers<[1], [0], [0], [1], [0, 0, 1, 1], [], []>} : vector<224x96xbf16>, vector<96x168xbf16>, vector<224x168xf32> -> vector<224x168xf32>
    %27 = arith.addf %21, %26 : vector<224x168xf32>
    %28 = vector.extract_strided_slice %0 {offsets = [4, 0, 0], sizes = [28, 8, 96], strides = [1, 1, 1]} : vector<32x8x96xbf16> to vector<28x8x96xbf16>
    %29 = vector.shape_cast %28 : vector<28x8x96xbf16> to vector<224x96xbf16>
    %c4 = arith.constant 4 : index
    %c0_16 = arith.constant 0 : index
    %c0_17 = arith.constant 0 : index
    %30 = vector.load %arg3[%c4, %c0_16, %c0_17] : memref<5x96x168xbf16, #tpu.memory_space<vmem>>, vector<1x96x168xbf16>
    %31 = vector.shape_cast %30 : vector<1x96x168xbf16> to vector<96x168xbf16>
    %cst_18 = arith.constant dense<0.000000e+00> : vector<224x168xf32>
    %32 = tpu.matmul %29, %31, %cst_18 {dimension_numbers = #tpu.dot_dimension_numbers<[1], [0], [0], [1], [0, 0, 1, 1], [], []>} : vector<224x96xbf16>, vector<96x168xbf16>, vector<224x168xf32> -> vector<224x168xf32>
    %33 = arith.addf %27, %32 : vector<224x168xf32>
    %34 = vector.shape_cast %33 : vector<224x168xf32> to vector<28x8x168xf32>
    %35 = vector.extract_strided_slice %34 {offsets = [0, 0, 0], sizes = [28, 8, 166], strides = [1, 1, 1]} : vector<28x8x168xf32> to vector<28x8x166xf32>
    %36 = vector.extract_strided_slice %34 {offsets = [0, 0, 1], sizes = [28, 8, 166], strides = [1, 1, 1]} : vector<28x8x168xf32> to vector<28x8x166xf32>
    %37 = arith.maximumf %35, %36 : vector<28x8x166xf32>
    %38 = vector.extract_strided_slice %34 {offsets = [0, 0, 2], sizes = [28, 8, 166], strides = [1, 1, 1]} : vector<28x8x168xf32> to vector<28x8x166xf32>
    %39 = arith.maximumf %37, %38 : vector<28x8x166xf32>
    %40 = vector.extract_strided_slice %39 {offsets = [0, 0, 0], sizes = [26, 8, 166], strides = [1, 1, 1]} : vector<28x8x166xf32> to vector<26x8x166xf32>
    %41 = vector.extract_strided_slice %39 {offsets = [1, 0, 0], sizes = [26, 8, 166], strides = [1, 1, 1]} : vector<28x8x166xf32> to vector<26x8x166xf32>
    %42 = arith.maximumf %40, %41 : vector<26x8x166xf32>
    %43 = vector.extract_strided_slice %39 {offsets = [2, 0, 0], sizes = [26, 8, 166], strides = [1, 1, 1]} : vector<28x8x166xf32> to vector<26x8x166xf32>
    %44 = arith.maximumf %42, %43 : vector<26x8x166xf32>
    %cst_19 = arith.constant 0.000000e+00 : f32
    %45 = vector.broadcast %cst_19 : f32 to vector<26x8x166xf32>
    %46 = arith.maximumf %44, %45 : vector<26x8x166xf32>
    %47 = arith.truncf %46 : vector<26x8x166xf32> to vector<26x8x166xbf16>
    %c0_20 = arith.constant 0 : index
    %c0_21 = arith.constant 0 : index
    %48 = vector.load %arg5[%c0_20, %c0_21] : memref<1x352xf32, #tpu.memory_space<vmem>>, vector<1x352xf32>
    %49 = vector.shape_cast %48 : vector<1x352xf32> to vector<1x352xf32>
    %50 = vector.broadcast %49 : vector<1x352xf32> to vector<176x352xf32>
    %51 = vector.extract_strided_slice %47 {offsets = [0, 0, 0], sizes = [22, 8, 166], strides = [1, 1, 1]} : vector<26x8x166xbf16> to vector<22x8x166xbf16>
    %52 = vector.shape_cast %51 : vector<22x8x166xbf16> to vector<176x166xbf16>
    %c0_22 = arith.constant 0 : index
    %c0_23 = arith.constant 0 : index
    %c0_24 = arith.constant 0 : index
    %53 = vector.load %arg4[%c0_22, %c0_23, %c0_24] : memref<5x166x352xbf16, #tpu.memory_space<vmem>>, vector<1x166x352xbf16>
    %54 = vector.shape_cast %53 : vector<1x166x352xbf16> to vector<166x352xbf16>
    %cst_25 = arith.constant dense<0.000000e+00> : vector<176x352xf32>
    %55 = tpu.matmul %52, %54, %cst_25 {dimension_numbers = #tpu.dot_dimension_numbers<[1], [0], [0], [1], [0, 0, 1, 1], [], []>} : vector<176x166xbf16>, vector<166x352xbf16>, vector<176x352xf32> -> vector<176x352xf32>
    %56 = arith.addf %50, %55 : vector<176x352xf32>
    %57 = vector.extract_strided_slice %47 {offsets = [1, 0, 0], sizes = [22, 8, 166], strides = [1, 1, 1]} : vector<26x8x166xbf16> to vector<22x8x166xbf16>
    %58 = vector.shape_cast %57 : vector<22x8x166xbf16> to vector<176x166xbf16>
    %c1_26 = arith.constant 1 : index
    %c0_27 = arith.constant 0 : index
    %c0_28 = arith.constant 0 : index
    %59 = vector.load %arg4[%c1_26, %c0_27, %c0_28] : memref<5x166x352xbf16, #tpu.memory_space<vmem>>, vector<1x166x352xbf16>
    %60 = vector.shape_cast %59 : vector<1x166x352xbf16> to vector<166x352xbf16>
    %cst_29 = arith.constant dense<0.000000e+00> : vector<176x352xf32>
    %61 = tpu.matmul %58, %60, %cst_29 {dimension_numbers = #tpu.dot_dimension_numbers<[1], [0], [0], [1], [0, 0, 1, 1], [], []>} : vector<176x166xbf16>, vector<166x352xbf16>, vector<176x352xf32> -> vector<176x352xf32>
    %62 = arith.addf %56, %61 : vector<176x352xf32>
    %63 = vector.extract_strided_slice %47 {offsets = [2, 0, 0], sizes = [22, 8, 166], strides = [1, 1, 1]} : vector<26x8x166xbf16> to vector<22x8x166xbf16>
    %64 = vector.shape_cast %63 : vector<22x8x166xbf16> to vector<176x166xbf16>
    %c2_30 = arith.constant 2 : index
    %c0_31 = arith.constant 0 : index
    %c0_32 = arith.constant 0 : index
    %65 = vector.load %arg4[%c2_30, %c0_31, %c0_32] : memref<5x166x352xbf16, #tpu.memory_space<vmem>>, vector<1x166x352xbf16>
    %66 = vector.shape_cast %65 : vector<1x166x352xbf16> to vector<166x352xbf16>
    %cst_33 = arith.constant dense<0.000000e+00> : vector<176x352xf32>
    %67 = tpu.matmul %64, %66, %cst_33 {dimension_numbers = #tpu.dot_dimension_numbers<[1], [0], [0], [1], [0, 0, 1, 1], [], []>} : vector<176x166xbf16>, vector<166x352xbf16>, vector<176x352xf32> -> vector<176x352xf32>
    %68 = arith.addf %62, %67 : vector<176x352xf32>
    %69 = vector.extract_strided_slice %47 {offsets = [3, 0, 0], sizes = [22, 8, 166], strides = [1, 1, 1]} : vector<26x8x166xbf16> to vector<22x8x166xbf16>
    %70 = vector.shape_cast %69 : vector<22x8x166xbf16> to vector<176x166xbf16>
    %c3_34 = arith.constant 3 : index
    %c0_35 = arith.constant 0 : index
    %c0_36 = arith.constant 0 : index
    %71 = vector.load %arg4[%c3_34, %c0_35, %c0_36] : memref<5x166x352xbf16, #tpu.memory_space<vmem>>, vector<1x166x352xbf16>
    %72 = vector.shape_cast %71 : vector<1x166x352xbf16> to vector<166x352xbf16>
    %cst_37 = arith.constant dense<0.000000e+00> : vector<176x352xf32>
    %73 = tpu.matmul %70, %72, %cst_37 {dimension_numbers = #tpu.dot_dimension_numbers<[1], [0], [0], [1], [0, 0, 1, 1], [], []>} : vector<176x166xbf16>, vector<166x352xbf16>, vector<176x352xf32> -> vector<176x352xf32>
    %74 = arith.addf %68, %73 : vector<176x352xf32>
    %75 = vector.extract_strided_slice %47 {offsets = [4, 0, 0], sizes = [22, 8, 166], strides = [1, 1, 1]} : vector<26x8x166xbf16> to vector<22x8x166xbf16>
    %76 = vector.shape_cast %75 : vector<22x8x166xbf16> to vector<176x166xbf16>
    %c4_38 = arith.constant 4 : index
    %c0_39 = arith.constant 0 : index
    %c0_40 = arith.constant 0 : index
    %77 = vector.load %arg4[%c4_38, %c0_39, %c0_40] : memref<5x166x352xbf16, #tpu.memory_space<vmem>>, vector<1x166x352xbf16>
    %78 = vector.shape_cast %77 : vector<1x166x352xbf16> to vector<166x352xbf16>
    %cst_41 = arith.constant dense<0.000000e+00> : vector<176x352xf32>
    %79 = tpu.matmul %76, %78, %cst_41 {dimension_numbers = #tpu.dot_dimension_numbers<[1], [0], [0], [1], [0, 0, 1, 1], [], []>} : vector<176x166xbf16>, vector<166x352xbf16>, vector<176x352xf32> -> vector<176x352xf32>
    %80 = arith.addf %74, %79 : vector<176x352xf32>
    %81 = vector.shape_cast %80 : vector<176x352xf32> to vector<22x8x352xf32>
    %82 = vector.extract_strided_slice %81 {offsets = [0, 0, 0], sizes = [22, 8, 350], strides = [1, 1, 1]} : vector<22x8x352xf32> to vector<22x8x350xf32>
    %83 = vector.extract_strided_slice %81 {offsets = [0, 0, 1], sizes = [22, 8, 350], strides = [1, 1, 1]} : vector<22x8x352xf32> to vector<22x8x350xf32>
    %84 = arith.maximumf %82, %83 : vector<22x8x350xf32>
    %85 = vector.extract_strided_slice %81 {offsets = [0, 0, 2], sizes = [22, 8, 350], strides = [1, 1, 1]} : vector<22x8x352xf32> to vector<22x8x350xf32>
    %86 = arith.maximumf %84, %85 : vector<22x8x350xf32>
    %87 = vector.extract_strided_slice %86 {offsets = [0, 0, 0], sizes = [20, 8, 350], strides = [1, 1, 1]} : vector<22x8x350xf32> to vector<20x8x350xf32>
    %88 = vector.extract_strided_slice %86 {offsets = [1, 0, 0], sizes = [20, 8, 350], strides = [1, 1, 1]} : vector<22x8x350xf32> to vector<20x8x350xf32>
    %89 = arith.maximumf %87, %88 : vector<20x8x350xf32>
    %90 = vector.extract_strided_slice %86 {offsets = [2, 0, 0], sizes = [20, 8, 350], strides = [1, 1, 1]} : vector<22x8x350xf32> to vector<20x8x350xf32>
    %91 = arith.maximumf %89, %90 : vector<20x8x350xf32>
    %cst_42 = arith.constant 0.000000e+00 : f32
    %92 = vector.broadcast %cst_42 : f32 to vector<20x8x350xf32>
    %93 = arith.maximumf %91, %92 : vector<20x8x350xf32>
    %94 = arith.truncf %93 : vector<20x8x350xf32> to vector<20x8x350xbf16>
    %c0_43 = arith.constant 0 : index
    %c0_44 = arith.constant 0 : index
    %95 = vector.load %arg7[%c0_43, %c0_44] : memref<1x128xf32, #tpu.memory_space<vmem>>, vector<1x128xf32>
    %96 = vector.shape_cast %95 : vector<1x128xf32> to vector<1x128xf32>
    %97 = vector.broadcast %96 : vector<1x128xf32> to vector<8x128xf32>
    %98 = vector.extract_strided_slice %94 {offsets = [0, 0, 0], sizes = [1, 8, 350], strides = [1, 1, 1]} : vector<20x8x350xbf16> to vector<1x8x350xbf16>
    %99 = vector.shape_cast %98 : vector<1x8x350xbf16> to vector<8x350xbf16>
    %c0_45 = arith.constant 0 : index
    %c0_46 = arith.constant 0 : index
    %c0_47 = arith.constant 0 : index
    %100 = vector.load %arg6[%c0_45, %c0_46, %c0_47] : memref<20x350x128xbf16, #tpu.memory_space<vmem>>, vector<1x350x128xbf16>
    %101 = vector.shape_cast %100 : vector<1x350x128xbf16> to vector<350x128xbf16>
    %cst_48 = arith.constant dense<0.000000e+00> : vector<8x128xf32>
    %102 = tpu.matmul %99, %101, %cst_48 {dimension_numbers = #tpu.dot_dimension_numbers<[1], [0], [0], [1], [0, 0, 1, 1], [], []>} : vector<8x350xbf16>, vector<350x128xbf16>, vector<8x128xf32> -> vector<8x128xf32>
    %103 = arith.addf %97, %102 : vector<8x128xf32>
    %104 = vector.extract_strided_slice %94 {offsets = [1, 0, 0], sizes = [1, 8, 350], strides = [1, 1, 1]} : vector<20x8x350xbf16> to vector<1x8x350xbf16>
    %105 = vector.shape_cast %104 : vector<1x8x350xbf16> to vector<8x350xbf16>
    %c1_49 = arith.constant 1 : index
    %c0_50 = arith.constant 0 : index
    %c0_51 = arith.constant 0 : index
    %106 = vector.load %arg6[%c1_49, %c0_50, %c0_51] : memref<20x350x128xbf16, #tpu.memory_space<vmem>>, vector<1x350x128xbf16>
    %107 = vector.shape_cast %106 : vector<1x350x128xbf16> to vector<350x128xbf16>
    %cst_52 = arith.constant dense<0.000000e+00> : vector<8x128xf32>
    %108 = tpu.matmul %105, %107, %cst_52 {dimension_numbers = #tpu.dot_dimension_numbers<[1], [0], [0], [1], [0, 0, 1, 1], [], []>} : vector<8x350xbf16>, vector<350x128xbf16>, vector<8x128xf32> -> vector<8x128xf32>
    %109 = arith.addf %103, %108 : vector<8x128xf32>
    %110 = vector.extract_strided_slice %94 {offsets = [2, 0, 0], sizes = [1, 8, 350], strides = [1, 1, 1]} : vector<20x8x350xbf16> to vector<1x8x350xbf16>
    %111 = vector.shape_cast %110 : vector<1x8x350xbf16> to vector<8x350xbf16>
    %c2_53 = arith.constant 2 : index
    %c0_54 = arith.constant 0 : index
    %c0_55 = arith.constant 0 : index
    %112 = vector.load %arg6[%c2_53, %c0_54, %c0_55] : memref<20x350x128xbf16, #tpu.memory_space<vmem>>, vector<1x350x128xbf16>
    %113 = vector.shape_cast %112 : vector<1x350x128xbf16> to vector<350x128xbf16>
    %cst_56 = arith.constant dense<0.000000e+00> : vector<8x128xf32>
    %114 = tpu.matmul %111, %113, %cst_56 {dimension_numbers = #tpu.dot_dimension_numbers<[1], [0], [0], [1], [0, 0, 1, 1], [], []>} : vector<8x350xbf16>, vector<350x128xbf16>, vector<8x128xf32> -> vector<8x128xf32>
    %115 = arith.addf %109, %114 : vector<8x128xf32>
    %116 = vector.extract_strided_slice %94 {offsets = [3, 0, 0], sizes = [1, 8, 350], strides = [1, 1, 1]} : vector<20x8x350xbf16> to vector<1x8x350xbf16>
    %117 = vector.shape_cast %116 : vector<1x8x350xbf16> to vector<8x350xbf16>
    %c3_57 = arith.constant 3 : index
    %c0_58 = arith.constant 0 : index
    %c0_59 = arith.constant 0 : index
    %118 = vector.load %arg6[%c3_57, %c0_58, %c0_59] : memref<20x350x128xbf16, #tpu.memory_space<vmem>>, vector<1x350x128xbf16>
    %119 = vector.shape_cast %118 : vector<1x350x128xbf16> to vector<350x128xbf16>
    %cst_60 = arith.constant dense<0.000000e+00> : vector<8x128xf32>
    %120 = tpu.matmul %117, %119, %cst_60 {dimension_numbers = #tpu.dot_dimension_numbers<[1], [0], [0], [1], [0, 0, 1, 1], [], []>} : vector<8x350xbf16>, vector<350x128xbf16>, vector<8x128xf32> -> vector<8x128xf32>
    %121 = arith.addf %115, %120 : vector<8x128xf32>
    %122 = vector.extract_strided_slice %94 {offsets = [4, 0, 0], sizes = [1, 8, 350], strides = [1, 1, 1]} : vector<20x8x350xbf16> to vector<1x8x350xbf16>
    %123 = vector.shape_cast %122 : vector<1x8x350xbf16> to vector<8x350xbf16>
    %c4_61 = arith.constant 4 : index
    %c0_62 = arith.constant 0 : index
    %c0_63 = arith.constant 0 : index
    %124 = vector.load %arg6[%c4_61, %c0_62, %c0_63] : memref<20x350x128xbf16, #tpu.memory_space<vmem>>, vector<1x350x128xbf16>
    %125 = vector.shape_cast %124 : vector<1x350x128xbf16> to vector<350x128xbf16>
    %cst_64 = arith.constant dense<0.000000e+00> : vector<8x128xf32>
    %126 = tpu.matmul %123, %125, %cst_64 {dimension_numbers = #tpu.dot_dimension_numbers<[1], [0], [0], [1], [0, 0, 1, 1], [], []>} : vector<8x350xbf16>, vector<350x128xbf16>, vector<8x128xf32> -> vector<8x128xf32>
    %127 = arith.addf %121, %126 : vector<8x128xf32>
    %128 = vector.extract_strided_slice %94 {offsets = [5, 0, 0], sizes = [1, 8, 350], strides = [1, 1, 1]} : vector<20x8x350xbf16> to vector<1x8x350xbf16>
    %129 = vector.shape_cast %128 : vector<1x8x350xbf16> to vector<8x350xbf16>
    %c5 = arith.constant 5 : index
    %c0_65 = arith.constant 0 : index
    %c0_66 = arith.constant 0 : index
    %130 = vector.load %arg6[%c5, %c0_65, %c0_66] : memref<20x350x128xbf16, #tpu.memory_space<vmem>>, vector<1x350x128xbf16>
    %131 = vector.shape_cast %130 : vector<1x350x128xbf16> to vector<350x128xbf16>
    %cst_67 = arith.constant dense<0.000000e+00> : vector<8x128xf32>
    %132 = tpu.matmul %129, %131, %cst_67 {dimension_numbers = #tpu.dot_dimension_numbers<[1], [0], [0], [1], [0, 0, 1, 1], [], []>} : vector<8x350xbf16>, vector<350x128xbf16>, vector<8x128xf32> -> vector<8x128xf32>
    %133 = arith.addf %127, %132 : vector<8x128xf32>
    %134 = vector.extract_strided_slice %94 {offsets = [6, 0, 0], sizes = [1, 8, 350], strides = [1, 1, 1]} : vector<20x8x350xbf16> to vector<1x8x350xbf16>
    %135 = vector.shape_cast %134 : vector<1x8x350xbf16> to vector<8x350xbf16>
    %c6 = arith.constant 6 : index
    %c0_68 = arith.constant 0 : index
    %c0_69 = arith.constant 0 : index
    %136 = vector.load %arg6[%c6, %c0_68, %c0_69] : memref<20x350x128xbf16, #tpu.memory_space<vmem>>, vector<1x350x128xbf16>
    %137 = vector.shape_cast %136 : vector<1x350x128xbf16> to vector<350x128xbf16>
    %cst_70 = arith.constant dense<0.000000e+00> : vector<8x128xf32>
    %138 = tpu.matmul %135, %137, %cst_70 {dimension_numbers = #tpu.dot_dimension_numbers<[1], [0], [0], [1], [0, 0, 1, 1], [], []>} : vector<8x350xbf16>, vector<350x128xbf16>, vector<8x128xf32> -> vector<8x128xf32>
    %139 = arith.addf %133, %138 : vector<8x128xf32>
    %140 = vector.extract_strided_slice %94 {offsets = [7, 0, 0], sizes = [1, 8, 350], strides = [1, 1, 1]} : vector<20x8x350xbf16> to vector<1x8x350xbf16>
    %141 = vector.shape_cast %140 : vector<1x8x350xbf16> to vector<8x350xbf16>
    %c7 = arith.constant 7 : index
    %c0_71 = arith.constant 0 : index
    %c0_72 = arith.constant 0 : index
    %142 = vector.load %arg6[%c7, %c0_71, %c0_72] : memref<20x350x128xbf16, #tpu.memory_space<vmem>>, vector<1x350x128xbf16>
    %143 = vector.shape_cast %142 : vector<1x350x128xbf16> to vector<350x128xbf16>
    %cst_73 = arith.constant dense<0.000000e+00> : vector<8x128xf32>
    %144 = tpu.matmul %141, %143, %cst_73 {dimension_numbers = #tpu.dot_dimension_numbers<[1], [0], [0], [1], [0, 0, 1, 1], [], []>} : vector<8x350xbf16>, vector<350x128xbf16>, vector<8x128xf32> -> vector<8x128xf32>
    %145 = arith.addf %139, %144 : vector<8x128xf32>
    %146 = vector.extract_strided_slice %94 {offsets = [8, 0, 0], sizes = [1, 8, 350], strides = [1, 1, 1]} : vector<20x8x350xbf16> to vector<1x8x350xbf16>
    %147 = vector.shape_cast %146 : vector<1x8x350xbf16> to vector<8x350xbf16>
    %c8 = arith.constant 8 : index
    %c0_74 = arith.constant 0 : index
    %c0_75 = arith.constant 0 : index
    %148 = vector.load %arg6[%c8, %c0_74, %c0_75] : memref<20x350x128xbf16, #tpu.memory_space<vmem>>, vector<1x350x128xbf16>
    %149 = vector.shape_cast %148 : vector<1x350x128xbf16> to vector<350x128xbf16>
    %cst_76 = arith.constant dense<0.000000e+00> : vector<8x128xf32>
    %150 = tpu.matmul %147, %149, %cst_76 {dimension_numbers = #tpu.dot_dimension_numbers<[1], [0], [0], [1], [0, 0, 1, 1], [], []>} : vector<8x350xbf16>, vector<350x128xbf16>, vector<8x128xf32> -> vector<8x128xf32>
    %151 = arith.addf %145, %150 : vector<8x128xf32>
    %152 = vector.extract_strided_slice %94 {offsets = [9, 0, 0], sizes = [1, 8, 350], strides = [1, 1, 1]} : vector<20x8x350xbf16> to vector<1x8x350xbf16>
    %153 = vector.shape_cast %152 : vector<1x8x350xbf16> to vector<8x350xbf16>
    %c9 = arith.constant 9 : index
    %c0_77 = arith.constant 0 : index
    %c0_78 = arith.constant 0 : index
    %154 = vector.load %arg6[%c9, %c0_77, %c0_78] : memref<20x350x128xbf16, #tpu.memory_space<vmem>>, vector<1x350x128xbf16>
    %155 = vector.shape_cast %154 : vector<1x350x128xbf16> to vector<350x128xbf16>
    %cst_79 = arith.constant dense<0.000000e+00> : vector<8x128xf32>
    %156 = tpu.matmul %153, %155, %cst_79 {dimension_numbers = #tpu.dot_dimension_numbers<[1], [0], [0], [1], [0, 0, 1, 1], [], []>} : vector<8x350xbf16>, vector<350x128xbf16>, vector<8x128xf32> -> vector<8x128xf32>
    %157 = arith.addf %151, %156 : vector<8x128xf32>
    %158 = vector.extract_strided_slice %94 {offsets = [10, 0, 0], sizes = [1, 8, 350], strides = [1, 1, 1]} : vector<20x8x350xbf16> to vector<1x8x350xbf16>
    %159 = vector.shape_cast %158 : vector<1x8x350xbf16> to vector<8x350xbf16>
    %c10 = arith.constant 10 : index
    %c0_80 = arith.constant 0 : index
    %c0_81 = arith.constant 0 : index
    %160 = vector.load %arg6[%c10, %c0_80, %c0_81] : memref<20x350x128xbf16, #tpu.memory_space<vmem>>, vector<1x350x128xbf16>
    %161 = vector.shape_cast %160 : vector<1x350x128xbf16> to vector<350x128xbf16>
    %cst_82 = arith.constant dense<0.000000e+00> : vector<8x128xf32>
    %162 = tpu.matmul %159, %161, %cst_82 {dimension_numbers = #tpu.dot_dimension_numbers<[1], [0], [0], [1], [0, 0, 1, 1], [], []>} : vector<8x350xbf16>, vector<350x128xbf16>, vector<8x128xf32> -> vector<8x128xf32>
    %163 = arith.addf %157, %162 : vector<8x128xf32>
    %164 = vector.extract_strided_slice %94 {offsets = [11, 0, 0], sizes = [1, 8, 350], strides = [1, 1, 1]} : vector<20x8x350xbf16> to vector<1x8x350xbf16>
    %165 = vector.shape_cast %164 : vector<1x8x350xbf16> to vector<8x350xbf16>
    %c11 = arith.constant 11 : index
    %c0_83 = arith.constant 0 : index
    %c0_84 = arith.constant 0 : index
    %166 = vector.load %arg6[%c11, %c0_83, %c0_84] : memref<20x350x128xbf16, #tpu.memory_space<vmem>>, vector<1x350x128xbf16>
    %167 = vector.shape_cast %166 : vector<1x350x128xbf16> to vector<350x128xbf16>
    %cst_85 = arith.constant dense<0.000000e+00> : vector<8x128xf32>
    %168 = tpu.matmul %165, %167, %cst_85 {dimension_numbers = #tpu.dot_dimension_numbers<[1], [0], [0], [1], [0, 0, 1, 1], [], []>} : vector<8x350xbf16>, vector<350x128xbf16>, vector<8x128xf32> -> vector<8x128xf32>
    %169 = arith.addf %163, %168 : vector<8x128xf32>
    %170 = vector.extract_strided_slice %94 {offsets = [12, 0, 0], sizes = [1, 8, 350], strides = [1, 1, 1]} : vector<20x8x350xbf16> to vector<1x8x350xbf16>
    %171 = vector.shape_cast %170 : vector<1x8x350xbf16> to vector<8x350xbf16>
    %c12 = arith.constant 12 : index
    %c0_86 = arith.constant 0 : index
    %c0_87 = arith.constant 0 : index
    %172 = vector.load %arg6[%c12, %c0_86, %c0_87] : memref<20x350x128xbf16, #tpu.memory_space<vmem>>, vector<1x350x128xbf16>
    %173 = vector.shape_cast %172 : vector<1x350x128xbf16> to vector<350x128xbf16>
    %cst_88 = arith.constant dense<0.000000e+00> : vector<8x128xf32>
    %174 = tpu.matmul %171, %173, %cst_88 {dimension_numbers = #tpu.dot_dimension_numbers<[1], [0], [0], [1], [0, 0, 1, 1], [], []>} : vector<8x350xbf16>, vector<350x128xbf16>, vector<8x128xf32> -> vector<8x128xf32>
    %175 = arith.addf %169, %174 : vector<8x128xf32>
    %176 = vector.extract_strided_slice %94 {offsets = [13, 0, 0], sizes = [1, 8, 350], strides = [1, 1, 1]} : vector<20x8x350xbf16> to vector<1x8x350xbf16>
    %177 = vector.shape_cast %176 : vector<1x8x350xbf16> to vector<8x350xbf16>
    %c13 = arith.constant 13 : index
    %c0_89 = arith.constant 0 : index
    %c0_90 = arith.constant 0 : index
    %178 = vector.load %arg6[%c13, %c0_89, %c0_90] : memref<20x350x128xbf16, #tpu.memory_space<vmem>>, vector<1x350x128xbf16>
    %179 = vector.shape_cast %178 : vector<1x350x128xbf16> to vector<350x128xbf16>
    %cst_91 = arith.constant dense<0.000000e+00> : vector<8x128xf32>
    %180 = tpu.matmul %177, %179, %cst_91 {dimension_numbers = #tpu.dot_dimension_numbers<[1], [0], [0], [1], [0, 0, 1, 1], [], []>} : vector<8x350xbf16>, vector<350x128xbf16>, vector<8x128xf32> -> vector<8x128xf32>
    %181 = arith.addf %175, %180 : vector<8x128xf32>
    %182 = vector.extract_strided_slice %94 {offsets = [14, 0, 0], sizes = [1, 8, 350], strides = [1, 1, 1]} : vector<20x8x350xbf16> to vector<1x8x350xbf16>
    %183 = vector.shape_cast %182 : vector<1x8x350xbf16> to vector<8x350xbf16>
    %c14 = arith.constant 14 : index
    %c0_92 = arith.constant 0 : index
    %c0_93 = arith.constant 0 : index
    %184 = vector.load %arg6[%c14, %c0_92, %c0_93] : memref<20x350x128xbf16, #tpu.memory_space<vmem>>, vector<1x350x128xbf16>
    %185 = vector.shape_cast %184 : vector<1x350x128xbf16> to vector<350x128xbf16>
    %cst_94 = arith.constant dense<0.000000e+00> : vector<8x128xf32>
    %186 = tpu.matmul %183, %185, %cst_94 {dimension_numbers = #tpu.dot_dimension_numbers<[1], [0], [0], [1], [0, 0, 1, 1], [], []>} : vector<8x350xbf16>, vector<350x128xbf16>, vector<8x128xf32> -> vector<8x128xf32>
    %187 = arith.addf %181, %186 : vector<8x128xf32>
    %188 = vector.extract_strided_slice %94 {offsets = [15, 0, 0], sizes = [1, 8, 350], strides = [1, 1, 1]} : vector<20x8x350xbf16> to vector<1x8x350xbf16>
    %189 = vector.shape_cast %188 : vector<1x8x350xbf16> to vector<8x350xbf16>
    %c15 = arith.constant 15 : index
    %c0_95 = arith.constant 0 : index
    %c0_96 = arith.constant 0 : index
    %190 = vector.load %arg6[%c15, %c0_95, %c0_96] : memref<20x350x128xbf16, #tpu.memory_space<vmem>>, vector<1x350x128xbf16>
    %191 = vector.shape_cast %190 : vector<1x350x128xbf16> to vector<350x128xbf16>
    %cst_97 = arith.constant dense<0.000000e+00> : vector<8x128xf32>
    %192 = tpu.matmul %189, %191, %cst_97 {dimension_numbers = #tpu.dot_dimension_numbers<[1], [0], [0], [1], [0, 0, 1, 1], [], []>} : vector<8x350xbf16>, vector<350x128xbf16>, vector<8x128xf32> -> vector<8x128xf32>
    %193 = arith.addf %187, %192 : vector<8x128xf32>
    %194 = vector.extract_strided_slice %94 {offsets = [16, 0, 0], sizes = [1, 8, 350], strides = [1, 1, 1]} : vector<20x8x350xbf16> to vector<1x8x350xbf16>
    %195 = vector.shape_cast %194 : vector<1x8x350xbf16> to vector<8x350xbf16>
    %c16 = arith.constant 16 : index
    %c0_98 = arith.constant 0 : index
    %c0_99 = arith.constant 0 : index
    %196 = vector.load %arg6[%c16, %c0_98, %c0_99] : memref<20x350x128xbf16, #tpu.memory_space<vmem>>, vector<1x350x128xbf16>
    %197 = vector.shape_cast %196 : vector<1x350x128xbf16> to vector<350x128xbf16>
    %cst_100 = arith.constant dense<0.000000e+00> : vector<8x128xf32>
    %198 = tpu.matmul %195, %197, %cst_100 {dimension_numbers = #tpu.dot_dimension_numbers<[1], [0], [0], [1], [0, 0, 1, 1], [], []>} : vector<8x350xbf16>, vector<350x128xbf16>, vector<8x128xf32> -> vector<8x128xf32>
    %199 = arith.addf %193, %198 : vector<8x128xf32>
    %200 = vector.extract_strided_slice %94 {offsets = [17, 0, 0], sizes = [1, 8, 350], strides = [1, 1, 1]} : vector<20x8x350xbf16> to vector<1x8x350xbf16>
    %201 = vector.shape_cast %200 : vector<1x8x350xbf16> to vector<8x350xbf16>
    %c17 = arith.constant 17 : index
    %c0_101 = arith.constant 0 : index
    %c0_102 = arith.constant 0 : index
    %202 = vector.load %arg6[%c17, %c0_101, %c0_102] : memref<20x350x128xbf16, #tpu.memory_space<vmem>>, vector<1x350x128xbf16>
    %203 = vector.shape_cast %202 : vector<1x350x128xbf16> to vector<350x128xbf16>
    %cst_103 = arith.constant dense<0.000000e+00> : vector<8x128xf32>
    %204 = tpu.matmul %201, %203, %cst_103 {dimension_numbers = #tpu.dot_dimension_numbers<[1], [0], [0], [1], [0, 0, 1, 1], [], []>} : vector<8x350xbf16>, vector<350x128xbf16>, vector<8x128xf32> -> vector<8x128xf32>
    %205 = arith.addf %199, %204 : vector<8x128xf32>
    %206 = vector.extract_strided_slice %94 {offsets = [18, 0, 0], sizes = [1, 8, 350], strides = [1, 1, 1]} : vector<20x8x350xbf16> to vector<1x8x350xbf16>
    %207 = vector.shape_cast %206 : vector<1x8x350xbf16> to vector<8x350xbf16>
    %c18 = arith.constant 18 : index
    %c0_104 = arith.constant 0 : index
    %c0_105 = arith.constant 0 : index
    %208 = vector.load %arg6[%c18, %c0_104, %c0_105] : memref<20x350x128xbf16, #tpu.memory_space<vmem>>, vector<1x350x128xbf16>
    %209 = vector.shape_cast %208 : vector<1x350x128xbf16> to vector<350x128xbf16>
    %cst_106 = arith.constant dense<0.000000e+00> : vector<8x128xf32>
    %210 = tpu.matmul %207, %209, %cst_106 {dimension_numbers = #tpu.dot_dimension_numbers<[1], [0], [0], [1], [0, 0, 1, 1], [], []>} : vector<8x350xbf16>, vector<350x128xbf16>, vector<8x128xf32> -> vector<8x128xf32>
    %211 = arith.addf %205, %210 : vector<8x128xf32>
    %212 = vector.extract_strided_slice %94 {offsets = [19, 0, 0], sizes = [1, 8, 350], strides = [1, 1, 1]} : vector<20x8x350xbf16> to vector<1x8x350xbf16>
    %213 = vector.shape_cast %212 : vector<1x8x350xbf16> to vector<8x350xbf16>
    %c19 = arith.constant 19 : index
    %c0_107 = arith.constant 0 : index
    %c0_108 = arith.constant 0 : index
    %214 = vector.load %arg6[%c19, %c0_107, %c0_108] : memref<20x350x128xbf16, #tpu.memory_space<vmem>>, vector<1x350x128xbf16>
    %215 = vector.shape_cast %214 : vector<1x350x128xbf16> to vector<350x128xbf16>
    %cst_109 = arith.constant dense<0.000000e+00> : vector<8x128xf32>
    %216 = tpu.matmul %213, %215, %cst_109 {dimension_numbers = #tpu.dot_dimension_numbers<[1], [0], [0], [1], [0, 0, 1, 1], [], []>} : vector<8x350xbf16>, vector<350x128xbf16>, vector<8x128xf32> -> vector<8x128xf32>
    %217 = arith.addf %211, %216 : vector<8x128xf32>
    %cst_110 = arith.constant 0.000000e+00 : f32
    %218 = vector.broadcast %cst_110 : f32 to vector<8x128xf32>
    %219 = arith.maximumf %217, %218 : vector<8x128xf32>
    %c0_111 = arith.constant 0 : index
    %c0_112 = arith.constant 0 : index
    %220 = vector.load %arg8[%c0_111, %c0_112] : memref<128x128xf32, #tpu.memory_space<vmem>>, vector<128x128xf32>
    %cst_113 = arith.constant dense<0.000000e+00> : vector<8x128xf32>
    %221 = tpu.matmul %219, %220, %cst_113 {dimension_numbers = #tpu.dot_dimension_numbers<[1], [0], [0], [1], [0, 0, 1, 1], [], []>} : vector<8x128xf32>, vector<128x128xf32>, vector<8x128xf32> -> vector<8x128xf32>
    %c0_114 = arith.constant 0 : index
    %c0_115 = arith.constant 0 : index
    %222 = vector.load %arg9[%c0_114, %c0_115] : memref<1x128xf32, #tpu.memory_space<vmem>>, vector<1x128xf32>
    %223 = vector.broadcast %222 : vector<1x128xf32> to vector<8x128xf32>
    %224 = arith.addf %221, %223 : vector<8x128xf32>
    %225 = tpu.iota {dimensions = array<i32: 1>} : vector<8x128xi32>
    %c100_i32 = arith.constant 100 : i32
    %226 = vector.broadcast %c100_i32 : i32 to vector<8x128xi32>
    %227 = arith.cmpi slt, %225, %226 : vector<8x128xi32>
    %cst_116 = arith.constant -1.000000e+30 : f32
    %228 = vector.broadcast %cst_116 : f32 to vector<8x128xf32>
    %229 = arith.select %227, %224, %228 : vector<8x128xi1>, vector<8x128xf32>
    %cst_117 = arith.constant dense<0xFF800000> : vector<8xf32>
    %230 = vector.multi_reduction <maximumf>, %229, %cst_117 [1] : vector<8x128xf32> to vector<8xf32>
    %231 = vector.shape_cast %230 : vector<8xf32> to vector<8x1xf32>
    %232 = vector.broadcast %231 : vector<8x1xf32> to vector<8x128xf32>
    %233 = arith.subf %229, %232 : vector<8x128xf32>
    %234 = math.exp %233 : vector<8x128xf32>
    %cst_118 = arith.constant dense<0.000000e+00> : vector<8xf32>
    %235 = vector.multi_reduction <add>, %234, %cst_118 [1] : vector<8x128xf32> to vector<8xf32>
    %236 = vector.shape_cast %235 : vector<8xf32> to vector<8x1xf32>
    %237 = vector.broadcast %236 : vector<8x1xf32> to vector<8x128xf32>
    %238 = arith.divf %234, %237 : vector<8x128xf32>
    %c0_119 = arith.constant 0 : index
    %c0_120 = arith.constant 0 : index
    %239 = vector.load %arg10[%c0_119, %c0_120] : memref<8x128xf32, #tpu.memory_space<vmem>>, vector<8x128xf32>
    tpu.vector_store %arg10[%c0_119, %c0_120], %238 {strides = array<i32>} : memref<8x128xf32, #tpu.memory_space<vmem>>, vector<8x128xf32>,
    return
  }
  func.func @transform_0(%arg0: i32) -> (i32, i32, i32) {
    %c0_i32 = arith.constant 0 : i32
    %c0_i32_0 = arith.constant 0 : i32
    %c0_i32_1 = arith.constant 0 : i32
    return %c0_i32, %arg0, %c0_i32_0 : i32, i32, i32
  }
  func.func @transform_1(%arg0: i32) -> (i32, i32) {
    %c0_i32 = arith.constant 0 : i32
    %c0_i32_0 = arith.constant 0 : i32
    %c0_i32_1 = arith.constant 0 : i32
    return %c0_i32, %c0_i32_0 : i32, i32
  }
  func.func @transform_2(%arg0: i32) -> (i32, i32, i32) {
    %c0_i32 = arith.constant 0 : i32
    %c0_i32_0 = arith.constant 0 : i32
    %c0_i32_1 = arith.constant 0 : i32
    %c0_i32_2 = arith.constant 0 : i32
    return %c0_i32, %c0_i32_0, %c0_i32_1 : i32, i32, i32
  }
  func.func @transform_3(%arg0: i32) -> (i32, i32, i32) {
    %c0_i32 = arith.constant 0 : i32
    %c0_i32_0 = arith.constant 0 : i32
    %c0_i32_1 = arith.constant 0 : i32
    %c0_i32_2 = arith.constant 0 : i32
    return %c0_i32, %c0_i32_0, %c0_i32_1 : i32, i32, i32
  }
  func.func @transform_4(%arg0: i32) -> (i32, i32) {
    %c0_i32 = arith.constant 0 : i32
    %c0_i32_0 = arith.constant 0 : i32
    %c0_i32_1 = arith.constant 0 : i32
    return %c0_i32, %c0_i32_0 : i32, i32
  }
  func.func @transform_5(%arg0: i32) -> (i32, i32, i32) {
    %c0_i32 = arith.constant 0 : i32
    %c0_i32_0 = arith.constant 0 : i32
    %c0_i32_1 = arith.constant 0 : i32
    %c0_i32_2 = arith.constant 0 : i32
    return %c0_i32, %c0_i32_0, %c0_i32_1 : i32, i32, i32
  }
  func.func @transform_6(%arg0: i32) -> (i32, i32) {
    %c0_i32 = arith.constant 0 : i32
    %c0_i32_0 = arith.constant 0 : i32
    %c0_i32_1 = arith.constant 0 : i32
    return %c0_i32, %c0_i32_0 : i32, i32
  }
  func.func @transform_7(%arg0: i32) -> (i32, i32) {
    %c0_i32 = arith.constant 0 : i32
    %c0_i32_0 = arith.constant 0 : i32
    %c0_i32_1 = arith.constant 0 : i32
    return %c0_i32, %c0_i32_0 : i32, i32
  }
  func.func @transform_8(%arg0: i32) -> (i32, i32) {
    %c0_i32 = arith.constant 0 : i32
    %c0_i32_0 = arith.constant 0 : i32
    %c0_i32_1 = arith.constant 0 : i32
    return %c0_i32, %c0_i32_0 : i32, i32
  }
  func.func @transform_9(%arg0: i32) -> (i32, i32) {
    %c0_i32 = arith.constant 0 : i32
    %c0_i32_0 = arith.constant 0 : i32
    return %arg0, %c0_i32 : i32, i32
  }
}

</mosaic_0001>

<bundles_post_ra>
// kernel: cifar100net_forward.1
= control target key start
LH: loop header
LB: loop body
LE: loop exit
PB: predicated region body
PF: predicated region fallthrough
CT: control target
= control target key end

     0   :  { %14 = vsyncpa [#allocation3], 0  ;;  %s21771_s0 = inlined_call_operand.vmem [shape: bf16[32,8,96], index: 0, kind: input, shape index: {}]   ;;  %s21772_s1 = inlined_call_operand.vmem [shape: f32[1,168], index: 1, kind: input, shape index: {}]   ;;  %s21773_s2 = inlined_call_operand.vmem [shape: bf16[5,96,168], index: 2, kind: input, shape index: {}]   ;;  %s21774_s3 = inlined_call_operand.hbm [shape: bf16[5,166,352], index: 3, kind: input, shape index: {}]   ;;  %s21775_s4 = inlined_call_operand.vmem [shape: f32[1,352], index: 4, kind: input, shape index: {}]   ;;  %s21776_s5 = inlined_call_operand.vmem [shape: bf16[20,350,128], index: 5, kind: input, shape index: {}]   ;;  %s21777_s6 = inlined_call_operand.vmem [shape: f32[1,128], index: 6, kind: input, shape index: {}]   ;;  %s21778_s7 = inlined_call_operand.hbm [shape: f32[128,128], index: 7, kind: input, shape index: {}]   ;;  %s21779_s8 = inlined_call_operand.vmem [shape: f32[1,128], index: 8, kind: input, shape index: {}]   ;;  %s21780_s9 = inlined_call_operand.vmem [shape: f32[8,128], index: 9, kind: output, shape index: {}]  }
   0x1   :  { %15 = vsyncpa [#allocation5], 0  ;;  %s16907_s30 = smov [#allocation2]   ;;  %s16859_s13 = scalar_lea.hbm %s21774_s3, 20160 }
   0x2   :  { %s27_s10 = sshll.u32 %s16907_s30, 4  ;;  %p16860_p0 = scmp.ne.s32.totalorder %s21774_s3, %s16859_s13  ;;  %s28_s10 = int_to_ptr.vmem [resolvable:$true] %s27_s10 }
   0x3   :  { %p16863_p1 = scmp.lt.u32.totalorder %s16859_s13, %s21774_s3 }
   0x5   :  { %p16865_p2 = pnand %p16863_p1, %p16860_p0 }
   0x7   :  { %16868 = shalt.err (!%p16865_p2)
}
   0x8   :  { %s16869_s18 = scalar_lea.vmem %s28_s10, 20160  ;;  %p16874_p4 = scmp.lt.s32.totalorder %s28_s10, %s28_s10 }
   0x9   :  { %p16870_p3 = scmp.ne.s32.totalorder %s28_s10, %s16869_s18  ;;  %p16875_p5 = scmp.lt.s32.totalorder %s16869_s18, %s16869_s18 }
   0xb   :  { %p16876_p6 = por %p16875_p5, %p16874_p4 }
   0xd   :  { %p16877_p7 = pnand %p16876_p6, %p16870_p3 }
   0xf   :  { %16880 = shalt.err (!%p16877_p7)
}
  0x10   :  { %s16908_s19 = smov 192   ;;  %s16909_s20 = smov 12  }
  0x11   :  { %33 = dma.hbm_to_vmem [thread:$0]  %s21774_s3, 20160, %s28_s10, [#allocation3], %s16908_s19, %s16908_s19, %s16909_s20  }
  0x12   :  { %s16910_s23 = smov [#allocation4]   ;;  %s16881_s27 = scalar_lea.hbm %s21778_s7, 2048 }
  0x13   :  { %s45_s24 = sshll.u32 %s16910_s23, 4  ;;  %p16882_p8 = scmp.ne.s32.totalorder %s21778_s7, %s16881_s27  ;;  %s46_s24 = int_to_ptr.vmem [resolvable:$true] %s45_s24 }
  0x14   :  { %p16885_p9 = scmp.lt.u32.totalorder %s16881_s27, %s21778_s7 }
  0x16   :  { %p16887_p10 = pnand %p16885_p9, %p16882_p8 }
  0x18   :  { %16890 = shalt.err (!%p16887_p10)
}
  0x19   :  { %s16891_s12 = scalar_lea.vmem %s46_s24, 2048  ;;  %p16896_p12 = scmp.lt.s32.totalorder %s46_s24, %s46_s24 }
  0x1a   :  { %p16892_p11 = scmp.ne.s32.totalorder %s46_s24, %s16891_s12  ;;  %p16897_p13 = scmp.lt.s32.totalorder %s16891_s12, %s16891_s12 }
  0x1c   :  { %p16898_p0 = por %p16897_p13, %p16896_p12 }
  0x1e   :  { %p16899_p1 = pnand %p16898_p0, %p16892_p11 }
  0x20   :  { %16902 = shalt.err (!%p16899_p1)
}
  0x21   :  { %s16911_s3 = smov 128   ;;  %s16912_s10 = smov 8  }
  0x22   :  { %51 = dma.hbm_to_vmem [thread:$0]  %s21778_s7, 2048, %s46_s24, [#allocation5], %s16911_s3, %s16911_s3, %s16912_s10  }
  0x23   :  { %16903 = dma.done.wait [#allocation3], 20160  }
  0x24   :  { %16904 = vsyncadd [#allocation3], 4294947136 }
  0x25   :  { %16905 = dma.done.wait [#allocation5], 2048  }
  0x26   :  { %16906 = vsyncadd [#allocation5], 4294965248  ;;  %v21784_v0 = vmov 0   ;;  %v16079_v1 = vld [vmem:[%s21773_s2 + $0x4] ss:$8 sps:$4 sm:$0xff]   ;;  %vm247_vm0 = vcmask 785408  }
  0x27   :  { %322 = vmatprep.mubr.bf16.mxu0 %v21784_v0  ;;  %v16081_v2 = vld [vmem:[%s21773_s2] ss:$8 sps:$4 sm:$0xff]   ;;  %290 = vmatprep.subr.bf16.mxu0 %v16079_v1  ;;  %v16082_v3 = vld [vmem:[%s21773_s2 + $0x14] ss:$8 sps:$4 sm:$0xff]   ;;  %v16084_v4 = vld [vmem:[%s21773_s2 + $0x10] ss:$8 sps:$4 sm:$0xff]  }
  0x28   :  { %291 = vmatpush1.bf16.msra.mxu0 %v16081_v2  ;;  %v16085_v5 = vld [vmem:[%s21773_s2 + $0x24] ss:$8 sps:$4 sm:$0xff]   ;;  %v16087_v6 = vld [vmem:[%s21773_s2 + $0x20] ss:$8 sps:$4 sm:$0xff]   ;;  %v16088_v7 = vld [vmem:[%s21773_s2 + $0x34] ss:$8 sps:$4 sm:$0xff]  }
  0x29   :  { %292 = vmatprep.subr.bf16.mxu0 %v16082_v3  ;;  %v17018_v8 = vld [vmem:[%s21771_s0 + $0x4] sm:$0xf]  ;;  %v17023_v9 = vld [vmem:[%s21771_s0 + $0x8] sm:$0xf]  ;;  %v64_v10 = vld [vmem:[%s21771_s0 + $0xc] sm:$0xf] }
  0x2a   :  { %v65_v11 = vld [vmem:[%s21771_s0 + $0x10] sm:$0xf]  ;;  %v11951_v13 = vcombine.low %v17018_v8, %v17023_v9  ;;  %v16091_v15 = vld [vmem:[%s21773_s2 + $0x44] ss:$8 sps:$4 sm:$0xff]   ;;  %v16093_v16 = vld [vmem:[%s21773_s2 + $0x40] ss:$8 sps:$4 sm:$0xff]   ;;  %v17091_v33 = vcombine.low %v17023_v9, %v64_v10 }
  0x2b   :  { %v16090_v12 = vld [vmem:[%s21773_s2 + $0x30] ss:$8 sps:$4 sm:$0xff]   ;;  %v17036_v14 = vcombine.low %v64_v10, %v65_v11  ;;  %v16094_v17 = vld [vmem:[%s21773_s2 + $0x54] ss:$8 sps:$4 sm:$0xff]   ;;  %v61_v21 = vld [vmem:[%s21771_s0] sm:$0xf] }
  0x2c   :  { %293 = vmatpush1.bf16.msra.mxu0 %v16084_v4  ;;  %v66_v18 = vld [vmem:[%s21771_s0 + $0x14] sm:$0xf]  ;;  %v67_v19 = vld [vmem:[%s21771_s0 + $0x18] sm:$0xf]  ;;  %v16100_v23 = vld [vmem:[%s21773_s2 + $0x64] ss:$8 sps:$4 sm:$0xff]   ;;  %v11899_v24 = vcombine.low %v61_v21, %v17018_v8 }
  0x2d   :  { %294 = vmatprep.subr.bf16.mxu0 %v16085_v5  ;;  %v16096_v20 = vld [vmem:[%s21773_s2 + $0x50] ss:$8 sps:$4 sm:$0xff]   ;;  %v17059_v22 = vcombine.low %v66_v18, %v67_v19  ;;  %v16098_v25 = vld [vmem:[%s21773_s2 + $0x60] ss:$8 sps:$4 sm:$0xff]   ;;  %v16106_v26 = vld [vmem:[%s21773_s2 + $0x74] ss:$8 sps:$4 sm:$0xff]   ;;  %v17116_v41 = vcombine.low %v65_v11, %v66_v18 }
  0x2e   :  { %v68_v27 = vld [vmem:[%s21771_s0 + $0x1c] sm:$0xf]  ;;  %v69_v28 = vld [vmem:[%s21771_s0 + $0x20] sm:$0xf]  ;;  %v16104_v29 = vld [vmem:[%s21773_s2 + $0x70] ss:$8 sps:$4 sm:$0xff]  }
  0x2f   :  { %v16111_v30 = vld [vmem:[%s21773_s2 + $0x84] ss:$8 sps:$4 sm:$0xff]   ;;  %v17085_v31 = vcombine.low %v68_v27, %v69_v28  ;;  %v16109_v32 = vld [vmem:[%s21773_s2 + $0x80] ss:$8 sps:$4 sm:$0xff]   ;;  %v16117_v34 = vld [vmem:[%s21773_s2 + $0x94] ss:$8 sps:$4 sm:$0xff]   ;;  %v17138_v48 = vcombine.low %v67_v19, %v68_v27 }
  0x30   :  { %295 = vmatpush1.bf16.msra.mxu0 %v16087_v6  ;;  %v70_v35 = vld [vmem:[%s21771_s0 + $0x24] sm:$0xf]  ;;  %v71_v36 = vld [vmem:[%s21771_s0 + $0x28] sm:$0xf]  ;;  %v16115_v37 = vld [vmem:[%s21773_s2 + $0x90] ss:$8 sps:$4 sm:$0xff]  }
  0x31   :  { %296 = vmatprep.subr.bf16.mxu0 %v16088_v7  ;;  %v16122_v38 = vld [vmem:[%s21773_s2 + $0xa4] ss:$8 sps:$4 sm:$0xff]   ;;  %v17111_v39 = vcombine.low %v70_v35, %v71_v36  ;;  %v16120_v40 = vld [vmem:[%s21773_s2 + $0xa0] ss:$8 sps:$4 sm:$0xff]   ;;  %v16127_v42 = vld [vmem:[%s21773_s2 + $0xb4] ss:$8 sps:$4 sm:$0xff]   ;;  %v17151_v52 = vcombine.low %v69_v28, %v70_v35 }
  0x32   :  { %v72_v43 = vld [vmem:[%s21771_s0 + $0x2c] sm:$0xf]  ;;  %v73_v44 = vld [vmem:[%s21771_s0 + $0x30] sm:$0xf]  ;;  %v74_v49 = vld [vmem:[%s21771_s0 + $0x34] sm:$0xf] }
  0x33   :  { %v16125_v45 = vld [vmem:[%s21773_s2 + $0xb0] ss:$8 sps:$4 sm:$0xff]   ;;  %v16132_v46 = vld [vmem:[%s21773_s2 + $0xc4] ss:$8 sps:$4 sm:$0xff]   ;;  %v17136_v47 = vcombine.low %v72_v43, %v73_v44  ;;  %v76_v53 = vld [vmem:[%s21771_s0 + $0x3c] sm:$0xf]  ;;  %v17164_v56 = vcombine.low %v71_v36, %v72_v43  ;;  %v17177_v60 = vcombine.low %v73_v44, %v74_v49 }
  0x34   :  { %297 = vmatpush1.bf16.msra.mxu0 %v16090_v12  ;;  %v75_v50 = vld [vmem:[%s21771_s0 + $0x38] sm:$0xf]  ;;  %v77_v54 = vld [vmem:[%s21771_s0 + $0x40] sm:$0xf]  ;;  %v78_v57 = vld [vmem:[%s21771_s0 + $0x44] sm:$0xf] }
  0x35   :  { %298 = vmatprep.subr.bf16.mxu0 %v16091_v15  ;;  %v17149_v51 = vcombine.low %v74_v49, %v75_v50  ;;  %v17162_v55 = vcombine.low %v76_v53, %v77_v54  ;;  %v79_v58 = vld [vmem:[%s21771_s0 + $0x48] sm:$0xf]  ;;  %v80_v61 = vld [vmem:[%s21771_s0 + $0x4c] sm:$0xf]  ;;  %v81_v62 = vld [vmem:[%s21771_s0 + $0x50] sm:$0xf]  ;;  %v17190_v1 = vcombine.low %v75_v50, %v76_v53  ;;  %v17203_v5 = vcombine.low %v77_v54, %v78_v57 }
  0x36   :  { %v17175_v59 = vcombine.low %v78_v57, %v79_v58  ;;  %v17188_v63 = vcombine.low %v80_v61, %v81_v62  ;;  %v82_v2 = vld [vmem:[%s21771_s0 + $0x54] sm:$0xf]  ;;  %v83_v3 = vld [vmem:[%s21771_s0 + $0x58] sm:$0xf]  ;;  %v17208_v6 = vcombine.low %v79_v58, %v80_v61  ;;  %v84_v10 = vld [vmem:[%s21771_s0 + $0x5c] sm:$0xf] }
  0x37   :  { %v17201_v4 = vcombine.low %v82_v2, %v83_v3  ;;  %v17213_v7 = vcombine.low %v81_v62, %v82_v2  ;;  %v17221_v11 = vcombine.low %v83_v3, %v84_v10  ;;  %v85_v12 = vld [vmem:[%s21771_s0 + $0x60] sm:$0xf]  ;;  %v86_v15 = vld [vmem:[%s21771_s0 + $0x64] sm:$0xf]  ;;  %v88_v18 = vld [vmem:[%s21771_s0 + $0x6c] sm:$0xf] }
  0x38   :  { %299 = vmatpush1.bf16.msra.mxu0 %v16093_v16  ;;  %v17232_v16 = vcombine.low %v85_v12, %v86_v15  ;;  %v16137_v21 = vld [vmem:[%s21773_s2 + $0xd4] ss:$8 sps:$4 sm:$0xff]   ;;  %v16146_v9 = vld [vmem:[%s21773_s2 + $0xf0] ss:$8 sps:$4 sm:$0xff]   ;;  %v16161_v36 = vld [vmem:[%s21773_s2 + $0x120] ss:$8 sps:$4 sm:$0xff]  }
  0x39   :  { %300 = vmatprep.subr.bf16.mxu0 %v16094_v17  ;;  %v87_v17 = vld [vmem:[%s21771_s0 + $0x68] sm:$0xf]  ;;  %v16148_v8 = vld [vmem:[%s21773_s2 + $0xf4] ss:$8 sps:$4 sm:$0xff]   ;;  %v16156_v28 = vld [vmem:[%s21773_s2 + $0x110] ss:$8 sps:$4 sm:$0xff]  }
  0x3a   :  { %v17243_v19 = vcombine.low %v87_v17, %v88_v18  ;;  %v16158_v27 = vld [vmem:[%s21773_s2 + $0x114] ss:$8 sps:$4 sm:$0xff]   ;;  %v16170_v43 = vld [vmem:[%s21773_s2 + $0x150] ss:$8 sps:$4 sm:$0xff]   ;;  %v16175_v44 = vld [vmem:[%s21773_s2 + $0x164] ss:$8 sps:$4 sm:$0xff]  }
  0x3b   :  { %v16176_v49 = vld [vmem:[%s21773_s2 + $0x170] ss:$8 sps:$4 sm:$0xff]   ;;  %v16182_v50 = vld [vmem:[%s21773_s2 + $0x184] ss:$8 sps:$4 sm:$0xff]   ;;  %v90_v53 = vld [vmem:[%s21771_s0 + $0x74] sm:$0xf] }
  0x3c   :  { %301 = vmatpush1.bf16.msra.mxu0 %v16096_v20  ;;  %v16130_v20 = vld [vmem:[%s21773_s2 + $0xc0] ss:$8 sps:$4 sm:$0xff]   ;;  %v16185_v58 = vld [vmem:[%s21773_s2 + $0x194] ss:$8 sps:$4 sm:$0xff]   ;;  %v16183_v61 = vld [vmem:[%s21773_s2 + $0x190] ss:$8 sps:$4 sm:$0xff]  }
  0x3d   :  { %650 = vmatprep.subr.bf16.mxu0 %v16100_v23  ;;  %v16135_v23 = vld [vmem:[%s21773_s2 + $0xd0] ss:$8 sps:$4 sm:$0xff]   ;;  %v16180_v57 = vld [vmem:[%s21773_s2 + $0x180] ss:$8 sps:$4 sm:$0xff]   ;;  %v16188_v62 = vld [vmem:[%s21773_s2 + $0x1a4] ss:$8 sps:$4 sm:$0xff]  }
  0x3e   :  { %v16186_v2 = vld [vmem:[%s21773_s2 + $0x1a0] ss:$8 sps:$4 sm:$0xff]   ;;  %v16191_v3 = vld [vmem:[%s21773_s2 + $0x1b4] ss:$8 sps:$4 sm:$0xff]   ;;  %s16915_s15 = smov 126   ;;  %vm2955_vm1 = vcmask 1042432  }
  0x3f   :  { %11925 = vmatmul.mubr.msk.bf16.vlgmr.msra.gmra.mrb[0].mxu0 %vm247_vm0, %v11899_v24  ;;  %v16142_v24 = vld [vmem:[%s21773_s2 + $0xe4] ss:$8 sps:$4 sm:$0xff]   ;;  %vm1971_vm2 = vcmask 1039360   ;;  %vm2224_vm3 = vcmask 1031168   ;;  %vm2921_vm4 = vcmask 310272   ;;  %vm16917_vm5 = vmmov 0  }
  0x40   :  { %651 = vmatpush1.bf16.msra.mxu0 %v16098_v25  ;;  %332 = vmatprep.mubr.bf16.mxu0 %v21784_v0  ;;  %v16140_v25 = vld [vmem:[%s21773_s2 + $0xe0] ss:$8 sps:$4 sm:$0xff]   ;;  %vm6703_vm6 = vcmask 1046528   ;;  %vm6699_vm7 = vcmask 769024  }
  0x41   :  { %652 = vmatprep.subr.bf16.mxu0 %v16106_v26  ;;  %v16151_v26 = vld [vmem:[%s21773_s2 + $0x100] ss:$8 sps:$4 sm:$0xff]  }
  0x44   :  { %653 = vmatpush1.bf16.msra.mxu0 %v16104_v29  ;;  %v16163_v29 = vld [vmem:[%s21773_s2 + $0x124] ss:$8 sps:$4 sm:$0xff]  }
  0x45   :  { %654 = vmatprep.subr.bf16.mxu0 %v16111_v30  ;;  %v17319_v30 = vcombine.low %v84_v10, %v85_v12  ;;  %v16194_v10 = vld [vmem:[%s21773_s2 + $0x1c4] ss:$8 sps:$4 sm:$0xff]   ;;  %v16192_v12 = vld [vmem:[%s21773_s2 + $0x1c0] ss:$8 sps:$4 sm:$0xff]  }
  0x47   :  { %11926 = vmatmul.mubr.msk.bf16.gmra.mrb[4].mxu0 %vm247_vm0, %v17091_v33 }
  0x48   :  { %342 = vmatprep.mubr.bf16.mxu0 %v21784_v0  ;;  %655 = vmatpush1.bf16.msra.mxu0 %v16109_v32  ;;  %v17324_v32 = vcombine.low %v86_v15, %v87_v17  ;;  %v16197_v15 = vld [vmem:[%s21773_s2 + $0x1d4] ss:$8 sps:$4 sm:$0xff]  }
  0x49   :  { %656 = vmatprep.subr.bf16.mxu0 %v16117_v34  ;;  %v89_v34 = vld [vmem:[%s21771_s0 + $0x70] sm:$0xf]  ;;  %v16215_v17 = vld [vmem:[#allocation2 + $0x7c] ss:$12 sps:$4 sm:$0xff]  }
  0x4a   :  { %v17332_v35 = vcombine.low %v88_v18, %v89_v34  ;;  %v17415_v54 = vcombine.low %v89_v34, %v90_v53  ;;  %v16217_v18 = vld [vmem:[#allocation2 + $0x78] ss:$12 sps:$4 sm:$0xff]  }
  0x4c   :  { %657 = vmatpush1.bf16.msra.mxu0 %v16115_v37  ;;  %v16166_v37 = vld [vmem:[%s21773_s2 + $0x134] ss:$8 sps:$4 sm:$0xff]  }
  0x4d   :  { %658 = vmatprep.subr.bf16.mxu0 %v16122_v38  ;;  %v16164_v38 = vld [vmem:[%s21773_s2 + $0x130] ss:$8 sps:$4 sm:$0xff]  }
  0x4f   :  { %11927 = vmatmul.mubr.msk.bf16.gmra.mrb[8].mxu0 %vm247_vm0, %v17116_v41 }
  0x50   :  { %352 = vmatprep.mubr.bf16.mxu0 %v21784_v0  ;;  %659 = vmatpush1.bf16.msra.mxu0 %v16120_v40  ;;  %v16169_v40 = vld [vmem:[%s21773_s2 + $0x144] ss:$8 sps:$4 sm:$0xff]  }
  0x51   :  { %660 = vmatprep.subr.bf16.mxu0 %v16127_v42  ;;  %v16167_v42 = vld [vmem:[%s21773_s2 + $0x140] ss:$8 sps:$4 sm:$0xff]  }
  0x54   :  { %661 = vmatpush1.bf16.msra.mxu0 %v16125_v45  ;;  %v16173_v45 = vld [vmem:[%s21773_s2 + $0x160] ss:$8 sps:$4 sm:$0xff]  }
  0x55   :  { %958 = vmatprep.subr.bf16.mxu0 %v16132_v46  ;;  %v16178_v46 = vld [vmem:[%s21773_s2 + $0x174] ss:$8 sps:$4 sm:$0xff]  }
  0x57   :  { %11928 = vmatmul.mubr.msk.bf16.gmra.mrb[12].mxu0 %vm247_vm0, %v17138_v48 }
  0x58   :  { %362 = vmatprep.mubr.bf16.mxu0 %v21784_v0 }
  0x5f   :  { %11929 = vmatmul.mubr.msk.bf16.gmra.mrb[16].mxu0 %vm247_vm0, %v17151_v52 }
  0x60   :  { %372 = vmatprep.mubr.bf16.mxu0 %v21784_v0 }
  0x67   :  { %11930 = vmatmul.mubr.msk.bf16.gmra.mrb[20].mxu0 %vm247_vm0, %v17164_v56 }
  0x68   :  { %382 = vmatprep.mubr.bf16.mxu0 %v21784_v0 }
  0x6f   :  { %11931 = vmatmul.mubr.msk.bf16.gmra.mrb[24].mxu0 %vm247_vm0, %v17177_v60 }
  0x70   :  { %392 = vmatprep.mubr.bf16.mxu0 %v21784_v0 }
  0x77   :  { %11932 = vmatmul.mubr.msk.bf16.gmra.mrb[28].mxu0 %vm247_vm0, %v17190_v1 }
  0x78   :  { %402 = vmatprep.mubr.bf16.mxu0 %v21784_v0 }
  0x7f   :  { %11933 = vmatmul.mubr.msk.bf16.gmra.mrb[32].mxu0 %vm247_vm0, %v17203_v5 }
  0x80   :  { %412 = vmatprep.mubr.bf16.mxu0 %v21784_v0 }
  0x87   :  { %11934 = vmatmul.mubr.msk.bf16.gmra.mrb[36].mxu0 %vm247_vm0, %v17208_v6 }
  0x88   :  { %422 = vmatprep.mubr.bf16.mxu0 %v21784_v0 }
  0x8f   :  { %11935 = vmatmul.mubr.msk.bf16.gmra.mrb[40].mxu0 %vm247_vm0, %v17213_v7 }
  0x90   :  { %432 = vmatprep.mubr.bf16.mxu0 %v21784_v0 }
  0x97   :  { %11936 = vmatmul.mubr.msk.bf16.gmra.mrb[44].mxu0 %vm247_vm0, %v17221_v11 }
  0x98   :  { %442 = vmatprep.mubr.bf16.mxu0 %v21784_v0 }
  0x9f   :  { %11937 = vmatmul.mubr.msk.bf16.gmra.mrb[48].mxu0 %vm247_vm0, %v17232_v16 }
  0xa0   :  { %452 = vmatprep.mubr.bf16.mxu0 %v21784_v0 }
  0xa7   :  { %11938 = vmatmul.mubr.msk.bf16.gmra.mrb[52].mxu0 %vm247_vm0, %v17243_v19 }
  0xa8   :  { %682 = vmatprep.mubr.bf16.mxu0 %v21784_v0 }
  0xaf   :  { %11977 = vmatmul.mubr.msk.bf16.vlgmr.msra.gmra.mrb[0].mxu0 %vm247_vm0, %v11951_v13  ;;  %v16153_v13 = vld [vmem:[%s21773_s2 + $0x104] ss:$8 sps:$4 sm:$0xff]  }
  0xb0   :  { %959 = vmatpush1.bf16.msra.mxu0 %v16130_v20  ;;  %692 = vmatprep.mubr.bf16.mxu0 %v21784_v0 }
  0xb1   :  { %960 = vmatprep.subr.bf16.mxu0 %v16137_v21  ;;  %v16218_v21 = vld [vmem:[#allocation2 + $0x94] ss:$12 sps:$4 sm:$0xff]  }
  0xb4   :  { %961 = vmatpush1.bf16.msra.mxu0 %v16135_v23  ;;  %v16220_v23 = vld [vmem:[#allocation2 + $0x90] ss:$12 sps:$4 sm:$0xff]  }
  0xb5   :  { %962 = vmatprep.subr.bf16.mxu0 %v16142_v24 }
  0xb7   :  { %11978 = vmatmul.mubr.msk.bf16.gmra.mrb[4].mxu0 %vm247_vm0, %v17036_v14 }
  0xb8   :  { %702 = vmatprep.mubr.bf16.mxu0 %v21784_v0  ;;  %963 = vmatpush1.bf16.msra.mxu0 %v16140_v25 }
  0xb9   :  { %964 = vmatprep.subr.bf16.mxu0 %v16148_v8 }
  0xbc   :  { %965 = vmatpush1.bf16.msra.mxu0 %v16146_v9 }
  0xbd   :  { %966 = vmatprep.subr.bf16.mxu0 %v16153_v13 }
  0xbf   :  { %11979 = vmatmul.mubr.msk.bf16.gmra.mrb[8].mxu0 %vm247_vm0, %v17059_v22 }
  0xc0   :  { %712 = vmatprep.mubr.bf16.mxu0 %v21784_v0  ;;  %967 = vmatpush1.bf16.msra.mxu0 %v16151_v26  ;;  %v16221_v26 = vld [vmem:[#allocation2 + $0xac] ss:$12 sps:$4 sm:$0xff]  }
  0xc1   :  { %968 = vmatprep.subr.bf16.mxu0 %v16158_v27 }
  0xc4   :  { %969 = vmatpush1.bf16.msra.mxu0 %v16156_v28 }
  0xc5   :  { %1266 = vmatprep.subr.bf16.mxu0 %v16163_v29 }
  0xc7   :  { %11980 = vmatmul.mubr.msk.bf16.gmra.mrb[12].mxu0 %vm247_vm0, %v17085_v31 }
  0xc8   :  { %722 = vmatprep.mubr.bf16.mxu0 %v21784_v0 }
  0xcf   :  { %11981 = vmatmul.mubr.msk.bf16.gmra.mrb[16].mxu0 %vm247_vm0, %v17111_v39 }
  0xd0   :  { %732 = vmatprep.mubr.bf16.mxu0 %v21784_v0 }
  0xd7   :  { %11982 = vmatmul.mubr.msk.bf16.gmra.mrb[20].mxu0 %vm247_vm0, %v17136_v47 }
  0xd8   :  { %742 = vmatprep.mubr.bf16.mxu0 %v21784_v0 }
  0xdf   :  { %11983 = vmatmul.mubr.msk.bf16.gmra.mrb[24].mxu0 %vm247_vm0, %v17149_v51 }
  0xe0   :  { %752 = vmatprep.mubr.bf16.mxu0 %v21784_v0 }
  0xe7   :  { %11984 = vmatmul.mubr.msk.bf16.gmra.mrb[28].mxu0 %vm247_vm0, %v17162_v55 }
  0xe8   :  { %762 = vmatprep.mubr.bf16.mxu0 %v21784_v0 }
  0xef   :  { %11985 = vmatmul.mubr.msk.bf16.gmra.mrb[32].mxu0 %vm247_vm0, %v17175_v59 }
  0xf0   :  { %772 = vmatprep.mubr.bf16.mxu0 %v21784_v0 }
  0xf7   :  { %11986 = vmatmul.mubr.msk.bf16.gmra.mrb[36].mxu0 %vm247_vm0, %v17188_v63 }
  0xf8   :  { %782 = vmatprep.mubr.bf16.mxu0 %v21784_v0 }
  0xff   :  { %11987 = vmatmul.mubr.msk.bf16.gmra.mrb[40].mxu0 %vm247_vm0, %v17201_v4 }
 0x100   :  { %792 = vmatprep.mubr.bf16.mxu0 %v21784_v0 }
 0x107   :  { %11988 = vmatmul.mubr.msk.bf16.gmra.mrb[44].mxu0 %vm247_vm0, %v17319_v30 }
 0x108   :  { %802 = vmatprep.mubr.bf16.mxu0 %v21784_v0 }
 0x10f   :  { %11989 = vmatmul.mubr.msk.bf16.gmra.mrb[48].mxu0 %vm247_vm0, %v17324_v32 }
 0x110   :  { %812 = vmatprep.mubr.bf16.mxu0 %v21784_v0 }
 0x117   :  { %11990 = vmatmul.mubr.msk.bf16.gmra.mrb[52].mxu0 %vm247_vm0, %v17332_v35 }
 0x118   :  { %990 = vmatprep.mubr.bf16.mxu0 %v21784_v0 }
 0x11f   :  { %12016 = vmatmul.mubr.msk.bf16.vlgmr.msra.gmra.mrb[0].mxu0 %vm247_vm0, %v17091_v33  ;;  %v16172_v33 = vld [vmem:[%s21773_s2 + $0x154] ss:$8 sps:$4 sm:$0xff]  }
 0x120   :  { %1267 = vmatpush1.bf16.msra.mxu0 %v16161_v36  ;;  %1000 = vmatprep.mubr.bf16.mxu0 %v21784_v0 }
 0x121   :  { %1268 = vmatprep.subr.bf16.mxu0 %v16166_v37  ;;  %v16226_v37 = vld [vmem:[#allocation2 + $0xc0] ss:$12 sps:$4 sm:$0xff]  }
 0x124   :  { %1269 = vmatpush1.bf16.msra.mxu0 %v16164_v38 }
 0x125   :  { %1270 = vmatprep.subr.bf16.mxu0 %v16169_v40 }
 0x127   :  { %12017 = vmatmul.mubr.msk.bf16.gmra.mrb[4].mxu0 %vm247_vm0, %v17116_v41 }
 0x128   :  { %1010 = vmatprep.mubr.bf16.mxu0 %v21784_v0  ;;  %1271 = vmatpush1.bf16.msra.mxu0 %v16167_v42 }
 0x129   :  { %1272 = vmatprep.subr.bf16.mxu0 %v16172_v33 }
 0x12c   :  { %1273 = vmatpush1.bf16.msra.mxu0 %v16170_v43 }
 0x12d   :  { %1274 = vmatprep.subr.bf16.mxu0 %v16175_v44  ;;  %v16227_v44 = vld [vmem:[#allocation2 + $0xdc] ss:$12 sps:$4 sm:$0xff]  }
 0x12f   :  { %12018 = vmatmul.mubr.msk.bf16.gmra.mrb[8].mxu0 %vm247_vm0, %v17138_v48 }
 0x130   :  { %1020 = vmatprep.mubr.bf16.mxu0 %v21784_v0  ;;  %1275 = vmatpush1.bf16.msra.mxu0 %v16173_v45 }
 0x131   :  { %1276 = vmatprep.subr.bf16.mxu0 %v16178_v46 }
 0x134   :  { %1277 = vmatpush1.bf16.msra.mxu0 %v16176_v49 }
 0x135   :  { %1574 = vmatprep.subr.bf16.mxu0 %v16182_v50  ;;  %v16229_v50 = vld [vmem:[#allocation2 + $0xd8] ss:$12 sps:$4 sm:$0xff]  }
 0x137   :  { %12019 = vmatmul.mubr.msk.bf16.gmra.mrb[12].mxu0 %vm247_vm0, %v17151_v52 }
 0x138   :  { %1030 = vmatprep.mubr.bf16.mxu0 %v21784_v0 }
 0x13f   :  { %12020 = vmatmul.mubr.msk.bf16.gmra.mrb[16].mxu0 %vm247_vm0, %v17164_v56 }
 0x140   :  { %1040 = vmatprep.mubr.bf16.mxu0 %v21784_v0 }
 0x147   :  { %12021 = vmatmul.mubr.msk.bf16.gmra.mrb[20].mxu0 %vm247_vm0, %v17177_v60 }
 0x148   :  { %1050 = vmatprep.mubr.bf16.mxu0 %v21784_v0 }
 0x14f   :  { %12022 = vmatmul.mubr.msk.bf16.gmra.mrb[24].mxu0 %vm247_vm0, %v17190_v1 }
 0x150   :  { %1060 = vmatprep.mubr.bf16.mxu0 %v21784_v0 }
 0x157   :  { %12023 = vmatmul.mubr.msk.bf16.gmra.mrb[28].mxu0 %vm247_vm0, %v17203_v5 }
 0x158   :  { %1070 = vmatprep.mubr.bf16.mxu0 %v21784_v0 }
 0x15f   :  { %12024 = vmatmul.mubr.msk.bf16.gmra.mrb[32].mxu0 %vm247_vm0, %v17208_v6 }
 0x160   :  { %1080 = vmatprep.mubr.bf16.mxu0 %v21784_v0 }
 0x167   :  { %12025 = vmatmul.mubr.msk.bf16.gmra.mrb[36].mxu0 %vm247_vm0, %v17213_v7 }
 0x168   :  { %1090 = vmatprep.mubr.bf16.mxu0 %v21784_v0 }
 0x16f   :  { %12026 = vmatmul.mubr.msk.bf16.gmra.mrb[40].mxu0 %vm247_vm0, %v17221_v11 }
 0x170   :  { %1100 = vmatprep.mubr.bf16.mxu0 %v21784_v0 }
 0x177   :  { %12027 = vmatmul.mubr.msk.bf16.gmra.mrb[44].mxu0 %vm247_vm0, %v17232_v16 }
 0x178   :  { %1110 = vmatprep.mubr.bf16.mxu0 %v21784_v0 }
 0x17f   :  { %12028 = vmatmul.mubr.msk.bf16.gmra.mrb[48].mxu0 %vm247_vm0, %v17243_v19 }
 0x180   :  { %1120 = vmatprep.mubr.bf16.mxu0 %v21784_v0 }
 0x187   :  { %12029 = vmatmul.mubr.msk.bf16.gmra.mrb[52].mxu0 %vm247_vm0, %v17415_v54 }
 0x188   :  { %1298 = vmatprep.mubr.bf16.mxu0 %v21784_v0 }
 0x18f   :  { %12055 = vmatmul.mubr.msk.bf16.vlgmr.msra.gmra.mrb[0].mxu0 %vm247_vm0, %v17036_v14  ;;  %v16189_v14 = vld [vmem:[%s21773_s2 + $0x1b0] ss:$8 sps:$4 sm:$0xff]  }
 0x190   :  { %1575 = vmatpush1.bf16.msra.mxu0 %v16180_v57  ;;  %1308 = vmatprep.mubr.bf16.mxu0 %v21784_v0 }
 0x191   :  { %1576 = vmatprep.subr.bf16.mxu0 %v16185_v58 }
 0x194   :  { %1577 = vmatpush1.bf16.msra.mxu0 %v16183_v61 }
 0x195   :  { %1578 = vmatprep.subr.bf16.mxu0 %v16188_v62 }
 0x197   :  { %12056 = vmatmul.mubr.msk.bf16.gmra.mrb[4].mxu0 %vm247_vm0, %v17059_v22  ;;  %v16195_v22 = vld [vmem:[%s21773_s2 + $0x1d0] ss:$8 sps:$4 sm:$0xff]  }
 0x198   :  { %1318 = vmatprep.mubr.bf16.mxu0 %v21784_v0  ;;  %1579 = vmatpush1.bf16.msra.mxu0 %v16186_v2 }
 0x199   :  { %1580 = vmatprep.subr.bf16.mxu0 %v16191_v3 }
 0x19c   :  { %1581 = vmatpush1.bf16.msra.mxu0 %v16189_v14 }
 0x19d   :  { %1582 = vmatprep.subr.bf16.mxu0 %v16194_v10 }
 0x19f   :  { %12057 = vmatmul.mubr.msk.bf16.gmra.mrb[8].mxu0 %vm247_vm0, %v17085_v31  ;;  %v91_v31 = vld [vmem:[%s21771_s0 + $0x78] sm:$0xf] }
 0x1a0   :  { %1328 = vmatprep.mubr.bf16.mxu0 %v21784_v0  ;;  %1583 = vmatpush1.bf16.msra.mxu0 %v16192_v12 }
 0x1a1   :  { %1584 = vmatprep.subr.bf16.mxu0 %v16197_v15 }
 0x1a4   :  { %1585 = vmatpush1.bf16.msra.mxu0 %v16195_v22 }
 0x1a7   :  { %12058 = vmatmul.mubr.msk.bf16.gmra.mrb[12].mxu0 %vm247_vm0, %v17111_v39  ;;  %v12042_v39 = vcombine.low %v90_v53, %v91_v31  ;;  %v2718_v53 = vld [vmem:[#allocation2 + $0xf0] sm:$0x77] }
 0x1a8   :  { %1338 = vmatprep.mubr.bf16.mxu0 %v21784_v0  ;;  %v12160_v57 = vcombine.low %v2718_v53, %v2718_v53 }
 0x1aa   :  { %v2957_v3 = vsel %vm2955_vm1, %v12160_v57, 0 }
 0x1af   :  { %12059 = vmatmul.mubr.msk.bf16.gmra.mrb[16].mxu0 %vm247_vm0, %v17136_v47 }
 0x1b0   :  { %1348 = vmatprep.mubr.bf16.mxu0 %v21784_v0 }
 0x1b7   :  { %12060 = vmatmul.mubr.msk.bf16.gmra.mrb[20].mxu0 %vm247_vm0, %v17149_v51  ;;  %v16202_v51 = vld [vmem:[#allocation2] ss:$12 sps:$4 sm:$0xff]  }
 0x1b8   :  { %1358 = vmatprep.mubr.bf16.mxu0 %v21784_v0 }
 0x1bf   :  { %12061 = vmatmul.mubr.msk.bf16.gmra.mrb[24].mxu0 %vm247_vm0, %v17162_v55  ;;  %v16205_v55 = vld [vmem:[#allocation2 + $0x18] ss:$12 sps:$4 sm:$0xff]  }
 0x1c0   :  { %1368 = vmatprep.mubr.bf16.mxu0 %v21784_v0 }
 0x1c7   :  { %12062 = vmatmul.mubr.msk.bf16.gmra.mrb[28].mxu0 %vm247_vm0, %v17175_v59  ;;  %v16208_v59 = vld [vmem:[#allocation2 + $0x30] ss:$12 sps:$4 sm:$0xff]  }
 0x1c8   :  { %1378 = vmatprep.mubr.bf16.mxu0 %v21784_v0 }
 0x1cf   :  { %12063 = vmatmul.mubr.msk.bf16.gmra.mrb[32].mxu0 %vm247_vm0, %v17188_v63  ;;  %v16209_v63 = vld [vmem:[#allocation2 + $0x4c] ss:$12 sps:$4 sm:$0xff]  }
 0x1d0   :  { %1388 = vmatprep.mubr.bf16.mxu0 %v21784_v0 }
 0x1d7   :  { %12064 = vmatmul.mubr.msk.bf16.gmra.mrb[36].mxu0 %vm247_vm0, %v17201_v4 }
 0x1d8   :  { %1398 = vmatprep.mubr.bf16.mxu0 %v21784_v0 }
 0x1df   :  { %12065 = vmatmul.mubr.msk.bf16.gmra.mrb[40].mxu0 %vm247_vm0, %v17319_v30 }
 0x1e0   :  { %1408 = vmatprep.mubr.bf16.mxu0 %v21784_v0 }
 0x1e7   :  { %12066 = vmatmul.mubr.msk.bf16.gmra.mrb[44].mxu0 %vm247_vm0, %v17324_v32  ;;  %v16223_v32 = vld [vmem:[#allocation2 + $0xa8] ss:$12 sps:$4 sm:$0xff]  }
 0x1e8   :  { %1418 = vmatprep.mubr.bf16.mxu0 %v21784_v0 }
 0x1ef   :  { %12067 = vmatmul.mubr.msk.bf16.gmra.mrb[48].mxu0 %vm247_vm0, %v17332_v35  ;;  %v16224_v35 = vld [vmem:[#allocation2 + $0xc4] ss:$12 sps:$4 sm:$0xff]  }
 0x1f0   :  { %1428 = vmatprep.mubr.bf16.mxu0 %v21784_v0 }
 0x1f7   :  { %12068 = vmatmul.mubr.msk.bf16.gmra.mrb[52].mxu0 %vm247_vm0, %v12042_v39 }
 0x1f8   :  { %1606 = vmatprep.mubr.bf16.mxu0 %v21784_v0 }
 0x1ff   :  { %12094 = vmatmul.mubr.msk.bf16.vlgmr.msra.gmra.mrb[0].mxu0 %vm247_vm0, %v17116_v41  ;;  %v92_v41 = vld [vmem:[%s21771_s0 + $0x7c] sm:$0xf] }
 0x200   :  { %1616 = vmatprep.mubr.bf16.mxu0 %v21784_v0  ;;  %v12081_v47 = vcombine.low %v91_v31, %v92_v41 }
 0x207   :  { %12095 = vmatmul.mubr.msk.bf16.gmra.mrb[4].mxu0 %vm247_vm0, %v17138_v48  ;;  %v16200_v48 = vld [vmem:[#allocation2 + $0x4] ss:$12 sps:$4 sm:$0xff]  }
 0x208   :  { %1626 = vmatprep.mubr.bf16.mxu0 %v21784_v0  ;;  %2965 = vmatprep.subr.bf16.mxu1 %v16200_v48 }
 0x209   :  { %2966 = vmatpush1.bf16.msra.mxu1 %v16202_v51 }
 0x20f   :  { %12096 = vmatmul.mubr.msk.bf16.gmra.mrb[8].mxu0 %vm247_vm0, %v17151_v52  ;;  %v16203_v52 = vld [vmem:[#allocation2 + $0x1c] ss:$12 sps:$4 sm:$0xff]  }
 0x210   :  { %1636 = vmatprep.mubr.bf16.mxu0 %v21784_v0  ;;  %2967 = vmatprep.subr.bf16.mxu1 %v16203_v52 }
 0x211   :  { %2968 = vmatpush1.bf16.msra.mxu1 %v16205_v55 }
 0x217   :  { %12097 = vmatmul.mubr.msk.bf16.gmra.mrb[12].mxu0 %vm247_vm0, %v17164_v56  ;;  %v16206_v56 = vld [vmem:[#allocation2 + $0x34] ss:$12 sps:$4 sm:$0xff]  }
 0x218   :  { %1646 = vmatprep.mubr.bf16.mxu0 %v21784_v0  ;;  %2969 = vmatprep.subr.bf16.mxu1 %v16206_v56 }
 0x219   :  { %2970 = vmatpush1.bf16.msra.mxu1 %v16208_v59 }
 0x21a   :  { %2971 = vmatprep.subr.bf16.mxu1 %v16209_v63 }
 0x21f   :  { %12098 = vmatmul.mubr.msk.bf16.gmra.mrb[16].mxu0 %vm247_vm0, %v17177_v60  ;;  %v21781_v60 = vlaneseq }
 0x220   :  { %1656 = vmatprep.mubr.bf16.mxu0 %v21784_v0 }
 0x221   :  { %v17541_v4 = vshrl.u32 %v21781_v60, 7 }
 0x223   :  { %21940 = vst [vmem:[#allocation8_spill] sm:$0xff] %v17541_v4 }
 0x227   :  { %12099 = vmatmul.mubr.msk.bf16.gmra.mrb[20].mxu0 %vm247_vm0, %v17190_v1  ;;  %v16211_v1 = vld [vmem:[#allocation2 + $0x48] ss:$12 sps:$4 sm:$0xff]  }
 0x228   :  { %1666 = vmatprep.mubr.bf16.mxu0 %v21784_v0  ;;  %2972 = vmatpush1.bf16.msra.mxu1 %v16211_v1 }
 0x22f   :  { %12100 = vmatmul.mubr.msk.bf16.gmra.mrb[24].mxu0 %vm247_vm0, %v17203_v5  ;;  %v16212_v5 = vld [vmem:[#allocation2 + $0x64] ss:$12 sps:$4 sm:$0xff]  }
 0x230   :  { %1676 = vmatprep.mubr.bf16.mxu0 %v21784_v0  ;;  %2973 = vmatprep.subr.bf16.mxu1 %v16212_v5 }
 0x237   :  { %12101 = vmatmul.mubr.msk.bf16.gmra.mrb[28].mxu0 %vm247_vm0, %v17208_v6  ;;  %v16214_v6 = vld [vmem:[#allocation2 + $0x60] ss:$12 sps:$4 sm:$0xff]  }
 0x238   :  { %1686 = vmatprep.mubr.bf16.mxu0 %v21784_v0  ;;  %2974 = vmatpush1.bf16.msra.mxu1 %v16214_v6 }
 0x239   :  { %2975 = vmatprep.subr.bf16.mxu1 %v16215_v17 }
 0x23c   :  { %2976 = vmatpush1.bf16.msra.mxu1 %v16217_v18 }
 0x23d   :  { %2977 = vmatprep.subr.bf16.mxu1 %v16218_v21 }
 0x23f   :  { %12102 = vmatmul.mubr.msk.bf16.gmra.mrb[32].mxu0 %vm247_vm0, %v17213_v7  ;;  %v21783_v7 = vsub.s32 0, %v17541_v4 }
 0x240   :  { %1696 = vmatprep.mubr.bf16.mxu0 %v21784_v0  ;;  %2978 = vmatpush1.bf16.msra.mxu1 %v16220_v23 }
 0x241   :  { %2979 = vmatprep.subr.bf16.mxu1 %v16221_v26 }
 0x244   :  { %2980 = vmatpush1.bf16.msra.mxu1 %v16223_v32 }
 0x245   :  { %2981 = vmatprep.subr.bf16.mxu1 %v16224_v35 }
 0x247   :  { %12103 = vmatmul.mubr.msk.bf16.gmra.mrb[36].mxu0 %vm247_vm0, %v17221_v11  ;;  %v93_v11 = vld [vmem:[%s21772_s1] sm:$0x3]  ;;  %s16914_s1 = smov 127  }
 0x248   :  { %1706 = vmatprep.mubr.bf16.mxu0 %v21784_v0  ;;  %2982 = vmatpush1.bf16.msra.mxu1 %v16226_v37 }
 0x249   :  { %2983 = vmatprep.subr.bf16.mxu1 %v16227_v44 }
 0x24c   :  { %2984 = vmatpush1.bf16.msra.mxu1 %v16229_v50 }
 0x24f   :  { %12104 = vmatmul.mubr.msk.bf16.gmra.mrb[40].mxu0 %vm247_vm0, %v17232_v16  ;;  %v21782_v16 = vsub.s32 1, %v17541_v4 }
 0x250   :  { %1716 = vmatprep.mubr.bf16.mxu0 %v21784_v0 }
 0x251   :  { %v17554_v20 = vrot.slane %v93_v11, %v21782_v16 }
 0x257   :  { %12105 = vmatmul.mubr.msk.bf16.gmra.mrb[44].mxu0 %vm247_vm0, %v17243_v19  ;;  %v17550_v19 = vrot.slane %v93_v11, %v21783_v7 }
 0x258   :  { %1726 = vmatprep.mubr.bf16.mxu0 %v21784_v0 }
 0x25f   :  { %12106 = vmatmul.mubr.msk.bf16.gmra.mrb[48].mxu0 %vm247_vm0, %v17415_v54  ;;  %v12161_v54 = vcombine.high %v2718_v53, %v2718_v53 }
 0x260   :  { %1736 = vmatprep.mubr.bf16.mxu0 %v21784_v0 }
 0x261   :  { %12163 = vmatprep.subr.msk.bf16.mxu1 %vm2955_vm1, %v12161_v54 }
 0x262   :  { %2986 = vmatpush1.bf16.msra.mxu1 %v2957_v3 }
 0x263   :  { %3108 = vmatprep.subr.bf16.mxu1 %v21784_v0 }
 0x267   :  { %12107 = vmatmul.mubr.msk.bf16.gmra.mrb[52].mxu0 %vm247_vm0, %v12081_v47 }
 0x2d2   :  { %v1608_v24 = vpop.f32.mrb[0].mxu0 }
 0x2d3   :  { %v17557_v25 = vadd.f32 %v1608_v24, %v17550_v19  ;;  %v1610_v8 = vpop.f32.mrb[1].mxu0 }
 0x2d4   :  { %v17560_v9 = vadd.f32 %v1610_v8, %v17554_v20  ;;  %v1612_v13 = vpop.f32.mrb[2].mxu0 }
 0x2d5   :  { %v17563_v27 = vadd.f32 %v1612_v13, %v17550_v19  ;;  %v1614_v28 = vpop.f32.mrb[3].mxu0 }
 0x2d6   :  { %v17566_v29 = vadd.f32 %v1614_v28, %v17554_v20  ;;  %v15569_v30 = vpack.i.bf16 %v17560_v9, %v17557_v25 }
 0x2d8   :  { %15570 = vrot.lane.b32.xlu0 %v15569_v30, %s16914_s1  ;;  %v15584_v34 = vpack.i.bf16 %v17566_v29, %v17563_v27 }
 0x2da   :  { %15585 = vrot.lane.b32.xlu1 %v15584_v34, %s16915_s15  ;;  %v1618_v36 = vpop.f32.mrb[4].mxu0 }
 0x2db   :  { %v17575_v38 = vadd.f32 %v1618_v36, %v17550_v19  ;;  %v1620_v40 = vpop.f32.mrb[5].mxu0 }
 0x2dc   :  { %v17578_v42 = vadd.f32 %v1620_v40, %v17554_v20  ;;  %15575 = vrot.lane.b32.xlu0 %v15569_v30, %s16915_s15  ;;  %v1622_v33 = vpop.f32.mrb[6].mxu0 }
 0x2dd   :  { %v1624_v43 = vpop.f32.mrb[7].mxu0  ;;  %v17582_v45 = vadd.f32 %v1622_v33, %v17550_v19 }
 0x2de   :  { %v17585_v46 = vadd.f32 %v1624_v43, %v17554_v20  ;;  %v15589_v49 = vpack.i.bf16 %v17578_v42, %v17575_v38 }
 0x2e0   :  { %15580 = vrot.lane.b32.xlu0 %v15584_v34, %s16914_s1  ;;  %15590 = vrot.lane.b32.xlu1 %v15589_v49, %s16914_s1  ;;  %v15599_v61 = vpack.i.bf16 %v17585_v46, %v17582_v45 }
 0x2e2   :  { %v1628_v58 = vpop.f32.mrb[8].mxu0 }
 0x2e3   :  { %v17594_v62 = vadd.f32 %v1628_v58, %v17550_v19  ;;  %v1630_v2 = vpop.f32.mrb[9].mxu0 }
 0x2e4   :  { %v17599_v14 = vadd.f32 %v1630_v2, %v17554_v20  ;;  %15595 = vrot.lane.b32.xlu0 %v15589_v49, %s16915_s15  ;;  %15600 = vrot.lane.b32.xlu1 %v15599_v61, %s16914_s1  ;;  %v1632_v10 = vpop.f32.mrb[10].mxu0 }
 0x2e5   :  { %v1634_v12 = vpop.f32.mrb[11].mxu0  ;;  %v17604_v15 = vadd.f32 %v1632_v10, %v17550_v19 }
 0x2e6   :  { %v17607_v22 = vadd.f32 %v1634_v12, %v17554_v20  ;;  %v15609_v31 = vpack.i.bf16 %v17599_v14, %v17594_v62 }
 0x2e8   :  { %15605 = vrot.lane.b32.xlu1 %v15599_v61, %s16915_s15  ;;  %15610 = vrot.lane.b32.xlu0 %v15609_v31, %s16914_s1  ;;  %v15619_v41 = vpack.i.bf16 %v17607_v22, %v17604_v15 }
 0x2ea   :  { %v1638_v39 = vpop.f32.mrb[12].mxu0 }
 0x2eb   :  { %v17617_v47 = vadd.f32 %v1638_v39, %v17550_v19  ;;  %v1640_v48 = vpop.f32.mrb[13].mxu0 }
 0x2ec   :  { %v17620_v51 = vadd.f32 %v1640_v48, %v17554_v20  ;;  %15615 = vrot.lane.b32.xlu0 %v15609_v31, %s16915_s15  ;;  %15620 = vrot.lane.b32.xlu1 %v15619_v41, %s16914_s1  ;;  %v1642_v52 = vpop.f32.mrb[14].mxu0 }
 0x2ed   :  { %v1644_v55 = vpop.f32.mrb[15].mxu0  ;;  %v17625_v56 = vadd.f32 %v1642_v52, %v17550_v19 }
 0x2ee   :  { %v17628_v59 = vadd.f32 %v1644_v55, %v17554_v20  ;;  %v15629_v63 = vpack.i.bf16 %v17620_v51, %v17617_v47 }
 0x2f0   :  { %15625 = vrot.lane.b32.xlu1 %v15619_v41, %s16915_s15  ;;  %15630 = vrot.lane.b32.xlu0 %v15629_v63, %s16914_s1  ;;  %v15639_v5 = vpack.i.bf16 %v17628_v59, %v17625_v56 }
 0x2f2   :  { %v1648_v1 = vpop.f32.mrb[16].mxu0 }
 0x2f3   :  { %v17637_v6 = vadd.f32 %v1648_v1, %v17550_v19  ;;  %v1650_v11 = vpop.f32.mrb[17].mxu0 }
 0x2f4   :  { %v17640_v17 = vadd.f32 %v1650_v11, %v17554_v20  ;;  %15635 = vrot.lane.b32.xlu0 %v15629_v63, %s16915_s15  ;;  %15640 = vrot.lane.b32.xlu1 %v15639_v5, %s16914_s1  ;;  %v1652_v18 = vpop.f32.mrb[18].mxu0 }
 0x2f5   :  { %v1654_v21 = vpop.f32.mrb[19].mxu0  ;;  %v17645_v23 = vadd.f32 %v1652_v18, %v17550_v19 }
 0x2f6   :  { %v17648_v24 = vadd.f32 %v1654_v21, %v17554_v20  ;;  %v15649_v8 = vpack.i.bf16 %v17640_v17, %v17637_v6 }
 0x2f8   :  { %15645 = vrot.lane.b32.xlu1 %v15639_v5, %s16915_s15  ;;  %15650 = vrot.lane.b32.xlu0 %v15649_v8, %s16914_s1  ;;  %v15659_v26 = vpack.i.bf16 %v17648_v24, %v17645_v23 }
 0x2fa   :  { %v1658_v13 = vpop.f32.mrb[20].mxu0 }
 0x2fb   :  { %v17657_v28 = vadd.f32 %v1658_v13, %v17550_v19  ;;  %v1660_v30 = vpop.f32.mrb[21].mxu0 }
 0x2fc   :  { %v17660_v32 = vadd.f32 %v1660_v30, %v17554_v20  ;;  %15655 = vrot.lane.b32.xlu0 %v15649_v8, %s16915_s15  ;;  %15660 = vrot.lane.b32.xlu1 %v15659_v26, %s16914_s1  ;;  %v1662_v34 = vpop.f32.mrb[22].mxu0 }
 0x2fd   :  { %v1664_v35 = vpop.f32.mrb[23].mxu0  ;;  %v17665_v36 = vadd.f32 %v1662_v34, %v17550_v19 }
 0x2fe   :  { %v17668_v37 = vadd.f32 %v1664_v35, %v17554_v20  ;;  %v15669_v40 = vpack.i.bf16 %v17660_v32, %v17657_v28 }
 0x300   :  { %15665 = vrot.lane.b32.xlu1 %v15659_v26, %s16915_s15  ;;  %15670 = vrot.lane.b32.xlu0 %v15669_v40, %s16914_s1  ;;  %v15679_v43 = vpack.i.bf16 %v17668_v37, %v17665_v36 }
 0x302   :  { %v1668_v33 = vpop.f32.mrb[24].mxu0 }
 0x303   :  { %v17677_v44 = vadd.f32 %v1668_v33, %v17550_v19  ;;  %v1670_v49 = vpop.f32.mrb[25].mxu0 }
 0x304   :  { %v17680_v50 = vadd.f32 %v1670_v49, %v17554_v20  ;;  %15675 = vrot.lane.b32.xlu0 %v15669_v40, %s16915_s15  ;;  %15680 = vrot.lane.b32.xlu1 %v15679_v43, %s16914_s1  ;;  %v1672_v53 = vpop.f32.mrb[26].mxu0 }
 0x305   :  { %v1674_v54 = vpop.f32.mrb[27].mxu0  ;;  %v17685_v57 = vadd.f32 %v1672_v53, %v17550_v19 }
 0x306   :  { %v17688_v58 = vadd.f32 %v1674_v54, %v17554_v20  ;;  %v15689_v61 = vpack.i.bf16 %v17680_v50, %v17677_v44 }
 0x308   :  { %15685 = vrot.lane.b32.xlu1 %v15679_v43, %s16915_s15  ;;  %15690 = vrot.lane.b32.xlu0 %v15689_v61, %s16914_s1  ;;  %v15699_v3 = vpack.i.bf16 %v17688_v58, %v17685_v57 }
 0x30a   :  { %v1678_v2 = vpop.f32.mrb[28].mxu0 }
 0x30b   :  { %v17697_v10 = vadd.f32 %v1678_v2, %v17550_v19  ;;  %v1680_v12 = vpop.f32.mrb[29].mxu0 }
 0x30c   :  { %v17700_v31 = vadd.f32 %v1680_v12, %v17554_v20  ;;  %15695 = vrot.lane.b32.xlu0 %v15689_v61, %s16915_s15  ;;  %15700 = vrot.lane.b32.xlu1 %v15699_v3, %s16914_s1  ;;  %v1682_v39 = vpop.f32.mrb[30].mxu0 }
 0x30d   :  { %v1684_v41 = vpop.f32.mrb[31].mxu0  ;;  %v17705_v48 = vadd.f32 %v1682_v39, %v17550_v19 }
 0x30e   :  { %v17708_v52 = vadd.f32 %v1684_v41, %v17554_v20  ;;  %v15709_v55 = vpack.i.bf16 %v17700_v31, %v17697_v10 }
 0x310   :  { %15705 = vrot.lane.b32.xlu1 %v15699_v3, %s16915_s15  ;;  %15710 = vrot.lane.b32.xlu0 %v15709_v55, %s16914_s1  ;;  %v15719_v1 = vpack.i.bf16 %v17708_v52, %v17705_v48 }
 0x312   :  { %v1688_v63 = vpop.f32.mrb[32].mxu0 }
 0x313   :  { %v17717_v5 = vadd.f32 %v1688_v63, %v17550_v19  ;;  %v1690_v11 = vpop.f32.mrb[33].mxu0 }
 0x314   :  { %v17720_v18 = vadd.f32 %v1690_v11, %v17554_v20  ;;  %15715 = vrot.lane.b32.xlu0 %v15709_v55, %s16915_s15  ;;  %15720 = vrot.lane.b32.xlu1 %v15719_v1, %s16914_s1  ;;  %v1692_v21 = vpop.f32.mrb[34].mxu0 }
 0x315   :  { %v1694_v8 = vpop.f32.mrb[35].mxu0  ;;  %v17725_v13 = vadd.f32 %v1692_v21, %v17550_v19 }
 0x316   :  { %v17728_v26 = vadd.f32 %v1694_v8, %v17554_v20  ;;  %v15729_v30 = vpack.i.bf16 %v17720_v18, %v17717_v5 }
 0x318   :  { %15725 = vrot.lane.b32.xlu1 %v15719_v1, %s16915_s15  ;;  %15730 = vrot.lane.b32.xlu0 %v15729_v30, %s16914_s1  ;;  %v15739_v35 = vpack.i.bf16 %v17728_v26, %v17725_v13 }
 0x31a   :  { %v1698_v34 = vpop.f32.mrb[36].mxu0 }
 0x31b   :  { %v17737_v40 = vadd.f32 %v1698_v34, %v17550_v19  ;;  %v1700_v33 = vpop.f32.mrb[37].mxu0 }
 0x31c   :  { %v17740_v43 = vadd.f32 %v1700_v33, %v17554_v20  ;;  %15735 = vrot.lane.b32.xlu0 %v15729_v30, %s16915_s15  ;;  %15740 = vrot.lane.b32.xlu1 %v15739_v35, %s16914_s1  ;;  %v1702_v49 = vpop.f32.mrb[38].mxu0 }
 0x31d   :  { %v1704_v53 = vpop.f32.mrb[39].mxu0  ;;  %v17745_v54 = vadd.f32 %v1702_v49, %v17550_v19 }
 0x31e   :  { %v17748_v61 = vadd.f32 %v1704_v53, %v17554_v20  ;;  %v15749_v2 = vpack.i.bf16 %v17740_v43, %v17737_v40 }
 0x320   :  { %15745 = vrot.lane.b32.xlu1 %v15739_v35, %s16915_s15  ;;  %15750 = vrot.lane.b32.xlu0 %v15749_v2, %s16914_s1  ;;  %v15759_v12 = vpack.i.bf16 %v17748_v61, %v17745_v54 }
 0x322   :  { %v1708_v3 = vpop.f32.mrb[40].mxu0 }
 0x323   :  { %v17757_v39 = vadd.f32 %v1708_v3, %v17550_v19  ;;  %v1710_v41 = vpop.f32.mrb[41].mxu0 }
 0x324   :  { %v17760_v55 = vadd.f32 %v1710_v41, %v17554_v20  ;;  %15755 = vrot.lane.b32.xlu0 %v15749_v2, %s16915_s15  ;;  %15760 = vrot.lane.b32.xlu1 %v15759_v12, %s16914_s1  ;;  %v1712_v63 = vpop.f32.mrb[42].mxu0 }
 0x325   :  { %21941 = vst [vmem:[#allocation9_spill] sm:$0xff] %v17757_v39  ;;  %v1714_v1 = vpop.f32.mrb[43].mxu0  ;;  %v17765_v11 = vadd.f32 %v1712_v63, %v17550_v19 }
 0x326   :  { %v17768_v21 = vadd.f32 %v1714_v1, %v17554_v20  ;;  %v15769_v8 = vpack.i.bf16 %v17760_v55, %v17757_v39 }
 0x327   :  { %21942 = vst [vmem:[#allocation10_spill] sm:$0xff] %v17765_v11 }
 0x328   :  { %21943 = vst [vmem:[#allocation11_spill] sm:$0xff] %v17768_v21  ;;  %15765 = vrot.lane.b32.xlu1 %v15759_v12, %s16915_s15  ;;  %15770 = vrot.lane.b32.xlu0 %v15769_v8, %s16914_s1  ;;  %v15779_v34 = vpack.i.bf16 %v17768_v21, %v17765_v11 }
 0x32a   :  { %v1718_v30 = vpop.f32.mrb[44].mxu0 }
 0x32b   :  { %v17777_v35 = vadd.f32 %v1718_v30, %v17550_v19  ;;  %v1720_v33 = vpop.f32.mrb[45].mxu0 }
 0x32c   :  { %v17780_v49 = vadd.f32 %v1720_v33, %v17554_v20  ;;  %15775 = vrot.lane.b32.xlu0 %v15769_v8, %s16915_s15  ;;  %15780 = vrot.lane.b32.xlu1 %v15779_v34, %s16914_s1  ;;  %v1722_v53 = vpop.f32.mrb[46].mxu0 }
 0x32d   :  { %21944 = vst [vmem:[#allocation12_spill] sm:$0xff] %v17777_v35  ;;  %v1724_v2 = vpop.f32.mrb[47].mxu0  ;;  %v17785_v3 = vadd.f32 %v1722_v53, %v17550_v19 }
 0x32e   :  { %21945 = vst [vmem:[#allocation13_spill] sm:$0xff] %v17780_v49  ;;  %v17788_v12 = vadd.f32 %v1724_v2, %v17554_v20  ;;  %v15789_v41 = vpack.i.bf16 %v17780_v49, %v17777_v35 }
 0x32f   :  { %21946 = vst [vmem:[#allocation14_spill] sm:$0xff] %v17785_v3 }
 0x330   :  { %21947 = vst [vmem:[#allocation15_spill] sm:$0xff] %v17788_v12  ;;  %15785 = vrot.lane.b32.xlu1 %v15779_v34, %s16915_s15  ;;  %15790 = vrot.lane.b32.xlu0 %v15789_v41, %s16914_s1  ;;  %v15799_v1 = vpack.i.bf16 %v17788_v12, %v17785_v3 }
 0x332   :  { %v1728_v63 = vpop.f32.mrb[48].mxu0 }
 0x333   :  { %v17797_v8 = vadd.f32 %v1728_v63, %v17550_v19  ;;  %v1730_v30 = vpop.f32.mrb[49].mxu0 }
 0x334   :  { %v17800_v33 = vadd.f32 %v1730_v30, %v17554_v20  ;;  %15795 = vrot.lane.b32.xlu0 %v15789_v41, %s16915_s15  ;;  %15800 = vrot.lane.b32.xlu1 %v15799_v1, %s16914_s1  ;;  %v1732_v53 = vpop.f32.mrb[50].mxu0 }
 0x335   :  { %21948 = vst [vmem:[#allocation16_spill] sm:$0xff] %v17797_v8  ;;  %v1734_v2 = vpop.f32.mrb[51].mxu0  ;;  %v17805_v34 = vadd.f32 %v1732_v53, %v17550_v19 }
 0x336   :  { %21949 = vst [vmem:[#allocation17_spill] sm:$0xff] %v17800_v33  ;;  %v17808_v60 = vadd.f32 %v1734_v2, %v17554_v20  ;;  %v15809_v63 = vpack.i.bf16 %v17800_v33, %v17797_v8 }
 0x337   :  { %21950 = vst [vmem:[#allocation18_spill] sm:$0xff] %v17805_v34 }
 0x338   :  { %21951 = vst [vmem:[#allocation19_spill] sm:$0xff] %v17808_v60  ;;  %15805 = vrot.lane.b32.xlu1 %v15799_v1, %s16915_s15  ;;  %15810 = vrot.lane.b32.xlu0 %v15809_v63, %s16914_s1  ;;  %v15819_v41 = vpack.i.bf16 %v17808_v60, %v17805_v34 }
 0x33a   :  { %v1738_v30 = vpop.f32.mrb[52].mxu0 }
 0x33b   :  { %v17817_v16 = vadd.f32 %v1738_v30, %v17550_v19  ;;  %v1740_v7 = vpop.f32.mrb[53].mxu0 }
 0x33c   :  { %v17820_v53 = vadd.f32 %v1740_v7, %v17554_v20  ;;  %15815 = vrot.lane.b32.xlu1 %v15809_v63, %s16915_s15  ;;  %15820 = vrot.lane.b32.xlu0 %v15819_v41, %s16914_s1  ;;  %v1742_v2 = vpop.f32.mrb[54].mxu0 }
 0x33d   :  { %21952 = vst [vmem:[#allocation20_spill] sm:$0xff] %v17817_v16  ;;  %v1744_v0 = vpop.f32.mrb[55].mxu0  ;;  %v17825_v1 = vadd.f32 %v1742_v2, %v17550_v19 }
 0x33e   :  { %21953 = vst [vmem:[#allocation21_spill] sm:$0xff] %v17820_v53  ;;  %v17828_v4 = vadd.f32 %v1744_v0, %v17554_v20  ;;  %v15829_v30 = vpack.i.bf16 %v17820_v53, %v17817_v16 }
 0x33f   :  { %21954 = vst [vmem:[#allocation22_spill] sm:$0xff] %v17825_v1 }
 0x340   :  { %21955 = vst [vmem:[#allocation23_spill] sm:$0xff] %v17828_v4  ;;  %15825 = vrot.lane.b32.xlu1 %v15819_v41, %s16915_s15  ;;  %15830 = vrot.lane.b32.xlu0 %v15829_v30, %s16914_s1  ;;  %v15839_v7 = vpack.i.bf16 %v17828_v4, %v17825_v1 }
 0x344   :  { %15835 = vrot.lane.b32.xlu1 %v15829_v30, %s16915_s15  ;;  %15840 = vrot.lane.b32.xlu0 %v15839_v7, %s16914_s1 }
 0x348   :  { %15845 = vrot.lane.b32.xlu1 %v15839_v7, %s16915_s15 }
 0x34a   :  { %v15571_v19 = vpop.permute.xlu0 %15570 }
 0x34b   :  { %v15573_v63 = vunpack.i.h.bf16 %v15571_v19  ;;  %v15572_v0 = vunpack.i.l.bf16 %v15571_v19 }
 0x34c   :  { %v15586_v20 = vpop.permute.xlu1 %15585 }
 0x34d   :  { %v1972_v16 = vsel %vm1971_vm2, %v15572_v0, %v15573_v63  ;;  %v15588_v53 = vunpack.i.h.bf16 %v15586_v20  ;;  %v15587_v60 = vunpack.i.l.bf16 %v15586_v20  ;;  %v2057_v7 = vmax.f32 %v17560_v9, %v15573_v63 }
 0x34e   :  { %v15576_v2 = vpop.permute.xlu0 %15575  ;;  %v2056_v19 = vmax.f32 %v17557_v25, %v1972_v16 }
 0x34f   :  { %v15578_v41 = vunpack.i.h.bf16 %v15576_v2  ;;  %v15577_v34 = vunpack.i.l.bf16 %v15576_v2  ;;  %v2226_v20 = vsel %vm2224_vm3, %v15587_v60, %v15588_v53 }
 0x351   :  { %v2225_v12 = vsel %vm2224_vm3, %v15577_v34, %v15578_v41  ;;  %v2310_v49 = vmax.f32 %v2057_v7, %v15578_v41 }
 0x352   :  { %v15581_v1 = vpop.permute.xlu0 %15580  ;;  %v15591_v4 = vpop.permute.xlu1 %15590  ;;  %v2309_v34 = vmax.f32 %v2056_v19, %v2225_v12 }
 0x353   :  { %v15583_v30 = vunpack.i.h.bf16 %v15581_v1  ;;  %v15582_v8 = vunpack.i.l.bf16 %v15581_v1  ;;  %v15593_v33 = vunpack.i.h.bf16 %v15591_v4  ;;  %v15592_v3 = vunpack.i.l.bf16 %v15591_v4 }
 0x355   :  { %v2059_v35 = vmax.f32 %v17566_v29, %v15583_v30  ;;  %v1973_v0 = vsel %vm1971_vm2, %v15582_v8, %v15583_v30  ;;  %v1974_v2 = vsel %vm1971_vm2, %v15592_v3, %v15593_v33  ;;  %v2061_v1 = vmax.f32 %v17578_v42, %v15593_v33  ;;  %v16242_v30 = vld [vmem:[#allocation2 + $0xf8] ss:$0 sps:$4 sm:$0x77]  }
 0x356   :  { %v2058_v11 = vmax.f32 %v17563_v27, %v1973_v0  ;;  %v15596_v4 = vpop.permute.xlu0 %15595  ;;  %v15601_v21 = vpop.permute.xlu1 %15600  ;;  %v2060_v29 = vmax.f32 %v17575_v38, %v1974_v2  ;;  %v17855_v19 = vsel %vm2955_vm1, %v16242_v30, 0 }
 0x357   :  { %v2312_v9 = vmax.f32 %v2059_v35, %v15588_v53  ;;  %v15598_v63 = vunpack.i.h.bf16 %v15596_v4  ;;  %v15597_v16 = vunpack.i.l.bf16 %v15596_v4  ;;  %v15603_v25 = vunpack.i.h.bf16 %v15601_v21 }
 0x358   :  { %v15602_v39 = vunpack.i.l.bf16 %v15601_v21  ;;  %v2311_v8 = vmax.f32 %v2058_v11, %v2226_v20 }
 0x359   :  { %v2227_v3 = vsel %vm2224_vm3, %v15597_v16, %v15598_v63  ;;  %v2314_v60 = vmax.f32 %v2061_v1, %v15598_v63  ;;  %v2366_v41 = vmax.f32 %v2310_v49, %v2312_v9  ;;  %v2063_v35 = vmax.f32 %v17585_v46, %v15603_v25 }
 0x35a   :  { %v2313_v7 = vmax.f32 %v2060_v29, %v2227_v3  ;;  %v1975_v27 = vsel %vm1971_vm2, %v15602_v39, %v15603_v25  ;;  %v15606_v42 = vpop.permute.xlu1 %15605  ;;  %v15611_v33 = vpop.permute.xlu0 %15610  ;;  %v2365_v0 = vmax.f32 %v2309_v34, %v2311_v8 }
 0x35b   :  { %v15608_v53 = vunpack.i.h.bf16 %v15606_v42  ;;  %v15607_v4 = vunpack.i.l.bf16 %v15606_v42  ;;  %v15613_v12 = vunpack.i.h.bf16 %v15611_v33  ;;  %v2062_v38 = vmax.f32 %v17582_v45, %v1975_v27 }
 0x35c   :  { %v15612_v11 = vunpack.i.l.bf16 %v15611_v33  ;;  %v2418_v21 = vmax.f32 %v2366_v41, %v2314_v60  ;;  %v2368_v39 = vmax.f32 %v2312_v9, %v2314_v60  ;;  %v2367_v20 = vmax.f32 %v2311_v8, %v2313_v7 }
 0x35d   :  { %v2228_v49 = vsel %vm2224_vm3, %v15607_v4, %v15608_v53  ;;  %v17858_v2 = vmax.f32 %v2063_v35, %v15608_v53  ;;  %v2065_v46 = vmax.f32 %v17599_v14, %v15613_v12  ;;  %v2417_v45 = vmax.f32 %v2365_v0, %v2313_v7 }
 0x35e   :  { %v17860_v1 = vmax.f32 %v2062_v38, %v2228_v49  ;;  %v1976_v63 = vsel %vm1971_vm2, %v15612_v11, %v15613_v12  ;;  %v15616_v16 = vpop.permute.xlu0 %15615  ;;  %v15621_v25 = vpop.permute.xlu1 %15620  ;;  %v2470_v30 = vmax.f32 %v2418_v21, 0.0 }
 0x35f   :  { %v15618_v34 = vunpack.i.h.bf16 %v15616_v16  ;;  %v15617_v29 = vunpack.i.l.bf16 %v15616_v16  ;;  %v15623_v3 = vunpack.i.h.bf16 %v15621_v25  ;;  %v2064_v41 = vmax.f32 %v17594_v62, %v1976_v63 }
 0x360   :  { %v15622_v27 = vunpack.i.l.bf16 %v15621_v25  ;;  %v2370_v42 = vmax.f32 %v2314_v60, %v17858_v2  ;;  %v2420_v9 = vmax.f32 %v2368_v39, %v17858_v2  ;;  %v2369_v14 = vmax.f32 %v2313_v7, %v17860_v1 }
 0x361   :  { %v2229_v8 = vsel %vm2224_vm3, %v15617_v29, %v15618_v34  ;;  %v2318_v33 = vmax.f32 %v2065_v46, %v15618_v34  ;;  %v2419_v35 = vmax.f32 %v2367_v20, %v17860_v1  ;;  %v2067_v0 = vmax.f32 %v17607_v22, %v15623_v3 }
 0x362   :  { %v17870_v53 = vmax.f32 %v2064_v41, %v2229_v8  ;;  %v1977_v4 = vsel %vm1971_vm2, %v15622_v27, %v15623_v3  ;;  %v15626_v12 = vpop.permute.xlu1 %15625  ;;  %v15631_v62 = vpop.permute.xlu0 %15630  ;;  %v2472_v38 = vmax.f32 %v2420_v9, 0.0  ;;  %v2469_v49 = vmax.f32 %v2417_v45, 0.0  ;;  %v16232_v41 = vld [vmem:[#allocation2 + $0x8] ss:$12 sps:$4 sm:$0xff]  }
 0x363   :  { %v2066_v60 = vmax.f32 %v17604_v15, %v1977_v4  ;;  %v15628_v11 = vunpack.i.h.bf16 %v15626_v12  ;;  %v15627_v21 = vunpack.i.l.bf16 %v15626_v12  ;;  %v15633_v39 = vunpack.i.h.bf16 %v15631_v62 }
 0x364   :  { %v15632_v46 = vunpack.i.l.bf16 %v15631_v62  ;;  %v17875_v63 = vmax.f32 %v2370_v42, %v2318_v33  ;;  %v17877_v7 = vpack.c.bf16 %v2472_v38, %v2470_v30  ;;  %v17881_v22 = vmax.f32 %v2369_v14, %v17870_v53 }
 0x365   :  { %v2230_v20 = vsel %vm2224_vm3, %v15627_v21, %v15628_v11  ;;  %v2320_v16 = vmax.f32 %v2067_v0, %v15628_v11  ;;  %v2471_v25 = vmax.f32 %v2419_v35, 0.0  ;;  %v2372_v34 = vmax.f32 %v17858_v2, %v2318_v33 }
 0x366   :  { %v2319_v29 = vmax.f32 %v2066_v60, %v2230_v20  ;;  %v1978_v15 = vsel %vm1971_vm2, %v15632_v46, %v15633_v39  ;;  %v2474_v45 = vmax.f32 %v17875_v63, 0.0  ;;  %12164 = vmatprep.mubr.msk.bf16.mxu1 %vm2921_vm4, %v17877_v7  ;;  %v15636_v3 = vpop.permute.xlu0 %15635  ;;  %v15641_v30 = vpop.permute.xlu1 %15640  ;;  %v2069_v42 = vmax.f32 %v17620_v51, %v15633_v39 }
 0x367   :  { %v2374_v27 = vmax.f32 %v2318_v33, %v2320_v16  ;;  %v2473_v9 = vmax.f32 %v17881_v22, 0.0  ;;  %v17890_v8 = vpack.c.bf16 %v2471_v25, %v2469_v49  ;;  %v2068_v2 = vmax.f32 %v17617_v47, %v1978_v15  ;;  %v16233_v49 = vld [vmem:[#allocation2 + $0x20] ss:$12 sps:$4 sm:$0xff]  }
 0x368   :  { %v17893_v14 = vpack.c.bf16 %v2474_v45, %v2472_v38  ;;  %v15638_v35 = vunpack.i.h.bf16 %v15636_v3  ;;  %v15637_v0 = vunpack.i.l.bf16 %v15636_v3  ;;  %v2373_v4 = vmax.f32 %v17870_v53, %v2319_v29 }
 0x369   :  { %2998 = vmatmul.mubr.bf16.vlgmr.msra.gmra.mrb[0].mxu1 %v17890_v8  ;;  %v17899_v12 = vpack.c.bf16 %v2473_v9, %v2471_v25  ;;  %v15643_v33 = vunpack.i.h.bf16 %v15641_v30  ;;  %v15642_v51 = vunpack.i.l.bf16 %v15641_v30  ;;  %v17904_v11 = vmax.f32 %v2372_v34, %v2320_v16 }
 0x36a   :  { %21956 = vst [vmem:[#allocation24_spill] sm:$0xff] %v17893_v14  ;;  %v2231_v62 = vsel %vm2224_vm3, %v15637_v0, %v15638_v35  ;;  %v17902_v60 = vmax.f32 %v2069_v42, %v15638_v35  ;;  %3109 = vmatpush1.bf16.msra.mxu1 %v16232_v41  ;;  %v15646_v47 = vpop.permute.xlu1 %15645  ;;  %v15651_v38 = vpop.permute.xlu0 %15650  ;;  %v2371_v21 = vmax.f32 %v17860_v1, %v17870_v53  ;;  %v21959_v25 = vmov 0  }
 0x36b   :  { %21957 = vst [vmem:[#allocation25_spill] sm:$0xff] %v17899_v12  ;;  %21958 = vst [vmem:[#allocation26_spill] sm:$0xff] %v17904_v11  ;;  %v17908_v39 = vmax.f32 %v2068_v2, %v2231_v62  ;;  %v2071_v46 = vmax.f32 %v17628_v59, %v15643_v33  ;;  %v1979_v63 = vsel %vm1971_vm2, %v15642_v51, %v15643_v33  ;;  %v15648_v20 = vunpack.i.h.bf16 %v15646_v47 }
 0x36c   :  { %3110 = vmatprep.subr.bf16.mxu1 %v21959_v25  ;;  %v2376_v15 = vmax.f32 %v2320_v16, %v17902_v60  ;;  %v17915_v3 = vmax.f32 %v2374_v27, %v17902_v60  ;;  %v2070_v34 = vmax.f32 %v17625_v56, %v1979_v63  ;;  %v15647_v30 = vunpack.i.l.bf16 %v15646_v47  ;;  %v16234_v56 = vld [vmem:[#allocation2 + $0x38] ss:$12 sps:$4 sm:$0xff]  }
 0x36d   :  { %v2375_v1 = vmax.f32 %v2319_v29, %v17908_v39  ;;  %v17920_v53 = vmax.f32 %v2373_v4, %v17908_v39  ;;  %v17922_v41 = vmax.f32 %v2071_v46, %v15648_v20  ;;  %v15653_v59 = vunpack.i.h.bf16 %v15651_v38 }
 0x36e   :  { %21960 = vst [vmem:[#allocation27_spill] sm:$0xff] %v17915_v3  ;;  %v21804_v42 = vmax.f32 %v17915_v3, 0.0  ;;  %v2232_v2 = vsel %vm2224_vm3, %v15647_v30, %v15648_v20  ;;  %v15652_v35 = vunpack.i.l.bf16 %v15651_v38  ;;  %v21808_v16 = vmax.f32 %v17904_v11, 0.0  ;;  %v15656_v27 = vpop.permute.xlu0 %15655  ;;  %v15661_v0 = vpop.permute.xlu1 %15660  ;;  %3111 = vmatpush1.bf16.msra.mxu1 %v16233_v49  ;;  %v21995_v11 = vld [vmem:[#allocation10_spill] sm:$0xff] }
 0x36f   :  { %21961 = vst [vmem:[#allocation28_spill] sm:$0xff] %v17920_v53  ;;  %v21807_v33 = vmax.f32 %v17920_v53, 0.0  ;;  %v2323_v51 = vmax.f32 %v2070_v34, %v2232_v2  ;;  %v2378_v4 = vmax.f32 %v17902_v60, %v17922_v41  ;;  %v17931_v62 = vmax.f32 %v2376_v15, %v17922_v41  ;;  %3112 = vmatprep.subr.bf16.mxu1 %v21959_v25 }
 0x370   :  { %v2073_v47 = vmax.f32 %v17640_v17, %v15653_v59  ;;  %v1980_v38 = vsel %vm1971_vm2, %v15652_v35, %v15653_v59  ;;  %v17938_v46 = vpack.c.bf16 %v21808_v16, %v2474_v45  ;;  %v17940_v49 = vmax.f32 %v2371_v21, %v2319_v29 }
 0x371   :  { %21962 = vst [vmem:[#allocation29_spill] sm:$0xff] %v17931_v62  ;;  %v2377_v63 = vmax.f32 %v17908_v39, %v2323_v51  ;;  %v17943_v20 = vmax.f32 %v2375_v1, %v2323_v51  ;;  %v21803_v60 = vmax.f32 %v17931_v62, 0.0  ;;  %v2072_v15 = vmax.f32 %v17637_v6, %v1980_v38  ;;  %v16235_v1 = vld [vmem:[#allocation2 + $0x50] ss:$12 sps:$4 sm:$0xff]  }
 0x372   :  { %21963 = vst [vmem:[#allocation30_spill] sm:$0xff] %v17940_v49  ;;  %12165 = vmatprep.mubr.msk.bf16.mxu1 %vm2921_vm4, %v17938_v46  ;;  %v21805_v17 = vmax.f32 %v17940_v49, 0.0  ;;  %v15658_v34 = vunpack.i.h.bf16 %v15656_v27  ;;  %v15657_v30 = vunpack.i.l.bf16 %v15656_v27  ;;  %v15663_v59 = vunpack.i.h.bf16 %v15661_v0  ;;  %v15666_v45 = vpop.permute.xlu1 %15665  ;;  %v15671_v2 = vpop.permute.xlu0 %15670  ;;  %3113 = vmatpush1.bf16.msra.mxu1 %v16234_v56 }
 0x373   :  { %21964 = vst [vmem:[#allocation31_spill] sm:$0xff] %v17943_v20  ;;  %v21806_v29 = vmax.f32 %v17943_v20, 0.0  ;;  %v17955_v21 = vpack.c.bf16 %v21803_v60, %v21804_v42  ;;  %v15662_v6 = vunpack.i.l.bf16 %v15661_v0  ;;  %v15668_v39 = vunpack.i.h.bf16 %v15666_v45  ;;  %3114 = vmatprep.subr.bf16.mxu1 %v21959_v25 }
 0x374   :  { %v17962_v35 = vpack.c.bf16 %v21805_v17, %v2473_v9  ;;  %v2233_v27 = vsel %vm2224_vm3, %v15657_v30, %v15658_v34  ;;  %v2326_v56 = vmax.f32 %v2073_v47, %v15658_v34  ;;  %v2075_v38 = vmax.f32 %v17648_v24, %v15663_v59 }
 0x375   :  { %21965 = vst [vmem:[#allocation32_spill] sm:$0xff] %v17955_v21  ;;  %v17970_v0 = vpack.c.bf16 %v21806_v29, %v21807_v33  ;;  %v17972_v60 = vmax.f32 %v2072_v15, %v2233_v27  ;;  %v1981_v42 = vsel %vm1971_vm2, %v15662_v6, %v15663_v59  ;;  %v15667_v22 = vunpack.i.l.bf16 %v15666_v45 }
 0x376   :  { %21966 = vst [vmem:[#allocation33_spill] sm:$0xff] %v17962_v35  ;;  %3008 = vmatmul.mubr.bf16.gmra.mrb[4].mxu1 %v17962_v35  ;;  %v2380_v9 = vmax.f32 %v17922_v41, %v2326_v56  ;;  %v17977_v17 = vmax.f32 %v2378_v4, %v2326_v56  ;;  %v2074_v47 = vmax.f32 %v17645_v23, %v1981_v42  ;;  %v15676_v34 = vpop.permute.xlu0 %15675  ;;  %v15681_v30 = vpop.permute.xlu1 %15680  ;;  %v15673_v45 = vunpack.i.h.bf16 %v15671_v2  ;;  %v16236_v41 = vld [vmem:[#allocation2 + $0x68] ss:$12 sps:$4 sm:$0xff]  }
 0x377   :  { %21967 = vst [vmem:[#allocation34_spill] sm:$0xff] %v17970_v0  ;;  %v17980_v24 = vmax.f32 %v2075_v38, %v15668_v39  ;;  %v2379_v29 = vmax.f32 %v2323_v51, %v17972_v60  ;;  %v17984_v15 = vmax.f32 %v2377_v63, %v17972_v60  ;;  %v2234_v59 = vsel %vm2224_vm3, %v15667_v22, %v15668_v39  ;;  %v16243_v35 = vld [vmem:[#allocation2 + $0xfc] ss:$12 sps:$4 sm:$0xff]  }
 0x378   :  { %21968 = vst [vmem:[#allocation35_spill] sm:$0xff] %v17977_v17  ;;  %12166 = vmatprep.mubr.msk.bf16.mxu1 %vm2921_vm4, %v17955_v21  ;;  %3115 = vmatpush1.bf16.msra.mxu1 %v16235_v1  ;;  %v21810_v4 = vmax.f32 %v17977_v17, 0.0  ;;  %v17990_v23 = vmax.f32 %v2074_v47, %v2234_v59  ;;  %v2077_v63 = vmax.f32 %v17660_v32, %v15673_v45  ;;  %v15672_v39 = vunpack.i.l.bf16 %v15671_v2  ;;  %v16237_v32 = vld [vmem:[#allocation2 + $0x80] ss:$12 sps:$4 sm:$0xff]  }
 0x379   :  { %21969 = vst [vmem:[#allocation36_spill] sm:$0xff] %v17984_v15  ;;  %v2382_v42 = vmax.f32 %v2326_v56, %v17980_v24  ;;  %v17994_v6 = vmax.f32 %v2380_v9, %v17980_v24  ;;  %3116 = vmatprep.subr.bf16.mxu1 %v21959_v25  ;;  %v15678_v27 = vunpack.i.h.bf16 %v15676_v34  ;;  %v15677_v56 = vunpack.i.l.bf16 %v15676_v34 }
 0x37a   :  { %v2381_v1 = vmax.f32 %v17972_v60, %v17990_v23  ;;  %v18002_v38 = vmax.f32 %v2379_v29, %v17990_v23  ;;  %v15686_v47 = vpop.permute.xlu1 %15685  ;;  %v15691_v9 = vpop.permute.xlu0 %15690  ;;  %v1982_v59 = vsel %vm1971_vm2, %v15672_v39, %v15673_v45  ;;  %v15683_v16 = vunpack.i.h.bf16 %v15681_v30 }
 0x37b   :  { %21970 = vst [vmem:[#allocation37_spill] sm:$0xff] %v17994_v6  ;;  %v21809_v22 = vmax.f32 %v17994_v6, 0.0  ;;  %v2330_v33 = vmax.f32 %v2077_v63, %v15678_v27  ;;  %v15682_v51 = vunpack.i.l.bf16 %v15681_v30  ;;  %v2076_v29 = vmax.f32 %v17657_v28, %v1982_v59 }
 0x37c   :  { %21971 = vst [vmem:[#allocation38_spill] sm:$0xff] %v18002_v38  ;;  %3117 = vmatpush1.bf16.msra.mxu1 %v16236_v41  ;;  %v21812_v2 = vmax.f32 %v18002_v38, 0.0  ;;  %v2235_v34 = vsel %vm2224_vm3, %v15677_v56, %v15678_v27  ;;  %v2079_v30 = vmax.f32 %v17668_v37, %v15683_v16  ;;  %v21974_v39 = vmax.f32 %v17984_v15, 0.0 }
 0x37d   :  { %v18011_v60 = vpack.c.bf16 %v21809_v22, %v21810_v4  ;;  %3118 = vmatprep.subr.bf16.mxu1 %v21959_v25  ;;  %v2384_v45 = vmax.f32 %v17980_v24, %v2330_v33  ;;  %v18017_v63 = vmax.f32 %v2382_v42, %v2330_v33  ;;  %v1983_v41 = vsel %vm1971_vm2, %v15682_v51, %v15683_v16  ;;  %v16238_v16 = vld [vmem:[#allocation2 + $0x98] ss:$12 sps:$4 sm:$0xff]  }
 0x37e   :  { %v18025_v22 = vpack.c.bf16 %v21812_v2, %v21974_v39  ;;  %3018 = vmatmul.mubr.bf16.gmra.mrb[8].mxu1 %v17970_v0  ;;  %v2329_v28 = vmax.f32 %v2076_v29, %v2235_v34  ;;  %v2078_v27 = vmax.f32 %v17665_v36, %v1983_v41  ;;  %v15688_v56 = vunpack.i.h.bf16 %v15686_v47  ;;  %v15696_v59 = vpop.permute.xlu0 %15695  ;;  %v15701_v24 = vpop.permute.xlu1 %15700 }
 0x37f   :  { %21972 = vst [vmem:[#allocation39_spill] sm:$0xff] %v18011_v60  ;;  %21973 = vst [vmem:[#allocation40_spill] sm:$0xff] %v18017_v63  ;;  %v15687_v4 = vunpack.i.l.bf16 %v15686_v47  ;;  %v15693_v37 = vunpack.i.h.bf16 %v15691_v9  ;;  %v15692_v6 = vunpack.i.l.bf16 %v15691_v9  ;;  %12167 = vmatprep.mubr.msk.bf16.mxu1 %vm2921_vm4, %v18011_v60  ;;  %v15698_v34 = vunpack.i.h.bf16 %v15696_v59 }
 0x380   :  { %21975 = vst [vmem:[#allocation41_spill] sm:$0xff] %v18025_v22  ;;  %3119 = vmatpush1.bf16.msra.mxu1 %v16237_v32  ;;  %v2383_v51 = vmax.f32 %v17990_v23, %v2329_v28  ;;  %v18033_v39 = vmax.f32 %v2381_v1, %v2329_v28  ;;  %v2332_v29 = vmax.f32 %v2079_v30, %v15688_v56  ;;  %v15697_v9 = vunpack.i.l.bf16 %v15696_v59 }
 0x381   :  { %3120 = vmatprep.subr.bf16.mxu1 %v21959_v25  ;;  %v2236_v36 = vsel %vm2224_vm3, %v15687_v4, %v15688_v56  ;;  %v2081_v41 = vmax.f32 %v17680_v50, %v15693_v37  ;;  %v1984_v47 = vsel %vm1971_vm2, %v15692_v6, %v15693_v37  ;;  %v15703_v17 = vunpack.i.h.bf16 %v15701_v24  ;;  %v16239_v4 = vld [vmem:[#allocation2 + $0xb0] ss:$12 sps:$4 sm:$0xff]  }
 0x382   :  { %21976 = vst [vmem:[#allocation42_spill] sm:$0xff] %v18033_v39  ;;  %v21817_v2 = vmax.f32 %v18033_v39, 0.0  ;;  %v2331_v42 = vmax.f32 %v2078_v27, %v2236_v36  ;;  %v2386_v32 = vmax.f32 %v2330_v33, %v2332_v29  ;;  %v18040_v38 = vmax.f32 %v2384_v45, %v2332_v29  ;;  %v15706_v23 = vpop.permute.xlu1 %15705  ;;  %v15711_v1 = vpop.permute.xlu0 %15710 }
 0x383   :  { %v2080_v30 = vmax.f32 %v17677_v44, %v1984_v47  ;;  %v2237_v15 = vsel %vm2224_vm3, %v15697_v9, %v15698_v34  ;;  %v2334_v20 = vmax.f32 %v2081_v41, %v15698_v34  ;;  %v15702_v59 = vunpack.i.l.bf16 %v15701_v24  ;;  %v16240_v47 = vld [vmem:[#allocation2 + $0xc8] ss:$12 sps:$4 sm:$0xff]  }
 0x384   :  { %3121 = vmatpush1.bf16.msra.mxu1 %v16238_v16  ;;  %v2385_v50 = vmax.f32 %v2329_v28, %v2331_v42  ;;  %v18044_v56 = vmax.f32 %v2383_v51, %v2331_v42  ;;  %v21819_v6 = vmax.f32 %v18040_v38, 0.0  ;;  %v2083_v44 = vmax.f32 %v17688_v58, %v15703_v17 }
 0x385   :  { %3122 = vmatprep.subr.bf16.mxu1 %v21959_v25  ;;  %v2333_v33 = vmax.f32 %v2080_v30, %v2237_v15  ;;  %v2388_v45 = vmax.f32 %v2332_v29, %v2334_v20  ;;  %v18048_v27 = vmax.f32 %v2386_v32, %v2334_v20  ;;  %v21977_v34 = vmax.f32 %v18017_v63, 0.0 }
 0x386   :  { %v21818_v37 = vmax.f32 %v18044_v56, 0.0  ;;  %3028 = vmatmul.mubr.bf16.gmra.mrb[12].mxu1 %v18025_v22  ;;  %v1985_v24 = vsel %vm1971_vm2, %v15702_v59, %v15703_v17  ;;  %v15708_v16 = vunpack.i.h.bf16 %v15706_v23  ;;  %v15716_v51 = vpop.permute.xlu0 %15715  ;;  %v15721_v15 = vpop.permute.xlu1 %15720  ;;  %v15707_v32 = vunpack.i.l.bf16 %v15706_v23 }
 0x387   :  { %v18056_v28 = vpack.c.bf16 %v21819_v6, %v21977_v34  ;;  %v2387_v29 = vmax.f32 %v2331_v42, %v2333_v33  ;;  %v18060_v36 = vmax.f32 %v2385_v50, %v2333_v33  ;;  %v2082_v41 = vmax.f32 %v17685_v57, %v1985_v24  ;;  %v16241_v42 = vld [vmem:[#allocation2 + $0xe0] ss:$12 sps:$4 sm:$0xff]  }
 0x388   :  { %3123 = vmatpush1.bf16.msra.mxu1 %v16239_v4  ;;  %v18068_v9 = vpack.c.bf16 %v21818_v37, %v21817_v2  ;;  %v2336_v17 = vmax.f32 %v2083_v44, %v15708_v16  ;;  %v15713_v30 = vunpack.i.h.bf16 %v15711_v1  ;;  %v15712_v50 = vunpack.i.l.bf16 %v15711_v1 }
 0x389   :  { %21978 = vst [vmem:[#allocation43_spill] sm:$0xff] %v18056_v28  ;;  %12168 = vmatprep.mubr.msk.bf16.mxu1 %vm2921_vm4, %v18056_v28  ;;  %3124 = vmatprep.subr.bf16.mxu1 %v21959_v25  ;;  %v15718_v57 = vunpack.i.h.bf16 %v15716_v51  ;;  %v15717_v4 = vunpack.i.l.bf16 %v15716_v51  ;;  %v2238_v59 = vsel %vm2224_vm3, %v15707_v32, %v15708_v16  ;;  %v15723_v39 = vunpack.i.h.bf16 %v15721_v15 }
 0x38a   :  { %21979 = vst [vmem:[#allocation44_spill] sm:$0xff] %v18068_v9  ;;  %v2390_v34 = vmax.f32 %v2334_v20, %v2336_v17  ;;  %v18075_v24 = vmax.f32 %v2388_v45, %v2336_v17  ;;  %v2085_v2 = vmax.f32 %v17700_v31, %v15713_v30  ;;  %v15726_v23 = vpop.permute.xlu1 %15725  ;;  %v15731_v44 = vpop.permute.xlu0 %15730  ;;  %v2335_v37 = vmax.f32 %v2082_v41, %v2238_v59 }
 0x38b   :  { %v1986_v6 = vsel %vm1971_vm2, %v15712_v50, %v15713_v30  ;;  %v2239_v58 = vsel %vm2224_vm3, %v15717_v4, %v15718_v57  ;;  %v15722_v20 = vunpack.i.l.bf16 %v15721_v15  ;;  %v2087_v41 = vmax.f32 %v17708_v52, %v15723_v39 }
 0x38c   :  { %3125 = vmatpush1.bf16.msra.mxu1 %v16240_v47  ;;  %v21821_v1 = vmax.f32 %v18075_v24, 0.0  ;;  %v2084_v51 = vmax.f32 %v17697_v10, %v1986_v6  ;;  %v18082_v16 = vmax.f32 %v2085_v2, %v15718_v57  ;;  %v2389_v31 = vmax.f32 %v2333_v33, %v2335_v37 }
 0x38d   :  { %3126 = vmatprep.subr.bf16.mxu1 %v21959_v25  ;;  %v18085_v45 = vmax.f32 %v2387_v29, %v2335_v37  ;;  %v15728_v32 = vunpack.i.h.bf16 %v15726_v23  ;;  %v21980_v30 = vmax.f32 %v18048_v27, 0.0  ;;  %v1987_v52 = vsel %vm1971_vm2, %v15722_v20, %v15723_v39 }
 0x38e   :  { %3038 = vmatmul.mubr.bf16.gmra.mrb[16].mxu1 %v18068_v9  ;;  %v2337_v10 = vmax.f32 %v2084_v51, %v2239_v58  ;;  %v2392_v2 = vmax.f32 %v2336_v17, %v18082_v16  ;;  %v18097_v6 = vmax.f32 %v2390_v34, %v18082_v16  ;;  %v15736_v33 = vpop.permute.xlu0 %15735  ;;  %v15741_v15 = vpop.permute.xlu1 %15740  ;;  %v15727_v50 = vunpack.i.l.bf16 %v15726_v23  ;;  %v16245_v34 = vld [vmem:[#allocation2 + $0x100] ss:$12 sps:$4 sm:$0xff]  }
 0x38f   :  { %v18092_v47 = vpack.c.bf16 %v21821_v1, %v21980_v30  ;;  %v21822_v29 = vmax.f32 %v18085_v45, 0.0  ;;  %v18101_v57 = vmax.f32 %v2087_v41, %v15728_v32  ;;  %v2086_v17 = vmax.f32 %v17705_v48, %v1987_v52 }
 0x390   :  { %3127 = vmatpush1.bf16.msra.mxu1 %v16241_v42  ;;  %v2391_v4 = vmax.f32 %v2335_v37, %v2337_v10  ;;  %v18103_v59 = vmax.f32 %v2389_v31, %v2337_v10  ;;  %v21982_v51 = vmax.f32 %v18060_v36, 0.0  ;;  %v2240_v37 = vsel %vm2224_vm3, %v15727_v50, %v15728_v32 }
 0x391   :  { %21981 = vst [vmem:[#allocation45_spill] sm:$0xff] %v18092_v47  ;;  %12169 = vmatprep.mubr.msk.bf16.mxu1 %vm2921_vm4, %v18092_v47  ;;  %3128 = vmatprep.subr.bf16.mxu1 %v21959_v25  ;;  %v2394_v42 = vmax.f32 %v18082_v16, %v18101_v57  ;;  %v18120_v23 = vmax.f32 %v2392_v2, %v18101_v57  ;;  %v15733_v31 = vunpack.i.h.bf16 %v15731_v44  ;;  %v15732_v41 = vunpack.i.l.bf16 %v15731_v44 }
 0x392   :  { %v18114_v39 = vpack.c.bf16 %v21822_v29, %v21982_v51  ;;  %v2339_v20 = vmax.f32 %v2086_v17, %v2240_v37  ;;  %v15746_v30 = vpop.permute.xlu1 %15745  ;;  %v15751_v52 = vpop.permute.xlu0 %15750  ;;  %v15738_v58 = vunpack.i.h.bf16 %v15736_v33  ;;  %v15737_v51 = vunpack.i.l.bf16 %v15736_v33 }
 0x393   :  { %v21825_v1 = vmax.f32 %v18120_v23, 0.0  ;;  %v15743_v29 = vunpack.i.h.bf16 %v15741_v15  ;;  %v2089_v16 = vmax.f32 %v17720_v18, %v15733_v31  ;;  %v1988_v2 = vsel %vm1971_vm2, %v15732_v41, %v15733_v31 }
 0x394   :  { %21983 = vst [vmem:[#allocation46_spill] sm:$0xff] %v18114_v39  ;;  %3129 = vmatpush1.bf16.msra.mxu1 %v17855_v19  ;;  %v2393_v32 = vmax.f32 %v2337_v10, %v2339_v20  ;;  %v18125_v50 = vmax.f32 %v2391_v4, %v2339_v20  ;;  %v21984_v17 = vmax.f32 %v18097_v6, 0.0  ;;  %v2088_v37 = vmax.f32 %v17717_v5, %v1988_v2 }
 0x395   :  { %3585 = vmatprep.subr.bf16.mxu1 %v16245_v34  ;;  %v2241_v33 = vsel %vm2224_vm3, %v15737_v51, %v15738_v58  ;;  %v2091_v19 = vmax.f32 %v17728_v26, %v15743_v29  ;;  %v2342_v18 = vmax.f32 %v2089_v16, %v15738_v58  ;;  %v15742_v4 = vunpack.i.l.bf16 %v15741_v15 }
 0x396   :  { %v18133_v44 = vpack.c.bf16 %v21825_v1, %v21984_v17  ;;  %v21826_v10 = vmax.f32 %v18125_v50, 0.0  ;;  %3048 = vmatmul.mubr.bf16.gmra.mrb[20].mxu1 %v18114_v39  ;;  %v15748_v31 = vunpack.i.h.bf16 %v15746_v30  ;;  %v15756_v34 = vpop.permute.xlu0 %15755  ;;  %v15761_v41 = vpop.permute.xlu1 %15760  ;;  %v2341_v48 = vmax.f32 %v2088_v37, %v2241_v33 }
 0x397   :  { %v15747_v63 = vunpack.i.l.bf16 %v15746_v30  ;;  %v15753_v62 = vunpack.i.h.bf16 %v15751_v52  ;;  %v15752_v17 = vunpack.i.l.bf16 %v15751_v52  ;;  %v21986_v5 = vmax.f32 %v18103_v59, 0.0 }
 0x398   :  { %21985 = vst [vmem:[#allocation47_spill] sm:$0xff] %v18133_v44  ;;  %12170 = vmatprep.mubr.msk.bf16.mxu1 %vm2921_vm4, %v18133_v44  ;;  %v2396_v51 = vmax.f32 %v18101_v57, %v2342_v18  ;;  %v18149_v58 = vmax.f32 %v2394_v42, %v2342_v18  ;;  %v1989_v15 = vsel %vm1971_vm2, %v15742_v4, %v15743_v29 }
 0x399   :  { %v18146_v26 = vpack.c.bf16 %v21826_v10, %v21986_v5  ;;  %v2395_v16 = vmax.f32 %v2339_v20, %v2341_v48  ;;  %v18152_v2 = vmax.f32 %v2393_v32, %v2341_v48  ;;  %v2090_v30 = vmax.f32 %v17725_v13, %v1989_v15 }
 0x39a   :  { %v2242_v52 = vsel %vm2224_vm3, %v15747_v63, %v15748_v31  ;;  %v2344_v33 = vmax.f32 %v2091_v19, %v15748_v31  ;;  %v2093_v1 = vmax.f32 %v17740_v43, %v15753_v62  ;;  %v1990_v5 = vsel %vm1971_vm2, %v15752_v17, %v15753_v62  ;;  %v15766_v10 = vpop.permute.xlu1 %15765  ;;  %v15771_v57 = vpop.permute.xlu0 %15770 }
 0x39b   :  { %21987 = vst [vmem:[#allocation48_spill] sm:$0xff] %v18146_v26  ;;  %v21830_v42 = vmax.f32 %v18152_v2, 0.0  ;;  %v2343_v53 = vmax.f32 %v2090_v30, %v2242_v52  ;;  %v2092_v29 = vmax.f32 %v17737_v40, %v1990_v5  ;;  %v15758_v20 = vunpack.i.h.bf16 %v15756_v34 }
 0x39c   :  { %v2398_v32 = vmax.f32 %v2342_v18, %v2344_v33  ;;  %v18161_v4 = vmax.f32 %v2396_v51, %v2344_v33  ;;  %v15757_v13 = vunpack.i.l.bf16 %v15756_v34  ;;  %v15763_v63 = vunpack.i.h.bf16 %v15761_v41 }
 0x39d   :  { %v2397_v15 = vmax.f32 %v2341_v48, %v2343_v53  ;;  %v18163_v37 = vmax.f32 %v2395_v16, %v2343_v53  ;;  %v2346_v19 = vmax.f32 %v2093_v1, %v15758_v20  ;;  %v15762_v43 = vunpack.i.l.bf16 %v15761_v41 }
 0x39e   :  { %v21828_v62 = vmax.f32 %v18161_v4, 0.0  ;;  %3058 = vmatmul.mubr.bf16.gmra.mrb[24].mxu1 %v18146_v26  ;;  %v2243_v31 = vsel %vm2224_vm3, %v15757_v13, %v15758_v20  ;;  %v2095_v17 = vmax.f32 %v17748_v61, %v15763_v63  ;;  %v15768_v40 = vunpack.i.h.bf16 %v15766_v10  ;;  %v15776_v30 = vpop.permute.xlu0 %15775  ;;  %v15781_v18 = vpop.permute.xlu1 %15780 }
 0x39f   :  { %v21829_v51 = vmax.f32 %v18163_v37, 0.0  ;;  %v2345_v34 = vmax.f32 %v2092_v29, %v2243_v31  ;;  %v2400_v52 = vmax.f32 %v2344_v33, %v2346_v19  ;;  %v18170_v48 = vmax.f32 %v2398_v32, %v2346_v19 }
 0x3a0   :  { %v21988_v1 = vmax.f32 %v18149_v58, 0.0  ;;  %v1991_v16 = vsel %vm1971_vm2, %v15762_v43, %v15763_v63  ;;  %v15767_v5 = vunpack.i.l.bf16 %v15766_v10  ;;  %v2348_v20 = vmax.f32 %v2095_v17, %v15768_v40 }
 0x3a1   :  { %v18183_v61 = vpack.c.bf16 %v21829_v51, %v21830_v42  ;;  %v2399_v29 = vmax.f32 %v2343_v53, %v2345_v34  ;;  %v18185_v33 = vmax.f32 %v2397_v15, %v2345_v34  ;;  %v2094_v13 = vmax.f32 %v17745_v54, %v1991_v16 }
 0x3a2   :  { %v18176_v41 = vpack.c.bf16 %v21828_v62, %v21988_v1  ;;  %v2244_v31 = vsel %vm2224_vm3, %v15767_v5, %v15768_v40  ;;  %v2402_v1 = vmax.f32 %v2346_v19, %v2348_v20  ;;  %v18190_v62 = vmax.f32 %v2400_v52, %v2348_v20  ;;  %v15786_v10 = vpop.permute.xlu1 %15785  ;;  %v15791_v63 = vpop.permute.xlu0 %15790 }
 0x3a3   :  { %21990 = vst [vmem:[#allocation50_spill] sm:$0xff] %v18183_v61  ;;  %v15773_v17 = vunpack.i.h.bf16 %v15771_v57  ;;  %v15772_v53 = vunpack.i.l.bf16 %v15771_v57  ;;  %v15778_v15 = vunpack.i.h.bf16 %v15776_v30  ;;  %v2347_v51 = vmax.f32 %v2094_v13, %v2244_v31  ;;  %v21993_v13 = vld [vmem:[#allocation9_spill] sm:$0xff] }
 0x3a4   :  { %21989 = vst [vmem:[#allocation49_spill] sm:$0xff] %v18176_v41  ;;  %12171 = vmatprep.mubr.msk.bf16.mxu1 %vm2921_vm4, %v18176_v41  ;;  %v21836_v42 = vmax.f32 %v18190_v62, 0.0  ;;  %v15777_v32 = vunpack.i.l.bf16 %v15776_v30  ;;  %v15783_v54 = vunpack.i.h.bf16 %v15781_v18  ;;  %v15782_v52 = vunpack.i.l.bf16 %v15781_v18  ;;  %v21994_v18 = vld [vmem:[#allocation11_spill] sm:$0xff] }
 0x3a5   :  { %v2097_v40 = vmax.f32 %v17760_v55, %v15773_v17  ;;  %v1992_v19 = vsel %vm1971_vm2, %v15772_v53, %v15773_v17  ;;  %v15788_v16 = vunpack.i.h.bf16 %v15786_v10  ;;  %v2401_v5 = vmax.f32 %v2345_v34, %v2347_v51 }
 0x3a6   :  { %v18198_v49 = vmax.f32 %v2399_v29, %v2347_v51  ;;  %v21991_v12 = vmax.f32 %v18170_v48, 0.0  ;;  %v2096_v31 = vmax.f32 %v21993_v13, %v1992_v19  ;;  %3068 = vmatmul.mubr.bf16.gmra.mrb[28].mxu1 %v18183_v61  ;;  %v15796_v30 = vpop.permute.xlu0 %15795  ;;  %v15801_v43 = vpop.permute.xlu1 %15800  ;;  %v2245_v55 = vsel %vm2224_vm3, %v15777_v32, %v15778_v15 }
 0x3a7   :  { %v2350_v17 = vmax.f32 %v2097_v40, %v15778_v15  ;;  %v2099_v53 = vmax.f32 %v21994_v18, %v15783_v54  ;;  %v1993_v34 = vsel %vm1971_vm2, %v15782_v52, %v15783_v54  ;;  %v15793_v61 = vunpack.i.h.bf16 %v15791_v63  ;;  %v21998_v18 = vld [vmem:[#allocation13_spill] sm:$0xff] }
 0x3a8   :  { %v18204_v57 = vpack.c.bf16 %v21836_v42, %v21991_v12  ;;  %v21841_v29 = vmax.f32 %v18198_v49, 0.0  ;;  %v2349_v3 = vmax.f32 %v2096_v31, %v2245_v55  ;;  %v2098_v14 = vmax.f32 %v21995_v11, %v1993_v34 }
 0x3a9   :  { %v15787_v12 = vunpack.i.l.bf16 %v15786_v10  ;;  %v2404_v19 = vmax.f32 %v2348_v20, %v2350_v17  ;;  %v18215_v13 = vmax.f32 %v2402_v1, %v2350_v17  ;;  %v2352_v42 = vmax.f32 %v2099_v53, %v15788_v16 }
 0x3aa   :  { %21992 = vst [vmem:[#allocation51_spill] sm:$0xff] %v18204_v57  ;;  %12172 = vmatprep.mubr.msk.bf16.mxu1 %vm2921_vm4, %v18204_v57  ;;  %v21996_v32 = vmax.f32 %v18185_v33, 0.0  ;;  %v18223_v54 = vmax.f32 %v2401_v5, %v2349_v3  ;;  %v15806_v11 = vpop.permute.xlu1 %15805  ;;  %v15811_v10 = vpop.permute.xlu0 %15810  ;;  %v2403_v52 = vmax.f32 %v2347_v51, %v2349_v3  ;;  %v2101_v53 = vmax.f32 %v21998_v18, %v15793_v61  ;;  %v22000_v18 = vld [vmem:[#allocation12_spill] sm:$0xff] }
 0x3ab   :  { %v2246_v40 = vsel %vm2224_vm3, %v15787_v12, %v15788_v16  ;;  %v21847_v31 = vmax.f32 %v18215_v13, 0.0  ;;  %v18227_v1 = vmax.f32 %v2404_v19, %v2352_v42  ;;  %v2406_v55 = vmax.f32 %v2350_v17, %v2352_v42 }
 0x3ac   :  { %v18221_v15 = vpack.c.bf16 %v21841_v29, %v21996_v32  ;;  %v2351_v20 = vmax.f32 %v2098_v14, %v2246_v40  ;;  %v15792_v34 = vunpack.i.l.bf16 %v15791_v63  ;;  %v15798_v57 = vunpack.i.h.bf16 %v15796_v30 }
 0x3ad   :  { %v21846_v5 = vmax.f32 %v18227_v1, 0.0  ;;  %v15797_v16 = vunpack.i.l.bf16 %v15796_v30  ;;  %v15803_v14 = vunpack.i.h.bf16 %v15801_v43  ;;  %v15802_v19 = vunpack.i.l.bf16 %v15801_v43 }
 0x3ae   :  { %21997 = vst [vmem:[#allocation9_spill] sm:$0xff] %v18221_v15  ;;  %v18231_v29 = vmax.f32 %v2403_v52, %v2351_v20  ;;  %v1994_v12 = vsel %vm1971_vm2, %v15792_v34, %v15793_v61  ;;  %3078 = vmatmul.mubr.bf16.gmra.mrb[32].mxu1 %v18221_v15  ;;  %v18236_v51 = vmax.f32 %v2101_v53, %v15798_v57  ;;  %v15816_v17 = vpop.permute.xlu1 %15815  ;;  %v15821_v40 = vpop.permute.xlu0 %15820  ;;  %v22001_v63 = vmax.f32 %v18223_v54, 0.0 }
 0x3af   :  { %v18243_v52 = vpack.c.bf16 %v21846_v5, %v21847_v31  ;;  %v2100_v30 = vmax.f32 %v22000_v18, %v1994_v12  ;;  %v2247_v61 = vsel %vm2224_vm3, %v15797_v16, %v15798_v57  ;;  %v2405_v34 = vmax.f32 %v2349_v3, %v2351_v20  ;;  %v22004_v31 = vld [vmem:[#allocation15_spill] sm:$0xff]  ;;  %v22005_v3 = vld [vmem:[#allocation14_spill] sm:$0xff] }
 0x3b0   :  { %v2408_v53 = vmax.f32 %v2352_v42, %v18236_v51  ;;  %v18249_v32 = vmax.f32 %v2406_v55, %v18236_v51  ;;  %v1995_v43 = vsel %vm1971_vm2, %v15802_v19, %v15803_v14  ;;  %v22002_v15 = vmax.f32 %v18231_v29, 0.0 }
 0x3b1   :  { %21999 = vst [vmem:[#allocation11_spill] sm:$0xff] %v18243_v52  ;;  %v18258_v5 = vmax.f32 %v2100_v30, %v2247_v61  ;;  %v2103_v12 = vmax.f32 %v22004_v31, %v15803_v14  ;;  %v15808_v18 = vunpack.i.h.bf16 %v15806_v11  ;;  %12173 = vmatprep.mubr.msk.bf16.mxu1 %vm2921_vm4, %v18243_v52  ;;  %v2102_v42 = vmax.f32 %v22005_v3, %v1995_v43  ;;  %v22006_v14 = vld [vmem:[#allocation17_spill] sm:$0xff]  ;;  %v22007_v3 = vld [vmem:[#allocation16_spill] sm:$0xff] }
 0x3b2   :  { %v18256_v41 = vpack.c.bf16 %v22002_v15, %v22001_v63  ;;  %v15807_v57 = vunpack.i.l.bf16 %v15806_v11  ;;  %v15813_v55 = vunpack.i.h.bf16 %v15811_v10  ;;  %v15812_v16 = vunpack.i.l.bf16 %v15811_v10  ;;  %v15826_v19 = vpop.permute.xlu1 %15825  ;;  %v15831_v61 = vpop.permute.xlu0 %15830 }
 0x3b3   :  { %v18265_v26 = vmax.f32 %v2405_v34, %v18258_v5  ;;  %v2356_v63 = vmax.f32 %v2103_v12, %v15808_v18  ;;  %v15818_v30 = vunpack.i.h.bf16 %v15816_v17  ;;  %v15817_v44 = vunpack.i.l.bf16 %v15816_v17 }
 0x3b4   :  { %22003 = vst [vmem:[#allocation10_spill] sm:$0xff] %v18256_v41  ;;  %v2248_v31 = vsel %vm2224_vm3, %v15807_v57, %v15808_v18  ;;  %v2105_v25 = vmax.f32 %v22006_v14, %v15813_v55  ;;  %v1996_v52 = vsel %vm1971_vm2, %v15812_v16, %v15813_v55  ;;  %v2407_v11 = vmax.f32 %v2351_v20, %v18258_v5 }
 0x3b5   :  { %v18272_v43 = vmax.f32 %v2102_v42, %v2248_v31  ;;  %v2410_v10 = vmax.f32 %v18236_v51, %v2356_v63  ;;  %v18275_v34 = vmax.f32 %v2408_v53, %v2356_v63  ;;  %v2104_v15 = vmax.f32 %v22007_v3, %v1996_v52 }
 0x3b6   :  { %3088 = vmatmul.mubr.bf16.gmra.mrb[36].mxu1 %v18256_v41  ;;  %v2249_v12 = vsel %vm2224_vm3, %v15817_v44, %v15818_v30  ;;  %v2358_v18 = vmax.f32 %v2105_v25, %v15818_v30  ;;  %v15823_v57 = vunpack.i.h.bf16 %v15821_v40  ;;  %v15836_v14 = vpop.permute.xlu1 %15835  ;;  %v15822_v51 = vunpack.i.l.bf16 %v15821_v40  ;;  %v22010_v30 = vld [vmem:[#allocation19_spill] sm:$0xff]  ;;  %v15841_v3 = vpop.permute.xlu0 %15840  ;;  %v22012_v40 = vld [vmem:[#allocation21_spill] sm:$0xff] }
 0x3b7   :  { %v18283_v20 = vmax.f32 %v2407_v11, %v18272_v43  ;;  %v21857_v42 = vmax.f32 %v18275_v34, 0.0  ;;  %v21869_v53 = vmax.f32 %v18265_v26, 0.0  ;;  %v18287_v55 = vmax.f32 %v2104_v15, %v2249_v12 }
 0x3b8   :  { %v2412_v52 = vmax.f32 %v2356_v63, %v2358_v18  ;;  %v22008_v25 = vmax.f32 %v18249_v32, 0.0  ;;  %v2107_v31 = vmax.f32 %v22010_v30, %v15823_v57  ;;  %v15828_v11 = vunpack.i.h.bf16 %v15826_v19 }
 0x3b9   :  { %v21868_v16 = vmax.f32 %v18283_v20, 0.0  ;;  %v1997_v17 = vsel %vm1971_vm2, %v15822_v51, %v15823_v57  ;;  %v15833_v12 = vunpack.i.h.bf16 %v15831_v61  ;;  %v15832_v41 = vunpack.i.l.bf16 %v15831_v61  ;;  %v22013_v51 = vld [vmem:[#allocation18_spill] sm:$0xff]  ;;  %v22014_v61 = vld [vmem:[#allocation23_spill] sm:$0xff] }
 0x3ba   :  { %v18294_v44 = vpack.c.bf16 %v21857_v42, %v22008_v25  ;;  %v2360_v63 = vmax.f32 %v2107_v31, %v15828_v11  ;;  %v15827_v25 = vunpack.i.l.bf16 %v15826_v19  ;;  %v15838_v30 = vunpack.i.h.bf16 %v15836_v14  ;;  %v15846_v47 = vpop.permute.xlu1 %15845 }
 0x3bb   :  { %v18304_v15 = vpack.c.bf16 %v21868_v16, %v21869_v53  ;;  %v15837_v42 = vunpack.i.l.bf16 %v15836_v14  ;;  %v15843_v39 = vunpack.i.h.bf16 %v15841_v3  ;;  %v2109_v9 = vmax.f32 %v22012_v40, %v15833_v12 }
 0x3bc   :  { %22009 = vst [vmem:[#allocation13_spill] sm:$0xff] %v18294_v44  ;;  %12174 = vmatprep.mubr.msk.bf16.mxu1 %vm2921_vm4, %v18294_v44  ;;  %v2462_v57 = vmax.f32 %v2410_v10, %v2358_v18  ;;  %v2106_v28 = vmax.f32 %v22013_v51, %v1997_v17  ;;  %v1998_v22 = vsel %vm1971_vm2, %v15832_v41, %v15833_v12  ;;  %v15842_v60 = vunpack.i.l.bf16 %v15841_v3 }
 0x3bd   :  { %22011 = vst [vmem:[#allocation12_spill] sm:$0xff] %v18304_v15  ;;  %v2414_v31 = vmax.f32 %v2358_v18, %v2360_v63  ;;  %v2362_v16 = vmax.f32 %v2109_v9, %v15838_v30  ;;  %v2111_v53 = vmax.f32 %v22014_v61, %v15843_v39  ;;  %v15848_v19 = vunpack.i.h.bf16 %v15846_v47  ;;  %v22015_v18 = vld [vmem:[#allocation20_spill] sm:$0xff] }
 0x3be   :  { %3098 = vmatmul.mubr.bf16.gmra.mrb[40].mxu1 %v18304_v15  ;;  %v2250_v14 = vsel %vm2224_vm3, %v15827_v25, %v15828_v11  ;;  %v2464_v44 = vmax.f32 %v2412_v52, %v2360_v63  ;;  %v2251_v10 = vsel %vm2224_vm3, %v15837_v42, %v15838_v30  ;;  %v15847_v40 = vunpack.i.l.bf16 %v15846_v47  ;;  %v22016_v15 = vld [vmem:[#allocation22_spill] sm:$0xff]  ;;  %v16248_v47 = vld [vmem:[#allocation2 + $0x118] ss:$12 sps:$4 sm:$0xff]  }
 0x3bf   :  { %12175 = vmatprep.mubr.msk.bf16.mxu1 %vm2921_vm4, %v17877_v7  ;;  %v2416_v17 = vmax.f32 %v2360_v63, %v2362_v16  ;;  %v2466_v51 = vmax.f32 %v2414_v31, %v2362_v16  ;;  %v1999_v41 = vsel %vm1971_vm2, %v15842_v60, %v15843_v39  ;;  %v2364_v12 = vmax.f32 %v2111_v53, %v15848_v19 }
 0x3c0   :  { %v2108_v9 = vmax.f32 %v22015_v18, %v1998_v22  ;;  %v2110_v61 = vmax.f32 %v22016_v15, %v1999_v41  ;;  %v2252_v3 = vsel %vm2224_vm3, %v15847_v40, %v15848_v19  ;;  %v2514_v0 = vmax.f32 %v2462_v57, 0.0 }
 0x3c1   :  { %v2359_v7 = vmax.f32 %v2106_v28, %v2250_v14  ;;  %v2468_v21 = vmax.f32 %v2416_v17, %v2364_v12  ;;  %v2516_v11 = vmax.f32 %v2464_v44, 0.0  ;;  %v2518_v25 = vmax.f32 %v2466_v51, 0.0 }
 0x3c2   :  { %v2361_v52 = vmax.f32 %v2108_v9, %v2251_v10  ;;  %v2363_v42 = vmax.f32 %v2110_v61, %v2252_v3  ;;  %v22017_v16 = vmax.f32 %v18040_v38, 0.0  ;;  %v22018_v60 = vmax.f32 %v18048_v27, 0.0  ;;  %v16249_v3 = vld [vmem:[#allocation2 + $0x12c] ss:$12 sps:$4 sm:$0xff]  }
 0x3c3   :  { %v2520_v63 = vmax.f32 %v2468_v21, 0.0  ;;  %v22019_v22 = vmax.f32 %v18044_v56, 0.0  ;;  %v22020_v53 = vmax.f32 %v18060_v36, 0.0  ;;  %v22021_v28 = vmax.f32 %v18075_v24, 0.0 }
 0x3c4   :  { %v18325_v39 = vpack.c.bf16 %v22018_v60, %v22017_v16  ;;  %v22022_v44 = vmax.f32 %v18097_v6, 0.0  ;;  %v22023_v21 = vmax.f32 %v18085_v45, 0.0  ;;  %v22024_v38 = vmax.f32 %v18103_v59, 0.0  ;;  %v16246_v59 = vld [vmem:[#allocation2 + $0x114] ss:$12 sps:$4 sm:$0xff]  }
 0x3c5   :  { %v18331_v15 = vpack.c.bf16 %v22020_v53, %v22019_v22  ;;  %v22025_v56 = vmax.f32 %v18120_v23, 0.0  ;;  %v22026_v36 = vmax.f32 %v18149_v58, 0.0  ;;  %v22027_v24 = vmax.f32 %v18125_v50, 0.0  ;;  %v22045_v53 = vld [vmem:[#allocation33_spill] sm:$0xff] }
 0x3c6   :  { %v18337_v30 = vpack.c.bf16 %v22022_v44, %v22021_v28  ;;  %3141 = vmatmul.mubr.bf16.vlgmr.msra.gmra.mrb[44].mxu1 %v17890_v8  ;;  %v18344_v27 = vpack.c.bf16 %v22024_v38, %v22023_v21  ;;  %v22028_v6 = vmax.f32 %v18152_v2, 0.0  ;;  %v22029_v8 = vmax.f32 %v18161_v4, 0.0  ;;  %v22047_v44 = vld [vmem:[#allocation34_spill] sm:$0xff]  ;;  %v22048_v21 = vld [vmem:[#allocation39_spill] sm:$0xff] }
 0x3c7   :  { %v18350_v57 = vpack.c.bf16 %v22026_v36, %v22025_v56  ;;  %v22030_v45 = vmax.f32 %v18170_v48, 0.0  ;;  %12176 = vmatprep.mubr.msk.bf16.mxu1 %vm2921_vm4, %v17938_v46  ;;  %3586 = vmatpush1.bf16.msra.mxu1 %v16243_v35  ;;  %v22031_v23 = vmax.f32 %v18163_v37, 0.0  ;;  %v22032_v58 = vmax.f32 %v18185_v33, 0.0  ;;  %v16251_v35 = vld [vmem:[#allocation2 + $0x130] ss:$12 sps:$4 sm:$0xff]  }
 0x3c8   :  { %v18356_v31 = vpack.c.bf16 %v22028_v6, %v22027_v24  ;;  %v22033_v2 = vmax.f32 %v18190_v62, 0.0  ;;  %v22034_v14 = vmax.f32 %v18215_v13, 0.0  ;;  %v22035_v48 = vmax.f32 %v18198_v49, 0.0  ;;  %3587 = vmatprep.subr.bf16.mxu1 %v16248_v47  ;;  %v16258_v38 = vld [vmem:[#allocation2 + $0x174] ss:$12 sps:$4 sm:$0xff]  }
 0x3c9   :  { %v18362_v19 = vpack.c.bf16 %v22030_v45, %v22029_v8  ;;  %v18370_v50 = vpack.c.bf16 %v22032_v58, %v22031_v23  ;;  %v22036_v10 = vmax.f32 %v18223_v54, 0.0  ;;  %v22037_v37 = vmax.f32 %v18227_v1, 0.0  ;;  %v16263_v56 = vld [vmem:[#allocation2 + $0x190] ss:$12 sps:$4 sm:$0xff]   ;;  %v16261_v36 = vld [vmem:[#allocation2 + $0x18c] ss:$12 sps:$4 sm:$0xff]  }
 0x3ca   :  { %v18376_v4 = vpack.c.bf16 %v22034_v14, %v22033_v2  ;;  %v22038_v33 = vmax.f32 %v18249_v32, 0.0  ;;  %v22039_v62 = vmax.f32 %v18231_v29, 0.0  ;;  %v22040_v13 = vmax.f32 %v18265_v26, 0.0  ;;  %v16266_v24 = vld [vmem:[#allocation2 + $0x1a8] ss:$12 sps:$4 sm:$0xff]   ;;  %v22051_v14 = vld [vmem:[#allocation44_spill] sm:$0xff] }
 0x3cb   :  { %v18382_v40 = vpack.c.bf16 %v22036_v10, %v22035_v48  ;;  %v22041_v49 = vmax.f32 %v18275_v34, 0.0  ;;  %v22042_v54 = vmax.f32 %v18258_v5, %v18272_v43  ;;  %v18404_v1 = vpack.c.bf16 %v2516_v11, %v2514_v0  ;;  %3588 = vmatpush1.bf16.msra.mxu1 %v16246_v59  ;;  %v16254_v5 = vld [vmem:[#allocation2 + $0x148] ss:$12 sps:$4 sm:$0xff]   ;;  %v16264_v45 = vld [vmem:[#allocation2 + $0x1a4] ss:$12 sps:$4 sm:$0xff]  }
 0x3cc   :  { %v18388_v17 = vpack.c.bf16 %v22038_v33, %v22037_v37  ;;  %v18394_v51 = vpack.c.bf16 %v22040_v13, %v22039_v62  ;;  %v22043_v32 = vmax.f32 %v18272_v43, %v18287_v55  ;;  %v18409_v29 = vpack.c.bf16 %v2518_v25, %v2516_v11  ;;  %3589 = vmatprep.subr.bf16.mxu1 %v16251_v35  ;;  %v22049_v6 = vld [vmem:[#allocation41_spill] sm:$0xff]  ;;  %v22050_v8 = vld [vmem:[#allocation43_spill] sm:$0xff]  ;;  %v16269_v59 = vld [vmem:[#allocation2 + $0x1c0] ss:$12 sps:$4 sm:$0xff]  }
 0x3cd   :  { %v18398_v41 = vpack.c.bf16 %v2514_v0, %v22041_v49  ;;  %v2461_v12 = vmax.f32 %v22042_v54, %v18287_v55  ;;  %v2413_v26 = vmax.f32 %v18287_v55, %v2359_v7  ;;  %v18412_v61 = vpack.c.bf16 %v2520_v63, %v2518_v25  ;;  %v22046_v25 = vld [vmem:[#allocation32_spill] sm:$0xff]  ;;  %v16267_v23 = vld [vmem:[#allocation2 + $0x1bc] ss:$12 sps:$4 sm:$0xff]   ;;  %v16272_v58 = vld [vmem:[#allocation2 + $0x1d8] ss:$12 sps:$4 sm:$0xff]  }
 0x3ce   :  { %v2463_v18 = vmax.f32 %v22043_v32, %v2359_v7  ;;  %v2415_v34 = vmax.f32 %v2359_v7, %v2361_v52  ;;  %v22044_v0 = vmax.f32 %v18283_v20, 0.0  ;;  %3149 = vmatmul.mubr.bf16.gmra.mrb[48].mxu1 %v22045_v53  ;;  %v16252_v7 = vld [vmem:[#allocation2 + $0x144] ss:$12 sps:$4 sm:$0xff]   ;;  %v16255_v20 = vld [vmem:[#allocation2 + $0x15c] ss:$12 sps:$4 sm:$0xff]   ;;  %v22052_v48 = vld [vmem:[#allocation45_spill] sm:$0xff] }
 0x3cf   :  { %v2513_v9 = vmax.f32 %v2461_v12, 0.0  ;;  %v2465_v16 = vmax.f32 %v2413_v26, %v2361_v52  ;;  %12177 = vmatprep.mubr.msk.bf16.mxu1 %vm2921_vm4, %v22046_v25  ;;  %3590 = vmatpush1.bf16.msra.mxu1 %v16249_v3  ;;  %v16257_v52 = vld [vmem:[#allocation2 + $0x160] ss:$12 sps:$4 sm:$0xff]   ;;  %v22054_v13 = vld [vmem:[#allocation47_spill] sm:$0xff]  ;;  %v22055_v49 = vmov 0   ;;  %v22057_v12 = vld [vmem:[#allocation49_spill] sm:$0xff] }
 0x3d0   :  { %v2515_v47 = vmax.f32 %v2463_v18, 0.0  ;;  %v2467_v43 = vmax.f32 %v2415_v34, %v2363_v42  ;;  %3591 = vmatprep.subr.bf16.mxu1 %v16254_v5  ;;  %v16260_v42 = vld [vmem:[#allocation2 + $0x178] ss:$12 sps:$4 sm:$0xff]   ;;  %v3340_v2 = vld [vmem:[#allocation2 + $0x1ec] sm:$0x77]  ;;  %v22053_v62 = vld [vmem:[#allocation46_spill] sm:$0xff] }
 0x3d1   :  { %v18416_v60 = vpack.c.bf16 %v2513_v9, %v22044_v0  ;;  %v2517_v11 = vmax.f32 %v2465_v16, 0.0  ;;  %v16270_v10 = vld [vmem:[#allocation2 + $0x1d4] ss:$12 sps:$4 sm:$0xff]   ;;  %v12239_v35 = vcombine.high %v3340_v2, %v3340_v2  ;;  %v12238_v37 = vcombine.low %v3340_v2, %v3340_v2  ;;  %v22056_v54 = vld [vmem:[#allocation48_spill] sm:$0xff]  ;;  %v22059_v18 = vld [vmem:[#allocation51_spill] sm:$0xff] }
 0x3d2   :  { %v18418_v22 = vpack.c.bf16 %v2515_v47, %v2513_v9  ;;  %v2519_v55 = vmax.f32 %v2467_v43, 0.0  ;;  %v22058_v32 = vld [vmem:[#allocation50_spill] sm:$0xff]  ;;  %v22060_v26 = vld [vmem:[#allocation9_spill] sm:$0xff]  ;;  %v22061_v9 = vld [vmem:[#allocation11_spill] sm:$0xff] }
 0x3d3   :  { %v18423_v63 = vpack.c.bf16 %v2517_v11, %v2515_v47  ;;  %3592 = vmatpush1.bf16.msra.mxu1 %v16252_v7  ;;  %v3577_v33 = vsel %vm2955_vm1, %v12238_v37, 0  ;;  %v22062_v34 = vld [vmem:[#allocation10_spill] sm:$0xff]  ;;  %v22063_v3 = vld [vmem:[#allocation13_spill] sm:$0xff]  ;;  %v22064_v47 = vld [vmem:[#allocation12_spill] sm:$0xff] }
 0x3d4   :  { %v18425_v28 = vpack.c.bf16 %v2519_v55, %v2517_v11  ;;  %3593 = vmatprep.subr.bf16.mxu1 %v16257_v52  ;;  %v22065_v16 = vld [vmem:[#allocation24_spill] sm:$0xff]  ;;  %v22066_v0 = vld [vmem:[#allocation26_spill] sm:$0xff]  ;;  %v22068_v11 = vld [vmem:[#allocation27_spill] sm:$0xff] }
 0x3d5   :  { %v16275_v5 = vld [vmem:[#allocation2 + $0x104] ss:$12 sps:$4 sm:$0xff]   ;;  %v22067_v43 = vmax.f32 %v22066_v0, 0.0  ;;  %v22069_v55 = vmax.f32 %v22068_v11, 0.0  ;;  %v22070_v52 = vld [vmem:[#allocation25_spill] sm:$0xff] }
 0x3d6   :  { %3157 = vmatmul.mubr.bf16.gmra.mrb[52].mxu1 %v22047_v44  ;;  %v16279_v37 = vld [vmem:[#allocation2 + $0x164] ss:$12 sps:$4 sm:$0xff]  }
 0x3d7   :  { %12178 = vmatprep.mubr.msk.bf16.mxu1 %vm2921_vm4, %v22048_v21  ;;  %3594 = vmatpush1.bf16.msra.mxu1 %v16255_v20  ;;  %v18461_v7 = vpack.c.bf16 %v22069_v55, %v22067_v43  ;;  %v16276_v20 = vld [vmem:[#allocation2 + $0x11c] ss:$12 sps:$4 sm:$0xff]   ;;  %v22081_v0 = vld [vmem:[#allocation36_spill] sm:$0xff]  ;;  %v22083_v55 = vld [vmem:[#allocation37_spill] sm:$0xff] }
 0x3d8   :  { %3595 = vmatprep.subr.bf16.mxu1 %v16260_v42  ;;  %v16277_v42 = vld [vmem:[#allocation2 + $0x134] ss:$12 sps:$4 sm:$0xff]   ;;  %v22082_v43 = vmax.f32 %v22081_v0, 0.0 }
 0x3d9   :  { %v16285_v0 = vld [vmem:[#allocation2 + $0x1f4] ss:$0 sps:$4 sm:$0x77]  }
 0x3db   :  { %3596 = vmatpush1.bf16.msra.mxu1 %v16258_v38  ;;  %v22071_v38 = vld [vmem:[#allocation30_spill] sm:$0xff] }
 0x3dc   :  { %3597 = vmatprep.subr.bf16.mxu1 %v16263_v56  ;;  %v22072_v56 = vmax.f32 %v22071_v38, 0.0  ;;  %v22085_v38 = vld [vmem:[#allocation40_spill] sm:$0xff] }
 0x3de   :  { %3165 = vmatmul.mubr.bf16.gmra.mrb[56].mxu1 %v22049_v6 }
 0x3df   :  { %12179 = vmatprep.mubr.msk.bf16.mxu1 %vm2921_vm4, %v22050_v8  ;;  %3598 = vmatpush1.bf16.msra.mxu1 %v16261_v36  ;;  %v22073_v36 = vld [vmem:[#allocation28_spill] sm:$0xff] }
 0x3e0   :  { %3599 = vmatprep.subr.bf16.mxu1 %v16266_v24  ;;  %v22074_v24 = vmax.f32 %v22073_v36, 0.0 }
 0x3e3   :  { %3600 = vmatpush1.bf16.msra.mxu1 %v16264_v45  ;;  %v18471_v45 = vpack.c.bf16 %v22074_v24, %v22072_v56  ;;  %v22086_v56 = vmax.f32 %v22085_v38, 0.0  ;;  %v16281_v24 = vld [vmem:[#allocation2 + $0x194] ss:$12 sps:$4 sm:$0xff]  }
 0x3e4   :  { %3601 = vmatprep.subr.bf16.mxu1 %v16269_v59  ;;  %v22075_v59 = vld [vmem:[#allocation29_spill] sm:$0xff] }
 0x3e5   :  { %v16291_v38 = vld [vmem:[#allocation2 + $0x214] ss:$12 sps:$4 sm:$0xff]  }
 0x3e6   :  { %3173 = vmatmul.mubr.bf16.gmra.mrb[60].mxu1 %v22051_v14 }
 0x3e7   :  { %12180 = vmatprep.mubr.msk.bf16.mxu1 %vm2921_vm4, %v22052_v48  ;;  %3602 = vmatpush1.bf16.msra.mxu1 %v16267_v23  ;;  %v22076_v23 = vmax.f32 %v22075_v59, 0.0  ;;  %v22087_v59 = vld [vmem:[#allocation38_spill] sm:$0xff] }
 0x3e8   :  { %3603 = vmatprep.subr.bf16.mxu1 %v16272_v58  ;;  %v22077_v58 = vld [vmem:[#allocation35_spill] sm:$0xff] }
 0x3e9   :  { %v22078_v2 = vmax.f32 %v22077_v58, 0.0  ;;  %v22089_v58 = vld [vmem:[#allocation42_spill] sm:$0xff] }
 0x3eb   :  { %3604 = vmatpush1.bf16.msra.mxu1 %v16270_v10  ;;  %v18478_v10 = vpack.c.bf16 %v22078_v2, %v22076_v23  ;;  %v22088_v23 = vmax.f32 %v22087_v59, 0.0  ;;  %v22090_v2 = vmax.f32 %v22089_v58, 0.0  ;;  %v16297_v59 = vld [vmem:[#allocation2 + $0x244] ss:$12 sps:$4 sm:$0xff]   ;;  %v16303_v58 = vld [vmem:[#allocation2 + $0x274] ss:$12 sps:$4 sm:$0xff]  }
 0x3ec   :  { %12241 = vmatprep.subr.msk.bf16.mxu1 %vm2955_vm1, %v12239_v35  ;;  %v16278_v35 = vld [vmem:[#allocation2 + $0x14c] ss:$12 sps:$4 sm:$0xff]  }
 0x3ee   :  { %3181 = vmatmul.mubr.bf16.gmra.mrb[64].mxu1 %v22053_v62 }
 0x3ef   :  { %12181 = vmatprep.mubr.msk.bf16.mxu1 %vm2921_vm4, %v22054_v13  ;;  %3606 = vmatpush1.bf16.msra.mxu1 %v3577_v33  ;;  %v22079_v33 = vld [vmem:[#allocation31_spill] sm:$0xff] }
 0x3f0   :  { %3728 = vmatprep.subr.bf16.mxu1 %v22055_v49 }
 0x3f6   :  { %3189 = vmatmul.mubr.bf16.gmra.mrb[68].mxu1 %v22056_v54 }
 0x3f7   :  { %12182 = vmatprep.mubr.msk.bf16.mxu1 %vm2921_vm4, %v22057_v12 }
 0x3fe   :  { %3197 = vmatmul.mubr.bf16.gmra.mrb[72].mxu1 %v22058_v32 }
 0x3ff   :  { %12183 = vmatprep.mubr.msk.bf16.mxu1 %vm2921_vm4, %v22059_v18 }
 0x406   :  { %3205 = vmatmul.mubr.bf16.gmra.mrb[76].mxu1 %v22060_v26 }
 0x407   :  { %12184 = vmatprep.mubr.msk.bf16.mxu1 %vm2921_vm4, %v22061_v9 }
 0x40e   :  { %3213 = vmatmul.mubr.bf16.gmra.mrb[80].mxu1 %v22062_v34 }
 0x40f   :  { %12185 = vmatprep.mubr.msk.bf16.mxu1 %vm2921_vm4, %v22063_v3 }
 0x416   :  { %3221 = vmatmul.mubr.bf16.gmra.mrb[84].mxu1 %v22064_v47 }
 0x417   :  { %12242 = vmatprep.mubr.msk.bf16.mxu1 %vm2921_vm4, %v22065_v16 }
 0x41e   :  { %3618 = vmatmul.mubr.bf16.vlgmr.msra.gmra.mrb[0].mxu1 %v22070_v52 }
 0x41f   :  { %12243 = vmatprep.mubr.msk.bf16.mxu1 %vm2921_vm4, %v18461_v7  ;;  %3729 = vmatpush1.bf16.msra.mxu1 %v16275_v5  ;;  %v22080_v5 = vmax.f32 %v22079_v33, 0.0  ;;  %v16283_v33 = vld [vmem:[#allocation2 + $0x1c4] ss:$12 sps:$4 sm:$0xff]  }
 0x420   :  { %3730 = vmatprep.subr.bf16.mxu1 %v22055_v49 }
 0x421   :  { %v18488_v11 = vpack.c.bf16 %v22082_v43, %v22080_v5  ;;  %v16284_v5 = vld [vmem:[#allocation2 + $0x1dc] ss:$12 sps:$4 sm:$0xff]   ;;  %v3583_v43 = vsel %vm2955_vm1, %v16285_v0, 0  ;;  %v16307_v0 = vld [vmem:[#allocation2 + $0x2a0] ss:$12 sps:$4 sm:$0xff]  }
 0x423   :  { %3731 = vmatpush1.bf16.msra.mxu1 %v16276_v20  ;;  %v22084_v20 = vmax.f32 %v22083_v55, 0.0  ;;  %v16288_v55 = vld [vmem:[#allocation2 + $0x1fc] ss:$12 sps:$4 sm:$0xff]  }
 0x424   :  { %3732 = vmatprep.subr.bf16.mxu1 %v22055_v49 }
 0x425   :  { %v18495_v36 = vpack.c.bf16 %v22086_v56, %v22084_v20  ;;  %v16286_v20 = vld [vmem:[#allocation2 + $0x1f8] ss:$12 sps:$4 sm:$0xff]   ;;  %v16289_v56 = vld [vmem:[#allocation2 + $0x210] ss:$12 sps:$4 sm:$0xff]  }
 0x426   :  { %3628 = vmatmul.mubr.bf16.gmra.mrb[4].mxu1 %v18471_v45 }
 0x427   :  { %12244 = vmatprep.mubr.msk.bf16.mxu1 %vm2921_vm4, %v18478_v10  ;;  %3733 = vmatpush1.bf16.msra.mxu1 %v16277_v42  ;;  %v16280_v42 = vld [vmem:[#allocation2 + $0x17c] ss:$12 sps:$4 sm:$0xff]  }
 0x428   :  { %3734 = vmatprep.subr.bf16.mxu1 %v22055_v49 }
 0x42b   :  { %3735 = vmatpush1.bf16.msra.mxu1 %v16278_v35  ;;  %v18505_v35 = vpack.c.bf16 %v22090_v2, %v22088_v23  ;;  %v16298_v23 = vld [vmem:[#allocation2 + $0x258] ss:$12 sps:$4 sm:$0xff]   ;;  %v16301_v2 = vld [vmem:[#allocation2 + $0x270] ss:$12 sps:$4 sm:$0xff]  }
 0x42c   :  { %3736 = vmatprep.subr.bf16.mxu1 %v22055_v49 }
 0x42e   :  { %3638 = vmatmul.mubr.bf16.gmra.mrb[8].mxu1 %v18488_v11 }
 0x42f   :  { %12245 = vmatprep.mubr.msk.bf16.mxu1 %vm2921_vm4, %v18495_v36  ;;  %3737 = vmatpush1.bf16.msra.mxu1 %v16279_v37  ;;  %v16282_v37 = vld [vmem:[#allocation2 + $0x1ac] ss:$12 sps:$4 sm:$0xff]  }
 0x430   :  { %3738 = vmatprep.subr.bf16.mxu1 %v22055_v49 }
 0x433   :  { %3739 = vmatpush1.bf16.msra.mxu1 %v16280_v42  ;;  %v16294_v42 = vld [vmem:[#allocation2 + $0x22c] ss:$12 sps:$4 sm:$0xff]  }
 0x434   :  { %3740 = vmatprep.subr.bf16.mxu1 %v22055_v49 }
 0x436   :  { %3648 = vmatmul.mubr.bf16.gmra.mrb[12].mxu1 %v18505_v35 }
 0x437   :  { %12246 = vmatprep.mubr.msk.bf16.mxu1 %vm2921_vm4, %v18325_v39  ;;  %3741 = vmatpush1.bf16.msra.mxu1 %v16281_v24  ;;  %v16292_v24 = vld [vmem:[#allocation2 + $0x228] ss:$12 sps:$4 sm:$0xff]  }
 0x438   :  { %3742 = vmatprep.subr.bf16.mxu1 %v22055_v49 }
 0x43b   :  { %3743 = vmatpush1.bf16.msra.mxu1 %v16282_v37  ;;  %v16306_v37 = vld [vmem:[#allocation2 + $0x28c] ss:$12 sps:$4 sm:$0xff]  }
 0x43c   :  { %3744 = vmatprep.subr.bf16.mxu1 %v22055_v49 }
 0x43e   :  { %3658 = vmatmul.mubr.bf16.gmra.mrb[16].mxu1 %v18331_v15 }
 0x43f   :  { %12247 = vmatprep.mubr.msk.bf16.mxu1 %vm2921_vm4, %v18337_v30  ;;  %3745 = vmatpush1.bf16.msra.mxu1 %v16283_v33  ;;  %v16304_v33 = vld [vmem:[#allocation2 + $0x288] ss:$12 sps:$4 sm:$0xff]  }
 0x440   :  { %3746 = vmatprep.subr.bf16.mxu1 %v22055_v49 }
 0x443   :  { %3747 = vmatpush1.bf16.msra.mxu1 %v16284_v5  ;;  %v16309_v5 = vld [vmem:[#allocation2 + $0x2a4] ss:$12 sps:$4 sm:$0xff]  }
 0x444   :  { %3748 = vmatprep.subr.bf16.mxu1 %v22055_v49 }
 0x446   :  { %3668 = vmatmul.mubr.bf16.gmra.mrb[20].mxu1 %v18344_v27 }
 0x447   :  { %12248 = vmatprep.mubr.msk.bf16.mxu1 %vm2921_vm4, %v18350_v57  ;;  %3749 = vmatpush1.bf16.msra.mxu1 %v3583_v43  ;;  %v16312_v43 = vld [vmem:[#allocation2 + $0x2bc] ss:$12 sps:$4 sm:$0xff]  }
 0x448   :  { %4145 = vmatprep.subr.bf16.mxu1 %v16288_v55  ;;  %v16310_v55 = vld [vmem:[#allocation2 + $0x2b8] ss:$12 sps:$4 sm:$0xff]  }
 0x44e   :  { %3678 = vmatmul.mubr.bf16.gmra.mrb[24].mxu1 %v18356_v31 }
 0x44f   :  { %12249 = vmatprep.mubr.msk.bf16.mxu1 %vm2921_vm4, %v18362_v19 }
 0x456   :  { %3688 = vmatmul.mubr.bf16.gmra.mrb[28].mxu1 %v18370_v50 }
 0x457   :  { %12250 = vmatprep.mubr.msk.bf16.mxu1 %vm2921_vm4, %v18376_v4 }
 0x45e   :  { %3698 = vmatmul.mubr.bf16.gmra.mrb[32].mxu1 %v18382_v40 }
 0x45f   :  { %12251 = vmatprep.mubr.msk.bf16.mxu1 %vm2921_vm4, %v18388_v17 }
 0x466   :  { %3708 = vmatmul.mubr.bf16.gmra.mrb[36].mxu1 %v18394_v51 }
 0x467   :  { %12252 = vmatprep.mubr.msk.bf16.mxu1 %vm2921_vm4, %v18398_v41 }
 0x46e   :  { %3718 = vmatmul.mubr.bf16.gmra.mrb[40].mxu1 %v18416_v60 }
 0x46f   :  { %12253 = vmatprep.mubr.msk.bf16.mxu1 %vm2921_vm4, %v22065_v16  ;;  %v16295_v16 = vld [vmem:[#allocation2 + $0x240] ss:$12 sps:$4 sm:$0xff]  }
 0x476   :  { %3761 = vmatmul.mubr.bf16.vlgmr.msra.gmra.mrb[44].mxu1 %v22070_v52  ;;  %v16300_v52 = vld [vmem:[#allocation2 + $0x25c] ss:$12 sps:$4 sm:$0xff]  }
 0x477   :  { %12254 = vmatprep.mubr.msk.bf16.mxu1 %vm2921_vm4, %v18461_v7  ;;  %4146 = vmatpush1.bf16.msra.mxu1 %v16286_v20  ;;  %v16315_v20 = vld [vmem:[#allocation2 + $0x2d4] ss:$12 sps:$4 sm:$0xff]  }
 0x478   :  { %4147 = vmatprep.subr.bf16.mxu1 %v16291_v38  ;;  %v3960_v38 = vld [vmem:[#allocation2 + $0x2e8] sm:$0x77] }
 0x47b   :  { %4148 = vmatpush1.bf16.msra.mxu1 %v16289_v56  ;;  %v16313_v56 = vld [vmem:[#allocation2 + $0x2d0] ss:$12 sps:$4 sm:$0xff]  }
 0x47c   :  { %4149 = vmatprep.subr.bf16.mxu1 %v16294_v42  ;;  %v12297_v42 = vcombine.high %v3960_v38, %v3960_v38 }
 0x47e   :  { %3769 = vmatmul.mubr.bf16.gmra.mrb[48].mxu1 %v18471_v45 }
 0x47f   :  { %12255 = vmatprep.mubr.msk.bf16.mxu1 %vm2921_vm4, %v18478_v10  ;;  %4150 = vmatpush1.bf16.msra.mxu1 %v16292_v24  ;;  %v12296_v24 = vcombine.low %v3960_v38, %v3960_v38  ;;  %v16331_v38 = vld [vmem:[#allocation2 + $0x2f8] ss:$12 sps:$4 sm:$0xff]  }
 0x480   :  { %4151 = vmatprep.subr.bf16.mxu1 %v16297_v59 }
 0x481   :  { %v4137_v59 = vsel %vm2955_vm1, %v12296_v24, 0  ;;  %v16332_v24 = vld [vmem:[#allocation2 + $0x30c] ss:$12 sps:$4 sm:$0xff]  }
 0x483   :  { %4152 = vmatpush1.bf16.msra.mxu1 %v16295_v16  ;;  %v16318_v16 = vld [vmem:[#allocation2 + $0x200] ss:$12 sps:$4 sm:$0xff]  }
 0x484   :  { %4153 = vmatprep.subr.bf16.mxu1 %v16300_v52  ;;  %v16319_v52 = vld [vmem:[#allocation2 + $0x218] ss:$12 sps:$4 sm:$0xff]  }
 0x486   :  { %3777 = vmatmul.mubr.bf16.gmra.mrb[52].mxu1 %v18488_v11 }
 0x487   :  { %12256 = vmatprep.mubr.msk.bf16.mxu1 %vm2921_vm4, %v18495_v36  ;;  %4154 = vmatpush1.bf16.msra.mxu1 %v16298_v23  ;;  %v16320_v23 = vld [vmem:[#allocation2 + $0x230] ss:$12 sps:$4 sm:$0xff]  }
 0x488   :  { %4155 = vmatprep.subr.bf16.mxu1 %v16303_v58  ;;  %v16321_v58 = vld [vmem:[#allocation2 + $0x248] ss:$12 sps:$4 sm:$0xff]  }
 0x48b   :  { %4156 = vmatpush1.bf16.msra.mxu1 %v16301_v2  ;;  %v16322_v2 = vld [vmem:[#allocation2 + $0x260] ss:$12 sps:$4 sm:$0xff]  }
 0x48c   :  { %4157 = vmatprep.subr.bf16.mxu1 %v16306_v37  ;;  %v16323_v37 = vld [vmem:[#allocation2 + $0x278] ss:$12 sps:$4 sm:$0xff]  }
 0x48e   :  { %3785 = vmatmul.mubr.bf16.gmra.mrb[56].mxu1 %v18505_v35 }
 0x48f   :  { %12257 = vmatprep.mubr.msk.bf16.mxu1 %vm2921_vm4, %v18325_v39  ;;  %4158 = vmatpush1.bf16.msra.mxu1 %v16304_v33  ;;  %v16324_v33 = vld [vmem:[#allocation2 + $0x290] ss:$12 sps:$4 sm:$0xff]  }
 0x490   :  { %4159 = vmatprep.subr.bf16.mxu1 %v16309_v5  ;;  %v16325_v5 = vld [vmem:[#allocation2 + $0x2a8] ss:$12 sps:$4 sm:$0xff]  }
 0x493   :  { %4160 = vmatpush1.bf16.msra.mxu1 %v16307_v0  ;;  %v16326_v0 = vld [vmem:[#allocation2 + $0x2c0] ss:$12 sps:$4 sm:$0xff]  }
 0x494   :  { %4161 = vmatprep.subr.bf16.mxu1 %v16312_v43  ;;  %v16327_v43 = vld [vmem:[#allocation2 + $0x2d8] ss:$12 sps:$4 sm:$0xff]  }
 0x496   :  { %3793 = vmatmul.mubr.bf16.gmra.mrb[60].mxu1 %v18331_v15 }
 0x497   :  { %12258 = vmatprep.mubr.msk.bf16.mxu1 %vm2921_vm4, %v18337_v30  ;;  %4162 = vmatpush1.bf16.msra.mxu1 %v16310_v55  ;;  %v16328_v55 = vld [vmem:[#allocation2 + $0x2f0] ss:$0 sps:$4 sm:$0x77]  }
 0x498   :  { %4163 = vmatprep.subr.bf16.mxu1 %v16315_v20  ;;  %v4143_v20 = vsel %vm2955_vm1, %v16328_v55, 0  ;;  %v16353_v55 = vld [vmem:[#allocation2 + $0x3b4] ss:$12 sps:$4 sm:$0xff]  }
 0x49b   :  { %4164 = vmatpush1.bf16.msra.mxu1 %v16313_v56  ;;  %v16329_v56 = vld [vmem:[#allocation2 + $0x2f4] ss:$12 sps:$4 sm:$0xff]  }
 0x49c   :  { %12299 = vmatprep.subr.msk.bf16.mxu1 %vm2955_vm1, %v12297_v42  ;;  %v16334_v42 = vld [vmem:[#allocation2 + $0x310] ss:$12 sps:$4 sm:$0xff]  }
 0x49e   :  { %3801 = vmatmul.mubr.bf16.gmra.mrb[64].mxu1 %v18344_v27 }
 0x49f   :  { %12259 = vmatprep.mubr.msk.bf16.mxu1 %vm2921_vm4, %v18350_v57  ;;  %4166 = vmatpush1.bf16.msra.mxu1 %v4137_v59  ;;  %v16337_v59 = vld [vmem:[#allocation2 + $0x328] ss:$12 sps:$4 sm:$0xff]  }
 0x4a0   :  { %4288 = vmatprep.subr.bf16.mxu1 %v22055_v49 }
 0x4a6   :  { %3809 = vmatmul.mubr.bf16.gmra.mrb[68].mxu1 %v18356_v31 }
 0x4a7   :  { %12260 = vmatprep.mubr.msk.bf16.mxu1 %vm2921_vm4, %v18362_v19 }
 0x4ae   :  { %3817 = vmatmul.mubr.bf16.gmra.mrb[72].mxu1 %v18370_v50 }
 0x4af   :  { %12261 = vmatprep.mubr.msk.bf16.mxu1 %vm2921_vm4, %v18376_v4 }
 0x4b6   :  { %3825 = vmatmul.mubr.bf16.gmra.mrb[76].mxu1 %v18382_v40 }
 0x4b7   :  { %12262 = vmatprep.mubr.msk.bf16.mxu1 %vm2921_vm4, %v18388_v17 }
 0x4be   :  { %3833 = vmatmul.mubr.bf16.gmra.mrb[80].mxu1 %v18394_v51 }
 0x4bf   :  { %12263 = vmatprep.mubr.msk.bf16.mxu1 %vm2921_vm4, %v18398_v41 }
 0x4c6   :  { %3841 = vmatmul.mubr.bf16.gmra.mrb[84].mxu1 %v18416_v60 }
 0x4c7   :  { %12300 = vmatprep.mubr.msk.bf16.mxu1 %vm2921_vm4, %v17938_v46 }
 0x4ce   :  { %4178 = vmatmul.mubr.bf16.vlgmr.msra.gmra.mrb[0].mxu1 %v22045_v53 }
 0x4cf   :  { %12301 = vmatprep.mubr.msk.bf16.mxu1 %vm2921_vm4, %v22046_v25  ;;  %4289 = vmatpush1.bf16.msra.mxu1 %v16318_v16  ;;  %v16335_v16 = vld [vmem:[#allocation2 + $0x324] ss:$12 sps:$4 sm:$0xff]  }
 0x4d0   :  { %4290 = vmatprep.subr.bf16.mxu1 %v22055_v49 }
 0x4d3   :  { %4291 = vmatpush1.bf16.msra.mxu1 %v16319_v52  ;;  %v16340_v52 = vld [vmem:[#allocation2 + $0x340] ss:$12 sps:$4 sm:$0xff]  }
 0x4d4   :  { %4292 = vmatprep.subr.bf16.mxu1 %v22055_v49 }
 0x4d6   :  { %4188 = vmatmul.mubr.bf16.gmra.mrb[4].mxu1 %v22047_v44 }
 0x4d7   :  { %12302 = vmatprep.mubr.msk.bf16.mxu1 %vm2921_vm4, %v22048_v21  ;;  %4293 = vmatpush1.bf16.msra.mxu1 %v16320_v23  ;;  %v16341_v23 = vld [vmem:[#allocation2 + $0x354] ss:$12 sps:$4 sm:$0xff]  }
 0x4d8   :  { %4294 = vmatprep.subr.bf16.mxu1 %v22055_v49 }
 0x4db   :  { %4295 = vmatpush1.bf16.msra.mxu1 %v16321_v58  ;;  %v16346_v58 = vld [vmem:[#allocation2 + $0x370] ss:$12 sps:$4 sm:$0xff]  }
 0x4dc   :  { %4296 = vmatprep.subr.bf16.mxu1 %v22055_v49 }
 0x4de   :  { %4198 = vmatmul.mubr.bf16.gmra.mrb[8].mxu1 %v22049_v6 }
 0x4df   :  { %12303 = vmatprep.mubr.msk.bf16.mxu1 %vm2921_vm4, %v22050_v8  ;;  %4297 = vmatpush1.bf16.msra.mxu1 %v16322_v2  ;;  %v16344_v2 = vld [vmem:[#allocation2 + $0x36c] ss:$12 sps:$4 sm:$0xff]  }
 0x4e0   :  { %4298 = vmatprep.subr.bf16.mxu1 %v22055_v49 }
 0x4e3   :  { %4299 = vmatpush1.bf16.msra.mxu1 %v16323_v37  ;;  %v16349_v37 = vld [vmem:[#allocation2 + $0x388] ss:$12 sps:$4 sm:$0xff]  }
 0x4e4   :  { %4300 = vmatprep.subr.bf16.mxu1 %v22055_v49 }
 0x4e6   :  { %4208 = vmatmul.mubr.bf16.gmra.mrb[12].mxu1 %v22051_v14 }
 0x4e7   :  { %12304 = vmatprep.mubr.msk.bf16.mxu1 %vm2921_vm4, %v22052_v48  ;;  %4301 = vmatpush1.bf16.msra.mxu1 %v16324_v33  ;;  %v16347_v33 = vld [vmem:[#allocation2 + $0x384] ss:$12 sps:$4 sm:$0xff]  }
 0x4e8   :  { %4302 = vmatprep.subr.bf16.mxu1 %v22055_v49 }
 0x4eb   :  { %4303 = vmatpush1.bf16.msra.mxu1 %v16325_v5  ;;  %v16352_v5 = vld [vmem:[#allocation2 + $0x3a0] ss:$12 sps:$4 sm:$0xff]  }
 0x4ec   :  { %4304 = vmatprep.subr.bf16.mxu1 %v22055_v49 }
 0x4ee   :  { %4218 = vmatmul.mubr.bf16.gmra.mrb[16].mxu1 %v22053_v62 }
 0x4ef   :  { %12305 = vmatprep.mubr.msk.bf16.mxu1 %vm2921_vm4, %v22054_v13  ;;  %4305 = vmatpush1.bf16.msra.mxu1 %v16326_v0  ;;  %v16350_v0 = vld [vmem:[#allocation2 + $0x39c] ss:$12 sps:$4 sm:$0xff]  }
 0x4f0   :  { %4306 = vmatprep.subr.bf16.mxu1 %v22055_v49 }
 0x4f3   :  { %4307 = vmatpush1.bf16.msra.mxu1 %v16327_v43  ;;  %v16355_v43 = vld [vmem:[#allocation2 + $0x3b8] ss:$12 sps:$4 sm:$0xff]  }
 0x4f4   :  { %4308 = vmatprep.subr.bf16.mxu1 %v22055_v49 }
 0x4f6   :  { %4228 = vmatmul.mubr.bf16.gmra.mrb[20].mxu1 %v22056_v54 }
 0x4f7   :  { %12306 = vmatprep.mubr.msk.bf16.mxu1 %vm2921_vm4, %v22057_v12  ;;  %4309 = vmatpush1.bf16.msra.mxu1 %v4143_v20  ;;  %v16358_v20 = vld [vmem:[#allocation2 + $0x3d0] ss:$12 sps:$4 sm:$0xff]  }
 0x4f8   :  { %4705 = vmatprep.subr.bf16.mxu1 %v16331_v38  ;;  %v4520_v38 = vld [vmem:[#allocation2 + $0x3e4] sm:$0x77] }
 0x4fe   :  { %4238 = vmatmul.mubr.bf16.gmra.mrb[24].mxu1 %v22058_v32 }
 0x4ff   :  { %12307 = vmatprep.mubr.msk.bf16.mxu1 %vm2921_vm4, %v22059_v18 }
 0x506   :  { %4248 = vmatmul.mubr.bf16.gmra.mrb[28].mxu1 %v22060_v26 }
 0x507   :  { %12308 = vmatprep.mubr.msk.bf16.mxu1 %vm2921_vm4, %v22061_v9 }
 0x50e   :  { %4258 = vmatmul.mubr.bf16.gmra.mrb[32].mxu1 %v22062_v34 }
 0x50f   :  { %12309 = vmatprep.mubr.msk.bf16.mxu1 %vm2921_vm4, %v22063_v3 }
 0x516   :  { %4268 = vmatmul.mubr.bf16.gmra.mrb[36].mxu1 %v22064_v47 }
 0x517   :  { %12310 = vmatprep.mubr.msk.bf16.mxu1 %vm2921_vm4, %v18404_v1 }
 0x51e   :  { %4278 = vmatmul.mubr.bf16.gmra.mrb[40].mxu1 %v18418_v22 }
 0x51f   :  { %12311 = vmatprep.mubr.msk.bf16.mxu1 %vm2921_vm4, %v17938_v46  ;;  %v16338_v46 = vld [vmem:[#allocation2 + $0x33c] ss:$12 sps:$4 sm:$0xff]  }
 0x526   :  { %4321 = vmatmul.mubr.bf16.vlgmr.msra.gmra.mrb[44].mxu1 %v22045_v53  ;;  %v16343_v53 = vld [vmem:[#allocation2 + $0x358] ss:$12 sps:$4 sm:$0xff]  }
 0x527   :  { %12312 = vmatprep.mubr.msk.bf16.mxu1 %vm2921_vm4, %v22046_v25  ;;  %4706 = vmatpush1.bf16.msra.mxu1 %v16329_v56  ;;  %v16356_v56 = vld [vmem:[#allocation2 + $0x3cc] ss:$12 sps:$4 sm:$0xff]  }
 0x528   :  { %4707 = vmatprep.subr.bf16.mxu1 %v16334_v42  ;;  %v12355_v42 = vcombine.high %v4520_v38, %v4520_v38 }
 0x52b   :  { %4708 = vmatpush1.bf16.msra.mxu1 %v16332_v24  ;;  %v12354_v24 = vcombine.low %v4520_v38, %v4520_v38  ;;  %v16377_v38 = vld [vmem:[#allocation2 + $0x40c] ss:$12 sps:$4 sm:$0xff]  }
 0x52c   :  { %4709 = vmatprep.subr.bf16.mxu1 %v16337_v59 }
 0x52d   :  { %v4697_v59 = vsel %vm2955_vm1, %v12354_v24, 0  ;;  %v16378_v24 = vld [vmem:[#allocation2 + $0x420] ss:$12 sps:$4 sm:$0xff]  }
 0x52e   :  { %4329 = vmatmul.mubr.bf16.gmra.mrb[48].mxu1 %v22047_v44 }
 0x52f   :  { %12313 = vmatprep.mubr.msk.bf16.mxu1 %vm2921_vm4, %v22048_v21  ;;  %4710 = vmatpush1.bf16.msra.mxu1 %v16335_v16  ;;  %v16361_v16 = vld [vmem:[#allocation2 + $0x2fc] ss:$12 sps:$4 sm:$0xff]  }
 0x530   :  { %4711 = vmatprep.subr.bf16.mxu1 %v16340_v52  ;;  %v16362_v52 = vld [vmem:[#allocation2 + $0x314] ss:$12 sps:$4 sm:$0xff]  }
 0x533   :  { %4712 = vmatpush1.bf16.msra.mxu1 %v16338_v46  ;;  %v16363_v46 = vld [vmem:[#allocation2 + $0x32c] ss:$12 sps:$4 sm:$0xff]  }
 0x534   :  { %4713 = vmatprep.subr.bf16.mxu1 %v16343_v53  ;;  %v16364_v53 = vld [vmem:[#allocation2 + $0x344] ss:$12 sps:$4 sm:$0xff]  }
 0x536   :  { %4337 = vmatmul.mubr.bf16.gmra.mrb[52].mxu1 %v22049_v6 }
 0x537   :  { %12314 = vmatprep.mubr.msk.bf16.mxu1 %vm2921_vm4, %v22050_v8  ;;  %4714 = vmatpush1.bf16.msra.mxu1 %v16341_v23  ;;  %v16365_v23 = vld [vmem:[#allocation2 + $0x35c] ss:$12 sps:$4 sm:$0xff]  }
 0x538   :  { %4715 = vmatprep.subr.bf16.mxu1 %v16346_v58  ;;  %v16366_v58 = vld [vmem:[#allocation2 + $0x374] ss:$12 sps:$4 sm:$0xff]  }
 0x53b   :  { %4716 = vmatpush1.bf16.msra.mxu1 %v16344_v2  ;;  %v16367_v2 = vld [vmem:[#allocation2 + $0x38c] ss:$12 sps:$4 sm:$0xff]  }
 0x53c   :  { %4717 = vmatprep.subr.bf16.mxu1 %v16349_v37  ;;  %v16368_v37 = vld [vmem:[#allocation2 + $0x3a4] ss:$12 sps:$4 sm:$0xff]  }
 0x53e   :  { %4345 = vmatmul.mubr.bf16.gmra.mrb[56].mxu1 %v22051_v14 }
 0x53f   :  { %12315 = vmatprep.mubr.msk.bf16.mxu1 %vm2921_vm4, %v22052_v48  ;;  %4718 = vmatpush1.bf16.msra.mxu1 %v16347_v33  ;;  %v16369_v33 = vld [vmem:[#allocation2 + $0x3bc] ss:$12 sps:$4 sm:$0xff]  }
 0x540   :  { %4719 = vmatprep.subr.bf16.mxu1 %v16352_v5  ;;  %v16370_v5 = vld [vmem:[#allocation2 + $0x3d4] ss:$12 sps:$4 sm:$0xff]  }
 0x543   :  { %4720 = vmatpush1.bf16.msra.mxu1 %v16350_v0  ;;  %v16371_v0 = vld [vmem:[#allocation2 + $0x3ec] ss:$0 sps:$4 sm:$0x77]  }
 0x544   :  { %4721 = vmatprep.subr.bf16.mxu1 %v16355_v43  ;;  %v4703_v43 = vsel %vm2955_vm1, %v16371_v0, 0 }
 0x546   :  { %4353 = vmatmul.mubr.bf16.gmra.mrb[60].mxu1 %v22053_v62 }
 0x547   :  { %12316 = vmatprep.mubr.msk.bf16.mxu1 %vm2921_vm4, %v22054_v13  ;;  %4722 = vmatpush1.bf16.msra.mxu1 %v16353_v55  ;;  %v16374_v55 = vld [vmem:[#allocation2 + $0x3f4] ss:$12 sps:$4 sm:$0xff]  }
 0x548   :  { %4723 = vmatprep.subr.bf16.mxu1 %v16358_v20  ;;  %v16372_v20 = vld [vmem:[#allocation2 + $0x3f0] ss:$12 sps:$4 sm:$0xff]  }
 0x54b   :  { %4724 = vmatpush1.bf16.msra.mxu1 %v16356_v56  ;;  %v16375_v56 = vld [vmem:[#allocation2 + $0x408] ss:$12 sps:$4 sm:$0xff]  }
 0x54c   :  { %12357 = vmatprep.subr.msk.bf16.mxu1 %vm2955_vm1, %v12355_v42  ;;  %v16380_v42 = vld [vmem:[#allocation2 + $0x424] ss:$12 sps:$4 sm:$0xff]  }
 0x54e   :  { %4361 = vmatmul.mubr.bf16.gmra.mrb[64].mxu1 %v22056_v54 }
 0x54f   :  { %12317 = vmatprep.mubr.msk.bf16.mxu1 %vm2921_vm4, %v22057_v12  ;;  %4726 = vmatpush1.bf16.msra.mxu1 %v4697_v59  ;;  %v16383_v59 = vld [vmem:[#allocation2 + $0x43c] ss:$12 sps:$4 sm:$0xff]  }
 0x550   :  { %4848 = vmatprep.subr.bf16.mxu1 %v22055_v49 }
 0x556   :  { %4369 = vmatmul.mubr.bf16.gmra.mrb[68].mxu1 %v22058_v32 }
 0x557   :  { %12318 = vmatprep.mubr.msk.bf16.mxu1 %vm2921_vm4, %v22059_v18 }
 0x55e   :  { %4377 = vmatmul.mubr.bf16.gmra.mrb[72].mxu1 %v22060_v26 }
 0x55f   :  { %12319 = vmatprep.mubr.msk.bf16.mxu1 %vm2921_vm4, %v22061_v9 }
 0x566   :  { %4385 = vmatmul.mubr.bf16.gmra.mrb[76].mxu1 %v22062_v34 }
 0x567   :  { %12320 = vmatprep.mubr.msk.bf16.mxu1 %vm2921_vm4, %v22063_v3 }
 0x56e   :  { %4393 = vmatmul.mubr.bf16.gmra.mrb[80].mxu1 %v22064_v47 }
 0x56f   :  { %12321 = vmatprep.mubr.msk.bf16.mxu1 %vm2921_vm4, %v18404_v1 }
 0x576   :  { %4401 = vmatmul.mubr.bf16.gmra.mrb[84].mxu1 %v18418_v22 }
 0x577   :  { %12358 = vmatprep.mubr.msk.bf16.mxu1 %vm2921_vm4, %v18461_v7 }
 0x57e   :  { %4738 = vmatmul.mubr.bf16.vlgmr.msra.gmra.mrb[0].mxu1 %v18471_v45 }
 0x57f   :  { %12359 = vmatprep.mubr.msk.bf16.mxu1 %vm2921_vm4, %v18478_v10  ;;  %4849 = vmatpush1.bf16.msra.mxu1 %v16361_v16  ;;  %v16384_v16 = vld [vmem:[#allocation2 + $0x450] ss:$12 sps:$4 sm:$0xff]  }
 0x580   :  { %4850 = vmatprep.subr.bf16.mxu1 %v22055_v49 }
 0x583   :  { %4851 = vmatpush1.bf16.msra.mxu1 %v16362_v52  ;;  %v16387_v52 = vld [vmem:[#allocation2 + $0x468] ss:$12 sps:$4 sm:$0xff]  }
 0x584   :  { %4852 = vmatprep.subr.bf16.mxu1 %v22055_v49 }
 0x586   :  { %4748 = vmatmul.mubr.bf16.gmra.mrb[4].mxu1 %v18488_v11 }
 0x587   :  { %12360 = vmatprep.mubr.msk.bf16.mxu1 %vm2921_vm4, %v18495_v36  ;;  %4853 = vmatpush1.bf16.msra.mxu1 %v16363_v46  ;;  %v16390_v46 = vld [vmem:[#allocation2 + $0x480] ss:$12 sps:$4 sm:$0xff]  }
 0x588   :  { %4854 = vmatprep.subr.bf16.mxu1 %v22055_v49 }
 0x58b   :  { %4855 = vmatpush1.bf16.msra.mxu1 %v16364_v53  ;;  %v16393_v53 = vld [vmem:[#allocation2 + $0x498] ss:$12 sps:$4 sm:$0xff]  }
 0x58c   :  { %4856 = vmatprep.subr.bf16.mxu1 %v22055_v49 }
 0x58e   :  { %4758 = vmatmul.mubr.bf16.gmra.mrb[8].mxu1 %v18505_v35 }
 0x58f   :  { %12361 = vmatprep.mubr.msk.bf16.mxu1 %vm2921_vm4, %v18325_v39  ;;  %4857 = vmatpush1.bf16.msra.mxu1 %v16365_v23  ;;  %v16396_v23 = vld [vmem:[#allocation2 + $0x4b0] ss:$12 sps:$4 sm:$0xff]  }
 0x590   :  { %4858 = vmatprep.subr.bf16.mxu1 %v22055_v49 }
 0x593   :  { %4859 = vmatpush1.bf16.msra.mxu1 %v16366_v58  ;;  %v5080_v58 = vld [vmem:[#allocation2 + $0x4e0] sm:$0x77] }
 0x594   :  { %4860 = vmatprep.subr.bf16.mxu1 %v22055_v49 }
 0x596   :  { %4768 = vmatmul.mubr.bf16.gmra.mrb[12].mxu1 %v18331_v15 }
 0x597   :  { %12362 = vmatprep.mubr.msk.bf16.mxu1 %vm2921_vm4, %v18337_v30  ;;  %4861 = vmatpush1.bf16.msra.mxu1 %v16367_v2  ;;  %v16399_v2 = vld [vmem:[#allocation2 + $0x4c8] ss:$12 sps:$4 sm:$0xff]  }
 0x598   :  { %4862 = vmatprep.subr.bf16.mxu1 %v22055_v49 }
 0x59b   :  { %4863 = vmatpush1.bf16.msra.mxu1 %v16368_v37  ;;  %v12412_v37 = vcombine.low %v5080_v58, %v5080_v58 }
 0x59c   :  { %4864 = vmatprep.subr.bf16.mxu1 %v22055_v49 }
 0x59e   :  { %4778 = vmatmul.mubr.bf16.gmra.mrb[16].mxu1 %v18344_v27 }
 0x59f   :  { %12363 = vmatprep.mubr.msk.bf16.mxu1 %vm2921_vm4, %v18350_v57  ;;  %4865 = vmatpush1.bf16.msra.mxu1 %v16369_v33  ;;  %v16419_v33 = vld [vmem:[%s21776_s5 + $0x50] sm:$0xff]  }
 0x5a0   :  { %4866 = vmatprep.subr.bf16.mxu1 %v22055_v49 }
 0x5a3   :  { %4867 = vmatpush1.bf16.msra.mxu1 %v16370_v5  ;;  %v16420_v5 = vld [vmem:[%s21776_s5 + $0x10] sm:$0xff]  }
 0x5a4   :  { %4868 = vmatprep.subr.bf16.mxu1 %v22055_v49 }
 0x5a6   :  { %4788 = vmatmul.mubr.bf16.gmra.mrb[20].mxu1 %v18356_v31 }
 0x5a7   :  { %12364 = vmatprep.mubr.msk.bf16.mxu1 %vm2921_vm4, %v18362_v19  ;;  %4869 = vmatpush1.bf16.msra.mxu1 %v4703_v43 }
 0x5a8   :  { %5265 = vmatprep.subr.bf16.mxu1 %v16374_v55 }
 0x5ae   :  { %4798 = vmatmul.mubr.bf16.gmra.mrb[24].mxu1 %v18370_v50 }
 0x5af   :  { %12365 = vmatprep.mubr.msk.bf16.mxu1 %vm2921_vm4, %v18376_v4 }
 0x5b6   :  { %4808 = vmatmul.mubr.bf16.gmra.mrb[28].mxu1 %v18382_v40 }
 0x5b7   :  { %12366 = vmatprep.mubr.msk.bf16.mxu1 %vm2921_vm4, %v18388_v17 }
 0x5be   :  { %4818 = vmatmul.mubr.bf16.gmra.mrb[32].mxu1 %v18394_v51 }
 0x5bf   :  { %12367 = vmatprep.mubr.msk.bf16.mxu1 %vm2921_vm4, %v18398_v41 }
 0x5c6   :  { %4828 = vmatmul.mubr.bf16.gmra.mrb[36].mxu1 %v18416_v60 }
 0x5c7   :  { %12368 = vmatprep.mubr.msk.bf16.mxu1 %vm2921_vm4, %v18409_v29 }
 0x5ce   :  { %4838 = vmatmul.mubr.bf16.gmra.mrb[40].mxu1 %v18423_v63 }
 0x5cf   :  { %12369 = vmatprep.mubr.msk.bf16.mxu1 %vm2921_vm4, %v18461_v7  ;;  %v16381_v7 = vld [vmem:[#allocation2 + $0x438] ss:$12 sps:$4 sm:$0xff]  }
 0x5d6   :  { %4881 = vmatmul.mubr.bf16.vlgmr.msra.gmra.mrb[44].mxu1 %v18471_v45  ;;  %v16386_v45 = vld [vmem:[#allocation2 + $0x454] ss:$12 sps:$4 sm:$0xff]  }
 0x5d7   :  { %12370 = vmatprep.mubr.msk.bf16.mxu1 %vm2921_vm4, %v18478_v10  ;;  %5266 = vmatpush1.bf16.msra.mxu1 %v16372_v20  ;;  %v16389_v10 = vld [vmem:[#allocation2 + $0x46c] ss:$12 sps:$4 sm:$0xff]  }
 0x5d8   :  { %5267 = vmatprep.subr.bf16.mxu1 %v16377_v38 }
 0x5db   :  { %5268 = vmatpush1.bf16.msra.mxu1 %v16375_v56 }
 0x5dc   :  { %5269 = vmatprep.subr.bf16.mxu1 %v16380_v42 }
 0x5de   :  { %4889 = vmatmul.mubr.bf16.gmra.mrb[48].mxu1 %v18488_v11  ;;  %v16392_v11 = vld [vmem:[#allocation2 + $0x484] ss:$12 sps:$4 sm:$0xff]  }
 0x5df   :  { %12371 = vmatprep.mubr.msk.bf16.mxu1 %vm2921_vm4, %v18495_v36  ;;  %5270 = vmatpush1.bf16.msra.mxu1 %v16378_v24  ;;  %v16395_v36 = vld [vmem:[#allocation2 + $0x49c] ss:$12 sps:$4 sm:$0xff]  }
 0x5e0   :  { %5271 = vmatprep.subr.bf16.mxu1 %v16383_v59  ;;  %v16421_v59 = vld [vmem:[%s21776_s5 + $0x58] sm:$0xff]  }
 0x5e3   :  { %5272 = vmatpush1.bf16.msra.mxu1 %v16381_v7  ;;  %v16422_v7 = vld [vmem:[%s21776_s5 + $0x18] sm:$0xff]  }
 0x5e4   :  { %5273 = vmatprep.subr.bf16.mxu1 %v16386_v45 }
 0x5e6   :  { %4897 = vmatmul.mubr.bf16.gmra.mrb[52].mxu1 %v18505_v35  ;;  %v16398_v35 = vld [vmem:[#allocation2 + $0x4b4] ss:$12 sps:$4 sm:$0xff]  }
 0x5e7   :  { %12372 = vmatprep.mubr.msk.bf16.mxu1 %vm2921_vm4, %v18325_v39  ;;  %5274 = vmatpush1.bf16.msra.mxu1 %v16384_v16  ;;  %v16401_v39 = vld [vmem:[#allocation2 + $0x4cc] ss:$12 sps:$4 sm:$0xff]  }
 0x5e8   :  { %5275 = vmatprep.subr.bf16.mxu1 %v16389_v10 }
 0x5eb   :  { %5276 = vmatpush1.bf16.msra.mxu1 %v16387_v52 }
 0x5ec   :  { %5277 = vmatprep.subr.bf16.mxu1 %v16392_v11  ;;  %v16423_v11 = vld [vmem:[%s21776_s5 + $0x60] sm:$0xff]  }
 0x5ee   :  { %4905 = vmatmul.mubr.bf16.gmra.mrb[56].mxu1 %v18331_v15  ;;  %v12413_v15 = vcombine.high %v5080_v58, %v5080_v58 }
 0x5ef   :  { %12373 = vmatprep.mubr.msk.bf16.mxu1 %vm2921_vm4, %v18337_v30  ;;  %5278 = vmatpush1.bf16.msra.mxu1 %v16390_v46  ;;  %v5257_v30 = vsel %vm2955_vm1, %v12412_v37, 0  ;;  %v16424_v46 = vld [vmem:[%s21776_s5 + $0x20] sm:$0xff]   ;;  %v16425_v37 = vld [vmem:[%s21776_s5 + $0x68] sm:$0xff]  }
 0x5f0   :  { %5279 = vmatprep.subr.bf16.mxu1 %v16395_v36 }
 0x5f3   :  { %5280 = vmatpush1.bf16.msra.mxu1 %v16393_v53 }
 0x5f4   :  { %5281 = vmatprep.subr.bf16.mxu1 %v16398_v35 }
 0x5f6   :  { %4913 = vmatmul.mubr.bf16.gmra.mrb[60].mxu1 %v18344_v27  ;;  %v16404_v27 = vld [vmem:[#allocation2 + $0x3f8] ss:$12 sps:$4 sm:$0xff]  }
 0x5f7   :  { %12374 = vmatprep.mubr.msk.bf16.mxu1 %vm2921_vm4, %v18350_v57  ;;  %5282 = vmatpush1.bf16.msra.mxu1 %v16396_v23  ;;  %v16405_v57 = vld [vmem:[#allocation2 + $0x410] ss:$12 sps:$4 sm:$0xff]  }
 0x5f8   :  { %5283 = vmatprep.subr.bf16.mxu1 %v16401_v39 }
 0x5fb   :  { %5284 = vmatpush1.bf16.msra.mxu1 %v16399_v2 }
 0x5fc   :  { %12415 = vmatprep.subr.msk.bf16.mxu1 %vm2955_vm1, %v12413_v15 }
 0x5fe   :  { %4921 = vmatmul.mubr.bf16.gmra.mrb[64].mxu1 %v18356_v31  ;;  %v16406_v31 = vld [vmem:[#allocation2 + $0x428] ss:$12 sps:$4 sm:$0xff]  }
 0x5ff   :  { %12375 = vmatprep.mubr.msk.bf16.mxu1 %vm2921_vm4, %v18362_v19  ;;  %5286 = vmatpush1.bf16.msra.mxu1 %v5257_v30  ;;  %v16407_v19 = vld [vmem:[#allocation2 + $0x440] ss:$12 sps:$4 sm:$0xff]  }
 0x600   :  { %5408 = vmatprep.subr.bf16.mxu1 %v22055_v49  ;;  %v16426_v30 = vld [vmem:[%s21776_s5 + $0x28] sm:$0xff]  }
 0x606   :  { %4929 = vmatmul.mubr.bf16.gmra.mrb[68].mxu1 %v18370_v50  ;;  %v16408_v50 = vld [vmem:[#allocation2 + $0x458] ss:$12 sps:$4 sm:$0xff]  }
 0x607   :  { %12376 = vmatprep.mubr.msk.bf16.mxu1 %vm2921_vm4, %v18376_v4  ;;  %v16409_v4 = vld [vmem:[#allocation2 + $0x470] ss:$12 sps:$4 sm:$0xff]  }
 0x60e   :  { %4937 = vmatmul.mubr.bf16.gmra.mrb[72].mxu1 %v18382_v40  ;;  %v16410_v40 = vld [vmem:[#allocation2 + $0x488] ss:$12 sps:$4 sm:$0xff]  }
 0x60f   :  { %12377 = vmatprep.mubr.msk.bf16.mxu1 %vm2921_vm4, %v18388_v17  ;;  %v16411_v17 = vld [vmem:[#allocation2 + $0x4a0] ss:$12 sps:$4 sm:$0xff]  }
 0x616   :  { %4945 = vmatmul.mubr.bf16.gmra.mrb[76].mxu1 %v18394_v51  ;;  %v16412_v51 = vld [vmem:[#allocation2 + $0x4b8] ss:$12 sps:$4 sm:$0xff]  }
 0x617   :  { %12378 = vmatprep.mubr.msk.bf16.mxu1 %vm2921_vm4, %v18398_v41  ;;  %v16413_v41 = vld [vmem:[#allocation2 + $0x4d0] ss:$12 sps:$4 sm:$0xff]  }
 0x61e   :  { %4953 = vmatmul.mubr.bf16.gmra.mrb[80].mxu1 %v18416_v60 }
 0x61f   :  { %12379 = vmatprep.mubr.msk.bf16.mxu1 %vm2921_vm4, %v18409_v29  ;;  %v16414_v29 = vld [vmem:[#allocation2 + $0x4e8] ss:$0 sps:$4 sm:$0x77]  }
 0x620   :  { %v5263_v60 = vsel %vm2955_vm1, %v16414_v29, 0 }
 0x626   :  { %4961 = vmatmul.mubr.bf16.gmra.mrb[84].mxu1 %v18423_v63  ;;  %v16416_v63 = vld [vmem:[%s21776_s5] sm:$0xff]  }
 0x627   :  { %12416 = vmatprep.mubr.msk.bf16.mxu1 %vm2921_vm4, %v22046_v25 }
 0x62e   :  { %5298 = vmatmul.mubr.bf16.vlgmr.msra.gmra.mrb[0].mxu1 %v22047_v44 }
 0x62f   :  { %12417 = vmatprep.mubr.msk.bf16.mxu1 %vm2921_vm4, %v22048_v21  ;;  %5409 = vmatpush1.bf16.msra.mxu1 %v16404_v27 }
 0x630   :  { %5410 = vmatprep.subr.bf16.mxu1 %v22055_v49 }
 0x633   :  { %5411 = vmatpush1.bf16.msra.mxu1 %v16405_v57 }
 0x634   :  { %5412 = vmatprep.subr.bf16.mxu1 %v22055_v49 }
 0x636   :  { %5308 = vmatmul.mubr.bf16.gmra.mrb[4].mxu1 %v22049_v6 }
 0x637   :  { %12418 = vmatprep.mubr.msk.bf16.mxu1 %vm2921_vm4, %v22050_v8  ;;  %5413 = vmatpush1.bf16.msra.mxu1 %v16406_v31 }
 0x638   :  { %5414 = vmatprep.subr.bf16.mxu1 %v22055_v49 }
 0x63b   :  { %5415 = vmatpush1.bf16.msra.mxu1 %v16407_v19 }
 0x63c   :  { %5416 = vmatprep.subr.bf16.mxu1 %v22055_v49 }
 0x63e   :  { %5318 = vmatmul.mubr.bf16.gmra.mrb[8].mxu1 %v22051_v14 }
 0x63f   :  { %12419 = vmatprep.mubr.msk.bf16.mxu1 %vm2921_vm4, %v22052_v48  ;;  %5417 = vmatpush1.bf16.msra.mxu1 %v16408_v50 }
 0x640   :  { %5418 = vmatprep.subr.bf16.mxu1 %v22055_v49 }
 0x643   :  { %5419 = vmatpush1.bf16.msra.mxu1 %v16409_v4 }
 0x644   :  { %5420 = vmatprep.subr.bf16.mxu1 %v22055_v49 }
 0x646   :  { %5328 = vmatmul.mubr.bf16.gmra.mrb[12].mxu1 %v22053_v62 }
 0x647   :  { %12420 = vmatprep.mubr.msk.bf16.mxu1 %vm2921_vm4, %v22054_v13  ;;  %5421 = vmatpush1.bf16.msra.mxu1 %v16410_v40 }
 0x648   :  { %5422 = vmatprep.subr.bf16.mxu1 %v22055_v49 }
 0x64b   :  { %5423 = vmatpush1.bf16.msra.mxu1 %v16411_v17 }
 0x64c   :  { %5424 = vmatprep.subr.bf16.mxu1 %v22055_v49 }
 0x64e   :  { %5338 = vmatmul.mubr.bf16.gmra.mrb[16].mxu1 %v22056_v54 }
 0x64f   :  { %12421 = vmatprep.mubr.msk.bf16.mxu1 %vm2921_vm4, %v22057_v12  ;;  %5425 = vmatpush1.bf16.msra.mxu1 %v16412_v51  ;;  %v16427_v51 = vld [vmem:[%s21776_s5 + $0x70] sm:$0xff]  }
 0x650   :  { %5426 = vmatprep.subr.bf16.mxu1 %v22055_v49 }
 0x653   :  { %5427 = vmatpush1.bf16.msra.mxu1 %v16413_v41  ;;  %v16428_v41 = vld [vmem:[%s21776_s5 + $0x30] sm:$0xff]  }
 0x654   :  { %5428 = vmatprep.subr.bf16.mxu1 %v22055_v49  ;;  %v16418_v49 = vld [vmem:[%s21776_s5 + $0x8] sm:$0xff]  }
 0x656   :  { %5348 = vmatmul.mubr.bf16.gmra.mrb[20].mxu1 %v22058_v32 }
 0x657   :  { %12422 = vmatprep.mubr.msk.bf16.mxu1 %vm2921_vm4, %v22059_v18  ;;  %5429 = vmatpush1.bf16.msra.mxu1 %v5263_v60 }
 0x65e   :  { %5358 = vmatmul.mubr.bf16.gmra.mrb[24].mxu1 %v22060_v26 }
 0x65f   :  { %12423 = vmatprep.mubr.msk.bf16.mxu1 %vm2921_vm4, %v22061_v9 }
 0x666   :  { %5368 = vmatmul.mubr.bf16.gmra.mrb[28].mxu1 %v22062_v34 }
 0x667   :  { %12424 = vmatprep.mubr.msk.bf16.mxu1 %vm2921_vm4, %v22063_v3 }
 0x66e   :  { %5378 = vmatmul.mubr.bf16.gmra.mrb[32].mxu1 %v22064_v47 }
 0x66f   :  { %12425 = vmatprep.mubr.msk.bf16.mxu1 %vm2921_vm4, %v18404_v1 }
 0x676   :  { %5388 = vmatmul.mubr.bf16.gmra.mrb[36].mxu1 %v18418_v22 }
 0x677   :  { %12426 = vmatprep.mubr.msk.bf16.mxu1 %vm2921_vm4, %v18412_v61 }
 0x67e   :  { %5398 = vmatmul.mubr.bf16.gmra.mrb[40].mxu1 %v18425_v28 }
 0x67f   :  { %12427 = vmatprep.mubr.msk.bf16.mxu1 %vm2921_vm4, %v22046_v25  ;;  %v16415_v25 = vld [vmem:[%s21776_s5 + $0x40] sm:$0xff]  }
 0x680   :  { %13786 = vmatprep.subr.bf16.mxu0 %v16415_v25 }
 0x681   :  { %13787 = vmatpush3.bf16.msra.mxu0 %v16416_v63 }
 0x686   :  { %5441 = vmatmul.mubr.bf16.vlgmr.msra.gmra.mrb[44].mxu1 %v22047_v44 }
 0x687   :  { %12428 = vmatprep.mubr.msk.bf16.mxu1 %vm2921_vm4, %v22048_v21 }
 0x68e   :  { %5449 = vmatmul.mubr.bf16.gmra.mrb[48].mxu1 %v22049_v6 }
 0x68f   :  { %12429 = vmatprep.mubr.msk.bf16.mxu1 %vm2921_vm4, %v22050_v8 }
 0x696   :  { %5457 = vmatmul.mubr.bf16.gmra.mrb[52].mxu1 %v22051_v14 }
 0x697   :  { %12430 = vmatprep.mubr.msk.bf16.mxu1 %vm2921_vm4, %v22052_v48 }
 0x69e   :  { %5465 = vmatmul.mubr.bf16.gmra.mrb[56].mxu1 %v22053_v62 }
 0x69f   :  { %12431 = vmatprep.mubr.msk.bf16.mxu1 %vm2921_vm4, %v22054_v13  ;;  %v16417_v13 = vld [vmem:[%s21776_s5 + $0x48] sm:$0xff]  }
 0x6a0   :  { %13788 = vmatprep.subr.bf16.mxu0 %v16417_v13 }
 0x6a1   :  { %13789 = vmatpush3.bf16.msra.mxu0 %v16418_v49 }
 0x6a2   :  { %13790 = vmatprep.subr.bf16.mxu0 %v16419_v33 }
 0x6a5   :  { %13791 = vmatpush3.bf16.msra.mxu0 %v16420_v5 }
 0x6a6   :  { %5473 = vmatmul.mubr.bf16.gmra.mrb[60].mxu1 %v22056_v54  ;;  %13792 = vmatprep.subr.bf16.mxu0 %v16421_v59 }
 0x6a7   :  { %12432 = vmatprep.mubr.msk.bf16.mxu1 %vm2921_vm4, %v22057_v12 }
 0x6a9   :  { %13793 = vmatpush3.bf16.msra.mxu0 %v16422_v7 }
 0x6aa   :  { %13794 = vmatprep.subr.bf16.mxu0 %v16423_v11 }
 0x6ad   :  { %13795 = vmatpush3.bf16.msra.mxu0 %v16424_v46 }
 0x6ae   :  { %5481 = vmatmul.mubr.bf16.gmra.mrb[64].mxu1 %v22058_v32  ;;  %13796 = vmatprep.subr.bf16.mxu0 %v16425_v37 }
 0x6af   :  { %12433 = vmatprep.mubr.msk.bf16.mxu1 %vm2921_vm4, %v22059_v18 }
 0x6b1   :  { %13797 = vmatpush3.bf16.msra.mxu0 %v16426_v30 }
 0x6b2   :  { %13798 = vmatprep.subr.bf16.mxu0 %v16427_v51 }
 0x6b5   :  { %13799 = vmatpush3.bf16.msra.mxu0 %v16428_v41 }
 0x6b6   :  { %5489 = vmatmul.mubr.bf16.gmra.mrb[68].mxu1 %v22060_v26 }
 0x6b7   :  { %12434 = vmatprep.mubr.msk.bf16.mxu1 %vm2921_vm4, %v22061_v9 }
 0x6be   :  { %5497 = vmatmul.mubr.bf16.gmra.mrb[72].mxu1 %v22062_v34 }
 0x6bf   :  { %12435 = vmatprep.mubr.msk.bf16.mxu1 %vm2921_vm4, %v22063_v3 }
 0x6c6   :  { %5505 = vmatmul.mubr.bf16.gmra.mrb[76].mxu1 %v22064_v47 }
 0x6c7   :  { %12436 = vmatprep.mubr.msk.bf16.mxu1 %vm2921_vm4, %v18404_v1  ;;  %v18817_v1 = vld [vmem:[%s21775_s4] sm:$0x7] }
 0x6ce   :  { %5513 = vmatmul.mubr.bf16.gmra.mrb[80].mxu1 %v18418_v22  ;;  %v22091_v22 = vld [vmem:[#allocation8_spill] sm:$0xff] }
 0x6cf   :  { %12437 = vmatprep.mubr.msk.bf16.mxu1 %vm2921_vm4, %v18412_v61  ;;  %v22092_v44 = vsub.s32 0, %v22091_v22  ;;  %v2585_v25 = vsub.s32 2, %v22091_v22 }
 0x6d1   :  { %v18822_v61 = vrot.slane %v18817_v1, %v22092_v44 }
 0x6d6   :  { %5521 = vmatmul.mubr.bf16.gmra.mrb[84].mxu1 %v18425_v28 }
 0x701   :  { %v5299_v28 = vpop.f32.mrb[0].mxu1 }
 0x702   :  { %v18824_v21 = vpop.f32.mrb[1].mxu1  ;;  %v18827_v8 = vadd.f32 %v5299_v28, %v18822_v61  ;;  %v22094_v28 = vsub.s32 1, %v22091_v22 }
 0x703   :  { %v5303_v6 = vpop.f32.mrb[2].mxu1 }
 0x704   :  { %v18830_v14 = vadd.f32 %v5303_v6, %v18822_v61  ;;  %v18832_v48 = vpop.f32.mrb[3].mxu1  ;;  %v18961_v6 = vrot.slane %v18817_v1, %v22094_v28  ;;  %v16430_v28 = vld [vmem:[%s21776_s5 + $0x38] sm:$0xff]  }
 0x706   :  { %v15854_v62 = vpack.i.bf16 %v18830_v14, %v18827_v8  ;;  %v18968_v49 = vadd.f32 %v18824_v21, %v18961_v6  ;;  %v18975_v59 = vadd.f32 %v18832_v48, %v18961_v6 }
 0x708   :  { %15855 = vrot.lane.b32.xlu1 %v15854_v62, %s16915_s15  ;;  %15850 = vrot.lane.b32.xlu0 %v15854_v62, %s16914_s1  ;;  %v18964_v62 = vrot.slane %v18817_v1, %v2585_v25 }
 0x709   :  { %v5309_v54 = vpop.f32.mrb[4].mxu1 }
 0x70a   :  { %v18845_v12 = vadd.f32 %v5309_v54, %v18822_v61  ;;  %v18847_v32 = vpop.f32.mrb[5].mxu1 }
 0x70b   :  { %v18849_v18 = vpop.f32.mrb[6].mxu1  ;;  %v18988_v46 = vadd.f32 %v18847_v32, %v18961_v6  ;;  %v16429_v32 = vld [vmem:[%s21776_s5 + $0x78] sm:$0xff]  }
 0x70c   :  { %v18851_v26 = vpop.f32.mrb[7].mxu1  ;;  %5673 = vrot.lane.b32.xlu0 %v18845_v12, %s16914_s1  ;;  %13800 = vmatprep.subr.bf16.mxu0 %v16429_v32 }
 0x70d   :  { %13801 = vmatpush3.bf16.msra.mxu0 %v16430_v28 }
 0x711   :  { %v18855_v9 = vpop.f32.mrb[8].mxu1 }
 0x712   :  { %v18857_v34 = vpop.f32.mrb[9].mxu1 }
 0x713   :  { %v18859_v3 = vpop.f32.mrb[10].mxu1 }
 0x714   :  { %v18861_v47 = vpop.f32.mrb[11].mxu1 }
 0x719   :  { %v18869_v0 = vpop.f32.mrb[12].mxu1 }
 0x71a   :  { %v18871_v43 = vpop.f32.mrb[13].mxu1 }
 0x71b   :  { %v18873_v55 = vpop.f32.mrb[14].mxu1 }
 0x71c   :  { %v18875_v20 = vpop.f32.mrb[15].mxu1 }
 0x721   :  { %v18877_v38 = vpop.f32.mrb[16].mxu1 }
 0x722   :  { %v18879_v56 = vpop.f32.mrb[17].mxu1 }
 0x723   :  { %v18881_v42 = vpop.f32.mrb[18].mxu1 }
 0x724   :  { %v18883_v24 = vpop.f32.mrb[19].mxu1 }
 0x729   :  { %v18891_v45 = vpop.f32.mrb[20].mxu1 }
 0x72a   :  { %v18893_v16 = vpop.f32.mrb[21].mxu1 }
 0x72b   :  { %v18895_v10 = vpop.f32.mrb[22].mxu1 }
 0x72c   :  { %v18897_v52 = vpop.f32.mrb[23].mxu1 }
 0x731   :  { %v18905_v36 = vpop.f32.mrb[24].mxu1 }
 0x732   :  { %v18907_v53 = vpop.f32.mrb[25].mxu1 }
 0x733   :  { %v18909_v35 = vpop.f32.mrb[26].mxu1 }
 0x734   :  { %v18911_v23 = vpop.f32.mrb[27].mxu1 }
 0x739   :  { %v18913_v39 = vpop.f32.mrb[28].mxu1 }
 0x73a   :  { %v18915_v58 = vpop.f32.mrb[29].mxu1 }
 0x73b   :  { %v18917_v2 = vpop.f32.mrb[30].mxu1 }
 0x73c   :  { %v18919_v15 = vpop.f32.mrb[31].mxu1 }
 0x741   :  { %v18927_v27 = vpop.f32.mrb[32].mxu1 }
 0x742   :  { %v18929_v57 = vpop.f32.mrb[33].mxu1 }
 0x743   :  { %v18931_v31 = vpop.f32.mrb[34].mxu1 }
 0x744   :  { %v18933_v19 = vpop.f32.mrb[35].mxu1 }
 0x749   :  { %v18935_v50 = vpop.f32.mrb[36].mxu1 }
 0x74a   :  { %v18937_v4 = vpop.f32.mrb[37].mxu1 }
 0x74b   :  { %v18939_v40 = vpop.f32.mrb[38].mxu1 }
 0x74c   :  { %v18941_v17 = vpop.f32.mrb[39].mxu1 }
 0x751   :  { %v18949_v29 = vpop.f32.mrb[40].mxu1 }
 0x752   :  { %v18951_v60 = vpop.f32.mrb[41].mxu1 }
 0x753   :  { %v18954_v63 = vpop.f32.mrb[42].mxu1 }
 0x754   :  { %22093 = vst [vmem:[#allocation15_spill] sm:$0xff] %v18954_v63  ;;  %v18956_v44 = vpop.f32.mrb[43].mxu1  ;;  %v16439_v63 = vld [vmem:[%s21776_s5 + $0x4d0] sm:$0xff]  }
 0x759   :  { %v5442_v13 = vpop.f32.mrb[44].mxu1 }
 0x75a   :  { %v18971_v54 = vadd.f32 %v5442_v13, %v18964_v62  ;;  %v5444_v33 = vpop.f32.mrb[45].mxu1  ;;  %v19008_v13 = vadd.f32 %v18851_v26, %v18961_v6 }
 0x75b   :  { %v5445_v5 = vpop.f32.mrb[46].mxu1 }
 0x75c   :  { %v18978_v22 = vadd.f32 %v5445_v5, %v18964_v62  ;;  %v5447_v7 = vpop.f32.mrb[47].mxu1  ;;  %v15859_v1 = vpack.i.bf16 %v18971_v54, %v18968_v49 }
 0x75e   :  { %15860 = vrot.lane.b32.xlu0 %v15859_v1, %s16914_s1  ;;  %v15869_v21 = vpack.i.bf16 %v18978_v22, %v18975_v59 }
 0x760   :  { %15870 = vrot.lane.b32.xlu1 %v15869_v21, %s16914_s1 }
 0x761   :  { %v5450_v11 = vpop.f32.mrb[48].mxu1 }
 0x762   :  { %v18991_v48 = vadd.f32 %v5450_v11, %v18964_v62  ;;  %15865 = vrot.lane.b32.xlu0 %v15859_v1, %s16915_s15  ;;  %v5452_v37 = vpop.f32.mrb[49].mxu1  ;;  %v21882_v11 = vmov 0.0  }
 0x763   :  { %v5453_v30 = vpop.f32.mrb[50].mxu1  ;;  %14383 = vmatprep.subr.bf16.mxu0 %v21882_v11  ;;  %v19023_v37 = vadd.f32 %v18849_v18, %v18822_v61 }
 0x764   :  { %v18995_v51 = vadd.f32 %v5453_v30, %v18964_v62  ;;  %15875 = vrot.lane.b32.xlu1 %v15869_v21, %s16915_s15  ;;  %v5455_v41 = vpop.f32.mrb[51].mxu1  ;;  %v15884_v25 = vpack.i.bf16 %v18991_v48, %v18988_v46  ;;  %v19027_v30 = vadd.f32 %v18857_v34, %v18961_v6 }
 0x766   :  { %15885 = vrot.lane.b32.xlu0 %v15884_v25, %s16915_s15  ;;  %v15889_v33 = vpack.i.bf16 %v18995_v51, %v19008_v13 }
 0x768   :  { %15880 = vrot.lane.b32.xlu1 %v15884_v25, %s16914_s1 }
 0x769   :  { %v5458_v5 = vpop.f32.mrb[52].mxu1 }
 0x76a   :  { %15890 = vrot.lane.b32.xlu0 %v15889_v33, %s16914_s1  ;;  %v5460_v7 = vpop.f32.mrb[53].mxu1  ;;  %v19016_v21 = vadd.f32 %v5458_v5, %v18964_v62  ;;  %v19046_v5 = vadd.f32 %v18861_v47, %v18961_v6 }
 0x76b   :  { %v5461_v1 = vpop.f32.mrb[54].mxu1 }
 0x76c   :  { %5981 = vrot.lane.b32.xlu1 %v18845_v12, %s16915_s15  ;;  %v5463_v26 = vpop.f32.mrb[55].mxu1  ;;  %v15899_v41 = vpack.i.bf16 %v19016_v21, %v19027_v30  ;;  %v19036_v18 = vadd.f32 %v5461_v1, %v18964_v62 }
 0x76e   :  { %15895 = vrot.lane.b32.xlu0 %v15889_v33, %s16915_s15  ;;  %v19042_v33 = vadd.f32 %v18855_v9, %v18822_v61  ;;  %v15909_v7 = vpack.i.bf16 %v19036_v18, %v19046_v5 }
 0x770   :  { %5679 = vrot.lane.b32.xlu1 %v19023_v37, %s16914_s1 }
 0x771   :  { %v5466_v25 = vpop.f32.mrb[56].mxu1 }
 0x772   :  { %15900 = vrot.lane.b32.xlu0 %v15899_v41, %s16914_s1  ;;  %v5468_v32 = vpop.f32.mrb[57].mxu1 }
 0x773   :  { %v5469_v28 = vpop.f32.mrb[58].mxu1  ;;  %v19055_v32 = vadd.f32 %v5466_v25, %v18964_v62 }
 0x774   :  { %5987 = vrot.lane.b32.xlu1 %v19023_v37, %s16915_s15  ;;  %v5471_v34 = vpop.f32.mrb[59].mxu1 }
 0x775   :  { %22095 = vst [vmem:[#allocation14_spill] sm:$0xff] %v19055_v32  ;;  %v19065_v34 = vadd.f32 %v18871_v43, %v18961_v6 }
 0x776   :  { %15905 = vrot.lane.b32.xlu0 %v15899_v41, %s16915_s15  ;;  %v19061_v41 = vadd.f32 %v18859_v3, %v18822_v61  ;;  %v19078_v3 = vadd.f32 %v5469_v28, %v18964_v62  ;;  %v19094_v28 = vadd.f32 %v18875_v20, %v18961_v6 }
 0x777   :  { %22096 = vst [vmem:[#allocation17_spill] sm:$0xff] %v19065_v34  ;;  %v15919_v25 = vpack.i.bf16 %v19055_v32, %v19065_v34  ;;  %v19125_v32 = vadd.f32 %v18873_v55, %v18822_v61  ;;  %v16449_v55 = vld [vmem:[%s21776_s5 + $0x528] sm:$0xff]  }
 0x778   :  { %5685 = vrot.lane.b32.xlu1 %v19042_v33, %s16914_s1  ;;  %22097 = vst [vmem:[#allocation16_spill] sm:$0xff] %v19078_v3  ;;  %22098 = vst [vmem:[#allocation19_spill] sm:$0xff] %v19094_v28 }
 0x779   :  { %v5474_v1 = vpop.f32.mrb[60].mxu1 }
 0x77a   :  { %15910 = vrot.lane.b32.xlu0 %v15909_v7, %s16914_s1  ;;  %v5476_v26 = vpop.f32.mrb[61].mxu1 }
 0x77b   :  { %v5477_v9 = vpop.f32.mrb[62].mxu1 }
 0x77c   :  { %5993 = vrot.lane.b32.xlu1 %v19042_v33, %s16915_s15  ;;  %v5479_v47 = vpop.f32.mrb[63].mxu1 }
 0x77e   :  { %15915 = vrot.lane.b32.xlu0 %v15909_v7, %s16915_s15  ;;  %v16437_v7 = vld [vmem:[%s21776_s5 + $0x510] sm:$0xff]  }
 0x77f   :  { %13989 = vmatprep.subr.bf16.mxu1 %v16437_v7  ;;  %v19113_v7 = vadd.f32 %v5474_v1, %v18964_v62  ;;  %v19129_v1 = vadd.f32 %v18879_v56, %v18961_v6 }
 0x780   :  { %5691 = vrot.lane.b32.xlu1 %v19061_v41, %s16914_s1  ;;  %13990 = vmatpush3.bf16.msra.mxu1 %v16439_v63 }
 0x781   :  { %v19072_v26 = vpop.f32.mrb[64].mxu1  ;;  %22099 = vst [vmem:[#allocation21_spill] sm:$0xff] %v19113_v7  ;;  %22100 = vst [vmem:[#allocation18_spill] sm:$0xff] %v19129_v1 }
 0x782   :  { %15920 = vrot.lane.b32.xlu0 %v15919_v25, %s16914_s1  ;;  %v5484_v47 = vpop.f32.mrb[65].mxu1 }
 0x783   :  { %v19075_v11 = vpop.f32.mrb[66].mxu1  ;;  %v19090_v47 = vadd.f32 %v18869_v0, %v18822_v61  ;;  %v16441_v0 = vld [vmem:[%s21776_s5 + $0x518] sm:$0xff]  }
 0x784   :  { %5999 = vrot.lane.b32.xlu1 %v19061_v41, %s16915_s15  ;;  %v5487_v43 = vpop.f32.mrb[67].mxu1  ;;  %13991 = vmatprep.subr.bf16.mxu1 %v16441_v0 }
 0x785   :  { %v15929_v43 = vpack.i.bf16 %v19078_v3, %v19094_v28  ;;  %v16445_v3 = vld [vmem:[%s21776_s5 + $0x520] sm:$0xff]  }
 0x786   :  { %15925 = vrot.lane.b32.xlu0 %v15919_v25, %s16915_s15  ;;  %v16443_v25 = vld [vmem:[%s21776_s5 + $0x4d8] sm:$0xff]  }
 0x787   :  { %13992 = vmatpush3.bf16.msra.mxu1 %v16443_v25  ;;  %v19148_v25 = vadd.f32 %v5477_v9, %v18964_v62  ;;  %v19164_v9 = vadd.f32 %v18883_v24, %v18961_v6 }
 0x788   :  { %5697 = vrot.lane.b32.xlu1 %v19090_v47, %s16914_s1  ;;  %13993 = vmatprep.subr.bf16.mxu1 %v16445_v3  ;;  %v16451_v3 = vld [vmem:[%s21776_s5 + $0x4e8] sm:$0xff]  }
 0x789   :  { %v19101_v34 = vpop.f32.mrb[68].mxu1  ;;  %22101 = vst [vmem:[#allocation23_spill] sm:$0xff] %v19148_v25  ;;  %22102 = vst [vmem:[#allocation20_spill] sm:$0xff] %v19164_v9 }
 0x78a   :  { %15930 = vrot.lane.b32.xlu0 %v15929_v43, %s16914_s1  ;;  %v5492_v20 = vpop.f32.mrb[69].mxu1 }
 0x78b   :  { %v19110_v63 = vpop.f32.mrb[70].mxu1  ;;  %v16447_v20 = vld [vmem:[%s21776_s5 + $0x4e0] sm:$0xff]  }
 0x78c   :  { %6005 = vrot.lane.b32.xlu1 %v19090_v47, %s16915_s15  ;;  %v5495_v28 = vpop.f32.mrb[71].mxu1  ;;  %13994 = vmatpush3.bf16.msra.mxu1 %v16447_v20 }
 0x78d   :  { %v15939_v28 = vpack.i.bf16 %v19113_v7, %v19129_v1  ;;  %13995 = vmatprep.subr.bf16.mxu1 %v16449_v55  ;;  %v16453_v1 = vld [vmem:[%s21776_s5 + $0x530] sm:$0xff]   ;;  %v19160_v7 = vadd.f32 %v18877_v38, %v18822_v61  ;;  %v15949_v55 = vpack.i.bf16 %v19148_v25, %v19164_v9  ;;  %v16457_v38 = vld [vmem:[%s21776_s5 + $0x538] sm:$0xff]   ;;  %v19190_v9 = vadd.f32 %v18881_v42, %v18822_v61 }
 0x78e   :  { %15935 = vrot.lane.b32.xlu0 %v15929_v43, %s16915_s15 }
 0x78f   :  { %22104 = vst [vmem:[#allocation33_spill] sm:$0xff] %v19190_v9 }
 0x790   :  { %5703 = vrot.lane.b32.xlu1 %v19125_v32, %s16914_s1  ;;  %13996 = vmatpush3.bf16.msra.mxu1 %v16451_v3 }
 0x791   :  { %v19136_v0 = vpop.f32.mrb[72].mxu1  ;;  %13997 = vmatprep.subr.bf16.mxu1 %v16453_v1  ;;  %v16459_v1 = vld [vmem:[%s21776_s5 + $0x4f8] sm:$0xff]  }
 0x792   :  { %15940 = vrot.lane.b32.xlu0 %v15939_v28, %s16914_s1  ;;  %v5500_v56 = vpop.f32.mrb[73].mxu1 }
 0x793   :  { %v19145_v43 = vpop.f32.mrb[74].mxu1  ;;  %v16455_v56 = vld [vmem:[%s21776_s5 + $0x4f0] sm:$0xff]  }
 0x794   :  { %6011 = vrot.lane.b32.xlu1 %v19125_v32, %s16915_s15  ;;  %v5503_v20 = vpop.f32.mrb[75].mxu1  ;;  %13998 = vmatpush3.bf16.msra.mxu1 %v16455_v56 }
 0x795   :  { %13999 = vmatprep.subr.bf16.mxu1 %v16457_v38  ;;  %v19184_v20 = vadd.f32 %v19072_v26, %v18964_v62  ;;  %v16461_v26 = vld [vmem:[%s21776_s5 + $0x540] sm:$0xff]  }
 0x796   :  { %15945 = vrot.lane.b32.xlu0 %v15939_v28, %s16915_s15  ;;  %v16463_v38 = vld [vmem:[%s21776_s5 + $0x500] sm:$0xff]  }
 0x797   :  { %22103 = vst [vmem:[#allocation22_spill] sm:$0xff] %v19184_v20 }
 0x798   :  { %5709 = vrot.lane.b32.xlu1 %v19160_v7, %s16914_s1  ;;  %14000 = vmatpush3.bf16.msra.mxu1 %v16459_v1 }
 0x799   :  { %v19171_v3 = vpop.f32.mrb[76].mxu1  ;;  %14001 = vmatprep.subr.bf16.mxu1 %v16461_v26  ;;  %v19220_v26 = vadd.f32 %v19075_v11, %v18964_v62 }
 0x79a   :  { %15950 = vrot.lane.b32.xlu0 %v15949_v55, %s16914_s1  ;;  %v5508_v24 = vpop.f32.mrb[77].mxu1 }
 0x79b   :  { %v19180_v28 = vpop.f32.mrb[78].mxu1  ;;  %v19194_v24 = vadd.f32 %v18893_v16, %v18961_v6  ;;  %v16465_v16 = vld [vmem:[%s21776_s5 + $0x548] sm:$0xff]   ;;  %22106 = vst [vmem:[#allocation34_spill] sm:$0xff] %v19220_v26 }
 0x79c   :  { %6017 = vrot.lane.b32.xlu1 %v19160_v7, %s16915_s15  ;;  %v5511_v56 = vpop.f32.mrb[79].mxu1  ;;  %14002 = vmatpush3.bf16.msra.mxu1 %v16463_v38 }
 0x79d   :  { %22105 = vst [vmem:[#allocation32_spill] sm:$0xff] %v19194_v24  ;;  %v15959_v42 = vpack.i.bf16 %v19184_v20, %v19194_v24  ;;  %v16467_v56 = vld [vmem:[%s21776_s5 + $0x508] sm:$0xff]   ;;  %14003 = vmatprep.subr.bf16.mxu1 %v16465_v16  ;;  %v16469_v24 = vld [vmem:[%s21776_s5 + $0x5c0] sm:$0xff]   ;;  %v19233_v16 = vadd.f32 %v18897_v52, %v18961_v6  ;;  %v19247_v52 = vadd.f32 %v19101_v34, %v18964_v62 }
 0x79e   :  { %15955 = vrot.lane.b32.xlu0 %v15949_v55, %s16915_s15  ;;  %v19267_v34 = vadd.f32 %v19110_v63, %v18964_v62  ;;  %v19287_v63 = vadd.f32 %v19136_v0, %v18964_v62  ;;  %v15851_v0 = vpop.permute.xlu0 %15850 }
 0x79f   :  { %22108 = vst [vmem:[#allocation41_spill] sm:$0xff] %v19233_v16  ;;  %v15969_v11 = vpack.i.bf16 %v19220_v26, %v19233_v16  ;;  %22109 = vst [vmem:[#allocation43_spill] sm:$0xff] %v19247_v52  ;;  %v19257_v16 = vadd.f32 %v18907_v53, %v18961_v6  ;;  %v19277_v53 = vadd.f32 %v18911_v23, %v18961_v6 }
 0x7a0   :  { %5715 = vrot.lane.b32.xlu1 %v19190_v9, %s16914_s1  ;;  %14004 = vmatpush3.bf16.msra.mxu1 %v16467_v56  ;;  %22112 = vst [vmem:[#allocation46_spill] sm:$0xff] %v19267_v34  ;;  %22115 = vst [vmem:[#allocation49_spill] sm:$0xff] %v19287_v63  ;;  %v19297_v23 = vadd.f32 %v18915_v58, %v18961_v6  ;;  %v19314_v58 = vadd.f32 %v18917_v2, %v18822_v61 }
 0x7a1   :  { %v19207_v1 = vpop.f32.mrb[80].mxu1  ;;  %14018 = vmatprep.subr.bf16.mxu1 %v16469_v24  ;;  %22111 = vst [vmem:[#allocation45_spill] sm:$0xff] %v19257_v16  ;;  %22114 = vst [vmem:[#allocation48_spill] sm:$0xff] %v19277_v53  ;;  %v19334_v2 = vadd.f32 %v19171_v3, %v18964_v62 }
 0x7a2   :  { %15960 = vrot.lane.b32.xlu0 %v15959_v42, %s16914_s1  ;;  %v5516_v55 = vpop.f32.mrb[81].mxu1  ;;  %22117 = vst [vmem:[#allocation51_spill] sm:$0xff] %v19297_v23  ;;  %22119 = vst [vmem:[#allocation11_spill] sm:$0xff] %v19314_v58 }
 0x7a3   :  { %v19216_v25 = vpop.f32.mrb[82].mxu1  ;;  %v19229_v55 = vadd.f32 %v18891_v45, %v18822_v61  ;;  %22122 = vst [vmem:[#allocation12_spill] sm:$0xff] %v19334_v2 }
 0x7a4   :  { %6023 = vrot.lane.b32.xlu1 %v19190_v9, %s16915_s15  ;;  %v5519_v38 = vpop.f32.mrb[83].mxu1 }
 0x7a5   :  { %22107 = vst [vmem:[#allocation39_spill] sm:$0xff] %v19229_v55 }
 0x7a6   :  { %15965 = vrot.lane.b32.xlu0 %v15959_v42, %s16915_s15  ;;  %v19253_v42 = vadd.f32 %v18895_v10, %v18822_v61  ;;  %v19273_v10 = vadd.f32 %v18905_v36, %v18822_v61  ;;  %v19293_v36 = vadd.f32 %v18909_v35, %v18822_v61  ;;  %v19309_v35 = vadd.f32 %v18913_v39, %v18822_v61 }
 0x7a8   :  { %5721 = vrot.lane.b32.xlu1 %v19229_v55, %s16914_s1  ;;  %22110 = vst [vmem:[#allocation44_spill] sm:$0xff] %v19253_v42  ;;  %22113 = vst [vmem:[#allocation47_spill] sm:$0xff] %v19273_v10 }
 0x7a9   :  { %v19240_v38 = vpop.f32.mrb[84].mxu1  ;;  %22116 = vst [vmem:[#allocation50_spill] sm:$0xff] %v19293_v36  ;;  %22118 = vst [vmem:[#allocation9_spill] sm:$0xff] %v19309_v35 }
 0x7aa   :  { %15970 = vrot.lane.b32.xlu0 %v15969_v11, %s16914_s1  ;;  %v5524_v56 = vpop.f32.mrb[85].mxu1 }
 0x7ab   :  { %v19243_v45 = vpop.f32.mrb[86].mxu1  ;;  %v15979_v56 = vpack.i.bf16 %v19247_v52, %v19257_v16 }
 0x7ac   :  { %6029 = vrot.lane.b32.xlu1 %v19229_v55, %s16915_s15  ;;  %v5527_v24 = vpop.f32.mrb[87].mxu1 }
 0x7ad   :  { %v15999_v24 = vpack.i.bf16 %v19297_v23, %v19287_v63  ;;  %v19364_v23 = vadd.f32 %v18933_v19, %v18961_v6  ;;  %v19380_v19 = vadd.f32 %v18937_v4, %v18961_v6 }
 0x7ae   :  { %15975 = vrot.lane.b32.xlu0 %v15969_v11, %s16915_s15  ;;  %v15989_v11 = vpack.i.bf16 %v19267_v34, %v19277_v53 }
 0x7af   :  { %22125 = vst [vmem:[#allocation27_spill] sm:$0xff] %v19364_v23  ;;  %22127 = vst [vmem:[#allocation30_spill] sm:$0xff] %v19380_v19 }
 0x7b0   :  { %5727 = vrot.lane.b32.xlu1 %v19253_v42, %s16914_s1 }
 0x7b2   :  { %15980 = vrot.lane.b32.xlu0 %v15979_v56, %s16914_s1 }
 0x7b4   :  { %6035 = vrot.lane.b32.xlu1 %v19253_v42, %s16915_s15 }
 0x7b6   :  { %15985 = vrot.lane.b32.xlu0 %v15979_v56, %s16915_s15  ;;  %v19318_v56 = vadd.f32 %v18919_v15, %v18961_v6  ;;  %v19340_v15 = vadd.f32 %v18929_v57, %v18961_v6 }
 0x7b8   :  { %5733 = vrot.lane.b32.xlu1 %v19273_v10, %s16914_s1  ;;  %22120 = vst [vmem:[#allocation10_spill] sm:$0xff] %v19318_v56  ;;  %v16009_v39 = vpack.i.bf16 %v19314_v58, %v19318_v56  ;;  %22123 = vst [vmem:[#allocation24_spill] sm:$0xff] %v19340_v15  ;;  %v15853_v56 = vunpack.i.h.bf16 %v15851_v0 }
 0x7ba   :  { %15990 = vrot.lane.b32.xlu0 %v15989_v11, %s16914_s1 }
 0x7bc   :  { %6041 = vrot.lane.b32.xlu1 %v19273_v10, %s16915_s15  ;;  %v19354_v10 = vadd.f32 %v19180_v28, %v18964_v62  ;;  %v19368_v28 = vadd.f32 %v18927_v27, %v18822_v61 }
 0x7be   :  { %15995 = vrot.lane.b32.xlu0 %v15989_v11, %s16915_s15  ;;  %v19322_v11 = vadd.f32 %v19145_v43, %v18964_v62  ;;  %v15856_v43 = vpop.permute.xlu1 %15855  ;;  %22124 = vst [vmem:[#allocation26_spill] sm:$0xff] %v19354_v10 }
 0x7bf   :  { %v15858_v4 = vunpack.i.h.bf16 %v15856_v43 }
 0x7c0   :  { %5739 = vrot.lane.b32.xlu1 %v19293_v36, %s16914_s1  ;;  %22121 = vst [vmem:[#allocation13_spill] sm:$0xff] %v19322_v11 }
 0x7c2   :  { %16000 = vrot.lane.b32.xlu0 %v15999_v24, %s16914_s1 }
 0x7c4   :  { %6047 = vrot.lane.b32.xlu1 %v19293_v36, %s16915_s15  ;;  %v16019_v36 = vpack.i.bf16 %v19334_v2, %v19340_v15  ;;  %v19372_v2 = vadd.f32 %v18931_v31, %v18822_v61 }
 0x7c6   :  { %16005 = vrot.lane.b32.xlu0 %v15999_v24, %s16915_s15  ;;  %v19330_v24 = vpop.permute.xlu0 %5673  ;;  %22126 = vst [vmem:[#allocation25_spill] sm:$0xff] %v19372_v2 }
 0x7c8   :  { %5745 = vrot.lane.b32.xlu1 %v19309_v35, %s16914_s1 }
 0x7ca   :  { %5755 = vrot.lane.b32.xlu0 %v19322_v11, %s16914_s1 }
 0x7cc   :  { %6053 = vrot.lane.b32.xlu1 %v19309_v35, %s16915_s15  ;;  %v15852_v35 = vunpack.i.l.bf16 %v15851_v0  ;;  %v16029_v0 = vpack.i.bf16 %v19354_v10, %v19364_v23  ;;  %v15857_v23 = vunpack.i.l.bf16 %v15856_v43 }
 0x7ce   :  { %16010 = vrot.lane.b32.xlu0 %v16009_v39, %s16914_s1 }
 0x7d0   :  { %v19345_v53 = vpop.permute.xlu0 %15860  ;;  %6063 = vrot.lane.b32.xlu1 %v19322_v11, %s16915_s15 }
 0x7d1   :  { %v15862_v57 = vunpack.i.l.bf16 %v19345_v53 }
 0x7d2   :  { %v19349_v3 = vpop.permute.xlu1 %15870  ;;  %16020 = vrot.lane.b32.xlu0 %v16019_v36, %s16914_s1 }
 0x7d3   :  { %v15872_v42 = vunpack.i.l.bf16 %v19349_v3  ;;  %v5793_v27 = vsel %vm1971_vm2, %v15852_v35, %v15862_v57  ;;  %v22128_v31 = vunpack.i.h.bf16 %v19349_v3 }
 0x7d4   :  { %v19359_v15 = vpop.permute.xlu0 %15865  ;;  %16015 = vrot.lane.b32.xlu1 %v16009_v39, %s16915_s15  ;;  %v5903_v16 = vmax.f32 %v18827_v8, %v5793_v27 }
 0x7d5   :  { %v5795_v39 = vsel %vm1971_vm2, %v15853_v56, %v15872_v42  ;;  %v5796_v11 = vsel %vm1971_vm2, %v15872_v42, %v22128_v31  ;;  %v15867_v63 = vunpack.i.l.bf16 %v19359_v15  ;;  %v19399_v56 = vadd.f32 %v19207_v1, %v18964_v62 }
 0x7d6   :  { %v19375_v58 = vpop.permute.xlu1 %15875  ;;  %16025 = vrot.lane.b32.xlu0 %v16019_v36, %s16915_s15  ;;  %v22129_v42 = vunpack.i.h.bf16 %v19345_v53  ;;  %v5906_v36 = vmax.f32 %v18830_v14, %v5795_v39  ;;  %v5907_v55 = vmax.f32 %v18975_v59, %v5796_v11  ;;  %v22131_v20 = vunpack.i.h.bf16 %v19359_v15 }
 0x7d7   :  { %v15877_v35 = vunpack.i.l.bf16 %v19375_v58  ;;  %v22130_v52 = vunpack.i.h.bf16 %v19375_v58  ;;  %v6101_v11 = vsel %vm2224_vm3, %v15857_v23, %v15867_v63 }
 0x7d8   :  { %v19392_v34 = vpop.permute.xlu0 %15885  ;;  %5757 = vrot.lane.b32.xlu1 %v19368_v28, %s16914_s1  ;;  %v5794_v31 = vsel %vm1971_vm2, %v15862_v57, %v22129_v42  ;;  %v6102_v57 = vsel %vm2224_vm3, %v15867_v63, %v22131_v20  ;;  %v6211_v23 = vmax.f32 %v5903_v16, %v6101_v11  ;;  %v19464_v11 = vadd.f32 %v18951_v60, %v18961_v6 }
 0x7d9   :  { %v6103_v43 = vsel %vm2224_vm3, %v15858_v4, %v15877_v35  ;;  %v6104_v1 = vsel %vm2224_vm3, %v15877_v35, %v22130_v52  ;;  %v15888_v8 = vunpack.i.h.bf16 %v19392_v34  ;;  %v15887_v14 = vunpack.i.l.bf16 %v19392_v34 }
 0x7da   :  { %v15881_v10 = vpop.permute.xlu1 %15880  ;;  %16030 = vrot.lane.b32.xlu0 %v16029_v0, %s16914_s1  ;;  %v5904_v59 = vmax.f32 %v18968_v49, %v5794_v31  ;;  %v19421_v4 = vmax.f32 %v5906_v36, %v6103_v43  ;;  %v19423_v52 = vmax.f32 %v5907_v55, %v6104_v1  ;;  %22135 = vst [vmem:[#allocation31_spill] sm:$0xff] %v19464_v11 }
 0x7db   :  { %v15883_v26 = vunpack.i.h.bf16 %v15881_v10  ;;  %v15882_v27 = vunpack.i.l.bf16 %v15881_v10  ;;  %v16039_v10 = vpack.i.bf16 %v19399_v56, %v19380_v19  ;;  %v6106_v55 = vsel %vm2224_vm3, %v15887_v14, %v15888_v8  ;;  %v16506_v19 = vld [vmem:[%s21776_s5 + $0x180] sm:$0xff]  }
 0x7dc   :  { %v15891_v39 = vpop.permute.xlu0 %15890  ;;  %6065 = vrot.lane.b32.xlu1 %v19368_v28, %s16915_s15  ;;  %v6212_v49 = vmax.f32 %v5904_v59, %v6102_v57  ;;  %v6277_v57 = vmax.f32 %v6211_v23, %v19421_v4 }
 0x7dd   :  { %v5798_v35 = vsel %vm1971_vm2, %v15882_v27, %v15883_v26  ;;  %v15893_v20 = vunpack.i.h.bf16 %v15891_v39  ;;  %v15892_v42 = vunpack.i.l.bf16 %v15891_v39  ;;  %v5797_v34 = vsel %vm1971_vm2, %v19330_v24, %v15882_v27 }
 0x7de   :  { %v5982_v9 = vpop.permute.xlu1 %5981  ;;  %16035 = vrot.lane.b32.xlu0 %v16029_v0, %s16915_s15  ;;  %v5910_v63 = vmax.f32 %v18988_v46, %v5798_v35  ;;  %v5909_v36 = vmax.f32 %v18845_v12, %v5797_v34  ;;  %v19439_v24 = vadd.f32 %v18935_v50, %v18822_v61  ;;  %v6278_v46 = vmax.f32 %v6212_v49, %v19423_v52 }
 0x7df   :  { %v6105_v31 = vsel %vm2224_vm3, %v5982_v9, %v15887_v14  ;;  %v5800_v16 = vsel %vm1971_vm2, %v15892_v42, %v15893_v20  ;;  %v19451_v27 = vadd.f32 %v18939_v40, %v18822_v61  ;;  %v19455_v50 = vadd.f32 %v18941_v17, %v18961_v6 }
 0x7e0   :  { %v15896_v43 = vpop.permute.xlu0 %15895  ;;  %5763 = vrot.lane.b32.xlu1 %v19372_v2, %s16914_s1  ;;  %22132 = vst [vmem:[#allocation28_spill] sm:$0xff] %v19439_v24  ;;  %v19441_v0 = vmax.f32 %v5910_v63, %v6106_v55  ;;  %v19446_v12 = vmax.f32 %v5909_v36, %v6105_v31  ;;  %v19459_v39 = vadd.f32 %v19216_v25, %v18964_v62 }
 0x7e1   :  { %v15898_v1 = vunpack.i.h.bf16 %v15896_v43  ;;  %v15897_v9 = vunpack.i.l.bf16 %v15896_v43  ;;  %22133 = vst [vmem:[#allocation29_spill] sm:$0xff] %v19451_v27  ;;  %22134 = vst [vmem:[#allocation35_spill] sm:$0xff] %v19455_v50  ;;  %v5911_v35 = vmax.f32 %v18991_v48, %v15883_v26  ;;  %v5914_v17 = vmax.f32 %v18995_v51, %v15893_v20 }
 0x7e2   :  { %v5680_v14 = vpop.permute.xlu1 %5679  ;;  %16040 = vrot.lane.b32.xlu0 %v16039_v10, %s16914_s1  ;;  %v6338_v59 = vmax.f32 %v6278_v46, %v19441_v0  ;;  %v6337_v34 = vmax.f32 %v6277_v57, %v19446_v12  ;;  %v5913_v49 = vmax.f32 %v19008_v13, %v5800_v16  ;;  %v16054_v48 = vpack.i.bf16 %v19459_v39, %v19455_v50  ;;  %v22183_v50 = vld [vmem:[#allocation11_spill] sm:$0xff] }
 0x7e3   :  { %v6108_v25 = vsel %vm2224_vm3, %v15897_v9, %v15898_v1  ;;  %v19476_v26 = vmax.f32 %v5914_v17, %v15898_v1  ;;  %v5799_v31 = vsel %vm1971_vm2, %v5680_v14, %v15892_v42  ;;  %v19479_v43 = vmax.f32 %v5911_v35, %v15888_v8  ;;  %v16431_v8 = vld [vmem:[%s21776_s5 + $0x80] sm:$0xff]  }
 0x7e4   :  { %v15901_v40 = vpop.permute.xlu0 %15900  ;;  %6071 = vrot.lane.b32.xlu1 %v19372_v2, %s16915_s15  ;;  %v6397_v63 = vmax.f32 %v6337_v34, 0.0  ;;  %v6398_v60 = vmax.f32 %v6338_v59, 0.0  ;;  %v19481_v13 = vmax.f32 %v5913_v49, %v6108_v25  ;;  %v19493_v42 = vadd.f32 %v19240_v38, %v18964_v62 }
 0x7e5   :  { %v15903_v23 = vunpack.i.h.bf16 %v15901_v40  ;;  %v15902_v55 = vunpack.i.l.bf16 %v15901_v40  ;;  %v22136_v14 = vunpack.i.h.bf16 %v19349_v3  ;;  %v5912_v35 = vmax.f32 %v19023_v37, %v5799_v31 }
 0x7e6   :  { %v5988_v36 = vpop.permute.xlu1 %5987  ;;  %16045 = vrot.lane.b32.xlu0 %v16039_v10, %s16915_s15  ;;  %v6457_v51 = vpack.c.bf16 %v6397_v63, %v6397_v63  ;;  %v6458_v57 = vpack.c.bf16 %v6398_v60, %v6398_v60  ;;  %v6284_v3 = vmax.f32 %v19441_v0, %v19481_v13  ;;  %v19527_v60 = vadd.f32 %v18949_v29, %v18822_v61 }
 0x7e7   :  { %v5802_v20 = vsel %vm1971_vm2, %v15902_v55, %v15903_v23  ;;  %v5917_v10 = vmax.f32 %v19016_v21, %v15903_v23  ;;  %v6107_v16 = vsel %vm2224_vm3, %v5988_v36, %v15897_v9  ;;  %v5908_v59 = vmax.f32 %v18978_v22, %v22136_v14 }
 0x7e8   :  { %v15906_v46 = vpop.permute.xlu0 %15905  ;;  %5769 = vrot.lane.b32.xlu1 %v19439_v24, %s16914_s1  ;;  %v6285_v9 = vmax.f32 %v19479_v43, %v19476_v26  ;;  %v5916_v40 = vmax.f32 %v19027_v30, %v5802_v20  ;;  %6739 = vmatprep.mubr.bf16.mxu0 %v6458_v57  ;;  %v19506_v49 = vmax.f32 %v5912_v35, %v6107_v16  ;;  %v22137_v36 = vmov 0.0  }
 0x7e9   :  { %v15908_v1 = vunpack.i.h.bf16 %v15906_v46  ;;  %v15907_v34 = vunpack.i.l.bf16 %v15906_v46  ;;  %6740 = vmatmul.mubr.bf16.vlgmr.msra.gmra.mrb[56].mxu0 %v6457_v51  ;;  %22138 = vst [vmem:[#allocation36_spill] sm:$0xff] %v19527_v60  ;;  %v16059_v31 = vpack.i.bf16 %v19493_v42, %v19464_v11  ;;  %v22140_v57 = vunpack.i.h.bf16 %v19375_v58 }
 0x7ea   :  { %v5686_v21 = vpop.permute.xlu1 %5685  ;;  %16050 = vrot.lane.b32.xlu0 %v16054_v48, %s16914_s1  ;;  %14384 = vmatpush3.bf16.msra.mxu0 %v16431_v8 }
 0x7eb   :  { %v19503_v17 = vmax.f32 %v5917_v10, %v15908_v1  ;;  %v5801_v38 = vsel %vm1971_vm2, %v5686_v21, %v15902_v55  ;;  %v6110_v22 = vsel %vm2224_vm3, %v15907_v34, %v15908_v1  ;;  %v16432_v55 = vld [vmem:[%s21776_s5 + $0x88] sm:$0xff]   ;;  %14395 = vmatprep.mubr.msk.bf16.mxu0 %vm16917_vm5, %v22137_v36  ;;  %14385 = vmatprep.subr.bf16.mxu0 %v22137_v36  ;;  %v22139_v10 = vunpack.i.h.bf16 %v19345_v53 }
 0x7ec   :  { %v15911_v37 = vpop.permute.xlu0 %15910  ;;  %6077 = vrot.lane.b32.xlu1 %v19439_v24, %s16915_s15  ;;  %v19513_v25 = vmax.f32 %v5916_v40, %v6110_v22  ;;  %v5915_v51 = vmax.f32 %v19042_v33, %v5801_v38  ;;  %v19539_v1 = vmax.f32 %v5908_v59, %v22140_v57  ;;  %v6283_v33 = vmax.f32 %v19446_v12, %v19506_v49 }
 0x7ed   :  { %v6288_v30 = vmax.f32 %v19476_v26, %v19503_v17  ;;  %v19518_v63 = vmax.f32 %v6285_v9, %v19503_v17  ;;  %v15913_v23 = vunpack.i.h.bf16 %v15911_v37  ;;  %v15912_v20 = vunpack.i.l.bf16 %v15911_v37  ;;  %v16433_v9 = vld [vmem:[%s21776_s5 + $0x90] sm:$0xff]  }
 0x7ee   :  { %v5994_v46 = vpop.permute.xlu1 %5993  ;;  %16055 = vrot.lane.b32.xlu0 %v16054_v48, %s16915_s15  ;;  %v5905_v16 = vmax.f32 %v18971_v54, %v22139_v10  ;;  %v19543_v8 = vmax.f32 %v6284_v3, %v19513_v25  ;;  %v6287_v54 = vmax.f32 %v19481_v13, %v19513_v25  ;;  %v22141_v53 = vunpack.i.h.bf16 %v19359_v15  ;;  %14386 = vmatpush3.bf16.msra.mxu0 %v16432_v55 }
 0x7ef   :  { %v6109_v29 = vsel %vm2224_vm3, %v5994_v46, %v15907_v34  ;;  %v5804_v14 = vsel %vm1971_vm2, %v15912_v20, %v15913_v23  ;;  %v5920_v59 = vmax.f32 %v19036_v18, %v15913_v23  ;;  %14387 = vmatprep.subr.bf16.mxu0 %v22137_v36  ;;  %v19570_v18 = vadd.f32 %v18956_v44, %v18961_v6 }
 0x7f0   :  { %v19548_v35 = vmax.f32 %v5915_v51, %v6109_v29  ;;  %v15916_v48 = vpop.permute.xlu0 %15915  ;;  %5775 = vrot.lane.b32.xlu1 %v19451_v27, %s16914_s1  ;;  %v6213_v58 = vmax.f32 %v5905_v16, %v22141_v53  ;;  %v5919_v40 = vmax.f32 %v19046_v5, %v5804_v14  ;;  %v19578_v23 = vadd.f32 %v19243_v45, %v18964_v62  ;;  %v16434_v62 = vld [vmem:[%s21776_s5 + $0x98] sm:$0xff]  }
 0x7f1   :  { %v15918_v34 = vunpack.i.h.bf16 %v15916_v48  ;;  %v15917_v21 = vunpack.i.l.bf16 %v15916_v48  ;;  %22142 = vst [vmem:[#allocation37_spill] sm:$0xff] %v19570_v18 }
 0x7f2   :  { %v6286_v38 = vmax.f32 %v19506_v49, %v19548_v35  ;;  %v19564_v22 = vmax.f32 %v6283_v33, %v19548_v35  ;;  %v5692_v15 = vpop.permute.xlu1 %5691  ;;  %16060 = vrot.lane.b32.xlu0 %v16059_v31, %s16914_s1  ;;  %v6279_v55 = vmax.f32 %v6213_v58, %v19539_v1  ;;  %14388 = vmatpush3.bf16.msra.mxu0 %v16433_v9 }
 0x7f3   :  { %v6112_v37 = vsel %vm2224_vm3, %v15917_v21, %v15918_v34  ;;  %v19573_v3 = vmax.f32 %v5920_v59, %v15918_v34  ;;  %v5803_v5 = vsel %vm1971_vm2, %v5692_v15, %v15912_v20  ;;  %14389 = vmatprep.subr.bf16.mxu0 %v22137_v36  ;;  %v16069_v33 = vpack.i.bf16 %v19578_v23, %v19570_v18  ;;  %v16435_v59 = vld [vmem:[%s21776_s5 + $0xa0] sm:$0xff]  }
 0x7f4   :  { %v19581_v51 = vmax.f32 %v5919_v40, %v6112_v37  ;;  %v15921_v46 = vpop.permute.xlu0 %15920  ;;  %6083 = vrot.lane.b32.xlu1 %v19451_v27, %s16915_s15  ;;  %v5918_v45 = vmax.f32 %v19061_v41, %v5803_v5  ;;  %v6339_v41 = vmax.f32 %v6279_v55, %v19479_v43  ;;  %v6281_v34 = vmax.f32 %v19423_v52, %v19441_v0  ;;  %v22145_v0 = vld [vmem:[#allocation15_spill] sm:$0xff] }
 0x7f5   :  { %v6291_v44 = vmax.f32 %v19503_v17, %v19573_v3  ;;  %v19588_v6 = vmax.f32 %v6288_v30, %v19573_v3  ;;  %v15923_v20 = vunpack.i.h.bf16 %v15921_v46  ;;  %v15922_v10 = vunpack.i.l.bf16 %v15921_v46 }
 0x7f6   :  { %v6000_v16 = vpop.permute.xlu1 %5999  ;;  %16065 = vrot.lane.b32.xlu0 %v16059_v31, %s16915_s15  ;;  %v19597_v57 = vmax.f32 %v6287_v54, %v19581_v51  ;;  %v6290_v17 = vmax.f32 %v19513_v25, %v19581_v51  ;;  %v16436_v31 = vld [vmem:[%s21776_s5 + $0xa8] sm:$0x7f]   ;;  %v22143_v25 = vld [vmem:[#allocation14_spill] sm:$0xff]  ;;  %14390 = vmatpush3.bf16.msra.mxu0 %v16434_v62  ;;  %v6341_v52 = vmax.f32 %v6281_v34, %v19481_v13 }
 0x7f7   :  { %v5806_v30 = vsel %vm1971_vm2, %v15922_v10, %v15923_v20  ;;  %v6111_v29 = vsel %vm2224_vm3, %v6000_v16, %v15917_v21  ;;  %v5923_v54 = vmax.f32 %v22143_v25, %v15923_v20  ;;  %v22144_v21 = vld [vmem:[#allocation17_spill] sm:$0xff]  ;;  %14391 = vmatprep.subr.bf16.mxu0 %v22137_v36  ;;  %v19634_v20 = vadd.f32 %v22145_v0, %v18822_v61 }
 0x7f8   :  { %v19606_v14 = vmax.f32 %v5918_v45, %v6111_v29  ;;  %v15926_v48 = vpop.permute.xlu0 %15925  ;;  %5781 = vrot.lane.b32.xlu1 %v19527_v60, %s16914_s1  ;;  %v5922_v9 = vmax.f32 %v22144_v21, %v5806_v30  ;;  %v6705_v62 = vsel %vm6703_vm6, %v16436_v31, 0  ;;  %v6399_v30 = vmax.f32 %v6339_v41, 0.0  ;;  %v22148_v21 = vld [vmem:[#allocation19_spill] sm:$0xff] }
 0x7f9   :  { %v15928_v53 = vunpack.i.h.bf16 %v15926_v48  ;;  %v15927_v58 = vunpack.i.l.bf16 %v15926_v48  ;;  %22146 = vst [vmem:[#allocation40_spill] sm:$0xff] %v19634_v20  ;;  %v16438_v48 = vld [vmem:[%s21776_s5 + $0xf0] sm:$0xff]  }
 0x7fa   :  { %v6289_v40 = vmax.f32 %v19548_v35, %v19606_v14  ;;  %v19623_v15 = vmax.f32 %v6286_v38, %v19606_v14  ;;  %v5698_v37 = vpop.permute.xlu1 %5697  ;;  %16070 = vrot.lane.b32.xlu0 %v16069_v33, %s16914_s1  ;;  %14392 = vmatpush3.bf16.msra.mxu0 %v16435_v59  ;;  %v6459_v34 = vpack.c.bf16 %v6399_v30, %v6399_v30 }
 0x7fb   :  { %v6114_v5 = vsel %vm2224_vm3, %v15927_v58, %v15928_v53  ;;  %v19628_v55 = vmax.f32 %v5923_v54, %v15928_v53  ;;  %v5805_v46 = vsel %vm1971_vm2, %v5698_v37, %v15922_v10  ;;  %14393 = vmatprep.subr.bf16.mxu0 %v22137_v36 }
 0x7fc   :  { %v19636_v35 = vmax.f32 %v5922_v9, %v6114_v5  ;;  %v15931_v38 = vpop.permute.xlu0 %15930  ;;  %6089 = vrot.lane.b32.xlu1 %v19527_v60, %s16915_s15  ;;  %v5921_v61 = vmax.f32 %v19090_v47, %v5805_v46  ;;  %v6401_v47 = vmax.f32 %v6341_v52, 0.0  ;;  %v16442_v46 = vld [vmem:[%s21776_s5 + $0xf8] sm:$0xff]  }
 0x7fd   :  { %v6294_v45 = vmax.f32 %v19573_v3, %v19628_v55  ;;  %v19644_v16 = vmax.f32 %v6291_v44, %v19628_v55  ;;  %v15933_v13 = vunpack.i.h.bf16 %v15931_v38  ;;  %v15932_v10 = vunpack.i.l.bf16 %v15931_v38 }
 0x7fe   :  { %v6006_v29 = vpop.permute.xlu1 %6005  ;;  %16075 = vrot.lane.b32.xlu0 %v16069_v33, %s16915_s15  ;;  %v19653_v3 = vmax.f32 %v6290_v17, %v19636_v35  ;;  %v6293_v44 = vmax.f32 %v19581_v51, %v19636_v35  ;;  %v22147_v33 = vld [vmem:[#allocation16_spill] sm:$0xff]  ;;  %14394 = vmatpush3.bf16.msra.mxu0 %v6705_v62  ;;  %v6461_v38 = vpack.c.bf16 %v6401_v47, %v6401_v47 }
 0x7ff   :  { %v5808_v31 = vsel %vm1971_vm2, %v15932_v10, %v15933_v13  ;;  %v6113_v41 = vsel %vm2224_vm3, %v6006_v29, %v15927_v58  ;;  %v5926_v53 = vmax.f32 %v22147_v33, %v15933_v13  ;;  %v16440_v51 = vld [vmem:[%s21776_s5 + $0xb0] sm:$0xff]   ;;  %13815 = vmatprep.subr.bf16.mxu0 %v16438_v48 }
 0x800   :  { %v19659_v25 = vmax.f32 %v5921_v61, %v6113_v41  ;;  %v15936_v54 = vpop.permute.xlu0 %15935  ;;  %5787 = vrot.lane.b32.xlu1 %v19634_v20, %s16914_s1  ;;  %v5925_v58 = vmax.f32 %v22148_v21, %v5808_v31  ;;  %v16446_v41 = vld [vmem:[%s21776_s5 + $0x100] sm:$0xff]  }
 0x801   :  { %v15938_v17 = vunpack.i.h.bf16 %v15936_v54  ;;  %v15937_v59 = vunpack.i.l.bf16 %v15936_v54  ;;  %14396 = vmatmul.mubr.msk.bf16.vlgmr.msra.gmra.mrb[60].mxu0 %vm6699_vm7, %v6459_v34  ;;  %v22151_v21 = vld [vmem:[#allocation18_spill] sm:$0xff] }
 0x802   :  { %v6292_v9 = vmax.f32 %v19606_v14, %v19659_v25  ;;  %v19671_v37 = vmax.f32 %v6289_v40, %v19659_v25  ;;  %v5704_v5 = vpop.permute.xlu1 %5703  ;;  %13816 = vmatpush3.bf16.msra.mxu0 %v16440_v51  ;;  %7002 = vmatprep.mubr.bf16.mxu0 %v6461_v38 }
 0x803   :  { %v6116_v52 = vsel %vm2224_vm3, %v15937_v59, %v15938_v17  ;;  %v19677_v0 = vmax.f32 %v5926_v53, %v15938_v17  ;;  %v5807_v62 = vsel %vm1971_vm2, %v5704_v5, %v15932_v10  ;;  %v16444_v10 = vld [vmem:[%s21776_s5 + $0xb8] sm:$0xff]   ;;  %13817 = vmatprep.subr.bf16.mxu0 %v16442_v46  ;;  %v16450_v46 = vld [vmem:[%s21776_s5 + $0x108] sm:$0xff]  }
 0x804   :  { %v19681_v13 = vmax.f32 %v5925_v58, %v6116_v52  ;;  %v15941_v14 = vpop.permute.xlu0 %15940  ;;  %6095 = vrot.lane.b32.xlu1 %v19634_v20, %s16915_s15  ;;  %v5924_v48 = vmax.f32 %v19125_v32, %v5807_v62  ;;  %v22150_v32 = vld [vmem:[#allocation21_spill] sm:$0xff] }
 0x805   :  { %v6297_v40 = vmax.f32 %v19628_v55, %v19677_v0  ;;  %v19688_v30 = vmax.f32 %v6294_v45, %v19677_v0  ;;  %v15943_v61 = vunpack.i.h.bf16 %v15941_v14  ;;  %v15942_v29 = vunpack.i.l.bf16 %v15941_v14 }
 0x806   :  { %v6012_v31 = vpop.permute.xlu1 %6011  ;;  %v19698_v55 = vmax.f32 %v6293_v44, %v19681_v13  ;;  %v6296_v45 = vmax.f32 %v19636_v35, %v19681_v13  ;;  %13818 = vmatpush3.bf16.msra.mxu0 %v16444_v10  ;;  %v16448_v44 = vld [vmem:[%s21776_s5 + $0xc0] sm:$0xff]  }
 0x807   :  { %22149 = vst [vmem:[#allocation38_spill] sm:$0xff] %v19688_v30  ;;  %v5810_v47 = vsel %vm1971_vm2, %v15942_v29, %v15943_v61  ;;  %v6115_v54 = vsel %vm2224_vm3, %v6012_v31, %v15937_v59  ;;  %v5929_v17 = vmax.f32 %v22150_v32, %v15943_v61  ;;  %13819 = vmatprep.subr.bf16.mxu0 %v16446_v41  ;;  %v16452_v31 = vld [vmem:[%s21776_s5 + $0xc8] sm:$0xff]  }
 0x808   :  { %v19704_v33 = vmax.f32 %v5924_v48, %v6115_v54  ;;  %v15946_v53 = vpop.permute.xlu0 %15945  ;;  %v5928_v58 = vmax.f32 %v22151_v21, %v5810_v47  ;;  %v16454_v47 = vld [vmem:[%s21776_s5 + $0x110] sm:$0xff]  }
 0x809   :  { %v15948_v51 = vunpack.i.h.bf16 %v15946_v53  ;;  %v15947_v34 = vunpack.i.l.bf16 %v15946_v53  ;;  %v16456_v21 = vld [vmem:[%s21776_s5 + $0xd0] sm:$0xff]  }
 0x80a   :  { %v6295_v35 = vmax.f32 %v19659_v25, %v19704_v33  ;;  %v19714_v5 = vmax.f32 %v6292_v9, %v19704_v33  ;;  %v5710_v59 = vpop.permute.xlu1 %5709  ;;  %13820 = vmatpush3.bf16.msra.mxu0 %v16448_v44 }
 0x80b   :  { %v6118_v52 = vsel %vm2224_vm3, %v15947_v34, %v15948_v51  ;;  %v19720_v38 = vmax.f32 %v5929_v17, %v15948_v51  ;;  %v5809_v62 = vsel %vm1971_vm2, %v5710_v59, %v15942_v29  ;;  %13821 = vmatprep.subr.bf16.mxu0 %v16450_v46  ;;  %v22155_v17 = vld [vmem:[#allocation23_spill] sm:$0xff] }
 0x80c   :  { %22152 = vst [vmem:[#allocation42_spill] sm:$0xff] %v19714_v5  ;;  %v19723_v14 = vmax.f32 %v5928_v58, %v6118_v52  ;;  %v15951_v61 = vpop.permute.xlu0 %15950  ;;  %v5927_v41 = vmax.f32 %v19160_v7, %v5809_v62  ;;  %v22156_v58 = vld [vmem:[#allocation20_spill] sm:$0xff] }
 0x80d   :  { %v6300_v25 = vmax.f32 %v19677_v0, %v19720_v38  ;;  %v19728_v9 = vmax.f32 %v6297_v40, %v19720_v38  ;;  %v15953_v10 = vunpack.i.h.bf16 %v15951_v61  ;;  %v15952_v48 = vunpack.i.l.bf16 %v15951_v61 }
 0x80e   :  { %v6018_v29 = vpop.permute.xlu1 %6017  ;;  %v19738_v0 = vmax.f32 %v6296_v45, %v19723_v14  ;;  %13822 = vmatpush3.bf16.msra.mxu0 %v16452_v31 }
 0x80f   :  { %22153 = vst [vmem:[#allocation8_spill] sm:$0xff] %v19728_v9  ;;  %v5812_v40 = vsel %vm1971_vm2, %v15952_v48, %v15953_v10  ;;  %v6117_v54 = vsel %vm2224_vm3, %v6018_v29, %v15947_v34  ;;  %v5932_v51 = vmax.f32 %v22155_v17, %v15953_v10  ;;  %13823 = vmatprep.subr.bf16.mxu0 %v16454_v47  ;;  %v16458_v34 = vld [vmem:[%s21776_s5 + $0x118] sm:$0xff]  }
 0x810   :  { %22154 = vst [vmem:[#allocation14_spill] sm:$0xff] %v19738_v0  ;;  %v19742_v53 = vmax.f32 %v5927_v41, %v6117_v54  ;;  %v15956_v32 = vpop.permute.xlu0 %15955  ;;  %v5931_v59 = vmax.f32 %v22156_v58, %v5812_v40  ;;  %v22159_v54 = vld [vmem:[#allocation33_spill] sm:$0xff] }
 0x811   :  { %v15958_v7 = vunpack.i.h.bf16 %v15956_v32  ;;  %v15957_v44 = vunpack.i.l.bf16 %v15956_v32 }
 0x812   :  { %v19750_v45 = vmax.f32 %v6295_v35, %v19742_v53  ;;  %v5716_v46 = vpop.permute.xlu1 %5715  ;;  %v6299_v35 = vmax.f32 %v19681_v13, %v19723_v14  ;;  %13824 = vmatpush3.bf16.msra.mxu0 %v16456_v21  ;;  %v16462_v13 = vld [vmem:[%s21776_s5 + $0x120] sm:$0xff]   ;;  %v6298_v21 = vmax.f32 %v19704_v33, %v19742_v53 }
 0x813   :  { %v6120_v52 = vsel %vm2224_vm3, %v15957_v44, %v15958_v7  ;;  %v19756_v62 = vmax.f32 %v5932_v51, %v15958_v7  ;;  %v5811_v61 = vsel %vm1971_vm2, %v5716_v46, %v15952_v48  ;;  %v16460_v48 = vld [vmem:[%s21776_s5 + $0xd8] sm:$0xff]   ;;  %13825 = vmatprep.subr.bf16.mxu0 %v16458_v34  ;;  %v6280_v7 = vmax.f32 %v19421_v4, %v19446_v12  ;;  %v22161_v12 = vld [vmem:[#allocation32_spill] sm:$0xff] }
 0x814   :  { %22157 = vst [vmem:[#allocation17_spill] sm:$0xff] %v19750_v45  ;;  %v19759_v10 = vmax.f32 %v5931_v59, %v6120_v52  ;;  %v19761_v31 = vpop.permute.xlu0 %15960  ;;  %v5930_v32 = vmax.f32 %v22159_v54, %v5811_v61  ;;  %v22160_v34 = vld [vmem:[#allocation22_spill] sm:$0xff] }
 0x815   :  { %v6303_v41 = vmax.f32 %v19720_v38, %v19756_v62  ;;  %v19768_v29 = vmax.f32 %v6300_v25, %v19756_v62  ;;  %v15963_v47 = vunpack.i.h.bf16 %v19761_v31  ;;  %v21919_v40 = vunpack.i.l.bf16 %v19761_v31 }
 0x816   :  { %v6024_v17 = vpop.permute.xlu1 %6023  ;;  %v6359_v38 = vmax.f32 %v6299_v35, %v19759_v10  ;;  %13826 = vmatpush3.bf16.msra.mxu0 %v16460_v48  ;;  %v6340_v4 = vmax.f32 %v6280_v7, %v19506_v49 }
 0x817   :  { %22158 = vst [vmem:[#allocation15_spill] sm:$0xff] %v19768_v29  ;;  %v5814_v25 = vsel %vm1971_vm2, %v21919_v40, %v15963_v47  ;;  %v6119_v51 = vsel %vm2224_vm3, %v6024_v17, %v15957_v44  ;;  %v5935_v52 = vmax.f32 %v22160_v34, %v15963_v47  ;;  %v16464_v44 = vld [vmem:[%s21776_s5 + $0xe0] sm:$0xff]   ;;  %13827 = vmatprep.subr.bf16.mxu0 %v16462_v13  ;;  %v16466_v47 = vld [vmem:[%s21776_s5 + $0x128] sm:$0xff]  }
 0x818   :  { %v19788_v58 = vmax.f32 %v5930_v32, %v6119_v51  ;;  %v19790_v59 = vpop.permute.xlu0 %15965  ;;  %v6419_v46 = vmax.f32 %v6359_v38, 0.0  ;;  %v5934_v33 = vmax.f32 %v22161_v12, %v5814_v25  ;;  %v6302_v13 = vmax.f32 %v19723_v14, %v19759_v10  ;;  %v16468_v34 = vld [vmem:[%s21776_s5 + $0xe8] sm:$0xff]   ;;  %v22173_v29 = vld [vmem:[#allocation46_spill] sm:$0xff] }
 0x819   :  { %v15968_v61 = vunpack.i.h.bf16 %v19790_v59  ;;  %v21916_v35 = vunpack.i.l.bf16 %v19790_v59 }
 0x81a   :  { %v6358_v54 = vmax.f32 %v6298_v21, %v19788_v58  ;;  %v19801_v32 = vpop.permute.xlu1 %5721  ;;  %v6479_v48 = vpack.c.bf16 %v6419_v46, %v6419_v46  ;;  %13828 = vmatpush3.bf16.msra.mxu0 %v16464_v44 }
 0x81b   :  { %v6122_v17 = vsel %vm2224_vm3, %v21916_v35, %v15968_v61  ;;  %v19809_v38 = vmax.f32 %v5935_v52, %v15968_v61  ;;  %v16470_v52 = vld [vmem:[%s21776_s5 + $0x580] sm:$0xff]   ;;  %v6400_v61 = vmax.f32 %v6340_v4, 0.0  ;;  %13829 = vmatprep.subr.bf16.mxu0 %v16466_v47  ;;  %v16471_v47 = vld [vmem:[%s21776_s5 + $0x130] sm:$0xff]  }
 0x81c   :  { %v6418_v51 = vmax.f32 %v6358_v54, 0.0  ;;  %v19811_v49 = vmax.f32 %v5934_v33, %v6122_v17  ;;  %8580 = vmatprep.mubr.bf16.mxu1 %v6479_v48  ;;  %v19813_v25 = vpop.permute.xlu0 %15970  ;;  %v22163_v54 = vld [vmem:[#allocation34_spill] sm:$0xff]  ;;  %v16473_v17 = vld [vmem:[%s21776_s5 + $0x588] sm:$0xff]  }
 0x81d   :  { %v6306_v7 = vmax.f32 %v19756_v62, %v19809_v38  ;;  %v19820_v21 = vmax.f32 %v6303_v41, %v19809_v38  ;;  %v21918_v46 = vunpack.i.h.bf16 %v19813_v25  ;;  %v16472_v62 = vld [vmem:[%s21776_s5 + $0x5c8] sm:$0xff]  }
 0x81e   :  { %v6478_v12 = vpack.c.bf16 %v6418_v51, %v6418_v51  ;;  %v19829_v14 = vpop.permute.xlu1 %6029  ;;  %v6362_v41 = vmax.f32 %v6302_v13, %v19811_v49  ;;  %13830 = vmatpush3.bf16.msra.mxu0 %v16468_v34  ;;  %v6460_v51 = vpack.c.bf16 %v6400_v61, %v6400_v61  ;;  %v16475_v34 = vld [vmem:[%s21776_s5 + $0x5d0] sm:$0xff]  }
 0x81f   :  { %22162 = vst [vmem:[#allocation16_spill] sm:$0xff] %v19820_v21  ;;  %v5938_v48 = vmax.f32 %v22163_v54, %v21918_v46  ;;  %14399 = vmatprep.subr.bf16.mxu0 %v22137_v36 }
 0x820   :  { %8581 = vmatmul.mubr.bf16.vlgmr.msra.gmra.mrb[88].mxu1 %v6478_v12  ;;  %v19835_v44 = vpop.permute.xlu0 %15975  ;;  %v6422_v33 = vmax.f32 %v6362_v41, 0.0 }
 0x821   :  { %14019 = vmatpush3.bf16.msra.mxu1 %v16470_v52  ;;  %v21915_v4 = vunpack.i.h.bf16 %v19835_v44  ;;  %7003 = vmatmul.mubr.bf16.vlgmr.msra.gmra.mrb[64].mxu0 %v6460_v51 }
 0x822   :  { %v19848_v13 = vpop.permute.xlu1 %5727  ;;  %14020 = vmatprep.subr.bf16.mxu1 %v16472_v62  ;;  %v6482_v12 = vpack.c.bf16 %v6422_v33, %v6422_v33  ;;  %14400 = vmatpush3.bf16.msra.mxu0 %v16471_v47  ;;  %v16474_v33 = vld [vmem:[%s21776_s5 + $0x138] sm:$0xff]   ;;  %v22165_v47 = vld [vmem:[#allocation43_spill] sm:$0xff] }
 0x823   :  { %v19855_v52 = vmax.f32 %v5938_v48, %v21915_v4  ;;  %v16476_v48 = vld [vmem:[%s21776_s5 + $0x590] sm:$0xff]   ;;  %14401 = vmatprep.subr.bf16.mxu0 %v22137_v36  ;;  %14411 = vmatprep.mubr.msk.bf16.mxu0 %vm16917_vm5, %v22137_v36  ;;  %v16479_v4 = vld [vmem:[%s21776_s5 + $0x598] sm:$0xff]  }
 0x824   :  { %8843 = vmatprep.mubr.bf16.mxu1 %v6482_v12  ;;  %v19857_v41 = vpop.permute.xlu0 %15980 }
 0x825   :  { %v6309_v61 = vmax.f32 %v19809_v38, %v19855_v52  ;;  %v19862_v54 = vmax.f32 %v6306_v7, %v19855_v52  ;;  %14021 = vmatpush3.bf16.msra.mxu1 %v16473_v17  ;;  %v21917_v62 = vunpack.i.h.bf16 %v19857_v41  ;;  %v16478_v38 = vld [vmem:[%s21776_s5 + $0x5d8] sm:$0xff]  }
 0x826   :  { %v19872_v51 = vpop.permute.xlu1 %6035  ;;  %14022 = vmatprep.subr.bf16.mxu1 %v16475_v34  ;;  %14402 = vmatpush3.bf16.msra.mxu0 %v16474_v33  ;;  %v16477_v34 = vld [vmem:[%s21776_s5 + $0x140] sm:$0xff]  }
 0x827   :  { %22164 = vst [vmem:[#allocation19_spill] sm:$0xff] %v19862_v54  ;;  %v5941_v17 = vmax.f32 %v22165_v47, %v21917_v62  ;;  %14403 = vmatprep.subr.bf16.mxu0 %v22137_v36  ;;  %v16481_v33 = vld [vmem:[%s21776_s5 + $0x5e0] sm:$0xff]   ;;  %v16480_v54 = vld [vmem:[%s21776_s5 + $0x148] sm:$0xff]   ;;  %v22168_v47 = vunpack.i.h.bf16 %v19813_v25 }
 0x828   :  { %v19879_v7 = vpop.permute.xlu0 %15985 }
 0x829   :  { %14023 = vmatpush3.bf16.msra.mxu1 %v16476_v48  ;;  %v21920_v12 = vunpack.i.h.bf16 %v19879_v7 }
 0x82a   :  { %v19892_v35 = vpop.permute.xlu1 %5733  ;;  %14024 = vmatprep.subr.bf16.mxu1 %v16478_v38  ;;  %14404 = vmatpush3.bf16.msra.mxu0 %v16477_v34  ;;  %v16484_v34 = vld [vmem:[%s21776_s5 + $0x5e8] sm:$0xff]   ;;  %v6282_v38 = vmax.f32 %v19539_v1, %v19479_v43  ;;  %v16483_v1 = vld [vmem:[%s21776_s5 + $0x150] sm:$0xff]  }
 0x82b   :  { %v19899_v48 = vmax.f32 %v5941_v17, %v21920_v12  ;;  %v16482_v17 = vld [vmem:[%s21776_s5 + $0x5a0] sm:$0xff]   ;;  %v22167_v12 = vunpack.i.l.bf16 %v19761_v31  ;;  %14405 = vmatprep.subr.bf16.mxu0 %v22137_v36  ;;  %v22169_v31 = vunpack.i.l.bf16 %v19813_v25 }
 0x82c   :  { %v19902_v62 = vpop.permute.xlu0 %15990 }
 0x82d   :  { %v6312_v46 = vmax.f32 %v19855_v52, %v19899_v48  ;;  %v19907_v40 = vmax.f32 %v6309_v61, %v19899_v48  ;;  %14025 = vmatpush3.bf16.msra.mxu1 %v16479_v4  ;;  %v5813_v52 = vsel %vm1971_vm2, %v19801_v32, %v22167_v12  ;;  %v5816_v32 = vsel %vm1971_vm2, %v22169_v31, %v22168_v47 }
 0x82e   :  { %v19922_v4 = vpop.permute.xlu1 %6041  ;;  %14026 = vmatprep.subr.bf16.mxu1 %v16481_v33  ;;  %v22170_v12 = vunpack.i.l.bf16 %v19790_v59  ;;  %v22171_v33 = vld [vmem:[#allocation39_spill] sm:$0xff]  ;;  %v22172_v20 = vunpack.i.h.bf16 %v19902_v62  ;;  %14406 = vmatpush3.bf16.msra.mxu0 %v16480_v54  ;;  %v22174_v47 = vunpack.i.h.bf16 %v19835_v44  ;;  %v16486_v54 = vld [vmem:[%s21776_s5 + $0x158] sm:$0x7f]  }
 0x82f   :  { %22166 = vst [vmem:[#allocation21_spill] sm:$0xff] %v19907_v40  ;;  %v5933_v21 = vmax.f32 %v22171_v33, %v5813_v52  ;;  %v16485_v59 = vld [vmem:[%s21776_s5 + $0x5a8] sm:$0xff]   ;;  %v22175_v52 = vunpack.i.l.bf16 %v19835_v44  ;;  %14407 = vmatprep.subr.bf16.mxu0 %v22137_v36  ;;  %v6301_v33 = vmax.f32 %v19742_v53, %v19788_v58  ;;  %v6968_v53 = vsel %vm6703_vm6, %v16486_v54, 0  ;;  %v22178_v54 = vld [vmem:[#allocation49_spill] sm:$0xff] }
 0x830   :  { %v6121_v61 = vsel %vm2224_vm3, %v19829_v14, %v22170_v12  ;;  %v19938_v40 = vpop.permute.xlu0 %15995  ;;  %v5944_v18 = vmax.f32 %v22173_v29, %v22172_v20  ;;  %v6342_v14 = vmax.f32 %v6282_v38, %v19476_v26  ;;  %v22176_v26 = vld [vmem:[#allocation41_spill] sm:$0xff] }
 0x831   :  { %14027 = vmatpush3.bf16.msra.mxu1 %v16482_v17  ;;  %v21924_v43 = vunpack.i.h.bf16 %v19938_v40  ;;  %v6124_v20 = vsel %vm2224_vm3, %v22175_v52, %v22174_v47  ;;  %v16487_v17 = vld [vmem:[%s21776_s5 + $0x5f0] sm:$0xff]   ;;  %v5937_v38 = vmax.f32 %v22176_v26, %v5816_v32  ;;  %v19967_v31 = vmax.f32 %v5933_v21, %v6121_v61 }
 0x832   :  { %v19958_v29 = vpop.permute.xlu1 %5739  ;;  %14028 = vmatprep.subr.bf16.mxu1 %v16484_v34  ;;  %14408 = vmatpush3.bf16.msra.mxu0 %v16483_v1  ;;  %v6402_v61 = vmax.f32 %v6342_v14, 0.0  ;;  %v6305_v14 = vmax.f32 %v19759_v10, %v19811_v49  ;;  %v16492_v10 = vld [vmem:[%s21776_s5 + $0x1a8] sm:$0xff]  }
 0x833   :  { %v19971_v12 = vmax.f32 %v5944_v18, %v21924_v43  ;;  %v19977_v47 = vmax.f32 %v5937_v38, %v6124_v20  ;;  %v16489_v18 = vld [vmem:[%s21776_s5 + $0x5b0] sm:$0xff]   ;;  %14409 = vmatprep.subr.bf16.mxu0 %v22137_v36  ;;  %v6361_v1 = vmax.f32 %v6301_v33, %v19967_v31  ;;  %v16490_v38 = vld [vmem:[%s21776_s5 + $0x160] sm:$0xff]  }
 0x834   :  { %v19975_v34 = vpop.permute.xlu0 %16000 }
 0x835   :  { %v6315_v52 = vmax.f32 %v19899_v48, %v19971_v12  ;;  %v19982_v60 = vmax.f32 %v6312_v46, %v19971_v12  ;;  %14029 = vmatpush3.bf16.msra.mxu1 %v16485_v59  ;;  %v21925_v21 = vunpack.i.l.bf16 %v19975_v34  ;;  %v16488_v46 = vld [vmem:[%s21776_s5 + $0x1a0] sm:$0xff]   ;;  %v16491_v48 = vld [vmem:[%s21776_s5 + $0x5f8] sm:$0xff]   ;;  %v6404_v59 = vmax.f32 %v19543_v8, 0.0 }
 0x836   :  { %v19990_v32 = vpop.permute.xlu1 %6047  ;;  %14030 = vmatprep.subr.bf16.mxu1 %v16487_v17  ;;  %14410 = vmatpush3.bf16.msra.mxu0 %v6968_v53  ;;  %v6365_v33 = vmax.f32 %v6305_v14, %v19977_v47  ;;  %v6462_v8 = vpack.c.bf16 %v6402_v61, %v6402_v61  ;;  %v6421_v53 = vmax.f32 %v6361_v1, 0.0  ;;  %v16495_v61 = vld [vmem:[%s21776_s5 + $0x670] sm:$0xff]   ;;  %v16494_v1 = vld [vmem:[%s21776_s5 + $0x168] sm:$0xff]  }
 0x837   :  { %22177 = vst [vmem:[#allocation18_spill] sm:$0xff] %v19982_v60  ;;  %v5947_v17 = vmax.f32 %v22178_v54, %v21925_v21  ;;  %13844 = vmatprep.subr.bf16.mxu0 %v16488_v46  ;;  %v6464_v21 = vpack.c.bf16 %v6404_v59, %v6404_v59  ;;  %v16500_v60 = vld [vmem:[%s21776_s5 + $0x1b8] sm:$0xff]  }
 0x838   :  { %v20002_v20 = vpop.permute.xlu0 %16005  ;;  %v6425_v14 = vmax.f32 %v6365_v33, 0.0 }
 0x839   :  { %14031 = vmatpush3.bf16.msra.mxu1 %v16489_v18  ;;  %v21926_v26 = vunpack.i.l.bf16 %v20002_v20  ;;  %v16493_v18 = vld [vmem:[%s21776_s5 + $0x5b8] sm:$0xff]   ;;  %14412 = vmatmul.mubr.msk.bf16.vlgmr.msra.gmra.mrb[60].mxu0 %vm6699_vm7, %v6462_v8  ;;  %v16496_v8 = vld [vmem:[%s21776_s5 + $0x1b0] sm:$0xff]  }
 0x83a   :  { %v5746_v43 = vpop.permute.xlu1 %5745  ;;  %14032 = vmatprep.subr.bf16.mxu1 %v16491_v48  ;;  %13845 = vmatpush3.bf16.msra.mxu0 %v16490_v38  ;;  %v16499_v38 = vld [vmem:[%s21776_s5 + $0x678] sm:$0xff]  }
 0x83b   :  { %v20020_v54 = vmax.f32 %v5947_v17, %v21926_v26  ;;  %7265 = vmatprep.mubr.bf16.mxu0 %v6464_v21  ;;  %13846 = vmatprep.subr.bf16.mxu0 %v16492_v10  ;;  %v6481_v21 = vpack.c.bf16 %v6421_v53, %v6421_v53  ;;  %v16498_v26 = vld [vmem:[%s21776_s5 + $0x170] sm:$0xff]  }
 0x83c   :  { %v20026_v46 = vpop.permute.xlu0 %5755 }
 0x83d   :  { %v20029_v48 = vmax.f32 %v6315_v52, %v20020_v54  ;;  %v6318_v59 = vmax.f32 %v19971_v12, %v20020_v54  ;;  %14033 = vmatpush3.bf16.msra.mxu1 %v16493_v18  ;;  %v16497_v52 = vld [vmem:[%s21776_s5 + $0x630] sm:$0xff]   ;;  %v6485_v18 = vpack.c.bf16 %v6425_v14, %v6425_v14  ;;  %v16503_v14 = vld [vmem:[%s21776_s5 + $0x680] sm:$0xff]  }
 0x83e   :  { %v6054_v17 = vpop.permute.xlu1 %6053  ;;  %14047 = vmatprep.subr.bf16.mxu1 %v16495_v61  ;;  %v22180_v12 = vld [vmem:[#allocation13_spill] sm:$0xff]  ;;  %13847 = vmatpush3.bf16.msra.mxu0 %v16494_v1 }
 0x83f   :  { %22179 = vst [vmem:[#allocation23_spill] sm:$0xff] %v20029_v48  ;;  %v5950_v10 = vmax.f32 %v22180_v12, %v20026_v46  ;;  %13848 = vmatprep.subr.bf16.mxu0 %v16496_v8  ;;  %v16501_v12 = vld [vmem:[%s21776_s5 + $0x638] sm:$0xff]  }
 0x840   :  { %v16011_v33 = vpop.permute.xlu0 %16010  ;;  %8844 = vmatmul.mubr.bf16.vlgmr.msra.gmra.mrb[92].mxu1 %v6481_v21 }
 0x841   :  { %14048 = vmatpush3.bf16.msra.mxu1 %v16497_v52  ;;  %v16013_v48 = vunpack.i.h.bf16 %v16011_v33  ;;  %v16012_v53 = vunpack.i.l.bf16 %v16011_v33  ;;  %9106 = vmatprep.mubr.bf16.mxu1 %v6485_v18  ;;  %v16003_v52 = vunpack.i.h.bf16 %v19975_v34 }
 0x842   :  { %v6064_v61 = vpop.permute.xlu1 %6063  ;;  %14049 = vmatprep.subr.bf16.mxu1 %v16499_v38  ;;  %13849 = vmatpush3.bf16.msra.mxu0 %v16498_v26  ;;  %v16504_v26 = vld [vmem:[%s21776_s5 + $0x1c0] sm:$0xff]  }
 0x843   :  { %v20056_v1 = vmax.f32 %v5950_v10, %v6064_v61  ;;  %v16502_v10 = vld [vmem:[%s21776_s5 + $0x178] sm:$0xff]   ;;  %v5823_v18 = vsel %vm1971_vm2, %v16013_v48, %v16012_v53  ;;  %13850 = vmatprep.subr.bf16.mxu0 %v16500_v60  ;;  %v16507_v60 = vld [vmem:[%s21776_s5 + $0x688] sm:$0xff]   ;;  %v22182_v48 = vunpack.i.l.bf16 %v19813_v25  ;;  %v22185_v25 = vunpack.i.h.bf16 %v19857_v41 }
 0x844   :  { %v16021_v8 = vpop.permute.xlu0 %16020  ;;  %v5948_v24 = vmax.f32 %v22183_v50, %v5823_v18  ;;  %v16508_v18 = vld [vmem:[%s21776_s5 + $0x1c8] sm:$0xff]  }
 0x845   :  { %v6321_v21 = vmax.f32 %v20020_v54, %v20056_v1  ;;  %v20065_v33 = vmax.f32 %v6318_v59, %v20056_v1  ;;  %v16023_v9 = vunpack.i.h.bf16 %v16021_v8  ;;  %14050 = vmatpush3.bf16.msra.mxu1 %v16501_v12  ;;  %v16505_v54 = vld [vmem:[%s21776_s5 + $0x640] sm:$0xff]   ;;  %v16008_v59 = vunpack.i.h.bf16 %v20002_v20 }
 0x846   :  { %v16016_v45 = vpop.permute.xlu1 %16015  ;;  %14051 = vmatprep.subr.bf16.mxu1 %v16503_v14  ;;  %v20087_v12 = vsel %vm1971_vm2, %v19848_v13, %v22182_v48  ;;  %v16022_v38 = vunpack.i.l.bf16 %v16021_v8  ;;  %13851 = vmatpush3.bf16.msra.mxu0 %v16502_v10  ;;  %v22186_v13 = vunpack.i.l.bf16 %v19857_v41 }
 0x847   :  { %22181 = vst [vmem:[#allocation20_spill] sm:$0xff] %v20065_v33  ;;  %v5821_v33 = vsel %vm1971_vm2, %v5746_v43, %v16003_v52  ;;  %v16018_v11 = vunpack.i.h.bf16 %v16016_v45  ;;  %v16017_v27 = vunpack.i.l.bf16 %v16016_v45  ;;  %v6129_v30 = vsel %vm2224_vm3, %v6054_v17, %v16008_v59  ;;  %v22184_v43 = vld [vmem:[#allocation12_spill] sm:$0xff]  ;;  %v22187_v17 = vld [vmem:[#allocation9_spill] sm:$0xff]  ;;  %13852 = vmatprep.subr.bf16.mxu0 %v16504_v26 }
 0x848   :  { %v16026_v0 = vpop.permute.xlu0 %16025  ;;  %v5953_v5 = vmax.f32 %v22184_v43, %v16023_v9  ;;  %v20100_v8 = vsel %vm1971_vm2, %v22186_v13, %v22185_v25  ;;  %v5945_v48 = vmax.f32 %v22187_v17, %v5821_v33  ;;  %v16509_v43 = vld [vmem:[%s21776_s5 + $0x648] sm:$0xff]   ;;  %v5824_v25 = vsel %vm1971_vm2, %v16012_v53, %v20026_v46 }
 0x849   :  { %v16028_v14 = vunpack.i.h.bf16 %v16026_v0  ;;  %v6131_v50 = vsel %vm2224_vm3, %v16018_v11, %v16017_v27  ;;  %14052 = vmatpush3.bf16.msra.mxu1 %v16505_v54  ;;  %v16027_v45 = vunpack.i.l.bf16 %v16026_v0  ;;  %v16511_v11 = vld [vmem:[%s21776_s5 + $0x690] sm:$0xff]   ;;  %v22188_v26 = vunpack.i.l.bf16 %v19975_v34 }
 0x84a   :  { %v5758_v10 = vpop.permute.xlu1 %5757  ;;  %v20113_v13 = vmax.f32 %v5948_v24, %v6131_v50  ;;  %14053 = vmatprep.subr.bf16.mxu1 %v16507_v60  ;;  %v20123_v17 = vmax.f32 %v5945_v48, %v6129_v30  ;;  %v5826_v2 = vsel %vm1971_vm2, %v16022_v38, %v16023_v9  ;;  %13853 = vmatpush3.bf16.msra.mxu0 %v16506_v19  ;;  %v16510_v30 = vld [vmem:[%s21776_s5 + $0x188] sm:$0xff]   ;;  %v22189_v9 = vld [vmem:[#allocation10_spill] sm:$0xff]  ;;  %v16512_v19 = vld [vmem:[%s21776_s5 + $0x1d0] sm:$0xff]  }
 0x84b   :  { %v20115_v33 = vmax.f32 %v5953_v5, %v16028_v14  ;;  %v5822_v54 = vsel %vm1971_vm2, %v16003_v52, %v22188_v26  ;;  %v5825_v46 = vsel %vm1971_vm2, %v5758_v10, %v16022_v38  ;;  %v6132_v5 = vsel %vm2224_vm3, %v16017_v27, %v6064_v61  ;;  %13854 = vmatprep.subr.bf16.mxu0 %v16508_v18  ;;  %v16515_v18 = vld [vmem:[%s21776_s5 + $0x698] sm:$0xff]   ;;  %v22193_v26 = vld [vmem:[#allocation24_spill] sm:$0xff] }
 0x84c   :  { %v20127_v24 = vpop.permute.xlu0 %16030  ;;  %v5949_v52 = vmax.f32 %v22189_v9, %v5824_v25  ;;  %v5951_v38 = vmax.f32 %v19368_v28, %v5825_v46  ;;  %v6319_v61 = vmax.f32 %v20123_v17, %v20113_v13  ;;  %v22191_v28 = vunpack.i.l.bf16 %v20002_v20 }
 0x84d   :  { %v6324_v0 = vmax.f32 %v20056_v1, %v20115_v33  ;;  %v20133_v53 = vmax.f32 %v6321_v21, %v20115_v33  ;;  %v16033_v34 = vunpack.i.h.bf16 %v20127_v24  ;;  %14054 = vmatpush3.bf16.msra.mxu1 %v16509_v43  ;;  %v16513_v1 = vld [vmem:[%s21776_s5 + $0x650] sm:$0xff]   ;;  %v22190_v21 = vunpack.i.l.bf16 %v19835_v44  ;;  %v22192_v43 = vld [vmem:[#allocation51_spill] sm:$0xff] }
 0x84e   :  { %v6066_v27 = vpop.permute.xlu1 %6065  ;;  %v6130_v48 = vsel %vm2224_vm3, %v16008_v59, %v22191_v28  ;;  %v6134_v50 = vsel %vm2224_vm3, %v16027_v45, %v16028_v14  ;;  %14055 = vmatprep.subr.bf16.mxu1 %v16511_v11  ;;  %v5946_v25 = vmax.f32 %v22192_v43, %v5822_v54  ;;  %v5952_v44 = vmax.f32 %v22193_v26, %v5826_v2  ;;  %v22194_v59 = vld [vmem:[#allocation44_spill] sm:$0xff]  ;;  %v22197_v54 = vld [vmem:[#allocation26_spill] sm:$0xff]  ;;  %v22198_v28 = vld [vmem:[#allocation45_spill] sm:$0xff] }
 0x84f   :  { %v6123_v60 = vsel %vm2224_vm3, %v19872_v51, %v22190_v21  ;;  %v6133_v10 = vsel %vm2224_vm3, %v6066_v27, %v16027_v45  ;;  %v20163_v46 = vmax.f32 %v5949_v52, %v6132_v5  ;;  %v5936_v14 = vmax.f32 %v22194_v59, %v20087_v12  ;;  %13855 = vmatpush3.bf16.msra.mxu0 %v16510_v30  ;;  %v16514_v5 = vld [vmem:[%s21776_s5 + $0x190] sm:$0xff]   ;;  %v16516_v21 = vld [vmem:[%s21776_s5 + $0x1d8] sm:$0xff]   ;;  %v16522_v59 = vld [vmem:[%s21776_s5 + $0x6a8] sm:$0xff]  }
 0x850   :  { %v20165_v51 = vmax.f32 %v5951_v38, %v6133_v10  ;;  %v20167_v20 = vpop.permute.xlu0 %16035  ;;  %v22195_v45 = vunpack.i.h.bf16 %v19879_v7  ;;  %v22196_v11 = vunpack.i.l.bf16 %v19879_v7  ;;  %v5956_v27 = vmax.f32 %v22197_v54, %v16033_v34  ;;  %13856 = vmatprep.subr.bf16.mxu0 %v16512_v19  ;;  %v16517_v30 = vld [vmem:[%s21776_s5 + $0x658] sm:$0xff]  }
 0x851   :  { %v16038_v2 = vunpack.i.h.bf16 %v20167_v20  ;;  %v20183_v52 = vmax.f32 %v5946_v25, %v6130_v48  ;;  %v20185_v12 = vmax.f32 %v5952_v44, %v6134_v50  ;;  %14056 = vmatpush3.bf16.msra.mxu1 %v16513_v1  ;;  %v5940_v10 = vmax.f32 %v22198_v28, %v20100_v8  ;;  %v16520_v44 = vld [vmem:[%s21776_s5 + $0x660] sm:$0xff]  }
 0x852   :  { %v6126_v9 = vsel %vm2224_vm3, %v22196_v11, %v22195_v45  ;;  %v20188_v38 = vmax.f32 %v6319_v61, %v20165_v51  ;;  %v20198_v48 = vmax.f32 %v5936_v14, %v6123_v60  ;;  %14057 = vmatprep.subr.bf16.mxu1 %v16515_v18  ;;  %v16519_v61 = vld [vmem:[%s21776_s5 + $0x6a0] sm:$0xff]   ;;  %v6304_v19 = vmax.f32 %v19788_v58, %v19967_v31  ;;  %v16518_v58 = vld [vmem:[%s21776_s5 + $0x198] sm:$0xff]  }
 0x853   :  { %v20202_v50 = vmax.f32 %v5956_v27, %v16038_v2  ;;  %v6320_v43 = vmax.f32 %v20183_v52, %v20163_v46  ;;  %v20213_v8 = vmax.f32 %v5940_v10, %v6126_v9  ;;  %13857 = vmatpush3.bf16.msra.mxu0 %v16514_v5  ;;  %v6403_v26 = vmax.f32 %v19564_v22, 0.0  ;;  %v16521_v9 = vld [vmem:[%s21776_s5 + $0x1e0] sm:$0xff]  }
 0x854   :  { %v20209_v1 = vpop.permute.xlu0 %16040  ;;  %13858 = vmatprep.subr.bf16.mxu0 %v16516_v21  ;;  %v6308_v14 = vmax.f32 %v19811_v49, %v19977_v47  ;;  %v16523_v49 = vld [vmem:[%s21776_s5 + $0x668] sm:$0xff]   ;;  %v16525_v21 = vld [vmem:[%s21776_s5 + $0x720] sm:$0xff]  }
 0x855   :  { %v6327_v60 = vmax.f32 %v20115_v33, %v20202_v50  ;;  %v20218_v25 = vmax.f32 %v6324_v0, %v20202_v50  ;;  %v21939_v18 = vunpack.i.h.bf16 %v20209_v1  ;;  %14058 = vmatpush3.bf16.msra.mxu1 %v16517_v30  ;;  %v20229_v33 = vmax.f32 %v6320_v43, %v20185_v12 }
 0x856   :  { %v6364_v0 = vmax.f32 %v6304_v19, %v20198_v48  ;;  %14059 = vmatprep.subr.bf16.mxu1 %v16519_v61  ;;  %v6368_v54 = vmax.f32 %v6308_v14, %v20213_v8  ;;  %v6463_v27 = vpack.c.bf16 %v6403_v26, %v6403_v26  ;;  %v16524_v19 = vld [vmem:[%s21776_s5 + $0x1e8] sm:$0xff]   ;;  %v16527_v14 = vld [vmem:[%s21776_s5 + $0x1f0] sm:$0xff]  }
 0x857   :  { %v5959_v45 = vmax.f32 %v19399_v56, %v21939_v18  ;;  %13859 = vmatpush3.bf16.msra.mxu0 %v16518_v58  ;;  %v16528_v58 = vld [vmem:[%s21776_s5 + $0x728] sm:$0xff]  }
 0x858   :  { %v20237_v22 = vpop.permute.xlu0 %16045  ;;  %14415 = vmatprep.subr.bf16.mxu0 %v22137_v36  ;;  %v6424_v5 = vmax.f32 %v6364_v0, 0.0  ;;  %v6428_v43 = vmax.f32 %v6368_v54, 0.0 }
 0x859   :  { %v21937_v11 = vunpack.i.h.bf16 %v20237_v22  ;;  %14060 = vmatpush3.bf16.msra.mxu1 %v16520_v44 }
 0x85a   :  { %14061 = vmatprep.subr.bf16.mxu1 %v16522_v59  ;;  %7266 = vmatmul.mubr.bf16.vlgmr.msra.gmra.mrb[68].mxu0 %v6463_v27  ;;  %v6488_v0 = vpack.c.bf16 %v6428_v43, %v6428_v43 }
 0x85b   :  { %v6267_v56 = vmax.f32 %v5959_v45, %v21937_v11  ;;  %14416 = vmatpush3.bf16.msra.mxu0 %v16521_v9  ;;  %14427 = vmatprep.mubr.msk.bf16.mxu0 %vm16917_vm5, %v22137_v36  ;;  %v16529_v45 = vld [vmem:[%s21776_s5 + $0x6e8] sm:$0xff]   ;;  %v16531_v9 = vld [vmem:[%s21776_s5 + $0x730] sm:$0xff]  }
 0x85c   :  { %v20256_v30 = vpop.permute.xlu0 %16050  ;;  %14417 = vmatprep.subr.bf16.mxu0 %v22137_v36 }
 0x85d   :  { %v6330_v28 = vmax.f32 %v20202_v50, %v6267_v56  ;;  %v20259_v10 = vmax.f32 %v6327_v60, %v6267_v56  ;;  %v21936_v61 = vunpack.i.h.bf16 %v20256_v30  ;;  %14062 = vmatpush3.bf16.msra.mxu1 %v16523_v49  ;;  %v16526_v50 = vld [vmem:[%s21776_s5 + $0x6e0] sm:$0xff]   ;;  %v6484_v60 = vpack.c.bf16 %v6424_v5, %v6424_v5  ;;  %v16530_v5 = vld [vmem:[%s21776_s5 + $0x1f8] sm:$0xff]  }
 0x85e   :  { %14076 = vmatprep.subr.bf16.mxu1 %v16525_v21 }
 0x85f   :  { %v5962_v44 = vmax.f32 %v19459_v39, %v21936_v61  ;;  %14418 = vmatpush3.bf16.msra.mxu0 %v16524_v19  ;;  %v16532_v19 = vld [vmem:[%s21776_s5 + $0x6f0] sm:$0xff]  }
 0x860   :  { %v20274_v26 = vpop.permute.xlu0 %16055  ;;  %9107 = vmatmul.mubr.bf16.vlgmr.msra.gmra.mrb[96].mxu1 %v6484_v60  ;;  %14419 = vmatprep.subr.bf16.mxu0 %v22137_v36  ;;  %v16533_v60 = vld [vmem:[%s21776_s5 + $0x200] sm:$0xff]  }
 0x861   :  { %v21935_v59 = vunpack.i.h.bf16 %v20274_v26  ;;  %14077 = vmatpush3.bf16.msra.mxu1 %v16526_v50  ;;  %9369 = vmatprep.mubr.bf16.mxu1 %v6488_v0  ;;  %v16537_v0 = vld [vmem:[%s21776_s5 + $0x740] sm:$0xff]  }
 0x862   :  { %14078 = vmatprep.subr.bf16.mxu1 %v16528_v58  ;;  %v16535_v58 = vld [vmem:[%s21776_s5 + $0x6f8] sm:$0xff]  }
 0x863   :  { %v20289_v39 = vmax.f32 %v5962_v44, %v21935_v59  ;;  %14420 = vmatpush3.bf16.msra.mxu0 %v16527_v14  ;;  %v16536_v44 = vld [vmem:[%s21776_s5 + $0x208] sm:$0x7f]   ;;  %v15992_v14 = vunpack.i.l.bf16 %v19902_v62 }
 0x864   :  { %v20294_v54 = vpop.permute.xlu0 %16060  ;;  %14421 = vmatprep.subr.bf16.mxu0 %v22137_v36  ;;  %v7231_v59 = vsel %vm6703_vm6, %v16536_v44, 0 }
 0x865   :  { %v20297_v27 = vmax.f32 %v6330_v28, %v20289_v39  ;;  %v21933_v49 = vunpack.i.h.bf16 %v20294_v54  ;;  %v6333_v21 = vmax.f32 %v6267_v56, %v20289_v39  ;;  %14079 = vmatpush3.bf16.msra.mxu1 %v16529_v45  ;;  %v16534_v28 = vld [vmem:[%s21776_s5 + $0x738] sm:$0xff]  }
 0x866   :  { %14080 = vmatprep.subr.bf16.mxu1 %v16531_v9 }
 0x867   :  { %v5965_v50 = vmax.f32 %v19493_v42, %v21933_v49  ;;  %14422 = vmatpush3.bf16.msra.mxu0 %v16530_v5  ;;  %v6405_v49 = vmax.f32 %v19518_v63, 0.0  ;;  %v16539_v63 = vld [vmem:[%s21776_s5 + $0x700] sm:$0xff]  }
 0x868   :  { %v20311_v43 = vpop.permute.xlu0 %16065  ;;  %14423 = vmatprep.subr.bf16.mxu0 %v22137_v36 }
 0x869   :  { %v21934_v56 = vunpack.i.h.bf16 %v20311_v43  ;;  %14081 = vmatpush3.bf16.msra.mxu1 %v16532_v19  ;;  %v6465_v11 = vpack.c.bf16 %v6405_v49, %v6405_v49 }
 0x86a   :  { %14082 = vmatprep.subr.bf16.mxu1 %v16534_v28 }
 0x86b   :  { %v6273_v42 = vmax.f32 %v5965_v50, %v21934_v56  ;;  %14424 = vmatpush3.bf16.msra.mxu0 %v16533_v60  ;;  %v22199_v50 = vunpack.i.l.bf16 %v19857_v41  ;;  %v15997_v56 = vunpack.i.l.bf16 %v19938_v40  ;;  %v6407_v41 = vmax.f32 %v19597_v57, 0.0 }
 0x86c   :  { %v20333_v45 = vpop.permute.xlu0 %16070  ;;  %14425 = vmatprep.subr.bf16.mxu0 %v22137_v36 }
 0x86d   :  { %v6336_v9 = vmax.f32 %v20289_v39, %v6273_v42  ;;  %v20336_v5 = vmax.f32 %v6333_v21, %v6273_v42  ;;  %v21938_v19 = vunpack.i.h.bf16 %v20333_v45  ;;  %v5817_v28 = vsel %vm1971_vm2, %v19892_v35, %v22199_v50  ;;  %14083 = vmatpush3.bf16.msra.mxu1 %v16535_v58  ;;  %v16538_v39 = vld [vmem:[%s21776_s5 + $0x250] sm:$0xff]   ;;  %v16541_v35 = vld [vmem:[%s21776_s5 + $0x748] sm:$0xff]  }
 0x86e   :  { %14084 = vmatprep.subr.bf16.mxu1 %v16537_v0  ;;  %v22200_v21 = vunpack.i.h.bf16 %v19902_v62  ;;  %v22201_v58 = vunpack.i.l.bf16 %v19879_v7  ;;  %v22202_v0 = vld [vmem:[#allocation47_spill] sm:$0xff]  ;;  %v22203_v7 = vunpack.i.h.bf16 %v19938_v40  ;;  %v22205_v62 = vld [vmem:[#allocation50_spill] sm:$0xff] }
 0x86f   :  { %v5939_v50 = vmax.f32 %v22202_v0, %v5817_v28  ;;  %v5968_v57 = vmax.f32 %v19578_v23, %v21938_v19  ;;  %14426 = vmatpush3.bf16.msra.mxu0 %v7231_v59  ;;  %v16542_v23 = vld [vmem:[%s21776_s5 + $0x258] sm:$0xff]   ;;  %v16543_v59 = vld [vmem:[%s21776_s5 + $0x708] sm:$0xff]   ;;  %v6467_v19 = vpack.c.bf16 %v6407_v41, %v6407_v41  ;;  %v16575_v40 = vld [vmem:[%s21776_s5 + $0x800] sm:$0xff]  }
 0x870   :  { %v5820_v60 = vsel %vm1971_vm2, %v15992_v14, %v22200_v21  ;;  %v6125_v44 = vsel %vm2224_vm3, %v19922_v4, %v22201_v58  ;;  %v20366_v42 = vpop.permute.xlu0 %16075  ;;  %v16540_v21 = vld [vmem:[%s21776_s5 + $0x210] sm:$0xff]   ;;  %v6128_v4 = vsel %vm2224_vm3, %v15997_v56, %v22203_v7  ;;  %13873 = vmatprep.subr.bf16.mxu0 %v16538_v39  ;;  %v16544_v41 = vld [vmem:[%s21776_s5 + $0x218] sm:$0xff]  }
 0x871   :  { %v16078_v61 = vunpack.i.h.bf16 %v20366_v42  ;;  %14085 = vmatpush3.bf16.msra.mxu1 %v16539_v63  ;;  %v22204_v28 = vld [vmem:[#allocation48_spill] sm:$0xff]  ;;  %v20388_v0 = vmax.f32 %v5939_v50, %v6125_v44  ;;  %v6307_v63 = vmax.f32 %v19967_v31, %v20198_v48 }
 0x872   :  { %v5943_v58 = vmax.f32 %v22204_v28, %v5820_v60  ;;  %14086 = vmatprep.subr.bf16.mxu1 %v16541_v35  ;;  %v16545_v39 = vld [vmem:[%s21776_s5 + $0x750] sm:$0xff]   ;;  %14428 = vmatmul.mubr.msk.bf16.vlgmr.msra.gmra.mrb[60].mxu0 %vm6699_vm7, %v6465_v11  ;;  %v16546_v35 = vld [vmem:[%s21776_s5 + $0x260] sm:$0xff]   ;;  %v16550_v50 = vld [vmem:[%s21776_s5 + $0x268] sm:$0xff]  }
 0x873   :  { %v6276_v49 = vmax.f32 %v5968_v57, %v16078_v61  ;;  %13874 = vmatpush3.bf16.msra.mxu0 %v16540_v21  ;;  %7528 = vmatprep.mubr.bf16.mxu0 %v6467_v19  ;;  %v16547_v31 = vld [vmem:[%s21776_s5 + $0x710] sm:$0xff]   ;;  %v6367_v11 = vmax.f32 %v6307_v63, %v20388_v0  ;;  %v6311_v19 = vmax.f32 %v19977_v47, %v20213_v8  ;;  %v16548_v60 = vld [vmem:[%s21776_s5 + $0x220] sm:$0xff]   ;;  %v16551_v57 = vld [vmem:[%s21776_s5 + $0x718] sm:$0xff]  }
 0x874   :  { %v20398_v7 = vmax.f32 %v5943_v58, %v6128_v4  ;;  %13875 = vmatprep.subr.bf16.mxu0 %v16542_v23  ;;  %v16553_v47 = vld [vmem:[%s21776_s5 + $0x7d0] sm:$0xff]   ;;  %v16552_v4 = vld [vmem:[%s21776_s5 + $0x228] sm:$0xff]  }
 0x875   :  { %v20400_v18 = vmax.f32 %v6336_v9, %v6276_v49  ;;  %14087 = vmatpush3.bf16.msra.mxu1 %v16543_v59  ;;  %v16549_v9 = vld [vmem:[%s21776_s5 + $0x758] sm:$0xff]   ;;  %v6427_v21 = vmax.f32 %v6367_v11, 0.0  ;;  %v16554_v59 = vld [vmem:[%s21776_s5 + $0x270] sm:$0xff]  }
 0x876   :  { %14088 = vmatprep.subr.bf16.mxu1 %v16545_v39  ;;  %v6371_v44 = vmax.f32 %v6311_v19, %v20398_v7  ;;  %v16555_v28 = vld [vmem:[%s21776_s5 + $0x790] sm:$0xff]   ;;  %v16557_v49 = vld [vmem:[%s21776_s5 + $0x7d8] sm:$0xff]   ;;  %v16563_v19 = vld [vmem:[%s21776_s5 + $0x7a0] sm:$0xff]  }
 0x877   :  { %13876 = vmatpush3.bf16.msra.mxu0 %v16544_v41  ;;  %v6487_v58 = vpack.c.bf16 %v6427_v21, %v6427_v21  ;;  %v16556_v63 = vld [vmem:[%s21776_s5 + $0x230] sm:$0xff]   ;;  %v16558_v41 = vld [vmem:[%s21776_s5 + $0x278] sm:$0xff]  }
 0x878   :  { %13877 = vmatprep.subr.bf16.mxu0 %v16546_v35  ;;  %v6431_v23 = vmax.f32 %v6371_v44, 0.0  ;;  %v16559_v35 = vld [vmem:[%s21776_s5 + $0x798] sm:$0xff]   ;;  %v16564_v44 = vld [vmem:[%s21776_s5 + $0x240] sm:$0xff]   ;;  %v16569_v21 = vld [vmem:[%s21776_s5 + $0x7f0] sm:$0xff]  }
 0x879   :  { %14089 = vmatpush3.bf16.msra.mxu1 %v16547_v31  ;;  %v16561_v31 = vld [vmem:[%s21776_s5 + $0x7e0] sm:$0xff]   ;;  %v16560_v11 = vld [vmem:[%s21776_s5 + $0x238] sm:$0xff]  }
 0x87a   :  { %14090 = vmatprep.subr.bf16.mxu1 %v16549_v9  ;;  %v6491_v39 = vpack.c.bf16 %v6431_v23, %v6431_v23  ;;  %v16562_v9 = vld [vmem:[%s21776_s5 + $0x280] sm:$0xff]   ;;  %v5819_v23 = vsel %vm1971_vm2, %v19958_v29, %v15992_v14  ;;  %v16571_v29 = vld [vmem:[%s21776_s5 + $0x290] sm:$0xff]  }
 0x87b   :  { %13878 = vmatpush3.bf16.msra.mxu0 %v16548_v60  ;;  %v16565_v60 = vld [vmem:[%s21776_s5 + $0x7e8] sm:$0xff]  }
 0x87c   :  { %13879 = vmatprep.subr.bf16.mxu0 %v16550_v50  ;;  %v16566_v50 = vld [vmem:[%s21776_s5 + $0x288] sm:$0xff]  }
 0x87d   :  { %14091 = vmatpush3.bf16.msra.mxu1 %v16551_v57  ;;  %v16567_v57 = vld [vmem:[%s21776_s5 + $0x7a8] sm:$0xff]  }
 0x87e   :  { %14105 = vmatprep.subr.bf16.mxu1 %v16553_v47  ;;  %v16568_v47 = vld [vmem:[%s21776_s5 + $0x248] sm:$0xff]  }
 0x87f   :  { %13880 = vmatpush3.bf16.msra.mxu0 %v16552_v4  ;;  %v6406_v4 = vmax.f32 %v19623_v15, 0.0  ;;  %v6127_v15 = vsel %vm2224_vm3, %v19990_v32, %v15997_v56  ;;  %v6310_v32 = vmax.f32 %v20198_v48, %v20388_v0  ;;  %v16574_v56 = vld [vmem:[%s21776_s5 + $0x298] sm:$0xff]   ;;  %v16578_v48 = vld [vmem:[%s21776_s5 + $0x808] sm:$0xff]  }
 0x880   :  { %9370 = vmatmul.mubr.bf16.vlgmr.msra.gmra.mrb[100].mxu1 %v6487_v58  ;;  %13881 = vmatprep.subr.bf16.mxu0 %v16554_v59  ;;  %v16570_v59 = vld [vmem:[%s21776_s5 + $0x7b0] sm:$0xff]   ;;  %v5942_v58 = vmax.f32 %v22205_v62, %v5819_v23  ;;  %v16585_v23 = vld [vmem:[%s21776_s5 + $0x848] sm:$0xff]  }
 0x881   :  { %14106 = vmatpush3.bf16.msra.mxu1 %v16555_v28  ;;  %9632 = vmatprep.mubr.bf16.mxu1 %v6491_v39  ;;  %v16572_v28 = vld [vmem:[%s21776_s5 + $0x7f8] sm:$0xff]   ;;  %v6466_v14 = vpack.c.bf16 %v6406_v4, %v6406_v4  ;;  %v16583_v4 = vld [vmem:[%s21776_s5 + $0x2b0] sm:$0xff]  }
 0x882   :  { %14107 = vmatprep.subr.bf16.mxu1 %v16557_v49  ;;  %v16573_v49 = vld [vmem:[%s21776_s5 + $0x7b8] sm:$0xff]   ;;  %v20504_v39 = vmax.f32 %v5942_v58, %v6127_v15  ;;  %v6408_v15 = vmax.f32 %v19588_v6, 0.0  ;;  %v16588_v58 = vld [vmem:[%s21776_s5 + $0x300] sm:$0xff]  }
 0x883   :  { %13882 = vmatpush3.bf16.msra.mxu0 %v16556_v63  ;;  %v16576_v63 = vld [vmem:[%s21776_s5 + $0x7c0] sm:$0xff]   ;;  %v16591_v6 = vld [vmem:[%s21776_s5 + $0x898] sm:$0xff]  }
 0x884   :  { %13883 = vmatprep.subr.bf16.mxu0 %v16558_v41  ;;  %v6370_v41 = vmax.f32 %v6310_v32, %v20504_v39  ;;  %v16592_v32 = vld [vmem:[%s21776_s5 + $0x308] sm:$0xff]  }
 0x885   :  { %14108 = vmatpush3.bf16.msra.mxu1 %v16559_v35  ;;  %v6314_v35 = vmax.f32 %v20213_v8, %v20398_v7  ;;  %v16581_v8 = vld [vmem:[%s21776_s5 + $0x880] sm:$0xff]  }
 0x886   :  { %14109 = vmatprep.subr.bf16.mxu1 %v16561_v31  ;;  %v16577_v31 = vld [vmem:[%s21776_s5 + $0x2a0] sm:$0xff]  }
 0x887   :  { %13884 = vmatpush3.bf16.msra.mxu0 %v16560_v11  ;;  %v6374_v11 = vmax.f32 %v6314_v35, %v20183_v52  ;;  %v16597_v35 = vld [vmem:[%s21776_s5 + $0x860] sm:$0xff]  }
 0x888   :  { %13885 = vmatprep.subr.bf16.mxu0 %v16562_v9  ;;  %v16579_v9 = vld [vmem:[%s21776_s5 + $0x7c8] sm:$0xff]  }
 0x889   :  { %14110 = vmatpush3.bf16.msra.mxu1 %v16563_v19  ;;  %v6430_v19 = vmax.f32 %v6370_v41, 0.0  ;;  %v16594_v41 = vld [vmem:[%s21776_s5 + $0x2c8] sm:$0xff]  }
 0x88a   :  { %14111 = vmatprep.subr.bf16.mxu1 %v16565_v60  ;;  %v16580_v60 = vld [vmem:[%s21776_s5 + $0x2a8] sm:$0xff]  }
 0x88b   :  { %13886 = vmatpush3.bf16.msra.mxu0 %v16564_v44  ;;  %v6434_v44 = vmax.f32 %v6374_v11, 0.0  ;;  %v16598_v11 = vld [vmem:[%s21776_s5 + $0x2d0] sm:$0xff]  }
 0x88c   :  { %13887 = vmatprep.subr.bf16.mxu0 %v16566_v50  ;;  %v16582_v50 = vld [vmem:[%s21776_s5 + $0x840] sm:$0xff]  }
 0x88d   :  { %14112 = vmatpush3.bf16.msra.mxu1 %v16567_v57  ;;  %v6490_v57 = vpack.c.bf16 %v6430_v19, %v6430_v19  ;;  %v16601_v19 = vld [vmem:[%s21776_s5 + $0x868] sm:$0xff]  }
 0x88e   :  { %14113 = vmatprep.subr.bf16.mxu1 %v16569_v21  ;;  %v16584_v21 = vld [vmem:[%s21776_s5 + $0x888] sm:$0xff]  }
 0x88f   :  { %13888 = vmatpush3.bf16.msra.mxu0 %v16568_v47  ;;  %v6494_v47 = vpack.c.bf16 %v6434_v44, %v6434_v44  ;;  %v16602_v44 = vld [vmem:[%s21776_s5 + $0x2d8] sm:$0xff]  }
 0x890   :  { %14431 = vmatprep.subr.bf16.mxu0 %v22137_v36 }
 0x891   :  { %14114 = vmatpush3.bf16.msra.mxu1 %v16570_v59  ;;  %v16586_v59 = vld [vmem:[%s21776_s5 + $0x2b8] sm:$0x7f]  }
 0x892   :  { %14115 = vmatprep.subr.bf16.mxu1 %v16572_v28  ;;  %7529 = vmatmul.mubr.bf16.vlgmr.msra.gmra.mrb[72].mxu0 %v6466_v14  ;;  %v16587_v28 = vld [vmem:[%s21776_s5 + $0x890] sm:$0xff]   ;;  %v7494_v62 = vsel %vm6703_vm6, %v16586_v59, 0  ;;  %v6410_v14 = vmax.f32 %v19653_v3, 0.0  ;;  %v16593_v3 = vld [vmem:[%s21776_s5 + $0x858] sm:$0xff]   ;;  %v16608_v59 = vld [vmem:[%s21776_s5 + $0x328] sm:$0xff]  }
 0x893   :  { %14432 = vmatpush3.bf16.msra.mxu0 %v16571_v29  ;;  %14443 = vmatprep.mubr.msk.bf16.mxu0 %vm16917_vm5, %v22137_v36  ;;  %v16589_v29 = vld [vmem:[%s21776_s5 + $0x850] sm:$0xff]  }
 0x894   :  { %14433 = vmatprep.subr.bf16.mxu0 %v22137_v36 }
 0x895   :  { %14116 = vmatpush3.bf16.msra.mxu1 %v16573_v49  ;;  %v16590_v49 = vld [vmem:[%s21776_s5 + $0x2c0] sm:$0xff]  }
 0x896   :  { %14117 = vmatprep.subr.bf16.mxu1 %v16575_v40  ;;  %v6468_v40 = vpack.c.bf16 %v6408_v15, %v6408_v15 }
 0x897   :  { %14434 = vmatpush3.bf16.msra.mxu0 %v16574_v56  ;;  %v6470_v56 = vpack.c.bf16 %v6410_v14, %v6410_v14 }
 0x898   :  { %14435 = vmatprep.subr.bf16.mxu0 %v22137_v36 }
 0x899   :  { %14118 = vmatpush3.bf16.msra.mxu1 %v16576_v63  ;;  %v16595_v63 = vld [vmem:[%s21776_s5 + $0x8a0] sm:$0xff]  }
 0x89a   :  { %14119 = vmatprep.subr.bf16.mxu1 %v16578_v48  ;;  %v16596_v48 = vld [vmem:[%s21776_s5 + $0x310] sm:$0xff]  }
 0x89b   :  { %14436 = vmatpush3.bf16.msra.mxu0 %v16577_v31  ;;  %v16599_v31 = vld [vmem:[%s21776_s5 + $0x8a8] sm:$0xff]  }
 0x89c   :  { %14437 = vmatprep.subr.bf16.mxu0 %v22137_v36 }
 0x89d   :  { %14120 = vmatpush3.bf16.msra.mxu1 %v16579_v9  ;;  %v16600_v9 = vld [vmem:[%s21776_s5 + $0x318] sm:$0xff]  }
 0x89e   :  { %14134 = vmatprep.subr.bf16.mxu1 %v16581_v8  ;;  %v16603_v8 = vld [vmem:[%s21776_s5 + $0x8b0] sm:$0xff]  }
 0x89f   :  { %14438 = vmatpush3.bf16.msra.mxu0 %v16580_v60  ;;  %v6313_v60 = vmax.f32 %v20388_v0, %v20504_v39  ;;  %v16607_v0 = vld [vmem:[%s21776_s5 + $0x8b8] sm:$0xff]  }
 0x8a0   :  { %9633 = vmatmul.mubr.bf16.vlgmr.msra.gmra.mrb[104].mxu1 %v6490_v57  ;;  %14439 = vmatprep.subr.bf16.mxu0 %v22137_v36  ;;  %v16605_v57 = vld [vmem:[%s21776_s5 + $0x870] sm:$0xff]  }
 0x8a1   :  { %14135 = vmatpush3.bf16.msra.mxu1 %v16582_v50  ;;  %9895 = vmatprep.mubr.bf16.mxu1 %v6494_v47  ;;  %v16604_v50 = vld [vmem:[%s21776_s5 + $0x320] sm:$0xff]   ;;  %v6317_v47 = vmax.f32 %v20398_v7, %v20183_v52  ;;  %v16611_v52 = vld [vmem:[%s21776_s5 + $0x930] sm:$0xff]   ;;  %v16610_v7 = vld [vmem:[%s21776_s5 + $0x2e8] sm:$0xff]  }
 0x8a2   :  { %14136 = vmatprep.subr.bf16.mxu1 %v16584_v21  ;;  %v6373_v21 = vmax.f32 %v6313_v60, %v20123_v17  ;;  %v16621_v60 = vld [vmem:[%s21776_s5 + $0x340] sm:$0xff]  }
 0x8a3   :  { %14440 = vmatpush3.bf16.msra.mxu0 %v16583_v4  ;;  %v16606_v4 = vld [vmem:[%s21776_s5 + $0x2e0] sm:$0xff]  }
 0x8a4   :  { %14441 = vmatprep.subr.bf16.mxu0 %v22137_v36  ;;  %v6433_v15 = vmax.f32 %v6373_v21, 0.0  ;;  %v16624_v21 = vld [vmem:[%s21776_s5 + $0x348] sm:$0xff]  }
 0x8a5   :  { %14137 = vmatpush3.bf16.msra.mxu1 %v16585_v23  ;;  %v6377_v23 = vmax.f32 %v6317_v47, %v20163_v46  ;;  %v16626_v47 = vld [vmem:[%s21776_s5 + $0x910] sm:$0xff]  }
 0x8a6   :  { %14138 = vmatprep.subr.bf16.mxu1 %v16587_v28  ;;  %v16609_v28 = vld [vmem:[%s21776_s5 + $0x878] sm:$0xff]  }
 0x8a7   :  { %14442 = vmatpush3.bf16.msra.mxu0 %v7494_v62  ;;  %v6437_v62 = vmax.f32 %v6377_v23, 0.0 }
 0x8a8   :  { %13902 = vmatprep.subr.bf16.mxu0 %v16588_v58  ;;  %v16612_v58 = vld [vmem:[%s21776_s5 + $0x330] sm:$0xff]  }
 0x8a9   :  { %14139 = vmatpush3.bf16.msra.mxu1 %v16589_v29  ;;  %v16613_v29 = vld [vmem:[%s21776_s5 + $0x8f0] sm:$0xff]  }
 0x8aa   :  { %14140 = vmatprep.subr.bf16.mxu1 %v16591_v6  ;;  %14444 = vmatmul.mubr.msk.bf16.vlgmr.msra.gmra.mrb[60].mxu0 %vm6699_vm7, %v6468_v40  ;;  %v6493_v6 = vpack.c.bf16 %v6433_v15, %v6433_v15  ;;  %v16629_v15 = vld [vmem:[%s21776_s5 + $0x918] sm:$0xff]  }
 0x8ab   :  { %13903 = vmatpush3.bf16.msra.mxu0 %v16590_v49  ;;  %7791 = vmatprep.mubr.bf16.mxu0 %v6470_v56  ;;  %v16615_v49 = vld [vmem:[%s21776_s5 + $0x938] sm:$0xff]   ;;  %v6497_v56 = vpack.c.bf16 %v6437_v62, %v6437_v62  ;;  %v6316_v62 = vmax.f32 %v20504_v39, %v20123_v17  ;;  %v6323_v39 = vmax.f32 %v20163_v46, %v20185_v12 }
 0x8ac   :  { %13904 = vmatprep.subr.bf16.mxu0 %v16592_v32 }
 0x8ad   :  { %14141 = vmatpush3.bf16.msra.mxu1 %v16593_v3  ;;  %v6376_v17 = vmax.f32 %v6316_v62, %v20113_v13 }
 0x8ae   :  { %14142 = vmatprep.subr.bf16.mxu1 %v16595_v63  ;;  %v16614_v63 = vld [vmem:[%s21776_s5 + $0x2f0] sm:$0xff]  }
 0x8af   :  { %13905 = vmatpush3.bf16.msra.mxu0 %v16594_v41  ;;  %v6436_v46 = vmax.f32 %v6376_v17, 0.0  ;;  %v16654_v17 = vld [vmem:[%s21776_s5 + $0x3d0] sm:$0xff]  }
 0x8b0   :  { %13906 = vmatprep.subr.bf16.mxu0 %v16596_v48  ;;  %v16616_v48 = vld [vmem:[%s21776_s5 + $0x338] sm:$0xff]  }
 0x8b1   :  { %14143 = vmatpush3.bf16.msra.mxu1 %v16597_v35  ;;  %v16617_v35 = vld [vmem:[%s21776_s5 + $0x8f8] sm:$0xff]  }
 0x8b2   :  { %14144 = vmatprep.subr.bf16.mxu1 %v16599_v31  ;;  %v16619_v31 = vld [vmem:[%s21776_s5 + $0x940] sm:$0xff]  }
 0x8b3   :  { %13907 = vmatpush3.bf16.msra.mxu0 %v16598_v11  ;;  %v16618_v11 = vld [vmem:[%s21776_s5 + $0x2f8] sm:$0xff]  }
 0x8b4   :  { %13908 = vmatprep.subr.bf16.mxu0 %v16600_v9  ;;  %v6409_v9 = vmax.f32 %v19671_v37, 0.0  ;;  %v16623_v37 = vld [vmem:[%s21776_s5 + $0x908] sm:$0xff]  }
 0x8b5   :  { %14145 = vmatpush3.bf16.msra.mxu1 %v16601_v19  ;;  %v16620_v19 = vld [vmem:[%s21776_s5 + $0x900] sm:$0xff]  }
 0x8b6   :  { %14146 = vmatprep.subr.bf16.mxu1 %v16603_v8  ;;  %v16622_v8 = vld [vmem:[%s21776_s5 + $0x948] sm:$0xff]  }
 0x8b7   :  { %13909 = vmatpush3.bf16.msra.mxu0 %v16602_v44  ;;  %v6469_v44 = vpack.c.bf16 %v6409_v9, %v6409_v9  ;;  %v6413_v9 = vmax.f32 %v19698_v55, 0.0  ;;  %v16643_v55 = vld [vmem:[%s21776_s5 + $0xa58] sm:$0xff]  }
 0x8b8   :  { %13910 = vmatprep.subr.bf16.mxu0 %v16604_v50  ;;  %v16625_v50 = vld [vmem:[%s21776_s5 + $0x950] sm:$0xff]  }
 0x8b9   :  { %14147 = vmatpush3.bf16.msra.mxu1 %v16605_v57  ;;  %v16032_v57 = vunpack.i.l.bf16 %v20127_v24  ;;  %v22207_v24 = vunpack.i.h.bf16 %v20209_v1 }
 0x8ba   :  { %14148 = vmatprep.subr.bf16.mxu1 %v16607_v0  ;;  %v16037_v0 = vunpack.i.l.bf16 %v20167_v20  ;;  %v16658_v20 = vld [vmem:[%s21776_s5 + $0x3d8] sm:$0xff]  }
 0x8bb   :  { %13911 = vmatpush3.bf16.msra.mxu0 %v16606_v4  ;;  %v16628_v4 = vld [vmem:[%s21776_s5 + $0x958] sm:$0xff]   ;;  %v5828_v23 = vsel %vm1971_vm2, %v16032_v57, %v16033_v34 }
 0x8bc   :  { %13912 = vmatprep.subr.bf16.mxu0 %v16608_v59  ;;  %v13802_v14 = vpop.f32.mrb[56].mxu0  ;;  %v16627_v59 = vld [vmem:[%s21776_s5 + $0x350] sm:$0xff]  }
 0x8bd   :  { %14149 = vmatpush3.bf16.msra.mxu1 %v16609_v28  ;;  %v13803_v40 = vpop.f32.mrb[57].mxu0  ;;  %v6136_v28 = vsel %vm2224_vm3, %v16037_v0, %v16038_v2  ;;  %v16630_v2 = vld [vmem:[%s21776_s5 + $0x358] sm:$0xff]  }
 0x8be   :  { %14163 = vmatprep.subr.bf16.mxu1 %v16611_v52  ;;  %v20652_v32 = vadd.f32 %v13803_v40, %v13802_v14  ;;  %v13805_v3 = vpop.f32.mrb[58].mxu0  ;;  %v22206_v52 = vld [vmem:[#allocation27_spill] sm:$0xff] }
 0x8bf   :  { %13913 = vmatpush3.bf16.msra.mxu0 %v16610_v7  ;;  %v13806_v41 = vpop.f32.mrb[59].mxu0  ;;  %v5955_v34 = vmax.f32 %v22206_v52, %v5828_v23  ;;  %v16631_v7 = vld [vmem:[%s21776_s5 + $0x960] sm:$0xff]   ;;  %v16634_v14 = vld [vmem:[%s21776_s5 + $0x968] sm:$0xff]   ;;  %v5764_v23 = vpop.permute.xlu1 %5763 }
 0x8c0   :  { %9896 = vmatmul.mubr.bf16.vlgmr.msra.gmra.mrb[108].mxu1 %v6493_v6  ;;  %13914 = vmatprep.subr.bf16.mxu0 %v16612_v58  ;;  %v16633_v6 = vld [vmem:[%s21776_s5 + $0x360] sm:$0xff]   ;;  %v16635_v40 = vld [vmem:[%s21776_s5 + $0x928] sm:$0xff]   ;;  %v6411_v41 = vmax.f32 %v19644_v16, 0.0  ;;  %v16641_v16 = vld [vmem:[%s21776_s5 + $0xa98] sm:$0xff]  }
 0x8c1   :  { %14164 = vmatpush3.bf16.msra.mxu1 %v16613_v29  ;;  %10158 = vmatprep.mubr.bf16.mxu1 %v6497_v56  ;;  %v20723_v58 = vmax.f32 %v5955_v34, %v6136_v28  ;;  %v16632_v29 = vld [vmem:[%s21776_s5 + $0x920] sm:$0xff]   ;;  %v16636_v3 = vld [vmem:[%s21776_s5 + $0x368] sm:$0x7f]   ;;  %v16637_v56 = vld [vmem:[%s21776_s5 + $0xa90] sm:$0xff]  }
 0x8c2   :  { %14165 = vmatprep.subr.bf16.mxu1 %v16615_v49  ;;  %v16648_v28 = vld [vmem:[%s21776_s5 + $0x380] sm:$0xff]   ;;  %v16651_v52 = vld [vmem:[%s21776_s5 + $0xa68] sm:$0xff]   ;;  %v16653_v34 = vld [vmem:[%s21776_s5 + $0xab0] sm:$0xff]  }
 0x8c3   :  { %13915 = vmatpush3.bf16.msra.mxu0 %v16614_v63  ;;  %v6383_v49 = vmax.f32 %v6323_v39, %v20723_v58  ;;  %v6072_v62 = vpop.permute.xlu1 %6071  ;;  %v16655_v39 = vld [vmem:[%s21776_s5 + $0xa70] sm:$0xff]  }
 0x8c4   :  { %13916 = vmatprep.subr.bf16.mxu0 %v16616_v48  ;;  %v7757_v48 = vsel %vm6703_vm6, %v16636_v3, 0 }
 0x8c5   :  { %14166 = vmatpush3.bf16.msra.mxu1 %v16617_v35  ;;  %v6443_v63 = vmax.f32 %v6383_v49, 0.0  ;;  %v16638_v35 = vld [vmem:[%s21776_s5 + $0x3b0] sm:$0xff]   ;;  %v6135_v49 = vsel %vm2224_vm3, %v6072_v62, %v16037_v0  ;;  %v16659_v0 = vld [vmem:[%s21776_s5 + $0xa78] sm:$0xff]  }
 0x8c6   :  { %14167 = vmatprep.subr.bf16.mxu1 %v16619_v31  ;;  %v16639_v31 = vld [vmem:[%s21776_s5 + $0xa50] sm:$0xff]  }
 0x8c7   :  { %13917 = vmatpush3.bf16.msra.mxu0 %v16618_v11  ;;  %v6496_v11 = vpack.c.bf16 %v6436_v46, %v6436_v46  ;;  %v16656_v46 = vld [vmem:[%s21776_s5 + $0x390] sm:$0xff]  }
 0x8c8   :  { %14447 = vmatprep.subr.bf16.mxu0 %v22137_v36 }
 0x8c9   :  { %14168 = vmatpush3.bf16.msra.mxu1 %v16620_v19  ;;  %v6503_v19 = vpack.c.bf16 %v6443_v63, %v6443_v63 }
 0x8ca   :  { %14169 = vmatprep.subr.bf16.mxu1 %v16622_v8  ;;  %7792 = vmatmul.mubr.bf16.vlgmr.msra.gmra.mrb[76].mxu0 %v6469_v44  ;;  %v16640_v8 = vld [vmem:[%s21776_s5 + $0x370] sm:$0xff]   ;;  %v16642_v44 = vld [vmem:[%s21776_s5 + $0x3b8] sm:$0xff]  }
 0x8cb   :  { %14448 = vmatpush3.bf16.msra.mxu0 %v16621_v60  ;;  %14459 = vmatprep.mubr.msk.bf16.mxu0 %vm16917_vm5, %v22137_v36  ;;  %v6471_v60 = vpack.c.bf16 %v6411_v41, %v6411_v41  ;;  %v22210_v41 = vld [vmem:[#allocation30_spill] sm:$0xff] }
 0x8cc   :  { %14449 = vmatprep.subr.bf16.mxu0 %v22137_v36 }
 0x8cd   :  { %14170 = vmatpush3.bf16.msra.mxu1 %v16623_v37  ;;  %v6473_v37 = vpack.c.bf16 %v6413_v9, %v6413_v9 }
 0x8ce   :  { %14171 = vmatprep.subr.bf16.mxu1 %v16625_v50  ;;  %v16645_v50 = vld [vmem:[%s21776_s5 + $0xaa0] sm:$0xff]  }
 0x8cf   :  { %14450 = vmatpush3.bf16.msra.mxu0 %v16624_v21  ;;  %v16644_v21 = vld [vmem:[%s21776_s5 + $0x378] sm:$0xff]  }
 0x8d0   :  { %14451 = vmatprep.subr.bf16.mxu0 %v22137_v36 }
 0x8d1   :  { %14172 = vmatpush3.bf16.msra.mxu1 %v16626_v47  ;;  %v16646_v47 = vld [vmem:[%s21776_s5 + $0x3c0] sm:$0xff]  }
 0x8d2   :  { %14173 = vmatprep.subr.bf16.mxu1 %v16628_v4  ;;  %v16647_v4 = vld [vmem:[%s21776_s5 + $0xa60] sm:$0xff]  }
 0x8d3   :  { %14452 = vmatpush3.bf16.msra.mxu0 %v16627_v59  ;;  %v16649_v59 = vld [vmem:[%s21776_s5 + $0xaa8] sm:$0xff]  }
 0x8d4   :  { %14453 = vmatprep.subr.bf16.mxu0 %v22137_v36 }
 0x8d5   :  { %14174 = vmatpush3.bf16.msra.mxu1 %v16629_v15  ;;  %v16650_v15 = vld [vmem:[%s21776_s5 + $0x3c8] sm:$0xff]  }
 0x8d6   :  { %14175 = vmatprep.subr.bf16.mxu1 %v16631_v7  ;;  %v16042_v7 = vunpack.i.l.bf16 %v20209_v1 }
 0x8d7   :  { %14454 = vmatpush3.bf16.msra.mxu0 %v16630_v2  ;;  %v16652_v2 = vld [vmem:[%s21776_s5 + $0x388] sm:$0xff]  }
 0x8d8   :  { %14455 = vmatprep.subr.bf16.mxu0 %v22137_v36 }
 0x8d9   :  { %14176 = vmatpush3.bf16.msra.mxu1 %v16632_v29  ;;  %v5827_v29 = vsel %vm1971_vm2, %v5764_v23, %v16032_v57  ;;  %v5830_v57 = vsel %vm1971_vm2, %v16042_v7, %v22207_v24  ;;  %v6326_v23 = vmax.f32 %v20185_v12, %v20723_v58  ;;  %v16667_v12 = vld [vmem:[%s21776_s5 + $0xa88] sm:$0xff]  }
 0x8da   :  { %14177 = vmatprep.subr.bf16.mxu1 %v16634_v14  ;;  %v16047_v14 = vunpack.i.l.bf16 %v20237_v22 }
 0x8db   :  { %14456 = vmatpush3.bf16.msra.mxu0 %v16633_v6  ;;  %v16657_v6 = vld [vmem:[%s21776_s5 + $0xab8] sm:$0xff]  }
 0x8dc   :  { %14457 = vmatprep.subr.bf16.mxu0 %v22137_v36 }
 0x8dd   :  { %14178 = vmatpush3.bf16.msra.mxu1 %v16635_v40  ;;  %v22208_v40 = vld [vmem:[#allocation25_spill] sm:$0xff] }
 0x8de   :  { %14221 = vmatprep.subr.bf16.mxu1 %v16637_v56  ;;  %v5954_v3 = vmax.f32 %v22208_v40, %v5827_v29  ;;  %v22209_v56 = vunpack.i.h.bf16 %v20237_v22  ;;  %v16666_v29 = vld [vmem:[%s21776_s5 + $0x3e8] sm:$0xff]   ;;  %v16670_v40 = vld [vmem:[%s21776_s5 + $0xb00] sm:$0xff]  }
 0x8df   :  { %14458 = vmatpush3.bf16.msra.mxu0 %v7757_v48  ;;  %v5958_v48 = vmax.f32 %v22210_v41, %v5830_v57  ;;  %v22211_v57 = vld [vmem:[#allocation42_spill] sm:$0xff]  ;;  %v16675_v41 = vld [vmem:[%s21776_s5 + $0xb50] sm:$0xff]   ;;  %v16685_v22 = vld [vmem:[%s21776_s5 + $0xb28] sm:$0xff]  }
 0x8e0   :  { %10159 = vmatmul.mubr.bf16.vlgmr.msra.gmra.mrb[112].mxu1 %v6496_v11  ;;  %13931 = vmatprep.subr.bf16.mxu0 %v16638_v35  ;;  %v6138_v63 = vsel %vm2224_vm3, %v16047_v14, %v22209_v56  ;;  %v20843_v35 = vmax.f32 %v5954_v3, %v6135_v49  ;;  %v16661_v11 = vld [vmem:[%s21776_s5 + $0xac0] sm:$0xff]   ;;  %v6412_v49 = vmax.f32 %v22211_v57, 0.0 }
 0x8e1   :  { %14222 = vmatpush3.bf16.msra.mxu1 %v16639_v31  ;;  %10684 = vmatprep.mubr.bf16.mxu1 %v6503_v19  ;;  %v20850_v19 = vmax.f32 %v5958_v48, %v6138_v63  ;;  %v16671_v63 = vld [vmem:[%s21776_s5 + $0x3f0] sm:$0xff]   ;;  %v16674_v48 = vld [vmem:[%s21776_s5 + $0x3f8] sm:$0xff]  }
 0x8e2   :  { %14223 = vmatprep.subr.bf16.mxu1 %v16641_v16  ;;  %14460 = vmatmul.mubr.msk.bf16.vlgmr.msra.gmra.mrb[60].mxu0 %vm6699_vm7, %v6471_v60  ;;  %v6322_v16 = vmax.f32 %v20113_v13, %v20165_v51  ;;  %v16660_v60 = vld [vmem:[%s21776_s5 + $0x398] sm:$0xff]   ;;  %v16662_v13 = vld [vmem:[%s21776_s5 + $0x3e0] sm:$0xff]  }
 0x8e3   :  { %13932 = vmatpush3.bf16.msra.mxu0 %v16640_v8  ;;  %8054 = vmatprep.mubr.bf16.mxu0 %v6473_v37  ;;  %v6386_v62 = vmax.f32 %v6326_v23, %v20850_v19  ;;  %v22212_v23 = vunpack.i.h.bf16 %v20256_v30  ;;  %v22216_v57 = vld [vmem:[#allocation38_spill] sm:$0xff] }
 0x8e4   :  { %13933 = vmatprep.subr.bf16.mxu0 %v16642_v44 }
 0x8e5   :  { %14224 = vmatpush3.bf16.msra.mxu1 %v16643_v55  ;;  %v12438_v55 = vld [vmem:[%s21777_s6] ss:$0 sm:$0xff]  ;;  %v6446_v24 = vmax.f32 %v6386_v62, 0.0  ;;  %v22215_v62 = vld [vmem:[#allocation35_spill] sm:$0xff] }
 0x8e6   :  { %14225 = vmatprep.subr.bf16.mxu1 %v16645_v50  ;;  %v16663_v50 = vld [vmem:[%s21776_s5 + $0xa80] sm:$0xff]  }
 0x8e7   :  { %13934 = vmatpush3.bf16.msra.mxu0 %v16644_v21  ;;  %v6382_v21 = vmax.f32 %v6322_v16, %v20843_v35  ;;  %v6506_v56 = vpack.c.bf16 %v6446_v24, %v6446_v24  ;;  %v16677_v16 = vld [vmem:[%s21776_s5 + $0x400] sm:$0xff]  }
 0x8e8   :  { %13935 = vmatprep.subr.bf16.mxu0 %v16646_v47 }
 0x8e9   :  { %14226 = vmatpush3.bf16.msra.mxu1 %v16647_v4  ;;  %v16665_v4 = vld [vmem:[%s21776_s5 + $0xac8] sm:$0xff]  }
 0x8ea   :  { %14227 = vmatprep.subr.bf16.mxu1 %v16649_v59 }
 0x8eb   :  { %13936 = vmatpush3.bf16.msra.mxu0 %v16648_v28  ;;  %v14884_v28 = vadd.f32 %v20652_v32, %v12438_v55  ;;  %v6442_v32 = vmax.f32 %v6382_v21, 0.0  ;;  %v16052_v55 = vunpack.i.l.bf16 %v20256_v30  ;;  %v16057_v21 = vunpack.i.l.bf16 %v20274_v26  ;;  %v16715_v30 = vld [vmem:[%s21776_s5 + $0xc18] sm:$0xff]  }
 0x8ec   :  { %13937 = vmatprep.subr.bf16.mxu0 %v16650_v15 }
 0x8ed   :  { %14228 = vmatpush3.bf16.msra.mxu1 %v16651_v52  ;;  %v6502_v3 = vpack.c.bf16 %v6442_v32, %v6442_v32  ;;  %v5832_v1 = vsel %vm1971_vm2, %v16052_v55, %v22212_v23  ;;  %v16697_v23 = vld [vmem:[%s21776_s5 + $0xbb0] sm:$0xff]  }
 0x8ee   :  { %14229 = vmatprep.subr.bf16.mxu1 %v16653_v34  ;;  %v16664_v34 = vld [vmem:[%s21776_s5 + $0x3a0] sm:$0xff]  }
 0x8ef   :  { %13938 = vmatpush3.bf16.msra.mxu0 %v16652_v2 }
 0x8f0   :  { %13939 = vmatprep.subr.bf16.mxu0 %v16654_v17 }
 0x8f1   :  { %14230 = vmatpush3.bf16.msra.mxu1 %v16655_v39  ;;  %v16669_v39 = vld [vmem:[%s21776_s5 + $0xb40] sm:$0xff]  }
 0x8f2   :  { %14231 = vmatprep.subr.bf16.mxu1 %v16657_v6  ;;  %v16668_v6 = vld [vmem:[%s21776_s5 + $0x3a8] sm:$0xff]  }
 0x8f3   :  { %v14005_v31 = vpop.f32.mrb[88].mxu1  ;;  %13940 = vmatpush3.bf16.msra.mxu0 %v16656_v46  ;;  %v16672_v46 = vld [vmem:[%s21776_s5 + $0xb48] sm:$0xff]  }
 0x8f4   :  { %v14006_v9 = vpop.f32.mrb[89].mxu1  ;;  %13941 = vmatprep.subr.bf16.mxu0 %v16658_v20  ;;  %v13831_v47 = vpop.f32.mrb[64].mxu0  ;;  %v6472_v20 = vpack.c.bf16 %v6412_v49, %v6412_v49  ;;  %v6414_v49 = vmax.f32 %v22216_v57, 0.0  ;;  %v16711_v57 = vld [vmem:[%s21776_s5 + $0xc10] sm:$0xff]  }
 0x8f5   :  { %v20852_v8 = vadd.f32 %v14006_v9, %v14005_v31  ;;  %v14008_v44 = vpop.f32.mrb[90].mxu1  ;;  %14232 = vmatpush3.bf16.msra.mxu1 %v16659_v0  ;;  %v13832_v59 = vpop.f32.mrb[65].mxu0  ;;  %v16673_v0 = vld [vmem:[%s21776_s5 + $0xb08] sm:$0xff]   ;;  %v16676_v31 = vld [vmem:[%s21776_s5 + $0xb10] sm:$0xff]   ;;  %v16678_v9 = vld [vmem:[%s21776_s5 + $0xb58] sm:$0xff]  }
 0x8f6   :  { %v14009_v37 = vpop.f32.mrb[91].mxu1  ;;  %14233 = vmatprep.subr.bf16.mxu1 %v16661_v11  ;;  %v13833_v15 = vadd.f32 %v13832_v59, %v13831_v47  ;;  %v13834_v52 = vpop.f32.mrb[66].mxu0  ;;  %v16681_v44 = vld [vmem:[%s21776_s5 + $0xb60] sm:$0xff]   ;;  %v22213_v59 = vld [vmem:[#allocation28_spill] sm:$0xff] }
 0x8f7   :  { %13942 = vmatpush3.bf16.msra.mxu0 %v16660_v60  ;;  %v13835_v2 = vpop.f32.mrb[67].mxu0  ;;  %v5770_v11 = vpop.permute.xlu1 %5769  ;;  %v16679_v60 = vld [vmem:[%s21776_s5 + $0xb18] sm:$0xff]   ;;  %v16682_v47 = vld [vmem:[%s21776_s5 + $0xb20] sm:$0xff]   ;;  %v22214_v52 = vunpack.i.h.bf16 %v20274_v26 }
 0x8f8   :  { %13943 = vmatprep.subr.bf16.mxu0 %v16662_v13  ;;  %v20883_v17 = vadd.f32 %v14884_v28, %v13833_v15  ;;  %v16680_v13 = vld [vmem:[%s21776_s5 + $0x408] sm:$0xff]   ;;  %v16683_v15 = vld [vmem:[%s21776_s5 + $0x410] sm:$0xff]   ;;  %v5961_v2 = vmax.f32 %v22215_v62, %v5832_v1  ;;  %v16705_v62 = vld [vmem:[%s21776_s5 + $0xbc0] sm:$0xff]  }
 0x8f9   :  { %14234 = vmatpush3.bf16.msra.mxu1 %v16663_v50  ;;  %v5829_v50 = vsel %vm1971_vm2, %v5770_v11, %v16042_v7  ;;  %v16690_v11 = vld [vmem:[%s21776_s5 + $0x420] sm:$0xff]   ;;  %v16716_v26 = vld [vmem:[%s21776_s5 + $0x498] sm:$0xff]  }
 0x8fa   :  { %14235 = vmatprep.subr.bf16.mxu1 %v16665_v4  ;;  %v16684_v4 = vld [vmem:[%s21776_s5 + $0xb68] sm:$0xff]   ;;  %v5957_v28 = vmax.f32 %v22213_v59, %v5829_v50 }
 0x8fb   :  { %13944 = vmatpush3.bf16.msra.mxu0 %v16664_v34  ;;  %v6078_v37 = vpop.permute.xlu1 %6077  ;;  %v6140_v34 = vsel %vm2224_vm3, %v16057_v21, %v22214_v52  ;;  %v16694_v50 = vld [vmem:[%s21776_s5 + $0x428] sm:$0xff]   ;;  %v16701_v52 = vld [vmem:[%s21776_s5 + $0xbb8] sm:$0xff]  }
 0x8fc   :  { %13945 = vmatprep.subr.bf16.mxu0 %v16666_v29  ;;  %v6137_v7 = vsel %vm2224_vm3, %v6078_v37, %v16047_v14  ;;  %v16686_v14 = vld [vmem:[%s21776_s5 + $0x418] sm:$0x7f]  }
 0x8fd   :  { %14236 = vmatpush3.bf16.msra.mxu1 %v16667_v12  ;;  %v20970_v29 = vmax.f32 %v5957_v28, %v6137_v7  ;;  %v16687_v12 = vld [vmem:[%s21776_s5 + $0xb70] sm:$0xff]   ;;  %v16699_v7 = vld [vmem:[%s21776_s5 + $0xbf8] sm:$0xff]  }
 0x8fe   :  { %14250 = vmatprep.subr.bf16.mxu1 %v16669_v39  ;;  %v6325_v39 = vmax.f32 %v20165_v51, %v20843_v35  ;;  %v16689_v51 = vld [vmem:[%s21776_s5 + $0xb30] sm:$0xff]  }
 0x8ff   :  { %13946 = vmatpush3.bf16.msra.mxu0 %v16668_v6  ;;  %v20977_v6 = vmax.f32 %v5961_v2, %v6140_v34  ;;  %v16698_v28 = vld [vmem:[%s21776_s5 + $0x430] sm:$0xff]   ;;  %v16703_v34 = vld [vmem:[%s21776_s5 + $0xc00] sm:$0xff]   ;;  %v5776_v2 = vpop.permute.xlu1 %5775 }
 0x900   :  { %10685 = vmatmul.mubr.bf16.vlgmr.msra.gmra.mrb[116].mxu1 %v6502_v3  ;;  %14463 = vmatprep.subr.bf16.mxu0 %v22137_v36 }
 0x901   :  { %14251 = vmatpush3.bf16.msra.mxu1 %v16670_v40  ;;  %10947 = vmatprep.mubr.bf16.mxu1 %v6506_v56  ;;  %v16688_v56 = vld [vmem:[%s21776_s5 + $0x460] sm:$0xff]  }
 0x902   :  { %14252 = vmatprep.subr.bf16.mxu1 %v16672_v46  ;;  %8055 = vmatmul.mubr.bf16.vlgmr.msra.gmra.mrb[80].mxu0 %v6472_v20  ;;  %v8020_v46 = vsel %vm6703_vm6, %v16686_v14, 0  ;;  %v16704_v14 = vld [vmem:[%s21776_s5 + $0x480] sm:$0xff]  }
 0x903   :  { %14464 = vmatpush3.bf16.msra.mxu0 %v16671_v63  ;;  %14475 = vmatprep.mubr.msk.bf16.mxu0 %vm16917_vm5, %v22137_v36  ;;  %v6385_v63 = vmax.f32 %v6325_v39, %v20970_v29  ;;  %v16708_v39 = vld [vmem:[%s21776_s5 + $0x488] sm:$0xff]  }
 0x904   :  { %14465 = vmatprep.subr.bf16.mxu0 %v22137_v36 }
 0x905   :  { %14253 = vmatpush3.bf16.msra.mxu1 %v16673_v0  ;;  %v22217_v0 = vld [vmem:[#allocation14_spill] sm:$0xff]  ;;  %v6445_v37 = vmax.f32 %v6385_v63, 0.0  ;;  %v16712_v63 = vld [vmem:[%s21776_s5 + $0x490] sm:$0xff]  }
 0x906   :  { %14254 = vmatprep.subr.bf16.mxu1 %v16675_v41  ;;  %v6416_v41 = vmax.f32 %v22217_v0, 0.0 }
 0x907   :  { %14466 = vmatpush3.bf16.msra.mxu0 %v16674_v48  ;;  %v16691_v48 = vld [vmem:[%s21776_s5 + $0xb78] sm:$0xff]   ;;  %v6505_v1 = vpack.c.bf16 %v6445_v37, %v6445_v37  ;;  %v22220_v37 = vunpack.i.h.bf16 %v20311_v43 }
 0x908   :  { %14467 = vmatprep.subr.bf16.mxu0 %v22137_v36 }
 0x909   :  { %14255 = vmatpush3.bf16.msra.mxu1 %v16676_v31  ;;  %v6329_v31 = vmax.f32 %v20723_v58, %v20850_v19  ;;  %v6476_v58 = vpack.c.bf16 %v6416_v41, %v6416_v41 }
 0x90a   :  { %14256 = vmatprep.subr.bf16.mxu1 %v16678_v9 }
 0x90b   :  { %14468 = vmatpush3.bf16.msra.mxu0 %v16677_v16  ;;  %v6389_v9 = vmax.f32 %v6329_v31, %v20977_v6  ;;  %v6474_v16 = vpack.c.bf16 %v6414_v49, %v6414_v49  ;;  %v16062_v49 = vunpack.i.l.bf16 %v20294_v54 }
 0x90c   :  { %14469 = vmatprep.subr.bf16.mxu0 %v22137_v36 }
 0x90d   :  { %14257 = vmatpush3.bf16.msra.mxu1 %v16679_v60  ;;  %v16692_v60 = vld [vmem:[%s21776_s5 + $0x468] sm:$0xff]  }
 0x90e   :  { %14258 = vmatprep.subr.bf16.mxu1 %v16681_v44  ;;  %v16693_v44 = vld [vmem:[%s21776_s5 + $0xb38] sm:$0xff]  }
 0x90f   :  { %14470 = vmatpush3.bf16.msra.mxu0 %v16680_v13  ;;  %v16695_v13 = vld [vmem:[%s21776_s5 + $0xbf0] sm:$0xff]  }
 0x910   :  { %14471 = vmatprep.subr.bf16.mxu0 %v22137_v36 }
 0x911   :  { %14259 = vmatpush3.bf16.msra.mxu1 %v16682_v47  ;;  %v6449_v47 = vmax.f32 %v6389_v9, 0.0 }
 0x912   :  { %14260 = vmatprep.subr.bf16.mxu1 %v16684_v4  ;;  %v16696_v4 = vld [vmem:[%s21776_s5 + $0x470] sm:$0xff]  }
 0x913   :  { %v14034_v32 = vpop.f32.mrb[92].mxu1  ;;  %14472 = vmatpush3.bf16.msra.mxu0 %v16683_v15  ;;  %v6509_v59 = vpack.c.bf16 %v6449_v47, %v6449_v47  ;;  %v16700_v15 = vld [vmem:[%s21776_s5 + $0x478] sm:$0xff]  }
 0x914   :  { %v14035_v24 = vpop.f32.mrb[93].mxu1  ;;  %14473 = vmatprep.subr.bf16.mxu0 %v22137_v36 }
 0x915   :  { %v20980_v40 = vadd.f32 %v14035_v24, %v14034_v32  ;;  %v14037_v3 = vpop.f32.mrb[94].mxu1  ;;  %14261 = vmatpush3.bf16.msra.mxu1 %v16685_v22  ;;  %v16702_v22 = vld [vmem:[%s21776_s5 + $0x438] sm:$0xff]   ;;  %v16706_v32 = vld [vmem:[%s21776_s5 + $0x440] sm:$0xff]   ;;  %v16709_v24 = vld [vmem:[%s21776_s5 + $0xbc8] sm:$0xff]  }
 0x916   :  { %v14038_v20 = vpop.f32.mrb[95].mxu1  ;;  %14262 = vmatprep.subr.bf16.mxu1 %v16687_v12  ;;  %v16707_v12 = vld [vmem:[%s21776_s5 + $0xc08] sm:$0xff]   ;;  %v6084_v3 = vpop.permute.xlu1 %6083 }
 0x917   :  { %14474 = vmatpush3.bf16.msra.mxu0 %v8020_v46  ;;  %v16710_v46 = vld [vmem:[%s21776_s5 + $0x448] sm:$0xff]   ;;  %v16713_v20 = vld [vmem:[%s21776_s5 + $0xbd0] sm:$0xff]  }
 0x918   :  { %13960 = vmatprep.subr.bf16.mxu0 %v16688_v56  ;;  %v5831_v56 = vsel %vm1971_vm2, %v5776_v2, %v16052_v55  ;;  %v22218_v55 = vunpack.i.h.bf16 %v20294_v54  ;;  %v22224_v54 = vunpack.i.h.bf16 %v20333_v45 }
 0x919   :  { %14263 = vmatpush3.bf16.msra.mxu1 %v16689_v51  ;;  %v16067_v51 = vunpack.i.l.bf16 %v20311_v43  ;;  %v16741_v43 = vld [vmem:[%s21776_s5 + $0xc88] sm:$0xff]  }
 0x91a   :  { %14264 = vmatprep.subr.bf16.mxu1 %v16691_v48  ;;  %14476 = vmatmul.mubr.msk.bf16.vlgmr.msra.gmra.mrb[60].mxu0 %vm6699_vm7, %v6474_v16  ;;  %v5834_v41 = vsel %vm1971_vm2, %v16062_v49, %v22218_v55  ;;  %v6139_v48 = vsel %vm2224_vm3, %v6084_v3, %v16057_v21  ;;  %v16717_v21 = vld [vmem:[%s21776_s5 + $0xbd8] sm:$0xff]   ;;  %v16723_v3 = vld [vmem:[%s21776_s5 + $0xbe8] sm:$0xff]  }
 0x91b   :  { %13961 = vmatpush3.bf16.msra.mxu0 %v16690_v11  ;;  %8317 = vmatprep.mubr.bf16.mxu0 %v6476_v58  ;;  %v22219_v11 = vld [vmem:[#allocation29_spill] sm:$0xff]  ;;  %v6142_v58 = vsel %vm2224_vm3, %v16067_v51, %v22220_v37 }
 0x91c   :  { %13962 = vmatprep.subr.bf16.mxu0 %v16692_v60  ;;  %v5960_v9 = vmax.f32 %v22219_v11, %v5831_v56  ;;  %v16724_v56 = vld [vmem:[%s21776_s5 + $0x4a8] sm:$0xff]   ;;  %v16730_v11 = vld [vmem:[%s21776_s5 + $0x4b8] sm:$0xff]  }
 0x91d   :  { %14265 = vmatpush3.bf16.msra.mxu1 %v16693_v44  ;;  %v16714_v44 = vld [vmem:[%s21776_s5 + $0x450] sm:$0xff]   ;;  %v16735_v37 = vld [vmem:[%s21776_s5 + $0xc78] sm:$0xff]  }
 0x91e   :  { %14279 = vmatprep.subr.bf16.mxu1 %v16695_v13 }
 0x91f   :  { %13963 = vmatpush3.bf16.msra.mxu0 %v16694_v50  ;;  %v22221_v50 = vld [vmem:[#allocation31_spill] sm:$0xff] }
 0x920   :  { %10948 = vmatmul.mubr.bf16.vlgmr.msra.gmra.mrb[120].mxu1 %v6505_v1  ;;  %13964 = vmatprep.subr.bf16.mxu0 %v16696_v4  ;;  %v5964_v47 = vmax.f32 %v22221_v50, %v5834_v41  ;;  %v21100_v4 = vmax.f32 %v5960_v9, %v6139_v48  ;;  %v16719_v1 = vld [vmem:[%s21776_s5 + $0xc20] sm:$0xff]   ;;  %v16727_v41 = vld [vmem:[%s21776_s5 + $0x4b0] sm:$0xff]   ;;  %v16729_v48 = vld [vmem:[%s21776_s5 + $0xc68] sm:$0xff]  }
 0x921   :  { %14280 = vmatpush3.bf16.msra.mxu1 %v16697_v23  ;;  %11210 = vmatprep.mubr.bf16.mxu1 %v6509_v59  ;;  %v6328_v59 = vmax.f32 %v20843_v35, %v20970_v29  ;;  %v16732_v9 = vld [vmem:[%s21776_s5 + $0xc70] sm:$0xff]  }
 0x922   :  { %14281 = vmatprep.subr.bf16.mxu1 %v16699_v7  ;;  %v22223_v50 = vld [vmem:[#allocation8_spill] sm:$0xff] }
 0x923   :  { %13965 = vmatpush3.bf16.msra.mxu0 %v16698_v28  ;;  %v6388_v35 = vmax.f32 %v6328_v59, %v21100_v4 }
 0x924   :  { %13966 = vmatprep.subr.bf16.mxu0 %v16700_v15  ;;  %v16718_v15 = vld [vmem:[%s21776_s5 + $0x458] sm:$0xff]  }
 0x925   :  { %14282 = vmatpush3.bf16.msra.mxu1 %v16701_v52  ;;  %v21113_v52 = vmax.f32 %v5964_v47, %v6142_v58  ;;  %v16736_v58 = vld [vmem:[%s21776_s5 + $0x4c8] sm:$0x7f]   ;;  %v6417_v47 = vmax.f32 %v22223_v50, 0.0 }
 0x926   :  { %14283 = vmatprep.subr.bf16.mxu1 %v16703_v34  ;;  %v22222_v34 = vld [vmem:[#allocation17_spill] sm:$0xff]  ;;  %v8283_v59 = vsel %vm6703_vm6, %v16736_v58, 0  ;;  %v22227_v50 = vld [vmem:[#allocation15_spill] sm:$0xff] }
 0x927   :  { %13967 = vmatpush3.bf16.msra.mxu0 %v16702_v22  ;;  %v16753_v58 = vld [vmem:[%s21776_s5 + $0xd18] sm:$0xff]  }
 0x928   :  { %13968 = vmatprep.subr.bf16.mxu0 %v16704_v14 }
 0x929   :  { %14284 = vmatpush3.bf16.msra.mxu1 %v16705_v62  ;;  %v16720_v62 = vld [vmem:[%s21776_s5 + $0xbe0] sm:$0xff]  }
 0x92a   :  { %14285 = vmatprep.subr.bf16.mxu1 %v16707_v12  ;;  %v16722_v12 = vld [vmem:[%s21776_s5 + $0xc28] sm:$0xff]  }
 0x92b   :  { %13969 = vmatpush3.bf16.msra.mxu0 %v16706_v32  ;;  %v6332_v32 = vmax.f32 %v20850_v19, %v20977_v6  ;;  %v16725_v19 = vld [vmem:[%s21776_s5 + $0xca0] sm:$0xff]  }
 0x92c   :  { %13970 = vmatprep.subr.bf16.mxu0 %v16708_v39  ;;  %v16721_v39 = vld [vmem:[%s21776_s5 + $0x4a0] sm:$0xff]  }
 0x92d   :  { %14286 = vmatpush3.bf16.msra.mxu1 %v16709_v24  ;;  %v13860_v0 = vpop.f32.mrb[68].mxu0  ;;  %v6392_v24 = vmax.f32 %v6332_v32, %v21113_v52 }
 0x92e   :  { %14287 = vmatprep.subr.bf16.mxu1 %v16711_v57  ;;  %v13861_v31 = vpop.f32.mrb[69].mxu0 }
 0x92f   :  { %v13862_v16 = vadd.f32 %v13861_v31, %v13860_v0  ;;  %v13863_v60 = vpop.f32.mrb[70].mxu0  ;;  %13971 = vmatpush3.bf16.msra.mxu0 %v16710_v46  ;;  %v6448_v46 = vmax.f32 %v6388_v35, 0.0  ;;  %v16731_v31 = vld [vmem:[%s21776_s5 + $0xcb0] sm:$0xff]   ;;  %v6477_v35 = vpack.c.bf16 %v6417_v47, %v6417_v47  ;;  %v6420_v47 = vmax.f32 %v22227_v50, 0.0 }
 0x930   :  { %v13864_v13 = vpop.f32.mrb[71].mxu0  ;;  %13972 = vmatprep.subr.bf16.mxu0 %v16712_v63  ;;  %v6452_v63 = vmax.f32 %v6392_v24, 0.0  ;;  %v16734_v60 = vld [vmem:[%s21776_s5 + $0xcb8] sm:$0xff]   ;;  %v16777_v50 = vld [vmem:[%s21776_s5 + $0x6d0] sm:$0xff]  }
 0x931   :  { %14288 = vmatpush3.bf16.msra.mxu1 %v16713_v20  ;;  %v21103_v23 = vadd.f32 %v20883_v17, %v13862_v16  ;;  %v6415_v17 = vmax.f32 %v22222_v34, 0.0  ;;  %v16726_v20 = vld [vmem:[%s21776_s5 + $0xc60] sm:$0xff]   ;;  %v6508_v0 = vpack.c.bf16 %v6448_v46, %v6448_v46  ;;  %v5782_v16 = vpop.permute.xlu1 %5781 }
 0x932   :  { %14289 = vmatprep.subr.bf16.mxu1 %v16715_v30  ;;  %v16728_v30 = vld [vmem:[%s21776_s5 + $0xca8] sm:$0xff]   ;;  %v6512_v55 = vpack.c.bf16 %v6452_v63, %v6452_v63  ;;  %v16737_v13 = vld [vmem:[%s21776_s5 + $0xcc0] sm:$0xff]  }
 0x933   :  { %v14063_v7 = vpop.f32.mrb[96].mxu1  ;;  %13973 = vmatpush3.bf16.msra.mxu0 %v16714_v44  ;;  %v6475_v57 = vpack.c.bf16 %v6415_v17, %v6415_v17  ;;  %v16733_v44 = vld [vmem:[%s21776_s5 + $0x4c0] sm:$0xff]   ;;  %v22225_v17 = vld [vmem:[#allocation36_spill] sm:$0xff] }
 0x934   :  { %v14064_v28 = vpop.f32.mrb[97].mxu1  ;;  %13974 = vmatprep.subr.bf16.mxu0 %v16716_v26  ;;  %v16072_v26 = vunpack.i.l.bf16 %v20333_v45 }
 0x935   :  { %v21116_v22 = vadd.f32 %v14064_v28, %v14063_v7  ;;  %v14066_v14 = vpop.f32.mrb[98].mxu1  ;;  %14290 = vmatpush3.bf16.msra.mxu1 %v16717_v21  ;;  %v6090_v21 = vpop.permute.xlu1 %6089  ;;  %v16077_v7 = vunpack.i.l.bf16 %v20366_v42  ;;  %v16738_v28 = vld [vmem:[%s21776_s5 + $0xc80] sm:$0xff]  }
 0x936   :  { %v14067_v2 = vpop.f32.mrb[99].mxu1  ;;  %14291 = vmatprep.subr.bf16.mxu1 %v16719_v1  ;;  %v5833_v1 = vsel %vm1971_vm2, %v5782_v16, %v16062_v49  ;;  %v5836_v49 = vsel %vm1971_vm2, %v16072_v26, %v22224_v54  ;;  %v6141_v34 = vsel %vm2224_vm3, %v6090_v21, %v16067_v51  ;;  %v22226_v51 = vld [vmem:[#allocation37_spill] sm:$0xff]  ;;  %v16755_v21 = vld [vmem:[%s21776_s5 + $0xd60] sm:$0xff]   ;;  %v16758_v54 = vld [vmem:[%s21776_s5 + $0xd68] sm:$0xff]  }
 0x937   :  { %13975 = vmatpush3.bf16.msra.mxu0 %v16718_v15  ;;  %v16740_v15 = vld [vmem:[%s21776_s5 + $0xcc8] sm:$0xff]   ;;  %v5963_v14 = vmax.f32 %v22225_v17, %v5833_v1  ;;  %v6144_v2 = vsel %vm2224_vm3, %v16077_v7, %v16078_v61  ;;  %v6331_v61 = vmax.f32 %v20970_v29, %v21100_v4  ;;  %v16744_v29 = vld [vmem:[%s21776_s5 + $0xc90] sm:$0xff]   ;;  %v16767_v42 = vld [vmem:[%s21776_s5 + $0xd80] sm:$0xff]  }
 0x938   :  { %14479 = vmatprep.subr.bf16.mxu0 %v22137_v36 }
 0x939   :  { %14292 = vmatpush3.bf16.msra.mxu1 %v16720_v62  ;;  %v16739_v62 = vld [vmem:[%s21776_s5 + $0x550] sm:$0xff]   ;;  %v21219_v32 = vmax.f32 %v5963_v14, %v6141_v34  ;;  %v16757_v14 = vld [vmem:[%s21776_s5 + $0x600] sm:$0xff]  }
 0x93a   :  { %14293 = vmatprep.subr.bf16.mxu1 %v16722_v12  ;;  %8318 = vmatmul.mubr.bf16.vlgmr.msra.gmra.mrb[84].mxu0 %v6475_v57  ;;  %v5967_v12 = vmax.f32 %v22226_v51, %v5836_v49  ;;  %v16761_v51 = vld [vmem:[%s21776_s5 + $0xd70] sm:$0xff]  }
 0x93b   :  { %14480 = vmatpush3.bf16.msra.mxu0 %v16721_v39  ;;  %14491 = vmatprep.mubr.msk.bf16.mxu0 %vm16917_vm5, %v22137_v36  ;;  %v16743_v39 = vld [vmem:[%s21776_s5 + $0xcd0] sm:$0xff]   ;;  %v6391_v63 = vmax.f32 %v6331_v61, %v21219_v32  ;;  %v16764_v61 = vld [vmem:[%s21776_s5 + $0xd78] sm:$0xff]  }
 0x93c   :  { %14481 = vmatprep.subr.bf16.mxu0 %v22137_v36  ;;  %v6275_v46 = vmax.f32 %v5967_v12, %v6144_v2  ;;  %v16759_v2 = vld [vmem:[%s21776_s5 + $0xd28] sm:$0xff]  }
 0x93d   :  { %14294 = vmatpush3.bf16.msra.mxu1 %v16723_v3  ;;  %v16742_v3 = vld [vmem:[%s21776_s5 + $0x558] sm:$0xff]  }
 0x93e   :  { %14308 = vmatprep.subr.bf16.mxu1 %v16725_v19 }
 0x93f   :  { %14482 = vmatpush3.bf16.msra.mxu0 %v16724_v56 }
 0x940   :  { %11211 = vmatmul.mubr.bf16.vlgmr.msra.gmra.mrb[124].mxu1 %v6508_v0  ;;  %14483 = vmatprep.subr.bf16.mxu0 %v22137_v36  ;;  %v16746_v0 = vld [vmem:[%s21776_s5 + $0xcd8] sm:$0xff]  }
 0x941   :  { %14309 = vmatpush3.bf16.msra.mxu1 %v16726_v20  ;;  %11473 = vmatprep.mubr.bf16.mxu1 %v6512_v55  ;;  %v16745_v55 = vld [vmem:[%s21776_s5 + $0x560] sm:$0xff]  }
 0x942   :  { %14310 = vmatprep.subr.bf16.mxu1 %v16728_v30  ;;  %v6335_v30 = vmax.f32 %v20977_v6, %v21113_v52  ;;  %v16748_v6 = vld [vmem:[%s21776_s5 + $0x568] sm:$0xff]  }
 0x943   :  { %14484 = vmatpush3.bf16.msra.mxu0 %v16727_v41 }
 0x944   :  { %14485 = vmatprep.subr.bf16.mxu0 %v22137_v36  ;;  %v6395_v41 = vmax.f32 %v6335_v30, %v6275_v46  ;;  %v16765_v46 = vld [vmem:[%s21776_s5 + $0xd38] sm:$0xff]  }
 0x945   :  { %14311 = vmatpush3.bf16.msra.mxu1 %v16729_v48  ;;  %v16747_v48 = vld [vmem:[%s21776_s5 + $0xc98] sm:$0xff]  }
 0x946   :  { %14312 = vmatprep.subr.bf16.mxu1 %v16731_v31  ;;  %v6451_v31 = vmax.f32 %v6391_v63, 0.0  ;;  %v6455_v52 = vmax.f32 %v6395_v41, 0.0 }
 0x947   :  { %14486 = vmatpush3.bf16.msra.mxu0 %v16730_v11  ;;  %v16749_v11 = vld [vmem:[%s21776_s5 + $0xd50] sm:$0xff]  }
 0x948   :  { %14487 = vmatprep.subr.bf16.mxu0 %v22137_v36  ;;  %v6511_v16 = vpack.c.bf16 %v6451_v31, %v6451_v31  ;;  %v16771_v31 = vld [vmem:[%s21776_s5 + $0xd48] sm:$0xff]  }
 0x949   :  { %14313 = vmatpush3.bf16.msra.mxu1 %v16732_v9  ;;  %v16750_v9 = vld [vmem:[%s21776_s5 + $0xd10] sm:$0xff]  }
 0x94a   :  { %14314 = vmatprep.subr.bf16.mxu1 %v16734_v60  ;;  %v16752_v60 = vld [vmem:[%s21776_s5 + $0xd58] sm:$0xff]  }
 0x94b   :  { %14488 = vmatpush3.bf16.msra.mxu0 %v16733_v44  ;;  %v6515_v44 = vpack.c.bf16 %v6455_v52, %v6455_v52  ;;  %v22229_v52 = vld [vmem:[#allocation16_spill] sm:$0xff] }
 0x94c   :  { %14489 = vmatprep.subr.bf16.mxu0 %v22137_v36 }
 0x94d   :  { %14315 = vmatpush3.bf16.msra.mxu1 %v16735_v37  ;;  %v16751_v37 = vld [vmem:[%s21776_s5 + $0x570] sm:$0xff]  }
 0x94e   :  { %14316 = vmatprep.subr.bf16.mxu1 %v16737_v13  ;;  %v16754_v13 = vld [vmem:[%s21776_s5 + $0x578] sm:$0x7f]  }
 0x94f   :  { %14490 = vmatpush3.bf16.msra.mxu0 %v8283_v59  ;;  %v8546_v1 = vsel %vm6703_vm6, %v16754_v13, 0  ;;  %v16756_v59 = vld [vmem:[%s21776_s5 + $0xd20] sm:$0xff]  }
 0x950   :  { %14495 = vmatprep.subr.bf16.mxu0 %v22137_v36  ;;  %v16775_v13 = vld [vmem:[%s21776_s5 + $0x6c0] sm:$0xff]  }
 0x951   :  { %14317 = vmatpush3.bf16.msra.mxu1 %v16738_v28  ;;  %v5788_v28 = vpop.permute.xlu1 %5787 }
 0x952   :  { %14318 = vmatprep.subr.bf16.mxu1 %v16740_v15  ;;  %14492 = vmatmul.mubr.msk.bf16.vlgmr.msra.gmra.mrb[60].mxu0 %vm6699_vm7, %v6477_v35 }
 0x953   :  { %v14092_v24 = vpop.f32.mrb[100].mxu1  ;;  %14496 = vmatpush3.bf16.msra.mxu0 %v16739_v62  ;;  %14507 = vmatprep.mubr.msk.bf16.mxu0 %vm16917_vm5, %v22137_v36  ;;  %v6480_v62 = vpack.c.bf16 %v6420_v47, %v6420_v47  ;;  %v16778_v47 = vld [vmem:[%s21776_s5 + $0x6d8] sm:$0x7f]  }
 0x954   :  { %v14093_v57 = vpop.f32.mrb[101].mxu1  ;;  %14497 = vmatprep.subr.bf16.mxu0 %v22137_v36 }
 0x955   :  { %v21232_v19 = vadd.f32 %v14093_v57, %v14092_v24  ;;  %v14095_v56 = vpop.f32.mrb[102].mxu1  ;;  %14319 = vmatpush3.bf16.msra.mxu1 %v16741_v43  ;;  %v6096_v12 = vpop.permute.xlu1 %6095  ;;  %v16762_v24 = vld [vmem:[%s21776_s5 + $0xd30] sm:$0xff]  }
 0x956   :  { %v14096_v20 = vpop.f32.mrb[103].mxu1  ;;  %14320 = vmatprep.subr.bf16.mxu1 %v16743_v39  ;;  %v16760_v39 = vld [vmem:[%s21776_s5 + $0x608] sm:$0xff]   ;;  %v6143_v57 = vsel %vm2224_vm3, %v6096_v12, %v16077_v7 }
 0x957   :  { %14498 = vmatpush3.bf16.msra.mxu0 %v16742_v3  ;;  %v22228_v3 = vld [vmem:[#allocation40_spill] sm:$0xff]  ;;  %v16766_v20 = vld [vmem:[%s21776_s5 + $0x618] sm:$0xff]  }
 0x958   :  { %14499 = vmatprep.subr.bf16.mxu0 %v22137_v36 }
 0x959   :  { %14321 = vmatpush3.bf16.msra.mxu1 %v16744_v29  ;;  %v6334_v29 = vmax.f32 %v21100_v4, %v21219_v32  ;;  %v16770_v4 = vld [vmem:[%s21776_s5 + $0xd88] sm:$0xff]   ;;  %v16769_v32 = vld [vmem:[%s21776_s5 + $0x620] sm:$0xff]  }
 0x95a   :  { %14322 = vmatprep.subr.bf16.mxu1 %v16746_v0 }
 0x95b   :  { %14500 = vmatpush3.bf16.msra.mxu0 %v16745_v55  ;;  %v16768_v55 = vld [vmem:[%s21776_s5 + $0xd40] sm:$0xff]  }
 0x95c   :  { %14501 = vmatprep.subr.bf16.mxu0 %v22137_v36 }
 0x95d   :  { %14323 = vmatpush3.bf16.msra.mxu1 %v16747_v48 }
 0x95e   :  { %14337 = vmatprep.subr.bf16.mxu1 %v16749_v11  ;;  %v16772_v11 = vld [vmem:[%s21776_s5 + $0x628] sm:$0x7f]  }
 0x95f   :  { %14502 = vmatpush3.bf16.msra.mxu0 %v16748_v6 }
 0x960   :  { %11474 = vmatmul.mubr.bf16.vlgmr.msra.gmra.mrb[128].mxu1 %v6511_v16  ;;  %14503 = vmatprep.subr.bf16.mxu0 %v22137_v36  ;;  %v8809_v16 = vsel %vm6703_vm6, %v16772_v11, 0 }
 0x961   :  { %14338 = vmatpush3.bf16.msra.mxu1 %v16750_v9  ;;  %11736 = vmatprep.mubr.bf16.mxu1 %v6515_v44  ;;  %v6423_v9 = vmax.f32 %v22229_v52, 0.0  ;;  %v16773_v44 = vld [vmem:[%s21776_s5 + $0x6b0] sm:$0xff]   ;;  %v16791_v52 = vld [vmem:[%s21776_s5 + $0x8c0] sm:$0xff]  }
 0x962   :  { %14339 = vmatprep.subr.bf16.mxu1 %v16752_v60 }
 0x963   :  { %14504 = vmatpush3.bf16.msra.mxu0 %v16751_v37  ;;  %v6483_v37 = vpack.c.bf16 %v6423_v9, %v6423_v9 }
 0x964   :  { %14505 = vmatprep.subr.bf16.mxu0 %v22137_v36 }
 0x965   :  { %14340 = vmatpush3.bf16.msra.mxu1 %v16753_v58  ;;  %v13889_v15 = vpop.f32.mrb[72].mxu0  ;;  %v16774_v58 = vld [vmem:[%s21776_s5 + $0x6b8] sm:$0xff]  }
 0x966   :  { %14341 = vmatprep.subr.bf16.mxu1 %v16755_v21  ;;  %v13890_v49 = vpop.f32.mrb[73].mxu0  ;;  %v16776_v21 = vld [vmem:[%s21776_s5 + $0x6c8] sm:$0xff]  }
 0x967   :  { %v13891_v34 = vadd.f32 %v13890_v49, %v13889_v15  ;;  %v13892_v17 = vpop.f32.mrb[74].mxu0  ;;  %14506 = vmatpush3.bf16.msra.mxu0 %v8546_v1 }
 0x968   :  { %v13893_v35 = vpop.f32.mrb[75].mxu0  ;;  %14511 = vmatprep.subr.bf16.mxu0 %v22137_v36 }
 0x969   :  { %14342 = vmatpush3.bf16.msra.mxu1 %v16756_v59  ;;  %v21294_v43 = vadd.f32 %v21103_v23, %v13891_v34  ;;  %v5835_v23 = vsel %vm1971_vm2, %v5788_v28, %v16072_v26  ;;  %v16763_v26 = vld [vmem:[%s21776_s5 + $0x610] sm:$0xff]   ;;  %v22230_v28 = vld [vmem:[#allocation19_spill] sm:$0xff]  ;;  %v9072_v34 = vsel %vm6703_vm6, %v16778_v47, 0 }
 0x96a   :  { %14343 = vmatprep.subr.bf16.mxu1 %v16758_v54  ;;  %14508 = vmatmul.mubr.msk.bf16.vlgmr.msra.gmra.mrb[60].mxu0 %vm6699_vm7, %v6480_v62  ;;  %v5966_v45 = vmax.f32 %v22228_v3, %v5835_v23  ;;  %v6426_v15 = vmax.f32 %v22230_v28, 0.0  ;;  %v16780_v35 = vld [vmem:[%s21776_s5 + $0x768] sm:$0xff]   ;;  %v16781_v23 = vld [vmem:[%s21776_s5 + $0x770] sm:$0xff]   ;;  %v16783_v3 = vld [vmem:[%s21776_s5 + $0x780] sm:$0xff]  }
 0x96b   :  { %14512 = vmatpush3.bf16.msra.mxu0 %v16757_v14  ;;  %14523 = vmatprep.mubr.msk.bf16.mxu0 %vm16917_vm5, %v22137_v36  ;;  %v16779_v14 = vld [vmem:[%s21776_s5 + $0x760] sm:$0xff]  }
 0x96c   :  { %14513 = vmatprep.subr.bf16.mxu0 %v22137_v36  ;;  %v6274_v56 = vmax.f32 %v5966_v45, %v6143_v57  ;;  %v6486_v62 = vpack.c.bf16 %v6426_v15, %v6426_v15  ;;  %v16782_v57 = vld [vmem:[%s21776_s5 + $0x778] sm:$0xff]   ;;  %v16784_v45 = vld [vmem:[%s21776_s5 + $0x788] sm:$0x7f]   ;;  %v16795_v15 = vld [vmem:[%s21776_s5 + $0x8e0] sm:$0xff]  }
 0x96d   :  { %14344 = vmatpush3.bf16.msra.mxu1 %v16759_v2 }
 0x96e   :  { %14345 = vmatprep.subr.bf16.mxu1 %v16761_v51  ;;  %v6394_v41 = vmax.f32 %v6334_v29, %v6274_v56  ;;  %v16785_v56 = vld [vmem:[%s21776_s5 + $0x810] sm:$0xff]  }
 0x96f   :  { %14514 = vmatpush3.bf16.msra.mxu0 %v16760_v39 }
 0x970   :  { %14515 = vmatprep.subr.bf16.mxu0 %v22137_v36  ;;  %v6454_v6 = vmax.f32 %v6394_v41, 0.0  ;;  %v16787_v41 = vld [vmem:[%s21776_s5 + $0x820] sm:$0xff]  }
 0x971   :  { %14346 = vmatpush3.bf16.msra.mxu1 %v16762_v24 }
 0x972   :  { %14347 = vmatprep.subr.bf16.mxu1 %v16764_v61  ;;  %v6514_v60 = vpack.c.bf16 %v6454_v6, %v6454_v6 }
 0x973   :  { %v14121_v7 = vpop.f32.mrb[104].mxu1  ;;  %14516 = vmatpush3.bf16.msra.mxu0 %v16763_v26 }
 0x974   :  { %v14122_v63 = vpop.f32.mrb[105].mxu1  ;;  %14517 = vmatprep.subr.bf16.mxu0 %v22137_v36 }
 0x975   :  { %v21334_v0 = vadd.f32 %v14122_v63, %v14121_v7  ;;  %v14124_v30 = vpop.f32.mrb[106].mxu1  ;;  %14348 = vmatpush3.bf16.msra.mxu1 %v16765_v46  ;;  %v9335_v46 = vsel %vm6703_vm6, %v16784_v45, 0  ;;  %v16786_v63 = vld [vmem:[%s21776_s5 + $0x818] sm:$0xff]   ;;  %v22234_v45 = vld [vmem:[#allocation20_spill] sm:$0xff] }
 0x976   :  { %v14125_v48 = vpop.f32.mrb[107].mxu1  ;;  %14349 = vmatprep.subr.bf16.mxu1 %v16767_v42 }
 0x977   :  { %14518 = vmatpush3.bf16.msra.mxu0 %v16766_v20  ;;  %v16788_v48 = vld [vmem:[%s21776_s5 + $0x828] sm:$0xff]  }
 0x978   :  { %14519 = vmatprep.subr.bf16.mxu0 %v22137_v36 }
 0x979   :  { %14350 = vmatpush3.bf16.msra.mxu1 %v16768_v55 }
 0x97a   :  { %14351 = vmatprep.subr.bf16.mxu1 %v16770_v4  ;;  %v16789_v4 = vld [vmem:[%s21776_s5 + $0x830] sm:$0xff]  }
 0x97b   :  { %14520 = vmatpush3.bf16.msra.mxu0 %v16769_v32  ;;  %v16790_v32 = vld [vmem:[%s21776_s5 + $0x838] sm:$0x7f]  }
 0x97c   :  { %14521 = vmatprep.subr.bf16.mxu0 %v22137_v36  ;;  %v9598_v6 = vsel %vm6703_vm6, %v16790_v32, 0  ;;  %v16809_v32 = vld [vmem:[%s21776_s5 + $0x9f8] sm:$0xff]  }
 0x97d   :  { %14352 = vmatpush3.bf16.msra.mxu1 %v16771_v31  ;;  %v22232_v31 = vld [vmem:[#allocation18_spill] sm:$0xff] }
 0x97e   :  { %v6432_v11 = vmax.f32 %v22232_v31, 0.0  ;;  %v16810_v31 = vld [vmem:[%s21776_s5 + $0x9b8] sm:$0xff]  }
 0x97f   :  { %14522 = vmatpush3.bf16.msra.mxu0 %v8809_v16  ;;  %v16792_v16 = vld [vmem:[%s21776_s5 + $0x8c8] sm:$0xff]  }
 0x980   :  { %11737 = vmatmul.mubr.bf16.vlgmr.msra.gmra.mrb[132].mxu1 %v6514_v60  ;;  %14527 = vmatprep.subr.bf16.mxu0 %v22137_v36  ;;  %v6492_v9 = vpack.c.bf16 %v6432_v11, %v6432_v11  ;;  %v16793_v60 = vld [vmem:[%s21776_s5 + $0x8d0] sm:$0xff]   ;;  %v16811_v11 = vld [vmem:[%s21776_s5 + $0xa00] sm:$0xff]  }
 0x981   :  { %14735 = vmatprep.mubr.msk.f32.mxu1 %vm16917_vm5, %v22137_v36 }
 0x982   :  { %14524 = vmatmul.mubr.msk.bf16.vlgmr.msra.gmra.mrb[60].mxu0 %vm6699_vm7, %v6483_v37 }
 0x983   :  { %14528 = vmatpush3.bf16.msra.mxu0 %v16773_v44  ;;  %14539 = vmatprep.mubr.msk.bf16.mxu0 %vm16917_vm5, %v22137_v36 }
 0x984   :  { %14529 = vmatprep.subr.bf16.mxu0 %v22137_v36 }
 0x987   :  { %14530 = vmatpush3.bf16.msra.mxu0 %v16774_v58  ;;  %v16794_v58 = vld [vmem:[%s21776_s5 + $0x8d8] sm:$0xff]  }
 0x988   :  { %14531 = vmatprep.subr.bf16.mxu0 %v22137_v36 }
 0x98b   :  { %14532 = vmatpush3.bf16.msra.mxu0 %v16775_v13 }
 0x98c   :  { %14533 = vmatprep.subr.bf16.mxu0 %v22137_v36 }
 0x98f   :  { %14534 = vmatpush3.bf16.msra.mxu0 %v16776_v21 }
 0x990   :  { %14535 = vmatprep.subr.bf16.mxu0 %v22137_v36 }
 0x993   :  { %v14150_v1 = vpop.f32.mrb[108].mxu1  ;;  %14536 = vmatpush3.bf16.msra.mxu0 %v16777_v50 }
 0x994   :  { %v14151_v59 = vpop.f32.mrb[109].mxu1  ;;  %14537 = vmatprep.subr.bf16.mxu0 %v22137_v36 }
 0x995   :  { %v21385_v54 = vadd.f32 %v14151_v59, %v14150_v1  ;;  %v14153_v49 = vpop.f32.mrb[110].mxu1 }
 0x996   :  { %v14154_v17 = vpop.f32.mrb[111].mxu1 }
 0x997   :  { %14538 = vmatpush3.bf16.msra.mxu0 %v9072_v34  ;;  %v16796_v34 = vld [vmem:[%s21776_s5 + $0x8e8] sm:$0x7f]  }
 0x998   :  { %14543 = vmatprep.subr.bf16.mxu0 %v22137_v36 }
 0x99a   :  { %14540 = vmatmul.mubr.msk.bf16.vlgmr.msra.gmra.mrb[60].mxu0 %vm6699_vm7, %v6486_v62 }
 0x99b   :  { %14544 = vmatpush3.bf16.msra.mxu0 %v16779_v14  ;;  %14555 = vmatprep.mubr.msk.bf16.mxu0 %vm16917_vm5, %v22137_v36  ;;  %v22233_v14 = vld [vmem:[#allocation23_spill] sm:$0xff] }
 0x99c   :  { %14545 = vmatprep.subr.bf16.mxu0 %v22137_v36  ;;  %v6435_v62 = vmax.f32 %v22233_v14, 0.0 }
 0x99d   :  { %v13918_v2 = vpop.f32.mrb[76].mxu0 }
 0x99e   :  { %v13919_v51 = vpop.f32.mrb[77].mxu0 }
 0x99f   :  { %v13920_v12 = vadd.f32 %v13919_v51, %v13918_v2  ;;  %v13921_v39 = vpop.f32.mrb[78].mxu0  ;;  %14546 = vmatpush3.bf16.msra.mxu0 %v16780_v35  ;;  %v9861_v35 = vsel %vm6703_vm6, %v16796_v34, 0  ;;  %v16797_v2 = vld [vmem:[%s21776_s5 + $0x970] sm:$0xff]   ;;  %v6495_v51 = vpack.c.bf16 %v6435_v62, %v6435_v62  ;;  %v6439_v34 = vmax.f32 %v20188_v38, 0.0  ;;  %v16820_v38 = vld [vmem:[%s21776_s5 + $0xa28] sm:$0xff]  }
 0x9a0   :  { %v13922_v24 = vpop.f32.mrb[79].mxu0  ;;  %14547 = vmatprep.subr.bf16.mxu0 %v22137_v36  ;;  %v16799_v39 = vld [vmem:[%s21776_s5 + $0x980] sm:$0xff]  }
 0x9a1   :  { %v21405_v61 = vadd.f32 %v21294_v43, %v13920_v12  ;;  %v22231_v43 = vld [vmem:[#allocation21_spill] sm:$0xff] }
 0x9a2   :  { %v6429_v26 = vmax.f32 %v22231_v43, 0.0  ;;  %v16798_v12 = vld [vmem:[%s21776_s5 + $0x978] sm:$0xff]   ;;  %v16801_v24 = vld [vmem:[%s21776_s5 + $0x990] sm:$0xff]   ;;  %v6438_v43 = vmax.f32 %v22234_v45, 0.0 }
 0x9a3   :  { %14548 = vmatpush3.bf16.msra.mxu0 %v16781_v23  ;;  %v16800_v23 = vld [vmem:[%s21776_s5 + $0x988] sm:$0xff]  }
 0x9a4   :  { %14549 = vmatprep.subr.bf16.mxu0 %v22137_v36  ;;  %v6489_v42 = vpack.c.bf16 %v6429_v26, %v6429_v26 }
 0x9a7   :  { %14550 = vmatpush3.bf16.msra.mxu0 %v16782_v57 }
 0x9a8   :  { %14551 = vmatprep.subr.bf16.mxu0 %v22137_v36 }
 0x9ab   :  { %14552 = vmatpush3.bf16.msra.mxu0 %v16783_v3 }
 0x9ac   :  { %14553 = vmatprep.subr.bf16.mxu0 %v22137_v36 }
 0x9af   :  { %14554 = vmatpush3.bf16.msra.mxu0 %v9335_v46 }
 0x9b0   :  { %14559 = vmatprep.subr.bf16.mxu0 %v22137_v36 }
 0x9b2   :  { %14556 = vmatmul.mubr.msk.bf16.vlgmr.msra.gmra.mrb[60].mxu0 %vm6699_vm7, %v6489_v42  ;;  %v16803_v42 = vld [vmem:[%s21776_s5 + $0x9e0] sm:$0xff]  }
 0x9b3   :  { %v14179_v7 = vpop.f32.mrb[112].mxu1  ;;  %14560 = vmatpush3.bf16.msra.mxu0 %v16785_v56  ;;  %14571 = vmatprep.mubr.msk.bf16.mxu0 %vm16917_vm5, %v22137_v36 }
 0x9b4   :  { %v14180_v29 = vpop.f32.mrb[113].mxu1  ;;  %14561 = vmatprep.subr.bf16.mxu0 %v22137_v36 }
 0x9b5   :  { %v21431_v20 = vadd.f32 %v14180_v29, %v14179_v7  ;;  %v14182_v30 = vpop.f32.mrb[114].mxu1  ;;  %v6440_v29 = vmax.f32 %v20229_v33, 0.0  ;;  %v16806_v33 = vld [vmem:[%s21776_s5 + $0x9a8] sm:$0xff]  }
 0x9b6   :  { %v14183_v55 = vpop.f32.mrb[115].mxu1  ;;  %v6498_v30 = vpack.c.bf16 %v6438_v43, %v6438_v43 }
 0x9b7   :  { %14562 = vmatpush3.bf16.msra.mxu0 %v16786_v63  ;;  %v16804_v63 = vld [vmem:[%s21776_s5 + $0x9a0] sm:$0xff]   ;;  %v16805_v55 = vld [vmem:[%s21776_s5 + $0x9e8] sm:$0xff]  }
 0x9b8   :  { %14563 = vmatprep.subr.bf16.mxu0 %v22137_v36 }
 0x9bb   :  { %14564 = vmatpush3.bf16.msra.mxu0 %v16787_v41  ;;  %v6500_v41 = vpack.c.bf16 %v6440_v29, %v6440_v29  ;;  %v16829_v29 = vld [vmem:[%s21776_s5 + $0xaf0] sm:$0xff]  }
 0x9bc   :  { %14565 = vmatprep.subr.bf16.mxu0 %v22137_v36 }
 0x9bf   :  { %14566 = vmatpush3.bf16.msra.mxu0 %v16788_v48  ;;  %v16807_v48 = vld [vmem:[%s21776_s5 + $0x9f0] sm:$0xff]  }
 0x9c0   :  { %14567 = vmatprep.subr.bf16.mxu0 %v22137_v36 }
 0x9c3   :  { %14568 = vmatpush3.bf16.msra.mxu0 %v16789_v4  ;;  %v16808_v4 = vld [vmem:[%s21776_s5 + $0x9b0] sm:$0xff]  }
 0x9c4   :  { %14569 = vmatprep.subr.bf16.mxu0 %v22137_v36 }
 0x9c7   :  { %14570 = vmatpush3.bf16.msra.mxu0 %v9598_v6  ;;  %v16812_v6 = vld [vmem:[%s21776_s5 + $0x9c0] sm:$0xff]  }
 0x9c8   :  { %14575 = vmatprep.subr.bf16.mxu0 %v22137_v36 }
 0x9ca   :  { %14572 = vmatmul.mubr.msk.bf16.vlgmr.msra.gmra.mrb[60].mxu0 %vm6699_vm7, %v6492_v9  ;;  %v16814_v9 = vld [vmem:[%s21776_s5 + $0x9c8] sm:$0xff]  }
 0x9cb   :  { %14576 = vmatpush3.bf16.msra.mxu0 %v16791_v52  ;;  %14587 = vmatprep.mubr.msk.bf16.mxu0 %vm16917_vm5, %v22137_v36  ;;  %v16813_v52 = vld [vmem:[%s21776_s5 + $0xa08] sm:$0xff]  }
 0x9cc   :  { %14577 = vmatprep.subr.bf16.mxu0 %v22137_v36 }
 0x9cf   :  { %14578 = vmatpush3.bf16.msra.mxu0 %v16792_v16  ;;  %v16815_v16 = vld [vmem:[%s21776_s5 + $0xa10] sm:$0xff]  }
 0x9d0   :  { %14579 = vmatprep.subr.bf16.mxu0 %v22137_v36 }
 0x9d3   :  { %v14237_v44 = vpop.f32.mrb[116].mxu1  ;;  %14580 = vmatpush3.bf16.msra.mxu0 %v16793_v60 }
 0x9d4   :  { %v14238_v37 = vpop.f32.mrb[117].mxu1  ;;  %14581 = vmatprep.subr.bf16.mxu0 %v22137_v36 }
 0x9d5   :  { %v21470_v13 = vadd.f32 %v14238_v37, %v14237_v44  ;;  %v14240_v21 = vpop.f32.mrb[118].mxu1  ;;  %v13947_v50 = vpop.f32.mrb[80].mxu0 }
 0x9d6   :  { %v14241_v47 = vpop.f32.mrb[119].mxu1  ;;  %v13948_v1 = vpop.f32.mrb[81].mxu0  ;;  %v16816_v21 = vld [vmem:[%s21776_s5 + $0x9d0] sm:$0xff]  }
 0x9d7   :  { %v13949_v59 = vadd.f32 %v13948_v1, %v13947_v50  ;;  %v13950_v28 = vpop.f32.mrb[82].mxu0  ;;  %14582 = vmatpush3.bf16.msra.mxu0 %v16794_v58  ;;  %v16817_v47 = vld [vmem:[%s21776_s5 + $0xa18] sm:$0xff]  }
 0x9d8   :  { %v13951_v49 = vpop.f32.mrb[83].mxu0  ;;  %14583 = vmatprep.subr.bf16.mxu0 %v22137_v36 }
 0x9d9   :  { %v21481_v17 = vadd.f32 %v21405_v61, %v13949_v59  ;;  %v16802_v61 = vld [vmem:[%s21776_s5 + $0x998] sm:$0x7f]  }
 0x9da   :  { %v10124_v56 = vsel %vm6703_vm6, %v16802_v61, 0  ;;  %v16818_v49 = vld [vmem:[%s21776_s5 + $0x9d8] sm:$0xff]   ;;  %v16825_v61 = vld [vmem:[%s21776_s5 + $0xad0] sm:$0xff]  }
 0x9db   :  { %14584 = vmatpush3.bf16.msra.mxu0 %v16795_v15 }
 0x9dc   :  { %14585 = vmatprep.subr.bf16.mxu0 %v22137_v36 }
 0x9df   :  { %14586 = vmatpush3.bf16.msra.mxu0 %v9861_v35 }
 0x9e0   :  { %14591 = vmatprep.subr.bf16.mxu0 %v22137_v36 }
 0x9e2   :  { %14588 = vmatmul.mubr.msk.bf16.vlgmr.msra.gmra.mrb[60].mxu0 %vm6699_vm7, %v6495_v51  ;;  %v6499_v51 = vpack.c.bf16 %v6439_v34, %v6439_v34  ;;  %v11788_v34 = vld [vmem:[#allocation4 + $0x10] sm:$0xff] }
 0x9e3   :  { %14592 = vmatpush3.bf16.msra.mxu0 %v16797_v2  ;;  %14603 = vmatprep.mubr.msk.bf16.mxu0 %vm16917_vm5, %v22137_v36 }
 0x9e4   :  { %14593 = vmatprep.subr.bf16.mxu0 %v22137_v36 }
 0x9e7   :  { %14594 = vmatpush3.bf16.msra.mxu0 %v16798_v12 }
 0x9e8   :  { %14595 = vmatprep.subr.bf16.mxu0 %v22137_v36 }
 0x9eb   :  { %14596 = vmatpush3.bf16.msra.mxu0 %v16799_v39 }
 0x9ec   :  { %14597 = vmatprep.subr.bf16.mxu0 %v22137_v36 }
 0x9ef   :  { %14598 = vmatpush3.bf16.msra.mxu0 %v16800_v23  ;;  %v16822_v23 = vld [vmem:[%s21776_s5 + $0xa38] sm:$0xff]  }
 0x9f0   :  { %14599 = vmatprep.subr.bf16.mxu0 %v22137_v36 }
 0x9f3   :  { %v14266_v57 = vpop.f32.mrb[120].mxu1  ;;  %14600 = vmatpush3.bf16.msra.mxu0 %v16801_v24 }
 0x9f4   :  { %v14267_v3 = vpop.f32.mrb[121].mxu1  ;;  %14601 = vmatprep.subr.bf16.mxu0 %v22137_v36 }
 0x9f5   :  { %v21513_v26 = vadd.f32 %v14267_v3, %v14266_v57  ;;  %v14269_v46 = vpop.f32.mrb[122].mxu1 }
 0x9f6   :  { %v14270_v7 = vpop.f32.mrb[123].mxu1 }
 0x9f7   :  { %14602 = vmatpush3.bf16.msra.mxu0 %v10124_v56  ;;  %v16828_v7 = vld [vmem:[%s21776_s5 + $0xae8] sm:$0xff]  }
 0x9f8   :  { %14192 = vmatprep.subr.bf16.mxu0 %v16803_v42  ;;  %v16827_v42 = vld [vmem:[%s21776_s5 + $0xae0] sm:$0xff]  }
 0x9fa   :  { %14604 = vmatmul.mubr.msk.bf16.vlgmr.msra.gmra.mrb[60].mxu0 %vm6699_vm7, %v6498_v30  ;;  %v6444_v30 = vmax.f32 %v20218_v25, 0.0  ;;  %v16833_v25 = vld [vmem:[%s21776_s5 + $0xb90] sm:$0xff]  }
 0x9fb   :  { %14193 = vmatpush3.bf16.msra.mxu0 %v16804_v63  ;;  %10421 = vmatprep.mubr.bf16.mxu0 %v6500_v41  ;;  %v16830_v63 = vld [vmem:[%s21776_s5 + $0xaf8] sm:$0x7f]   ;;  %v16831_v41 = vld [vmem:[%s21776_s5 + $0xb80] sm:$0xff]  }
 0x9fc   :  { %14194 = vmatprep.subr.bf16.mxu0 %v16805_v55  ;;  %v10650_v55 = vsel %vm6703_vm6, %v16830_v63, 0 }
 0x9ff   :  { %14195 = vmatpush3.bf16.msra.mxu0 %v16806_v33  ;;  %v6504_v33 = vpack.c.bf16 %v6444_v30, %v6444_v30  ;;  %v16849_v30 = vld [vmem:[%s21776_s5 + $0xd90] sm:$0xff]  }
 0xa00   :  { %14196 = vmatprep.subr.bf16.mxu0 %v16807_v48  ;;  %v16832_v48 = vld [vmem:[%s21776_s5 + $0xb88] sm:$0xff]  }
 0xa03   :  { %14197 = vmatpush3.bf16.msra.mxu0 %v16808_v4 }
 0xa04   :  { %14198 = vmatprep.subr.bf16.mxu0 %v16809_v32 }
 0xa07   :  { %14199 = vmatpush3.bf16.msra.mxu0 %v16810_v31  ;;  %v16834_v31 = vld [vmem:[%s21776_s5 + $0xb98] sm:$0xff]  }
 0xa08   :  { %14200 = vmatprep.subr.bf16.mxu0 %v16811_v11 }
 0xa0b   :  { %14201 = vmatpush3.bf16.msra.mxu0 %v16812_v6 }
 0xa0c   :  { %14202 = vmatprep.subr.bf16.mxu0 %v16813_v52 }
 0xa0d   :  { %v13976_v60 = vpop.f32.mrb[84].mxu0 }
 0xa0e   :  { %v13977_v44 = vpop.f32.mrb[85].mxu0 }
 0xa0f   :  { %v13978_v37 = vadd.f32 %v13977_v44, %v13976_v60  ;;  %v13979_v58 = vpop.f32.mrb[86].mxu0  ;;  %14203 = vmatpush3.bf16.msra.mxu0 %v16814_v9  ;;  %v16835_v9 = vld [vmem:[%s21776_s5 + $0xba0] sm:$0xff]   ;;  %v6447_v60 = vmax.f32 %v20259_v10, 0.0 }
 0xa10   :  { %v13980_v50 = vpop.f32.mrb[87].mxu0  ;;  %14204 = vmatprep.subr.bf16.mxu0 %v16815_v16  ;;  %v16836_v16 = vld [vmem:[%s21776_s5 + $0xba8] sm:$0x7f]   ;;  %v16839_v10 = vld [vmem:[%s21776_s5 + $0xc40] sm:$0xff]  }
 0xa11   :  { %v14890_v1 = vadd.f32 %v21481_v17, %v13978_v37  ;;  %v10913_v44 = vsel %vm6703_vm6, %v16836_v16, 0  ;;  %v16837_v37 = vld [vmem:[%s21776_s5 + $0xc30] sm:$0xff]   ;;  %v6507_v58 = vpack.c.bf16 %v6447_v60, %v6447_v60  ;;  %v16840_v50 = vld [vmem:[%s21776_s5 + $0xc48] sm:$0xff]  }
 0xa13   :  { %v14295_v59 = vpop.f32.mrb[124].mxu1  ;;  %v14891_v28 = vadd.f32 %v14890_v1, %v20852_v8  ;;  %14205 = vmatpush3.bf16.msra.mxu0 %v16816_v21  ;;  %v16819_v8 = vld [vmem:[%s21776_s5 + $0xa20] sm:$0xff]   ;;  %v16838_v21 = vld [vmem:[%s21776_s5 + $0xc38] sm:$0xff]  }
 0xa14   :  { %v14296_v15 = vpop.f32.mrb[125].mxu1  ;;  %14206 = vmatprep.subr.bf16.mxu0 %v16817_v47  ;;  %v16841_v47 = vld [vmem:[%s21776_s5 + $0xc50] sm:$0xff]   ;;  %v16842_v1 = vld [vmem:[%s21776_s5 + $0xc58] sm:$0x7f]  }
 0xa15   :  { %v21570_v14 = vadd.f32 %v14296_v15, %v14295_v59  ;;  %v14298_v62 = vpop.f32.mrb[126].mxu1  ;;  %v14892_v35 = vadd.f32 %v14891_v28, %v20980_v40  ;;  %v6450_v59 = vmax.f32 %v20297_v27, 0.0  ;;  %v11176_v28 = vsel %vm6703_vm6, %v16842_v1, 0  ;;  %v11786_v15 = vld [vmem:[#allocation4] sm:$0xff] }
 0xa16   :  { %v14299_v2 = vpop.f32.mrb[127].mxu1  ;;  %v16918_v62 = vmov 0.0|0.0  }
 0xa17   :  { %v14893_v17 = vadd.f32 %v14892_v35, %v21116_v22  ;;  %14207 = vmatpush3.bf16.msra.mxu0 %v16818_v49  ;;  %v11787_v49 = vld [vmem:[#allocation4 + $0x8] sm:$0xff]  ;;  %14738 = vmatprep.subr.bf16.mxu1 %v16918_v62  ;;  %v11789_v2 = vld [vmem:[#allocation4 + $0x18] sm:$0xff] }
 0xa18   :  { %14607 = vmatprep.subr.bf16.mxu0 %v22137_v36  ;;  %v14739_v35 = vpack.c.bf16 %v11787_v49, %v11786_v15  ;;  %v14742_v27 = vpack.c.bf16 %v11789_v2, %v11788_v34 }
 0xa19   :  { %v14894_v12 = vadd.f32 %v14893_v17, %v21232_v19  ;;  %v16821_v19 = vld [vmem:[%s21776_s5 + $0xa30] sm:$0xff]   ;;  %v16843_v17 = vld [vmem:[%s21776_s5 + $0xce0] sm:$0xff]  }
 0xa1a   :  { %10422 = vmatmul.mubr.bf16.vlgmr.msra.gmra.mrb[88].mxu0 %v6499_v51  ;;  %14740 = vmatpush3.bf16.msra.mxu1 %v14739_v35  ;;  %v11790_v51 = vld [vmem:[#allocation4 + $0x20] sm:$0xff] }
 0xa1b   :  { %14608 = vmatpush3.bf16.msra.mxu0 %v16819_v8  ;;  %14619 = vmatprep.mubr.msk.bf16.mxu0 %vm16917_vm5, %v22137_v36  ;;  %v14895_v40 = vadd.f32 %v14894_v12, %v21334_v0  ;;  %v16823_v0 = vld [vmem:[%s21776_s5 + $0xa40] sm:$0xff]   ;;  %v6510_v8 = vpack.c.bf16 %v6450_v59, %v6450_v59  ;;  %v11791_v12 = vld [vmem:[#allocation4 + $0x28] sm:$0xff] }
 0xa1c   :  { %14609 = vmatprep.subr.bf16.mxu0 %v22137_v36  ;;  %14741 = vmatprep.subr.bf16.mxu1 %v16918_v62 }
 0xa1d   :  { %v14896_v22 = vadd.f32 %v14895_v40, %v21385_v54  ;;  %v16824_v54 = vld [vmem:[%s21776_s5 + $0xa48] sm:$0x7f]   ;;  %v14745_v40 = vpack.c.bf16 %v11791_v12, %v11790_v51 }
 0xa1e   :  { %v10387_v24 = vsel %vm6703_vm6, %v16824_v54, 0  ;;  %14743 = vmatpush3.bf16.msra.mxu1 %v14742_v27  ;;  %v11794_v54 = vld [vmem:[#allocation4 + $0x40] sm:$0xff] }
 0xa1f   :  { %14610 = vmatpush3.bf16.msra.mxu0 %v16820_v38  ;;  %v21591_v39 = vadd.f32 %v14896_v22, %v21431_v20  ;;  %v6441_v20 = vmax.f32 %v20133_v53, 0.0  ;;  %v16826_v53 = vld [vmem:[%s21776_s5 + $0xad8] sm:$0xff]   ;;  %v16844_v38 = vld [vmem:[%s21776_s5 + $0xce8] sm:$0xff]   ;;  %14744 = vmatprep.subr.bf16.mxu1 %v16918_v62 }
 0xa20   :  { %14611 = vmatprep.subr.bf16.mxu0 %v22137_v36  ;;  %v11792_v22 = vld [vmem:[#allocation4 + $0x30] sm:$0xff] }
 0xa21   :  { %v6501_v57 = vpack.c.bf16 %v6441_v20, %v6441_v20  ;;  %v11795_v20 = vld [vmem:[#allocation4 + $0x48] sm:$0xff] }
 0xa22   :  { %14746 = vmatpush3.bf16.msra.mxu1 %v14745_v40 }
 0xa23   :  { %14612 = vmatpush3.bf16.msra.mxu0 %v16821_v19  ;;  %v11793_v19 = vld [vmem:[#allocation4 + $0x38] sm:$0xff]  ;;  %14747 = vmatprep.subr.bf16.mxu1 %v16918_v62 }
 0xa24   :  { %14613 = vmatprep.subr.bf16.mxu0 %v22137_v36 }
 0xa27   :  { %14614 = vmatpush3.bf16.msra.mxu0 %v16822_v23  ;;  %v16845_v23 = vld [vmem:[%s21776_s5 + $0xcf0] sm:$0xff]  }
 0xa28   :  { %14615 = vmatprep.subr.bf16.mxu0 %v22137_v36 }
 0xa2b   :  { %14616 = vmatpush3.bf16.msra.mxu0 %v16823_v0  ;;  %v14748_v0 = vpack.c.bf16 %v11793_v19, %v11792_v22 }
 0xa2c   :  { %14617 = vmatprep.subr.bf16.mxu0 %v22137_v36 }
 0xa2d   :  { %14749 = vmatpush3.bf16.msra.mxu1 %v14748_v0 }
 0xa2e   :  { %14750 = vmatprep.subr.bf16.mxu1 %v16918_v62 }
 0xa2f   :  { %14618 = vmatpush3.bf16.msra.mxu0 %v10387_v24  ;;  %v16846_v24 = vld [vmem:[%s21776_s5 + $0xcf8] sm:$0xff]  }
 0xa30   :  { %14623 = vmatprep.subr.bf16.mxu0 %v22137_v36 }
 0xa32   :  { %14620 = vmatmul.mubr.msk.bf16.vlgmr.msra.gmra.mrb[60].mxu0 %vm6699_vm7, %v6501_v57  ;;  %v11796_v57 = vld [vmem:[#allocation4 + $0x50] sm:$0xff] }
 0xa33   :  { %v14324_v3 = vpop.f32.mrb[128].mxu1  ;;  %14624 = vmatpush3.bf16.msra.mxu0 %v16825_v61  ;;  %14635 = vmatprep.mubr.msk.bf16.mxu0 %vm16917_vm5, %v22137_v36  ;;  %v14751_v61 = vpack.c.bf16 %v11795_v20, %v11794_v54 }
 0xa34   :  { %v14325_v45 = vpop.f32.mrb[129].mxu1  ;;  %14625 = vmatprep.subr.bf16.mxu0 %v22137_v36 }
 0xa35   :  { %v21618_v43 = vadd.f32 %v14325_v45, %v14324_v3  ;;  %v14327_v46 = vpop.f32.mrb[130].mxu1  ;;  %v11797_v3 = vld [vmem:[#allocation4 + $0x58] sm:$0xff]  ;;  %14752 = vmatpush3.bf16.msra.mxu1 %v14751_v61 }
 0xa36   :  { %v14328_v56 = vpop.f32.mrb[131].mxu1  ;;  %v16847_v45 = vld [vmem:[%s21776_s5 + $0xd00] sm:$0xff]   ;;  %v14754_v46 = vpack.c.bf16 %v11797_v3, %v11796_v57  ;;  %14753 = vmatprep.subr.bf16.mxu1 %v16918_v62 }
 0xa37   :  { %14626 = vmatpush3.bf16.msra.mxu0 %v16826_v53  ;;  %v16848_v53 = vld [vmem:[%s21776_s5 + $0xd08] sm:$0x7f]  }
 0xa38   :  { %14627 = vmatprep.subr.bf16.mxu0 %v22137_v36  ;;  %v11798_v56 = vld [vmem:[#allocation4 + $0x60] sm:$0xff] }
 0xa39   :  { %14755 = vmatpush3.bf16.msra.mxu1 %v14754_v46 }
 0xa3a   :  { %14756 = vmatprep.subr.bf16.mxu1 %v16918_v62 }
 0xa3b   :  { %14628 = vmatpush3.bf16.msra.mxu0 %v16827_v42  ;;  %v11799_v42 = vld [vmem:[#allocation4 + $0x68] sm:$0xff] }
 0xa3c   :  { %14629 = vmatprep.subr.bf16.mxu0 %v22137_v36  ;;  %v14757_v63 = vpack.c.bf16 %v11799_v42, %v11798_v56 }
 0xa3e   :  { %14758 = vmatpush3.bf16.msra.mxu1 %v14757_v63 }
 0xa3f   :  { %14630 = vmatpush3.bf16.msra.mxu0 %v16828_v7  ;;  %v6453_v7 = vmax.f32 %v20336_v5, 0.0  ;;  %14759 = vmatprep.subr.bf16.mxu1 %v16918_v62  ;;  %v16850_v5 = vld [vmem:[%s21776_s5 + $0xd98] sm:$0xff]  }
 0xa40   :  { %14631 = vmatprep.subr.bf16.mxu0 %v22137_v36 }
 0xa43   :  { %14632 = vmatpush3.bf16.msra.mxu0 %v16829_v29  ;;  %v11439_v29 = vsel %vm6703_vm6, %v16848_v53, 0 }
 0xa44   :  { %14633 = vmatprep.subr.bf16.mxu0 %v22137_v36 }
 0xa47   :  { %14634 = vmatpush3.bf16.msra.mxu0 %v10650_v55  ;;  %v6513_v55 = vpack.c.bf16 %v6453_v7, %v6453_v7 }
 0xa48   :  { %14639 = vmatprep.subr.bf16.mxu0 %v22137_v36 }
 0xa4a   :  { %14636 = vmatmul.mubr.msk.bf16.vlgmr.msra.gmra.mrb[60].mxu0 %vm6699_vm7, %v6504_v33  ;;  %v16852_v33 = vld [vmem:[%s21776_s5 + $0xda8] sm:$0xff]  }
 0xa4b   :  { %14640 = vmatpush3.bf16.msra.mxu0 %v16831_v41  ;;  %14651 = vmatprep.mubr.msk.bf16.mxu0 %vm16917_vm5, %v22137_v36  ;;  %v16851_v41 = vld [vmem:[%s21776_s5 + $0xda0] sm:$0xff]  }
 0xa4c   :  { %14641 = vmatprep.subr.bf16.mxu0 %v22137_v36 }
 0xa4f   :  { %14642 = vmatpush3.bf16.msra.mxu0 %v16832_v48  ;;  %v16853_v48 = vld [vmem:[%s21776_s5 + $0xdb0] sm:$0xff]  }
 0xa50   :  { %14643 = vmatprep.subr.bf16.mxu0 %v22137_v36 }
 0xa53   :  { %v14353_v4 = vpop.f32.mrb[132].mxu1  ;;  %14644 = vmatpush3.bf16.msra.mxu0 %v16833_v25  ;;  %v16854_v25 = vld [vmem:[%s21776_s5 + $0xdb8] sm:$0x7f]  }
 0xa54   :  { %v14354_v32 = vpop.f32.mrb[133].mxu1  ;;  %14645 = vmatprep.subr.bf16.mxu0 %v22137_v36 }
 0xa55   :  { %v21657_v11 = vadd.f32 %v14354_v32, %v14353_v4  ;;  %v14356_v6 = vpop.f32.mrb[134].mxu1  ;;  %v6456_v4 = vmax.f32 %v20400_v18, 0.0  ;;  %v11702_v32 = vsel %vm6703_vm6, %v16854_v25, 0 }
 0xa56   :  { %v14357_v52 = vpop.f32.mrb[135].mxu1 }
 0xa57   :  { %14646 = vmatpush3.bf16.msra.mxu0 %v16834_v31  ;;  %v6516_v31 = vpack.c.bf16 %v6456_v4, %v6456_v4 }
 0xa58   :  { %14647 = vmatprep.subr.bf16.mxu0 %v22137_v36 }
 0xa5b   :  { %14648 = vmatpush3.bf16.msra.mxu0 %v16835_v9 }
 0xa5c   :  { %14649 = vmatprep.subr.bf16.mxu0 %v22137_v36 }
 0xa5f   :  { %14650 = vmatpush3.bf16.msra.mxu0 %v10913_v44 }
 0xa60   :  { %14655 = vmatprep.subr.bf16.mxu0 %v22137_v36 }
 0xa62   :  { %14652 = vmatmul.mubr.msk.bf16.vlgmr.msra.gmra.mrb[60].mxu0 %vm6699_vm7, %v6507_v58 }
 0xa63   :  { %14656 = vmatpush3.bf16.msra.mxu0 %v16837_v37  ;;  %14667 = vmatprep.mubr.msk.bf16.mxu0 %vm16917_vm5, %v22137_v36 }
 0xa64   :  { %14657 = vmatprep.subr.bf16.mxu0 %v22137_v36 }
 0xa67   :  { %14658 = vmatpush3.bf16.msra.mxu0 %v16838_v21 }
 0xa68   :  { %14659 = vmatprep.subr.bf16.mxu0 %v22137_v36 }
 0xa6b   :  { %14660 = vmatpush3.bf16.msra.mxu0 %v16839_v10  ;;  %v11800_v10 = vld [vmem:[#allocation4 + $0x70] sm:$0xff] }
 0xa6c   :  { %14661 = vmatprep.subr.bf16.mxu0 %v22137_v36 }
 0xa6f   :  { %14662 = vmatpush3.bf16.msra.mxu0 %v16840_v50  ;;  %v11801_v50 = vld [vmem:[#allocation4 + $0x78] sm:$0xff] }
 0xa70   :  { %14663 = vmatprep.subr.bf16.mxu0 %v22137_v36 }
 0xa73   :  { %14664 = vmatpush3.bf16.msra.mxu0 %v16841_v47  ;;  %v14760_v47 = vpack.c.bf16 %v11801_v50, %v11800_v10 }
 0xa74   :  { %14665 = vmatprep.subr.bf16.mxu0 %v22137_v36 }
 0xa75   :  { %14761 = vmatpush3.bf16.msra.mxu1 %v14760_v47 }
 0xa77   :  { %14666 = vmatpush3.bf16.msra.mxu0 %v11176_v28 }
 0xa78   :  { %14671 = vmatprep.subr.bf16.mxu0 %v22137_v36 }
 0xa7a   :  { %14668 = vmatmul.mubr.msk.bf16.vlgmr.msra.gmra.mrb[60].mxu0 %vm6699_vm7, %v6510_v8 }
 0xa7b   :  { %14672 = vmatpush3.bf16.msra.mxu0 %v16843_v17  ;;  %14683 = vmatprep.mubr.msk.bf16.mxu0 %vm16917_vm5, %v22137_v36 }
 0xa7c   :  { %14673 = vmatprep.subr.bf16.mxu0 %v22137_v36 }
 0xa7f   :  { %14674 = vmatpush3.bf16.msra.mxu0 %v16844_v38 }
 0xa80   :  { %14675 = vmatprep.subr.bf16.mxu0 %v22137_v36 }
 0xa83   :  { %14676 = vmatpush3.bf16.msra.mxu0 %v16845_v23 }
 0xa84   :  { %14677 = vmatprep.subr.bf16.mxu0 %v22137_v36 }
 0xa87   :  { %14678 = vmatpush3.bf16.msra.mxu0 %v16846_v24 }
 0xa88   :  { %14679 = vmatprep.subr.bf16.mxu0 %v22137_v36 }
 0xa8b   :  { %14680 = vmatpush3.bf16.msra.mxu0 %v16847_v45 }
 0xa8c   :  { %14681 = vmatprep.subr.bf16.mxu0 %v22137_v36 }
 0xa8f   :  { %14682 = vmatpush3.bf16.msra.mxu0 %v11439_v29 }
 0xa90   :  { %14687 = vmatprep.subr.bf16.mxu0 %v22137_v36 }
 0xa92   :  { %14684 = vmatmul.mubr.msk.bf16.vlgmr.msra.gmra.mrb[60].mxu0 %vm6699_vm7, %v6513_v55 }
 0xa93   :  { %14688 = vmatpush3.bf16.msra.mxu0 %v16849_v30  ;;  %14699 = vmatprep.mubr.msk.bf16.mxu0 %vm16917_vm5, %v22137_v36 }
 0xa94   :  { %14689 = vmatprep.subr.bf16.mxu0 %v22137_v36 }
 0xa97   :  { %14690 = vmatpush3.bf16.msra.mxu0 %v16850_v5 }
 0xa98   :  { %14691 = vmatprep.subr.bf16.mxu0 %v22137_v36 }
 0xa9b   :  { %14692 = vmatpush3.bf16.msra.mxu0 %v16851_v41 }
 0xa9c   :  { %14693 = vmatprep.subr.bf16.mxu0 %v22137_v36 }
 0xa9f   :  { %14694 = vmatpush3.bf16.msra.mxu0 %v16852_v33 }
 0xaa0   :  { %14695 = vmatprep.subr.bf16.mxu0 %v22137_v36 }
 0xaa3   :  { %14696 = vmatpush3.bf16.msra.mxu0 %v16853_v48 }
 0xaa4   :  { %14697 = vmatprep.subr.bf16.mxu0 %v22137_v36 }
 0xaa7   :  { %14698 = vmatpush3.bf16.msra.mxu0 %v11702_v32 }
 0xaaa   :  { %14700 = vmatmul.mubr.msk.bf16.vlgmr.msra.gmra.mrb[60].mxu0 %vm6699_vm7, %v6516_v31 }
 0xaed   :  { %v14208_v6 = vpop.f32.mrb[88].mxu0 }
 0xaee   :  { %v14209_v52 = vpop.f32.mrb[89].mxu0 }
 0xaef   :  { %v14210_v9 = vadd.f32 %v14209_v52, %v14208_v6  ;;  %v14211_v16 = vpop.f32.mrb[90].mxu0 }
 0xaf0   :  { %v14212_v60 = vpop.f32.mrb[91].mxu0 }
 0xaf1   :  { %v14898_v44 = vadd.f32 %v21591_v39, %v14210_v9 }
 0xaf3   :  { %v14899_v37 = vadd.f32 %v14898_v44, %v21470_v13  ;;  %v22235_v13 = vlaneseq }
 0xaf5   :  { %v14900_v58 = vadd.f32 %v14899_v37, %v21513_v26  ;;  %v11880_v34 = vand.u32 127, %v22235_v13  ;;  %v13735_v26 = vld [vmem:[%s21779_s8] ss:$0 sm:$0xff] }
 0xaf7   :  { %v14901_v18 = vadd.f32 %v14900_v58, %v21570_v14  ;;  %vm11881_vm8 = vcmp.lt.s32.totalorder %v11880_v34, 100 }
 0xaf9   :  { %v14902_v36 = vadd.f32 %v14901_v18, %v21618_v43 }
 0xafb   :  { %v14903_v21 = vadd.f32 %v14902_v36, %v21657_v11 }
 0xb7d   :  { %v11778_v1 = vpop.f32.mrb[60].mxu0 }
 0xb7e   :  { %v14904_v59 = vadd.f32 %v14903_v21, %v11778_v1  ;;  %v14701_v28 = vpop.f32.mrb[61].mxu0 }
 0xb7f   :  { %v11781_v15 = vpop.f32.mrb[62].mxu0 }
 0xb80   :  { %v11785_v49 = vmax.f32 %v14904_v59, 0.0  ;;  %v14702_v39 = vpop.f32.mrb[63].mxu0 }
 0xb82   :  { %14736 = vmatmul.mubr.f32.vlgmr.msra.gmra.mrb[136].mxu1 %v11785_v49 }
 0xc55   :  { %v11875_v14 = vpop.f32.mrb[136].mxu1 }
 0xc56   :  { %v11876_v43 = vadd.f32 %v13735_v26, %v11875_v14  ;;  %v14737_v11 = vpop.f32.mrb[137].mxu1 }
 0xc58   :  { %v11882_v62 = vsel %vm11881_vm8, %v11876_v43, -1e+30 }
 0xc59   :  { %11883 = vmax.xlane.f32.xlu0 %v11882_v62 }
 0xce6   :  { %v11884_v35 = vpop.xlane.xlu0 %11883 }
 0xce7   :  { %v11885_v2 = vsub.f32 %v11882_v62, %v11884_v35 }
 0xce9   :  { %v11886_v17 = vmul.f32 1.442695, %v11885_v2 }
 0xceb   :  { %16855 = vpow2.f32 %v11886_v17 }
 0xcf5   :  { %v16856_v8 = vpop.eup %16855 }
 0xcf6   :  { %11888 = vadd.xlane.f32.xlu1 %v16856_v8 }
 0xd83   :  { %v11889_v27 = vpop.xlane.xlu1 %11888 }
 0xd84   :  { %16857 = vrcp.f32 %v11889_v27 }
 0xd8e   :  { %v16858_v51 = vpop.eup %16857 }
 0xd8f   :  { %v11891_v12 = vmul.f32 %v16858_v51, %v16856_v8 }
 0xd91   :  { %11892 = vst [vmem:[%s21780_s9] sm:$0xff] %v11891_v12 }
 0xd92   :  { %11897 = vsyncpa [#allocation3], 1 }
 0xd93   :  { %11898 = vsyncpa [#allocation5], 1 }

</bundles_post_ra>
